<compile_context>
chip_gen: v7x
topology: tpu7x:2x2x1
jax: 0.10.0
libtpu: 0.0.40
codegen_flags: <defaults>
</compile_context>

<pallas_src>
import functools
import math

import jax
import jax.numpy as jnp
from jax import lax
from jax.experimental import pallas as pl
from jax.experimental.pallas import tpu as pltpu

_BN_EPS = 1e-5
_BN_SCALE = 1.0 / math.sqrt(1.0 + _BN_EPS)   # BN with running mean=0, var=1
_LANE = 128


def _pick_tile(n, candidates=(512, 256, 128)):
    for c in candidates:
        if n % c == 0:
            return c
    return n


def _cp(dim_sems, vmem_bytes):
    limit = int(min(48 * 2**20, max(8 * 2**20, vmem_bytes)))
    return pltpu.CompilerParams(dimension_semantics=dim_sems,
                                vmem_limit_bytes=limit)


# ----------------------------------------------------------------------------
# Kernel A: pairwise squared distances via augmented-coordinate matmul
# ----------------------------------------------------------------------------
def _sqdist_kernel(a_ref, b_ref, o_ref):
    # a: [8, TM] cols = [x, y, z, |a|^2, 1, 0, 0, 0]^T     (lane-dense in N)
    # b: [8, TMM] cols = [-2x', -2y', -2z', 1, |b'|^2, 0,0,0]^T
    # a^T b = |a|^2 + |b'|^2 - 2 a.b'  (exactly the torch formula)
    o_ref[...] = lax.dot_general(a_ref[...], b_ref[...],
                                 (((0,), (0,)), ((), ())),
                                 preferred_element_type=jnp.float32)


def square_distance_cf(src_cf, dst_cf):
    """src_cf: [B,3,N], dst_cf: [B,3,M] (channels-first) -> [B,N,M] sq. dist."""
    B, _, N = src_cf.shape
    M = dst_cf.shape[2]
    src = src_cf.astype(jnp.float32)
    dst = dst_cf.astype(jnp.float32)
    a2 = jnp.sum(src * src, axis=1, keepdims=True)                  # [B,1,N]
    b2 = jnp.sum(dst * dst, axis=1, keepdims=True)                  # [B,1,M]
    a_aug = jnp.concatenate(
        [src, a2, jnp.ones((B, 1, N), jnp.float32),
         jnp.zeros((B, 3, N), jnp.float32)], axis=1)                # [B,8,N]
    b_aug = jnp.concatenate(
        [-2.0 * dst, jnp.ones((B, 1, M), jnp.float32), b2,
         jnp.zeros((B, 3, M), jnp.float32)], axis=1)                # [B,8,M]
    TM = _pick_tile(N)
    TMM = _pick_tile(M)
    blocks = (8 * TM + 8 * TMM + TM * TMM) * 4
    return pl.pallas_call(
        _sqdist_kernel,
        out_shape=jax.ShapeDtypeStruct((B, N, M), jnp.float32),
        grid=(B, N // TM, M // TMM),
        in_specs=[
            pl.BlockSpec((None, 8, TM), lambda b, i, j: (b, 0, i)),
            pl.BlockSpec((None, 8, TMM), lambda b, i, j: (b, 0, j)),
        ],
        out_specs=pl.BlockSpec((None, TM, TMM), lambda b, i, j: (b, i, j)),
        compiler_params=_cp(("parallel", "parallel", "parallel"),
                            2 * blocks + (2 << 20)),
    )(a_aug, b_aug)


# ----------------------------------------------------------------------------
# Kernel B1: NonLocal attention on the sparse points (per batch)
# ----------------------------------------------------------------------------
def _attention_kernel(p1_ref, p2_ref, wq_ref, wkv_ref, wnl_ref, o_ref):
    b_c1 = wq_ref.shape[0]
    p2 = p2_ref[...]                                                 # [C2,S] f32
    nlq = jnp.dot(wq_ref[...], p2.astype(jnp.bfloat16),
                  preferred_element_type=jnp.float32)                # [b,S]
    nlkv = jnp.dot(wkv_ref[...], p1_ref[...],
                   preferred_element_type=jnp.float32)               # [2b,N]
    nlk = nlkv[:b_c1, :]
    nlv = nlkv[b_c1:, :]
    scores = lax.dot_general(                                        # [S,N]
        nlq.astype(jnp.bfloat16), nlk.astype(jnp.bfloat16),
        (((0,), (0,)), ((), ())), preferred_element_type=jnp.float32)
    scores = scores * (1.0 / math.sqrt(b_c1))
    m = jnp.max(scores, axis=-1, keepdims=True)
    p = jnp.exp(scores - m)
    denom = jnp.sum(p, axis=-1, keepdims=True)
    p = p * pl.reciprocal(denom, approx=True)
    nl = lax.dot_general(                                            # [S,b]
        p.astype(jnp.bfloat16), nlv.astype(jnp.bfloat16),
        (((1,), (1,)), ((), ())), preferred_element_type=jnp.float32)
    nlfeat = lax.dot_general(                                        # [C2,S]
        wnl_ref[...], nl.astype(jnp.bfloat16),
        (((1,), (1,)), ((), ())), preferred_element_type=jnp.float32)
    o_ref[...] = (p2 + jnp.maximum(nlfeat, 0.0)).astype(o_ref.dtype)


def nonlocal_attention(points1_bf, points2, wq, wkv, wnl):
    """points1:[B,C1,N] bf16, points2:[B,C2,S] -> updated p2 [B,C2,S] bf16."""
    B, C1, N = points1_bf.shape
    C2, S = points2.shape[1], points2.shape[2]
    blocks = (C1 * N * 2 + C2 * S * 4 + C2 * S * 2 +
              (wq.size + wkv.size + wnl.size) * 2)
    temps = 3 * S * N * 4                     # scores / exp / probs
    # TODO(synk): at very large N, tile this over N with an online softmax.
    return pl.pallas_call(
        _attention_kernel,
        out_shape=jax.ShapeDtypeStruct((B, C2, S), jnp.bfloat16),
        grid=(B,),
        in_specs=[
            pl.BlockSpec((None, C1, N), lambda b: (b, 0, 0)),
            pl.BlockSpec((None, C2, S), lambda b: (b, 0, 0)),
            pl.BlockSpec(wq.shape, lambda b: (0, 0)),
            pl.BlockSpec(wkv.shape, lambda b: (0, 0)),
            pl.BlockSpec(wnl.shape, lambda b: (0, 0)),
        ],
        out_specs=pl.BlockSpec((None, C2, S), lambda b: (b, 0, 0)),
        compiler_params=_cp(("parallel",), 2 * blocks + temps + (2 << 20)),
    )(points1_bf, points2.astype(jnp.float32),
      wq.astype(jnp.bfloat16), wkv.astype(jnp.bfloat16),
      wnl.astype(jnp.bfloat16))


# ----------------------------------------------------------------------------
# Kernel B2: inverse-distance interpolation + l_mlp (pre-gather), tiled over N
# ----------------------------------------------------------------------------
def _interp_lmlp_kernel(n_l, *refs):
    p2_ref, wd_ref = refs[0], refs[1]
    layers = [(refs[2 + 2 * j], refs[3 + 2 * j]) for j in range(n_l)]
    o_ref = refs[2 + 2 * n_l]
    # interpolated[c, n] = sum_s p2[c, s] * Wd[n, s]   (bf16 x bf16, f32 acc)
    h = lax.dot_general(p2_ref[...], wd_ref[...], (((1,), (1,)), ((), ())),
                        preferred_element_type=jnp.float32)
    # l_mlp 1x1 convs commute with the later neighbour gather, so apply them
    # once per point here instead of once per (point, neighbour).
    for (w_ref, b_ref) in layers:
        h = jnp.dot(w_ref[...], h.astype(jnp.bfloat16),
                    preferred_element_type=jnp.float32)
        h = jnp.maximum(h + b_ref[...], 0.0)
    o_ref[...] = h.astype(o_ref.dtype)


def interpolate_lmlp(p2_src, w_dense, l_wb):
    """p2_src:[B,C2,S] bf16, w_dense:[B,N,S] bf16 -> l_mlp(interp) [B,Cl,N] bf16."""
    B, C2, S = p2_src.shape
    N = w_dense.shape[1]
    Cl = l_wb[-1][0].shape[0]
    n_l = len(l_wb)
    TN = _pick_tile(N)

    inputs = [p2_src, w_dense]
    in_specs = [pl.BlockSpec((None, C2, S), lambda b, i: (b, 0, 0)),
                pl.BlockSpec((None, TN, S), lambda b, i: (b, i, 0))]
    wbytes = 0
    for (w, b) in l_wb:
        wb_ = w.astype(jnp.bfloat16)
        bb = b.reshape(-1, 1).astype(jnp.float32)
        inputs.extend([wb_, bb])
        in_specs.append(pl.BlockSpec(wb_.shape, lambda b_, i: (0, 0)))
        in_specs.append(pl.BlockSpec(bb.shape, lambda b_, i: (0, 0)))
        wbytes += wb_.size * 2 + bb.size * 4

    blocks = C2 * S * 2 + TN * S * 2 + Cl * TN * 2 + wbytes
    temps = 4 * max(C2, Cl) * TN * 4
    kernel = functools.partial(_interp_lmlp_kernel, n_l)
    return pl.pallas_call(
        kernel,
        out_shape=jax.ShapeDtypeStruct((B, Cl, N), jnp.bfloat16),
        grid=(B, N // TN),
        in_specs=in_specs,
        out_specs=pl.BlockSpec((None, Cl, TN), lambda b, i: (b, 0, i)),
        compiler_params=_cp(("parallel", "parallel"),
                            2 * blocks + temps + (2 << 20)),
    )(*inputs)


# ----------------------------------------------------------------------------
# Kernel C: fused local head (weight_net + chunked bilinear + pc_conv +
#           concat-with-points1 + final mlp convs), tiled over points
# ----------------------------------------------------------------------------
def _local_head_kernel(n_f, *refs):
    (gfeat_ref, rel_ref, p1_ref, wwn_ref, bwn_ref, wpc_ref, bpc_ref,
     wfa_ref, wfb_ref, bf1_ref) = refs[:10]
    pos = 10
    f_rest = [(refs[pos + 2 * j], refs[pos + 2 * j + 1]) for j in range(n_f - 1)]
    pos += 2 * (n_f - 1)
    o_ref, wk_sc, gf_sc = refs[pos], refs[pos + 1], refs[pos + 2]

    K = gfeat_ref.shape[0]
    Cl = gfeat_ref.shape[1]
    TN = o_ref.shape[-1]
    D = bwn_ref.shape[0]
    NC = wpc_ref.shape[0]
    Dc = D // NC
    LN = wk_sc.shape[-1]

    # Hoisted loop-invariant weight loads (Python loops below are unrolled, so
    # reading these inside would re-emit the loads / broadcasts every iter).
    wwn = wwn_ref[...]
    bwn = jnp.broadcast_to(bwn_ref[...], (D, LN))
    wpc = wpc_ref[...]
    bpc = bpc_ref[...]
    wfa = wfa_ref[...]
    wfb = wfb_ref[...]
    bf1 = bf1_ref[...]
    f_rest_w = [(w_ref[...], b_ref[...]) for (w_ref, b_ref) in f_rest]

    for j in range(TN // LN):
        lsl = pl.ds(j * LN, LN)
        # Phase 1: weight_net per neighbour + bf16->f32 feature upcast, staged
        # into VMEM scratch so the hot bilinear loop below is pure FMA.
        for k in range(K):
            wk = jnp.dot(wwn, rel_ref[k, :, lsl],
                         preferred_element_type=jnp.float32)
            wk_sc[k] = jnp.maximum(wk + bwn, 0.0)
            gf_sc[k] = gfeat_ref[k, :, lsl].astype(jnp.float32)

        # Phase 2: per-point bilinear form sum_k h_k (x) w_k, with D chunked so
        # the live accumulator is only [Dc, Cl, LN]; the matching slice of the
        # pc_conv contraction is fused per chunk (MXU).
        pc = jnp.zeros((bpc.shape[0], LN), jnp.float32)
        for c in range(NC):
            m = jnp.zeros((Dc, Cl, LN), jnp.float32)
            for k in range(K):
                w_k = wk_sc[k, pl.ds(c * Dc, Dc), :]             # [Dc, LN]
                g_k = gf_sc[k]                                   # [Cl, LN]
                m = m + w_k[:, None, :] * g_k[None, :, :]
            pc = pc + jnp.dot(wpc[c],
                              m.reshape(Dc * Cl, LN).astype(jnp.bfloat16),
                              preferred_element_type=jnp.float32)
        pc = jnp.maximum(pc + bpc, 0.0)

        # concat([pc, points1]) -> first final conv as a split matmul, then
        # the remaining 1x1 convs.
        y = (jnp.dot(wfa, pc.astype(jnp.bfloat16),
                     preferred_element_type=jnp.float32)
             + jnp.dot(wfb, p1_ref[:, lsl],
                       preferred_element_type=jnp.float32))
        y = jnp.maximum(y + bf1, 0.0)
        for (w, b) in f_rest_w:
            y = jnp.maximum(
                jnp.dot(w, y.astype(jnp.bfloat16),
                        preferred_element_type=jnp.float32) + b, 0.0)
        o_ref[:, lsl] = y


def local_head(gfeat_kf, rel_kf, p1_f, wn_wb, pc_w3, pc_b, f_wb):
    """gfeat_kf:[K,Cl,BNp] bf16, rel_kf:[K,8,BNp] bf16, p1_f:[C1,BNp] bf16
       -> [Cout, BNp] f32 (BNp is a multiple of 128)."""
    K, Cl, BNp = gfeat_kf.shape
    Crel = rel_kf.shape[1]
    C1 = p1_f.shape[0]
    wn_w, wn_b = wn_wb
    D = wn_w.shape[0]
    Cl_out = pc_w3.shape[0]
    Cout = f_wb[-1][0].shape[0]
    n_f = len(f_wb)

    TN = _pick_tile(BNp)
    LN = min(_LANE, TN)
    Dc = math.gcd(D, 8)
    NC = D // Dc

    # pc_conv weights pre-chunked along the weight_net channel (d) axis so the
    # kernel contracts [Cl_out, Dc*Cl] x [Dc*Cl, LN] per chunk; columns ordered
    # (d_local major, c minor) to match the [Dc, Cl, LN] chunk accumulator.
    wpc_chunks = (pc_w3.reshape(Cl_out, NC, Dc, Cl)
                  .transpose(1, 0, 2, 3)
                  .reshape(NC, Cl_out, Dc * Cl).astype(jnp.bfloat16))

    # first final conv split into the pc-feature and points1 halves so no
    # activation concatenation is ever materialized.
    wf1, bf1 = f_wb[0]
    wfa = wf1[:, :Cl_out].astype(jnp.bfloat16)
    wfb = wf1[:, Cl_out:].astype(jnp.bfloat16)

    inputs = [gfeat_kf, rel_kf, p1_f,
              wn_w.astype(jnp.bfloat16),
              wn_b.reshape(-1, 1).astype(jnp.float32),
              wpc_chunks,
              pc_b.reshape(-1, 1).astype(jnp.float32),
              wfa, wfb, bf1.reshape(-1, 1).astype(jnp.float32)]
    in_specs = [
        pl.BlockSpec((K, Cl, TN), lambda i: (0, 0, i)),
        pl.BlockSpec((K, Crel, TN), lambda i: (0, 0, i)),
        pl.BlockSpec((C1, TN), lambda i: (0, i)),
    ]
    for arr in inputs[3:]:
        in_specs.append(
            pl.BlockSpec(arr.shape, lambda i, _nd=arr.ndim: (0,) * _nd))
    for (w, b) in f_wb[1:]:
        wb_ = w.astype(jnp.bfloat16)
        bb = b.reshape(-1, 1).astype(jnp.float32)
        inputs.extend([wb_, bb])
        in_specs.append(pl.BlockSpec(wb_.shape, lambda i: (0, 0)))
        in_specs.append(pl.BlockSpec(bb.shape, lambda i: (0, 0)))

    blocks = (K * Cl * TN * 2 + K * Crel * TN * 2 + C1 * TN * 2
              + Cout * TN * 4)
    scratch = K * (D + Cl) * LN * 4
    temps = (Dc * Cl + 4 * Cl_out) * LN * 4
    kernel = functools.partial(_local_head_kernel, n_f)
    return pl.pallas_call(
        kernel,
        out_shape=jax.ShapeDtypeStruct((Cout, BNp), jnp.float32),
        grid=(BNp // TN,),
        in_specs=in_specs,
        out_specs=pl.BlockSpec((Cout, TN), lambda i: (0, i)),
        scratch_shapes=[pltpu.VMEM((K, D, LN), jnp.float32),
                        pltpu.VMEM((K, Cl, LN), jnp.float32)],
        compiler_params=_cp(("parallel",),
                            2 * blocks + scratch + temps + (2 << 20)),
    )(*inputs)


# ----------------------------------------------------------------------------
# Parameters (deterministic synthetic init) + forward glue
# ----------------------------------------------------------------------------
def init_params(key, in_channel1, in_channel2, b_c1, mlp_list, l_mlp_list):
    keys = iter(jax.random.split(key, 64))

    def conv_w(cout, cin, scale=0.1):
        return jax.random.normal(next(keys), (cout, cin), jnp.float32) * scale

    def conv_b(cout, scale=0.1):
        return jax.random.normal(next(keys), (cout,), jnp.float32) * scale

    p = {}
    p['nlq_w'] = conv_w(b_c1, in_channel2)        # Conv1d(in_c2, b_c1, 1, bias=False)
    p['nlkv_w'] = conv_w(2 * b_c1, in_channel1)   # Conv1d(in_c1, 2*b_c1, 1, bias=False)
    p['nl_w'] = conv_w(in_channel2, b_c1)         # Conv1d(b_c1, in_c2, 1, bias=False)
    p['wn_w'] = conv_w(32, 3)                     # Conv2d(3, 32, 1)
    p['wn_b'] = conv_b(32)
    p['l_convs'] = []
    last = in_channel2
    for oc in l_mlp_list:
        p['l_convs'].append((conv_w(oc, last), conv_b(oc)))
        last = oc
    Cl = l_mlp_list[-1]
    # pc_conv: Conv2d(32, Cl, [1, Cl]) -> weight [Cl, 32(cin=d), Cl(kW=c)]
    p['pc_w'] = jax.random.normal(next(keys), (Cl, 32, Cl), jnp.float32) * 0.1
    p['pc_b'] = conv_b(Cl)
    p['convs'] = []
    last = Cl + in_channel1
    for oc in mlp_list:
        p['convs'].append((conv_w(oc, last), conv_b(oc)))
        last = oc
    return p


def point_asnl_decoding(params, xyz1, xyz2, points1, points2, nsample, b_c1,
                        NL=True):
    """xyz1:[B,3,N] xyz2:[B,3,S] points1:[B,C1,N] points2:[B,C2,S] -> [B,mlp[-1],N]."""
    B, _, N = xyz1.shape
    C1 = points1.shape[1]
    C2, S = points2.shape[1], points2.shape[2]
    K = nsample

    points1_bf = points1.astype(jnp.bfloat16)

    # ---- interpolation weights from the K nearest sparse points ----
    dists = square_distance_cf(xyz1, xyz2)                      # [B,N,S]
    # TODO(synk): fuse a streaming top-K into the distance kernel to avoid the
    #             full [B,N,S] / [B,N,N] HBM round-trips at real point counts.
    neg_top, idx = lax.top_k(-dists, K)                         # K smallest
    d_k = jnp.maximum(-neg_top, 0.0)                            # clamp cancellation noise
    dist_recip = 1.0 / (d_k + 1e-8)
    weight = dist_recip / jnp.sum(dist_recip, axis=-1, keepdims=True)  # [B,N,K]
    b_ar = jnp.arange(B)[:, None, None]
    n_ar = jnp.arange(N)[None, :, None]
    # TODO(synk): replace this dense scatter with a scalar-prefetch gather
    #             kernel (keeps p2 resident, reads only [N,K] idx/weights).
    w_dense = (jnp.zeros((B, N, S), jnp.float32)
               .at[b_ar, n_ar, idx].add(weight)).astype(jnp.bfloat16)

    # ---- NonLocal branch on the sparse points ----
    if NL:
        wnl_folded = params['nl_w'] * _BN_SCALE                 # BN (no bias) folded
        p2_src = nonlocal_attention(points1_bf, points2, params['nlq_w'],
                                    params['nlkv_w'], wnl_folded)  # [B,C2,S] bf16
    else:
        p2_src = points2.astype(jnp.bfloat16)

    # ---- fused inverse-distance interpolation + l_mlp (pre-gather) ----
    l_wb = [(w * _BN_SCALE, b * _BN_SCALE) for (w, b) in params['l_convs']]
    feat_l = interpolate_lmlp(p2_src, w_dense, l_wb)            # [B,Cl,N] bf16
    Cl = l_wb[-1][0].shape[0]

    # ---- local grouping (K nearest neighbours of the dense points) ----
    self_d = square_distance_cf(xyz1, xyz1)                     # [B,N,N]
    _, g_idx = lax.top_k(-self_d, K)                            # [B,N,K]
    xyz1_t = jnp.transpose(xyz1, (0, 2, 1)).astype(jnp.float32)  # [B,N,3]
    grouped_xyz = jnp.take_along_axis(xyz1_t[:, None, :, :],
                                      g_idx[:, :, :, None], axis=2)  # [B,N,K,3]
    rel = grouped_xyz - xyz1_t[:, :, None, :]                   # [B,N,K,3]
    rel_kf = jnp.transpose(rel, (2, 3, 0, 1)).reshape(K, 3, B * N)
    rel_kf = jnp.pad(rel_kf, ((0, 0), (0, 5), (0, 0))).astype(jnp.bfloat16)

    gfeat = jnp.take_along_axis(feat_l[:, :, None, :],
                                g_idx[:, None, :, :], axis=3)   # [B,Cl,N,K]
    gfeat_kf = jnp.transpose(gfeat, (3, 1, 0, 2)).reshape(K, Cl, B * N)

    p1_f = jnp.transpose(points1_bf, (1, 0, 2)).reshape(C1, B * N)

    # pad the folded (batch, point) axis to a multiple of 128 lanes so the
    # local-head tiles are always lane-dense (no masked stores / giant tile).
    BN = B * N
    BN_pad = ((BN + _LANE - 1) // _LANE) * _LANE
    pad = BN_pad - BN
    if pad:
        gfeat_kf = jnp.pad(gfeat_kf, ((0, 0), (0, 0), (0, pad)))
        rel_kf = jnp.pad(rel_kf, ((0, 0), (0, 0), (0, pad)))
        p1_f = jnp.pad(p1_f, ((0, 0), (0, pad)))

    # ---- fold BatchNorm (default running stats) into weights / biases ----
    wn_w = jnp.pad(params['wn_w'], ((0, 0), (0, 5))) * _BN_SCALE    # [32,8]
    wn_b = params['wn_b'] * _BN_SCALE
    pc_w3 = params['pc_w'] * _BN_SCALE                              # [Cl,32,Cl]
    pc_b = params['pc_b'] * _BN_SCALE
    f_wb = [(w * _BN_SCALE, b * _BN_SCALE) for (w, b) in params['convs']]

    out_flat = local_head(gfeat_kf, rel_kf, p1_f, (wn_w, wn_b), pc_w3, pc_b,
                          f_wb)                                 # [Cout,BN_pad]
    Cout = f_wb[-1][0].shape[0]
    out_flat = out_flat[:, :BN]
    return jnp.transpose(out_flat.reshape(Cout, B, N), (1, 0, 2))


# ----------------------------------------------------------------------------
if __name__ == "__main__":
    B, N, S = 2, 64, 16
    C1, C2 = 16, 32           # in_channel1, in_channel2
    b_c1 = 16
    nsample = 8
    l_mlp_list = [32, 32]
    mlp_list = [64, 64]

    key = jax.random.PRNGKey(0)
    k_xyz1, k_xyz2, k_p1, k_p2, k_params = jax.random.split(key, 5)
    xyz1 = jax.random.normal(k_xyz1, (B, 3, N), jnp.float32)
    xyz2 = jax.random.normal(k_xyz2, (B, 3, S), jnp.float32)
    points1 = jax.random.normal(k_p1, (B, C1, N), jnp.float32)
    points2 = jax.random.normal(k_p2, (B, C2, S), jnp.float32)

    params = init_params(k_params, C1, C2, b_c1, mlp_list, l_mlp_list)

    fwd = jax.jit(lambda p, a, b, c, d: point_asnl_decoding(
        p, a, b, c, d, nsample=nsample, b_c1=b_c1, NL=True))
    out = fwd(params, xyz1, xyz2, points1, points2)
    out = jax.block_until_ready(out)
    assert out.shape == (B, mlp_list[-1], N), out.shape
    assert bool(jnp.all(jnp.isfinite(out)))
    print("KERNEL_OK")
</pallas_src>

<mosaic_0001>
module attributes {stable_mosaic.version = 11 : i64} {
  func.func private @main(%arg0: i32) attributes {dimension_semantics = [#tpu.dimension_semantics<core_parallel>], iteration_bounds = array<i64: 2>, tpu.core_type = #tpu.core_type<sc_scalar_subcore>, window_params = []} {
    return
  }
}

module attributes {stable_mosaic.version = 11 : i64} {
  func.func private @main(%arg0: i32) attributes {dimension_semantics = [#tpu.dimension_semantics<core_parallel>], iteration_bounds = array<i64: 2>, tpu.core_type = #tpu.core_type<sc_scalar_subcore>, window_params = []} {
    return
  }
}

module attributes {stable_mosaic.version = 11 : i64} {
  func.func @_sqdist_kernel(%arg0: i32, %arg1: i32, %arg2: i32, %arg3: memref<1x8x64xf32, #tpu.memory_space<vmem>>, %arg4: memref<1x8x64xf32, #tpu.memory_space<vmem>>, %arg5: memref<1x64x64xf32, #tpu.memory_space<vmem>>) attributes {dimension_semantics = [#tpu.dimension_semantics<parallel>, #tpu.dimension_semantics<parallel>, #tpu.dimension_semantics<parallel>], iteration_bounds = array<i64: 2, 1, 1>, scalar_prefetch = 0 : i64, scratch_operands = 0 : i64, tpu.core_type = #tpu.core_type<tc>, window_params = [{transform_indices = @transform_0, window_bounds = array<i64: 1, 8, 64>}, {transform_indices = @transform_1, window_bounds = array<i64: 1, 8, 64>}, {transform_indices = @transform_2, window_bounds = array<i64: 1, 64, 64>}]} {
    %c0 = arith.constant 0 : index
    %c0_0 = arith.constant 0 : index
    %c0_1 = arith.constant 0 : index
    %0 = vector.load %arg3[%c0, %c0_0, %c0_1] : memref<1x8x64xf32, #tpu.memory_space<vmem>>, vector<1x8x64xf32>
    %1 = vector.shape_cast %0 : vector<1x8x64xf32> to vector<8x64xf32>
    %c0_2 = arith.constant 0 : index
    %c0_3 = arith.constant 0 : index
    %c0_4 = arith.constant 0 : index
    %2 = vector.load %arg4[%c0_2, %c0_3, %c0_4] : memref<1x8x64xf32, #tpu.memory_space<vmem>>, vector<1x8x64xf32>
    %3 = vector.shape_cast %2 : vector<1x8x64xf32> to vector<8x64xf32>
    %cst = arith.constant dense<0.000000e+00> : vector<64x64xf32>
    %4 = tpu.matmul %1, %3, %cst {dimension_numbers = #tpu.dot_dimension_numbers<[0], [0], [1], [1], [0, 1, 1, 1], [], []>} : vector<8x64xf32>, vector<8x64xf32>, vector<64x64xf32> -> vector<64x64xf32>
    %c0_5 = arith.constant 0 : index
    %c0_6 = arith.constant 0 : index
    %c0_7 = arith.constant 0 : index
    %5 = vector.load %arg5[%c0_5, %c0_6, %c0_7] : memref<1x64x64xf32, #tpu.memory_space<vmem>>, vector<1x64x64xf32>
    %6 = vector.shape_cast %5 : vector<1x64x64xf32> to vector<64x64xf32>
    %7 = vector.shape_cast %4 : vector<64x64xf32> to vector<1x64x64xf32>
    tpu.vector_store %arg5[%c0_5, %c0_6, %c0_7], %7 {strides = array<i32>} : memref<1x64x64xf32, #tpu.memory_space<vmem>>, vector<1x64x64xf32>,
    return
  }
  func.func @transform_0(%arg0: i32, %arg1: i32, %arg2: i32) -> (i32, i32, i32) {
    %c0_i32 = arith.constant 0 : i32
    %c0_i32_0 = arith.constant 0 : i32
    return %arg0, %c0_i32, %arg1 : i32, i32, i32
  }
  func.func @transform_1(%arg0: i32, %arg1: i32, %arg2: i32) -> (i32, i32, i32) {
    %c0_i32 = arith.constant 0 : i32
    %c0_i32_0 = arith.constant 0 : i32
    return %arg0, %c0_i32, %arg2 : i32, i32, i32
  }
  func.func @transform_2(%arg0: i32, %arg1: i32, %arg2: i32) -> (i32, i32, i32) {
    %c0_i32 = arith.constant 0 : i32
    return %arg0, %arg1, %arg2 : i32, i32, i32
  }
}

module attributes {stable_mosaic.version = 11 : i64} {
  func.func @_sqdist_kernel(%arg0: i32, %arg1: i32, %arg2: i32, %arg3: memref<1x8x64xf32, #tpu.memory_space<vmem>>, %arg4: memref<1x8x16xf32, #tpu.memory_space<vmem>>, %arg5: memref<1x64x16xf32, #tpu.memory_space<vmem>>) attributes {dimension_semantics = [#tpu.dimension_semantics<parallel>, #tpu.dimension_semantics<parallel>, #tpu.dimension_semantics<parallel>], iteration_bounds = array<i64: 2, 1, 1>, scalar_prefetch = 0 : i64, scratch_operands = 0 : i64, tpu.core_type = #tpu.core_type<tc>, window_params = [{transform_indices = @transform_0, window_bounds = array<i64: 1, 8, 64>}, {transform_indices = @transform_1, window_bounds = array<i64: 1, 8, 16>}, {transform_indices = @transform_2, window_bounds = array<i64: 1, 64, 16>}]} {
    %c0 = arith.constant 0 : index
    %c0_0 = arith.constant 0 : index
    %c0_1 = arith.constant 0 : index
    %0 = vector.load %arg3[%c0, %c0_0, %c0_1] : memref<1x8x64xf32, #tpu.memory_space<vmem>>, vector<1x8x64xf32>
    %1 = vector.shape_cast %0 : vector<1x8x64xf32> to vector<8x64xf32>
    %c0_2 = arith.constant 0 : index
    %c0_3 = arith.constant 0 : index
    %c0_4 = arith.constant 0 : index
    %2 = vector.load %arg4[%c0_2, %c0_3, %c0_4] : memref<1x8x16xf32, #tpu.memory_space<vmem>>, vector<1x8x16xf32>
    %3 = vector.shape_cast %2 : vector<1x8x16xf32> to vector<8x16xf32>
    %cst = arith.constant dense<0.000000e+00> : vector<64x16xf32>
    %4 = tpu.matmul %1, %3, %cst {dimension_numbers = #tpu.dot_dimension_numbers<[0], [0], [1], [1], [0, 1, 1, 1], [], []>} : vector<8x64xf32>, vector<8x16xf32>, vector<64x16xf32> -> vector<64x16xf32>
    %c0_5 = arith.constant 0 : index
    %c0_6 = arith.constant 0 : index
    %c0_7 = arith.constant 0 : index
    %5 = vector.load %arg5[%c0_5, %c0_6, %c0_7] : memref<1x64x16xf32, #tpu.memory_space<vmem>>, vector<1x64x16xf32>
    %6 = vector.shape_cast %5 : vector<1x64x16xf32> to vector<64x16xf32>
    %7 = vector.shape_cast %4 : vector<64x16xf32> to vector<1x64x16xf32>
    tpu.vector_store %arg5[%c0_5, %c0_6, %c0_7], %7 {strides = array<i32>} : memref<1x64x16xf32, #tpu.memory_space<vmem>>, vector<1x64x16xf32>,
    return
  }
  func.func @transform_0(%arg0: i32, %arg1: i32, %arg2: i32) -> (i32, i32, i32) {
    %c0_i32 = arith.constant 0 : i32
    %c0_i32_0 = arith.constant 0 : i32
    return %arg0, %c0_i32, %arg1 : i32, i32, i32
  }
  func.func @transform_1(%arg0: i32, %arg1: i32, %arg2: i32) -> (i32, i32, i32) {
    %c0_i32 = arith.constant 0 : i32
    %c0_i32_0 = arith.constant 0 : i32
    return %arg0, %c0_i32, %arg2 : i32, i32, i32
  }
  func.func @transform_2(%arg0: i32, %arg1: i32, %arg2: i32) -> (i32, i32, i32) {
    %c0_i32 = arith.constant 0 : i32
    return %arg0, %arg1, %arg2 : i32, i32, i32
  }
}

module attributes {stable_mosaic.version = 11 : i64} {
  func.func @_attention_kernel(%arg0: i32, %arg1: memref<1x16x64xbf16, #tpu.memory_space<vmem>>, %arg2: memref<1x32x16xf32, #tpu.memory_space<vmem>>, %arg3: memref<16x32xbf16, #tpu.memory_space<vmem>>, %arg4: memref<32x16xbf16, #tpu.memory_space<vmem>>, %arg5: memref<32x16xbf16, #tpu.memory_space<vmem>>, %arg6: memref<1x32x16xbf16, #tpu.memory_space<vmem>>) attributes {dimension_semantics = [#tpu.dimension_semantics<parallel>], iteration_bounds = array<i64: 2>, scalar_prefetch = 0 : i64, scratch_operands = 0 : i64, tpu.core_type = #tpu.core_type<tc>, window_params = [{transform_indices = @transform_0, window_bounds = array<i64: 1, 16, 64>}, {transform_indices = @transform_1, window_bounds = array<i64: 1, 32, 16>}, {pipeline_mode = #tpu.pipeline_mode<synchronous>, transform_indices = @transform_2, window_bounds = array<i64: 16, 32>}, {pipeline_mode = #tpu.pipeline_mode<synchronous>, transform_indices = @transform_3, window_bounds = array<i64: 32, 16>}, {pipeline_mode = #tpu.pipeline_mode<synchronous>, transform_indices = @transform_4, window_bounds = array<i64: 32, 16>}, {transform_indices = @transform_5, window_bounds = array<i64: 1, 32, 16>}]} {
    %c0 = arith.constant 0 : index
    %c0_0 = arith.constant 0 : index
    %c0_1 = arith.constant 0 : index
    %0 = vector.load %arg2[%c0, %c0_0, %c0_1] : memref<1x32x16xf32, #tpu.memory_space<vmem>>, vector<1x32x16xf32>
    %1 = vector.shape_cast %0 : vector<1x32x16xf32> to vector<32x16xf32>
    %c0_2 = arith.constant 0 : index
    %c0_3 = arith.constant 0 : index
    %2 = vector.load %arg3[%c0_2, %c0_3] : memref<16x32xbf16, #tpu.memory_space<vmem>>, vector<16x32xbf16>
    %3 = arith.truncf %1 : vector<32x16xf32> to vector<32x16xbf16>
    %cst = arith.constant dense<0.000000e+00> : vector<16x16xf32>
    %4 = tpu.matmul %2, %3, %cst {dimension_numbers = #tpu.dot_dimension_numbers<[1], [0], [0], [1], [0, 0, 1, 1], [], []>} : vector<16x32xbf16>, vector<32x16xbf16>, vector<16x16xf32> -> vector<16x16xf32>
    %c0_4 = arith.constant 0 : index
    %c0_5 = arith.constant 0 : index
    %5 = vector.load %arg4[%c0_4, %c0_5] : memref<32x16xbf16, #tpu.memory_space<vmem>>, vector<32x16xbf16>
    %c0_6 = arith.constant 0 : index
    %c0_7 = arith.constant 0 : index
    %c0_8 = arith.constant 0 : index
    %6 = vector.load %arg1[%c0_6, %c0_7, %c0_8] : memref<1x16x64xbf16, #tpu.memory_space<vmem>>, vector<1x16x64xbf16>
    %7 = vector.shape_cast %6 : vector<1x16x64xbf16> to vector<16x64xbf16>
    %cst_9 = arith.constant dense<0.000000e+00> : vector<32x64xf32>
    %8 = tpu.matmul %5, %7, %cst_9 {dimension_numbers = #tpu.dot_dimension_numbers<[1], [0], [0], [1], [0, 0, 1, 1], [], []>} : vector<32x16xbf16>, vector<16x64xbf16>, vector<32x64xf32> -> vector<32x64xf32>
    %9 = vector.extract_strided_slice %8 {offsets = [0, 0], sizes = [16, 64], strides = [1, 1]} : vector<32x64xf32> to vector<16x64xf32>
    %10 = vector.extract_strided_slice %8 {offsets = [16, 0], sizes = [16, 64], strides = [1, 1]} : vector<32x64xf32> to vector<16x64xf32>
    %11 = arith.truncf %4 : vector<16x16xf32> to vector<16x16xbf16>
    %12 = arith.truncf %9 : vector<16x64xf32> to vector<16x64xbf16>
    %cst_10 = arith.constant dense<0.000000e+00> : vector<16x64xf32>
    %13 = tpu.matmul %11, %12, %cst_10 {dimension_numbers = #tpu.dot_dimension_numbers<[0], [0], [1], [1], [0, 1, 1, 1], [], []>} : vector<16x16xbf16>, vector<16x64xbf16>, vector<16x64xf32> -> vector<16x64xf32>
    %cst_11 = arith.constant 2.500000e-01 : f32
    %14 = vector.broadcast %cst_11 : f32 to vector<16x64xf32>
    %15 = arith.mulf %13, %14 : vector<16x64xf32>
    %cst_12 = arith.constant dense<0xFF800000> : vector<16xf32>
    %16 = vector.multi_reduction <maximumf>, %15, %cst_12 [1] : vector<16x64xf32> to vector<16xf32>
    %17 = vector.shape_cast %16 : vector<16xf32> to vector<16x1xf32>
    %18 = vector.broadcast %17 : vector<16x1xf32> to vector<16x64xf32>
    %19 = arith.subf %15, %18 : vector<16x64xf32>
    %20 = math.exp %19 : vector<16x64xf32>
    %cst_13 = arith.constant dense<0.000000e+00> : vector<16xf32>
    %21 = vector.multi_reduction <add>, %20, %cst_13 [1] : vector<16x64xf32> to vector<16xf32>
    %22 = vector.shape_cast %21 : vector<16xf32> to vector<16x1xf32>
    %23 = tpu.reciprocal %22 {approx = true} : vector<16x1xf32> -> vector<16x1xf32>
    %24 = vector.broadcast %23 : vector<16x1xf32> to vector<16x64xf32>
    %25 = arith.mulf %20, %24 : vector<16x64xf32>
    %26 = arith.truncf %25 : vector<16x64xf32> to vector<16x64xbf16>
    %27 = arith.truncf %10 : vector<16x64xf32> to vector<16x64xbf16>
    %cst_14 = arith.constant dense<0.000000e+00> : vector<16x16xf32>
    %28 = tpu.matmul %26, %27, %cst_14 {dimension_numbers = #tpu.dot_dimension_numbers<[1], [1], [0], [0], [0, 0, 1, 0], [], []>} : vector<16x64xbf16>, vector<16x64xbf16>, vector<16x16xf32> -> vector<16x16xf32>
    %c0_15 = arith.constant 0 : index
    %c0_16 = arith.constant 0 : index
    %29 = vector.load %arg5[%c0_15, %c0_16] : memref<32x16xbf16, #tpu.memory_space<vmem>>, vector<32x16xbf16>
    %30 = arith.truncf %28 : vector<16x16xf32> to vector<16x16xbf16>
    %cst_17 = arith.constant dense<0.000000e+00> : vector<32x16xf32>
    %31 = tpu.matmul %29, %30, %cst_17 {dimension_numbers = #tpu.dot_dimension_numbers<[1], [1], [0], [0], [0, 0, 1, 0], [], []>} : vector<32x16xbf16>, vector<16x16xbf16>, vector<32x16xf32> -> vector<32x16xf32>
    %cst_18 = arith.constant 0.000000e+00 : f32
    %32 = vector.broadcast %cst_18 : f32 to vector<32x16xf32>
    %33 = arith.maximumf %31, %32 : vector<32x16xf32>
    %34 = arith.addf %1, %33 : vector<32x16xf32>
    %35 = arith.truncf %34 : vector<32x16xf32> to vector<32x16xbf16>
    %c0_19 = arith.constant 0 : index
    %c0_20 = arith.constant 0 : index
    %c0_21 = arith.constant 0 : index
    %36 = vector.load %arg6[%c0_19, %c0_20, %c0_21] : memref<1x32x16xbf16, #tpu.memory_space<vmem>>, vector<1x32x16xbf16>
    %37 = vector.shape_cast %36 : vector<1x32x16xbf16> to vector<32x16xbf16>
    %38 = vector.shape_cast %35 : vector<32x16xbf16> to vector<1x32x16xbf16>
    tpu.vector_store %arg6[%c0_19, %c0_20, %c0_21], %38 {strides = array<i32>} : memref<1x32x16xbf16, #tpu.memory_space<vmem>>, vector<1x32x16xbf16>,
    return
  }
  func.func @transform_0(%arg0: i32) -> (i32, i32, i32) {
    %c0_i32 = arith.constant 0 : i32
    %c0_i32_0 = arith.constant 0 : i32
    %c0_i32_1 = arith.constant 0 : i32
    return %arg0, %c0_i32, %c0_i32_0 : i32, i32, i32
  }
  func.func @transform_1(%arg0: i32) -> (i32, i32, i32) {
    %c0_i32 = arith.constant 0 : i32
    %c0_i32_0 = arith.constant 0 : i32
    %c0_i32_1 = arith.constant 0 : i32
    return %arg0, %c0_i32, %c0_i32_0 : i32, i32, i32
  }
  func.func @transform_2(%arg0: i32) -> (i32, i32) {
    %c0_i32 = arith.constant 0 : i32
    %c0_i32_0 = arith.constant 0 : i32
    %c0_i32_1 = arith.constant 0 : i32
    return %c0_i32, %c0_i32_0 : i32, i32
  }
  func.func @transform_3(%arg0: i32) -> (i32, i32) {
    %c0_i32 = arith.constant 0 : i32
    %c0_i32_0 = arith.constant 0 : i32
    %c0_i32_1 = arith.constant 0 : i32
    return %c0_i32, %c0_i32_0 : i32, i32
  }
  func.func @transform_4(%arg0: i32) -> (i32, i32) {
    %c0_i32 = arith.constant 0 : i32
    %c0_i32_0 = arith.constant 0 : i32
    %c0_i32_1 = arith.constant 0 : i32
    return %c0_i32, %c0_i32_0 : i32, i32
  }
  func.func @transform_5(%arg0: i32) -> (i32, i32, i32) {
    %c0_i32 = arith.constant 0 : i32
    %c0_i32_0 = arith.constant 0 : i32
    %c0_i32_1 = arith.constant 0 : i32
    return %arg0, %c0_i32, %c0_i32_0 : i32, i32, i32
  }
}

module attributes {stable_mosaic.version = 11 : i64} {
  func.func @_interp_lmlp_kernel(%arg0: i32, %arg1: i32, %arg2: memref<1x32x16xbf16, #tpu.memory_space<vmem>>, %arg3: memref<1x64x16xbf16, #tpu.memory_space<vmem>>, %arg4: memref<32x32xbf16, #tpu.memory_space<vmem>>, %arg5: memref<32x1xf32, #tpu.memory_space<vmem>>, %arg6: memref<32x32xbf16, #tpu.memory_space<vmem>>, %arg7: memref<32x1xf32, #tpu.memory_space<vmem>>, %arg8: memref<1x32x64xbf16, #tpu.memory_space<vmem>>) attributes {dimension_semantics = [#tpu.dimension_semantics<parallel>, #tpu.dimension_semantics<parallel>], iteration_bounds = array<i64: 2, 1>, scalar_prefetch = 0 : i64, scratch_operands = 0 : i64, tpu.core_type = #tpu.core_type<tc>, window_params = [{transform_indices = @transform_0, window_bounds = array<i64: 1, 32, 16>}, {transform_indices = @transform_1, window_bounds = array<i64: 1, 64, 16>}, {pipeline_mode = #tpu.pipeline_mode<synchronous>, transform_indices = @transform_2, window_bounds = array<i64: 32, 32>}, {pipeline_mode = #tpu.pipeline_mode<synchronous>, transform_indices = @transform_3, window_bounds = array<i64: 32, 1>}, {pipeline_mode = #tpu.pipeline_mode<synchronous>, transform_indices = @transform_4, window_bounds = array<i64: 32, 32>}, {pipeline_mode = #tpu.pipeline_mode<synchronous>, transform_indices = @transform_5, window_bounds = array<i64: 32, 1>}, {transform_indices = @transform_6, window_bounds = array<i64: 1, 32, 64>}]} {
    %c0 = arith.constant 0 : index
    %c0_0 = arith.constant 0 : index
    %c0_1 = arith.constant 0 : index
    %0 = vector.load %arg2[%c0, %c0_0, %c0_1] : memref<1x32x16xbf16, #tpu.memory_space<vmem>>, vector<1x32x16xbf16>
    %1 = vector.shape_cast %0 : vector<1x32x16xbf16> to vector<32x16xbf16>
    %c0_2 = arith.constant 0 : index
    %c0_3 = arith.constant 0 : index
    %c0_4 = arith.constant 0 : index
    %2 = vector.load %arg3[%c0_2, %c0_3, %c0_4] : memref<1x64x16xbf16, #tpu.memory_space<vmem>>, vector<1x64x16xbf16>
    %3 = vector.shape_cast %2 : vector<1x64x16xbf16> to vector<64x16xbf16>
    %cst = arith.constant dense<0.000000e+00> : vector<32x64xf32>
    %4 = tpu.matmul %1, %3, %cst {dimension_numbers = #tpu.dot_dimension_numbers<[1], [1], [0], [0], [0, 0, 1, 0], [], []>} : vector<32x16xbf16>, vector<64x16xbf16>, vector<32x64xf32> -> vector<32x64xf32>
    %c0_5 = arith.constant 0 : index
    %c0_6 = arith.constant 0 : index
    %5 = vector.load %arg4[%c0_5, %c0_6] : memref<32x32xbf16, #tpu.memory_space<vmem>>, vector<32x32xbf16>
    %6 = arith.truncf %4 : vector<32x64xf32> to vector<32x64xbf16>
    %cst_7 = arith.constant dense<0.000000e+00> : vector<32x64xf32>
    %7 = tpu.matmul %5, %6, %cst_7 {dimension_numbers = #tpu.dot_dimension_numbers<[1], [0], [0], [1], [0, 0, 1, 1], [], []>} : vector<32x32xbf16>, vector<32x64xbf16>, vector<32x64xf32> -> vector<32x64xf32>
    %c0_8 = arith.constant 0 : index
    %c0_9 = arith.constant 0 : index
    %8 = vector.load %arg5[%c0_8, %c0_9] : memref<32x1xf32, #tpu.memory_space<vmem>>, vector<32x1xf32>
    %9 = vector.broadcast %8 : vector<32x1xf32> to vector<32x64xf32>
    %10 = arith.addf %7, %9 : vector<32x64xf32>
    %cst_10 = arith.constant 0.000000e+00 : f32
    %11 = vector.broadcast %cst_10 : f32 to vector<32x64xf32>
    %12 = arith.maximumf %10, %11 : vector<32x64xf32>
    %c0_11 = arith.constant 0 : index
    %c0_12 = arith.constant 0 : index
    %13 = vector.load %arg6[%c0_11, %c0_12] : memref<32x32xbf16, #tpu.memory_space<vmem>>, vector<32x32xbf16>
    %14 = arith.truncf %12 : vector<32x64xf32> to vector<32x64xbf16>
    %cst_13 = arith.constant dense<0.000000e+00> : vector<32x64xf32>
    %15 = tpu.matmul %13, %14, %cst_13 {dimension_numbers = #tpu.dot_dimension_numbers<[1], [0], [0], [1], [0, 0, 1, 1], [], []>} : vector<32x32xbf16>, vector<32x64xbf16>, vector<32x64xf32> -> vector<32x64xf32>
    %c0_14 = arith.constant 0 : index
    %c0_15 = arith.constant 0 : index
    %16 = vector.load %arg7[%c0_14, %c0_15] : memref<32x1xf32, #tpu.memory_space<vmem>>, vector<32x1xf32>
    %17 = vector.broadcast %16 : vector<32x1xf32> to vector<32x64xf32>
    %18 = arith.addf %15, %17 : vector<32x64xf32>
    %cst_16 = arith.constant 0.000000e+00 : f32
    %19 = vector.broadcast %cst_16 : f32 to vector<32x64xf32>
    %20 = arith.maximumf %18, %19 : vector<32x64xf32>
    %21 = arith.truncf %20 : vector<32x64xf32> to vector<32x64xbf16>
    %c0_17 = arith.constant 0 : index
    %c0_18 = arith.constant 0 : index
    %c0_19 = arith.constant 0 : index
    %22 = vector.load %arg8[%c0_17, %c0_18, %c0_19] : memref<1x32x64xbf16, #tpu.memory_space<vmem>>, vector<1x32x64xbf16>
    %23 = vector.shape_cast %22 : vector<1x32x64xbf16> to vector<32x64xbf16>
    %24 = vector.shape_cast %21 : vector<32x64xbf16> to vector<1x32x64xbf16>
    tpu.vector_store %arg8[%c0_17, %c0_18, %c0_19], %24 {strides = array<i32>} : memref<1x32x64xbf16, #tpu.memory_space<vmem>>, vector<1x32x64xbf16>,
    return
  }
  func.func @transform_0(%arg0: i32, %arg1: i32) -> (i32, i32, i32) {
    %c0_i32 = arith.constant 0 : i32
    %c0_i32_0 = arith.constant 0 : i32
    %c0_i32_1 = arith.constant 0 : i32
    return %arg0, %c0_i32, %c0_i32_0 : i32, i32, i32
  }
  func.func @transform_1(%arg0: i32, %arg1: i32) -> (i32, i32, i32) {
    %c0_i32 = arith.constant 0 : i32
    %c0_i32_0 = arith.constant 0 : i32
    return %arg0, %arg1, %c0_i32 : i32, i32, i32
  }
  func.func @transform_2(%arg0: i32, %arg1: i32) -> (i32, i32) {
    %c0_i32 = arith.constant 0 : i32
    %c0_i32_0 = arith.constant 0 : i32
    %c0_i32_1 = arith.constant 0 : i32
    return %c0_i32, %c0_i32_0 : i32, i32
  }
  func.func @transform_3(%arg0: i32, %arg1: i32) -> (i32, i32) {
    %c0_i32 = arith.constant 0 : i32
    %c0_i32_0 = arith.constant 0 : i32
    %c0_i32_1 = arith.constant 0 : i32
    return %c0_i32, %c0_i32_0 : i32, i32
  }
  func.func @transform_4(%arg0: i32, %arg1: i32) -> (i32, i32) {
    %c0_i32 = arith.constant 0 : i32
    %c0_i32_0 = arith.constant 0 : i32
    %c0_i32_1 = arith.constant 0 : i32
    return %c0_i32, %c0_i32_0 : i32, i32
  }
  func.func @transform_5(%arg0: i32, %arg1: i32) -> (i32, i32) {
    %c0_i32 = arith.constant 0 : i32
    %c0_i32_0 = arith.constant 0 : i32
    %c0_i32_1 = arith.constant 0 : i32
    return %c0_i32, %c0_i32_0 : i32, i32
  }
  func.func @transform_6(%arg0: i32, %arg1: i32) -> (i32, i32, i32) {
    %c0_i32 = arith.constant 0 : i32
    %c0_i32_0 = arith.constant 0 : i32
    return %arg0, %c0_i32, %arg1 : i32, i32, i32
  }
}

module attributes {stable_mosaic.version = 11 : i64} {
  func.func @_local_head_kernel(%arg0: i32, %arg1: memref<8x32x128xbf16, #tpu.memory_space<vmem>>, %arg2: memref<8x8x128xbf16, #tpu.memory_space<vmem>>, %arg3: memref<16x128xbf16, #tpu.memory_space<vmem>>, %arg4: memref<32x8xbf16, #tpu.memory_space<vmem>>, %arg5: memref<32x1xf32, #tpu.memory_space<vmem>>, %arg6: memref<4x32x256xbf16, #tpu.memory_space<vmem>>, %arg7: memref<32x1xf32, #tpu.memory_space<vmem>>, %arg8: memref<64x32xbf16, #tpu.memory_space<vmem>>, %arg9: memref<64x16xbf16, #tpu.memory_space<vmem>>, %arg10: memref<64x1xf32, #tpu.memory_space<vmem>>, %arg11: memref<64x64xbf16, #tpu.memory_space<vmem>>, %arg12: memref<64x1xf32, #tpu.memory_space<vmem>>, %arg13: memref<64x128xf32, #tpu.memory_space<vmem>>, %arg14: memref<8x32x128xf32, #tpu.memory_space<vmem>>, %arg15: memref<8x32x128xf32, #tpu.memory_space<vmem>>) attributes {dimension_semantics = [#tpu.dimension_semantics<parallel>], iteration_bounds = array<i64: 1>, scalar_prefetch = 0 : i64, scratch_operands = 2 : i64, tpu.core_type = #tpu.core_type<tc>, window_params = [{transform_indices = @transform_0, window_bounds = array<i64: 8, 32, 128>}, {transform_indices = @transform_1, window_bounds = array<i64: 8, 8, 128>}, {transform_indices = @transform_2, window_bounds = array<i64: 16, 128>}, {pipeline_mode = #tpu.pipeline_mode<synchronous>, transform_indices = @transform_3, window_bounds = array<i64: 32, 8>}, {pipeline_mode = #tpu.pipeline_mode<synchronous>, transform_indices = @transform_4, window_bounds = array<i64: 32, 1>}, {pipeline_mode = #tpu.pipeline_mode<synchronous>, transform_indices = @transform_5, window_bounds = array<i64: 4, 32, 256>}, {pipeline_mode = #tpu.pipeline_mode<synchronous>, transform_indices = @transform_6, window_bounds = array<i64: 32, 1>}, {pipeline_mode = #tpu.pipeline_mode<synchronous>, transform_indices = @transform_7, window_bounds = array<i64: 64, 32>}, {pipeline_mode = #tpu.pipeline_mode<synchronous>, transform_indices = @transform_8, window_bounds = array<i64: 64, 16>}, {pipeline_mode = #tpu.pipeline_mode<synchronous>, transform_indices = @transform_9, window_bounds = array<i64: 64, 1>}, {pipeline_mode = #tpu.pipeline_mode<synchronous>, transform_indices = @transform_10, window_bounds = array<i64: 64, 64>}, {pipeline_mode = #tpu.pipeline_mode<synchronous>, transform_indices = @transform_11, window_bounds = array<i64: 64, 1>}, {transform_indices = @transform_12, window_bounds = array<i64: 64, 128>}]} {
    %c0 = arith.constant 0 : index
    %c0_0 = arith.constant 0 : index
    %0 = vector.load %arg4[%c0, %c0_0] : memref<32x8xbf16, #tpu.memory_space<vmem>>, vector<32x8xbf16>
    %c0_1 = arith.constant 0 : index
    %c0_2 = arith.constant 0 : index
    %1 = vector.load %arg5[%c0_1, %c0_2] : memref<32x1xf32, #tpu.memory_space<vmem>>, vector<32x1xf32>
    %2 = vector.shape_cast %1 : vector<32x1xf32> to vector<32x1xf32>
    %3 = vector.broadcast %2 : vector<32x1xf32> to vector<32x128xf32>
    %c0_3 = arith.constant 0 : index
    %c0_4 = arith.constant 0 : index
    %c0_5 = arith.constant 0 : index
    %4 = vector.load %arg6[%c0_3, %c0_4, %c0_5] : memref<4x32x256xbf16, #tpu.memory_space<vmem>>, vector<4x32x256xbf16>
    %c0_6 = arith.constant 0 : index
    %c0_7 = arith.constant 0 : index
    %5 = vector.load %arg7[%c0_6, %c0_7] : memref<32x1xf32, #tpu.memory_space<vmem>>, vector<32x1xf32>
    %c0_8 = arith.constant 0 : index
    %c0_9 = arith.constant 0 : index
    %6 = vector.load %arg8[%c0_8, %c0_9] : memref<64x32xbf16, #tpu.memory_space<vmem>>, vector<64x32xbf16>
    %c0_10 = arith.constant 0 : index
    %c0_11 = arith.constant 0 : index
    %7 = vector.load %arg9[%c0_10, %c0_11] : memref<64x16xbf16, #tpu.memory_space<vmem>>, vector<64x16xbf16>
    %c0_12 = arith.constant 0 : index
    %c0_13 = arith.constant 0 : index
    %8 = vector.load %arg10[%c0_12, %c0_13] : memref<64x1xf32, #tpu.memory_space<vmem>>, vector<64x1xf32>
    %c0_14 = arith.constant 0 : index
    %c0_15 = arith.constant 0 : index
    %9 = vector.load %arg11[%c0_14, %c0_15] : memref<64x64xbf16, #tpu.memory_space<vmem>>, vector<64x64xbf16>
    %c0_16 = arith.constant 0 : index
    %c0_17 = arith.constant 0 : index
    %10 = vector.load %arg12[%c0_16, %c0_17] : memref<64x1xf32, #tpu.memory_space<vmem>>, vector<64x1xf32>
    %c0_18 = arith.constant 0 : index
    %c0_19 = arith.constant 0 : index
    %c0_20 = arith.constant 0 : index
    %11 = vector.load %arg2[%c0_18, %c0_19, %c0_20] : memref<8x8x128xbf16, #tpu.memory_space<vmem>>, vector<1x8x128xbf16>
    %12 = vector.shape_cast %11 : vector<1x8x128xbf16> to vector<8x128xbf16>
    %cst = arith.constant dense<0.000000e+00> : vector<32x128xf32>
    %13 = tpu.matmul %0, %12, %cst {dimension_numbers = #tpu.dot_dimension_numbers<[1], [0], [0], [1], [0, 0, 1, 1], [], []>} : vector<32x8xbf16>, vector<8x128xbf16>, vector<32x128xf32> -> vector<32x128xf32>
    %14 = arith.addf %13, %3 : vector<32x128xf32>
    %cst_21 = arith.constant 0.000000e+00 : f32
    %15 = vector.broadcast %cst_21 : f32 to vector<32x128xf32>
    %16 = arith.maximumf %14, %15 : vector<32x128xf32>
    %c0_22 = arith.constant 0 : index
    %c0_23 = arith.constant 0 : index
    %c0_24 = arith.constant 0 : index
    %17 = vector.load %arg14[%c0_22, %c0_23, %c0_24] : memref<8x32x128xf32, #tpu.memory_space<vmem>>, vector<1x32x128xf32>
    %18 = vector.shape_cast %17 : vector<1x32x128xf32> to vector<32x128xf32>
    %19 = vector.shape_cast %16 : vector<32x128xf32> to vector<1x32x128xf32>
    tpu.vector_store %arg14[%c0_22, %c0_23, %c0_24], %19 {strides = array<i32>} : memref<8x32x128xf32, #tpu.memory_space<vmem>>, vector<1x32x128xf32>,
    %c0_25 = arith.constant 0 : index
    %c0_26 = arith.constant 0 : index
    %c0_27 = arith.constant 0 : index
    %20 = vector.load %arg1[%c0_25, %c0_26, %c0_27] : memref<8x32x128xbf16, #tpu.memory_space<vmem>>, vector<1x32x128xbf16>
    %21 = vector.shape_cast %20 : vector<1x32x128xbf16> to vector<32x128xbf16>
    %22 = arith.extf %21 : vector<32x128xbf16> to vector<32x128xf32>
    %c0_28 = arith.constant 0 : index
    %c0_29 = arith.constant 0 : index
    %c0_30 = arith.constant 0 : index
    %23 = vector.load %arg15[%c0_28, %c0_29, %c0_30] : memref<8x32x128xf32, #tpu.memory_space<vmem>>, vector<1x32x128xf32>
    %24 = vector.shape_cast %23 : vector<1x32x128xf32> to vector<32x128xf32>
    %25 = vector.shape_cast %22 : vector<32x128xf32> to vector<1x32x128xf32>
    tpu.vector_store %arg15[%c0_28, %c0_29, %c0_30], %25 {strides = array<i32>} : memref<8x32x128xf32, #tpu.memory_space<vmem>>, vector<1x32x128xf32>,
    %c1 = arith.constant 1 : index
    %c0_31 = arith.constant 0 : index
    %c0_32 = arith.constant 0 : index
    %26 = vector.load %arg2[%c1, %c0_31, %c0_32] : memref<8x8x128xbf16, #tpu.memory_space<vmem>>, vector<1x8x128xbf16>
    %27 = vector.shape_cast %26 : vector<1x8x128xbf16> to vector<8x128xbf16>
    %cst_33 = arith.constant dense<0.000000e+00> : vector<32x128xf32>
    %28 = tpu.matmul %0, %27, %cst_33 {dimension_numbers = #tpu.dot_dimension_numbers<[1], [0], [0], [1], [0, 0, 1, 1], [], []>} : vector<32x8xbf16>, vector<8x128xbf16>, vector<32x128xf32> -> vector<32x128xf32>
    %29 = arith.addf %28, %3 : vector<32x128xf32>
    %cst_34 = arith.constant 0.000000e+00 : f32
    %30 = vector.broadcast %cst_34 : f32 to vector<32x128xf32>
    %31 = arith.maximumf %29, %30 : vector<32x128xf32>
    %c1_35 = arith.constant 1 : index
    %c0_36 = arith.constant 0 : index
    %c0_37 = arith.constant 0 : index
    %32 = vector.load %arg14[%c1_35, %c0_36, %c0_37] : memref<8x32x128xf32, #tpu.memory_space<vmem>>, vector<1x32x128xf32>
    %33 = vector.shape_cast %32 : vector<1x32x128xf32> to vector<32x128xf32>
    %34 = vector.shape_cast %31 : vector<32x128xf32> to vector<1x32x128xf32>
    tpu.vector_store %arg14[%c1_35, %c0_36, %c0_37], %34 {strides = array<i32>} : memref<8x32x128xf32, #tpu.memory_space<vmem>>, vector<1x32x128xf32>,
    %c1_38 = arith.constant 1 : index
    %c0_39 = arith.constant 0 : index
    %c0_40 = arith.constant 0 : index
    %35 = vector.load %arg1[%c1_38, %c0_39, %c0_40] : memref<8x32x128xbf16, #tpu.memory_space<vmem>>, vector<1x32x128xbf16>
    %36 = vector.shape_cast %35 : vector<1x32x128xbf16> to vector<32x128xbf16>
    %37 = arith.extf %36 : vector<32x128xbf16> to vector<32x128xf32>
    %c1_41 = arith.constant 1 : index
    %c0_42 = arith.constant 0 : index
    %c0_43 = arith.constant 0 : index
    %38 = vector.load %arg15[%c1_41, %c0_42, %c0_43] : memref<8x32x128xf32, #tpu.memory_space<vmem>>, vector<1x32x128xf32>
    %39 = vector.shape_cast %38 : vector<1x32x128xf32> to vector<32x128xf32>
    %40 = vector.shape_cast %37 : vector<32x128xf32> to vector<1x32x128xf32>
    tpu.vector_store %arg15[%c1_41, %c0_42, %c0_43], %40 {strides = array<i32>} : memref<8x32x128xf32, #tpu.memory_space<vmem>>, vector<1x32x128xf32>,
    %c2 = arith.constant 2 : index
    %c0_44 = arith.constant 0 : index
    %c0_45 = arith.constant 0 : index
    %41 = vector.load %arg2[%c2, %c0_44, %c0_45] : memref<8x8x128xbf16, #tpu.memory_space<vmem>>, vector<1x8x128xbf16>
    %42 = vector.shape_cast %41 : vector<1x8x128xbf16> to vector<8x128xbf16>
    %cst_46 = arith.constant dense<0.000000e+00> : vector<32x128xf32>
    %43 = tpu.matmul %0, %42, %cst_46 {dimension_numbers = #tpu.dot_dimension_numbers<[1], [0], [0], [1], [0, 0, 1, 1], [], []>} : vector<32x8xbf16>, vector<8x128xbf16>, vector<32x128xf32> -> vector<32x128xf32>
    %44 = arith.addf %43, %3 : vector<32x128xf32>
    %cst_47 = arith.constant 0.000000e+00 : f32
    %45 = vector.broadcast %cst_47 : f32 to vector<32x128xf32>
    %46 = arith.maximumf %44, %45 : vector<32x128xf32>
    %c2_48 = arith.constant 2 : index
    %c0_49 = arith.constant 0 : index
    %c0_50 = arith.constant 0 : index
    %47 = vector.load %arg14[%c2_48, %c0_49, %c0_50] : memref<8x32x128xf32, #tpu.memory_space<vmem>>, vector<1x32x128xf32>
    %48 = vector.shape_cast %47 : vector<1x32x128xf32> to vector<32x128xf32>
    %49 = vector.shape_cast %46 : vector<32x128xf32> to vector<1x32x128xf32>
    tpu.vector_store %arg14[%c2_48, %c0_49, %c0_50], %49 {strides = array<i32>} : memref<8x32x128xf32, #tpu.memory_space<vmem>>, vector<1x32x128xf32>,
    %c2_51 = arith.constant 2 : index
    %c0_52 = arith.constant 0 : index
    %c0_53 = arith.constant 0 : index
    %50 = vector.load %arg1[%c2_51, %c0_52, %c0_53] : memref<8x32x128xbf16, #tpu.memory_space<vmem>>, vector<1x32x128xbf16>
    %51 = vector.shape_cast %50 : vector<1x32x128xbf16> to vector<32x128xbf16>
    %52 = arith.extf %51 : vector<32x128xbf16> to vector<32x128xf32>
    %c2_54 = arith.constant 2 : index
    %c0_55 = arith.constant 0 : index
    %c0_56 = arith.constant 0 : index
    %53 = vector.load %arg15[%c2_54, %c0_55, %c0_56] : memref<8x32x128xf32, #tpu.memory_space<vmem>>, vector<1x32x128xf32>
    %54 = vector.shape_cast %53 : vector<1x32x128xf32> to vector<32x128xf32>
    %55 = vector.shape_cast %52 : vector<32x128xf32> to vector<1x32x128xf32>
    tpu.vector_store %arg15[%c2_54, %c0_55, %c0_56], %55 {strides = array<i32>} : memref<8x32x128xf32, #tpu.memory_space<vmem>>, vector<1x32x128xf32>,
    %c3 = arith.constant 3 : index
    %c0_57 = arith.constant 0 : index
    %c0_58 = arith.constant 0 : index
    %56 = vector.load %arg2[%c3, %c0_57, %c0_58] : memref<8x8x128xbf16, #tpu.memory_space<vmem>>, vector<1x8x128xbf16>
    %57 = vector.shape_cast %56 : vector<1x8x128xbf16> to vector<8x128xbf16>
    %cst_59 = arith.constant dense<0.000000e+00> : vector<32x128xf32>
    %58 = tpu.matmul %0, %57, %cst_59 {dimension_numbers = #tpu.dot_dimension_numbers<[1], [0], [0], [1], [0, 0, 1, 1], [], []>} : vector<32x8xbf16>, vector<8x128xbf16>, vector<32x128xf32> -> vector<32x128xf32>
    %59 = arith.addf %58, %3 : vector<32x128xf32>
    %cst_60 = arith.constant 0.000000e+00 : f32
    %60 = vector.broadcast %cst_60 : f32 to vector<32x128xf32>
    %61 = arith.maximumf %59, %60 : vector<32x128xf32>
    %c3_61 = arith.constant 3 : index
    %c0_62 = arith.constant 0 : index
    %c0_63 = arith.constant 0 : index
    %62 = vector.load %arg14[%c3_61, %c0_62, %c0_63] : memref<8x32x128xf32, #tpu.memory_space<vmem>>, vector<1x32x128xf32>
    %63 = vector.shape_cast %62 : vector<1x32x128xf32> to vector<32x128xf32>
    %64 = vector.shape_cast %61 : vector<32x128xf32> to vector<1x32x128xf32>
    tpu.vector_store %arg14[%c3_61, %c0_62, %c0_63], %64 {strides = array<i32>} : memref<8x32x128xf32, #tpu.memory_space<vmem>>, vector<1x32x128xf32>,
    %c3_64 = arith.constant 3 : index
    %c0_65 = arith.constant 0 : index
    %c0_66 = arith.constant 0 : index
    %65 = vector.load %arg1[%c3_64, %c0_65, %c0_66] : memref<8x32x128xbf16, #tpu.memory_space<vmem>>, vector<1x32x128xbf16>
    %66 = vector.shape_cast %65 : vector<1x32x128xbf16> to vector<32x128xbf16>
    %67 = arith.extf %66 : vector<32x128xbf16> to vector<32x128xf32>
    %c3_67 = arith.constant 3 : index
    %c0_68 = arith.constant 0 : index
    %c0_69 = arith.constant 0 : index
    %68 = vector.load %arg15[%c3_67, %c0_68, %c0_69] : memref<8x32x128xf32, #tpu.memory_space<vmem>>, vector<1x32x128xf32>
    %69 = vector.shape_cast %68 : vector<1x32x128xf32> to vector<32x128xf32>
    %70 = vector.shape_cast %67 : vector<32x128xf32> to vector<1x32x128xf32>
    tpu.vector_store %arg15[%c3_67, %c0_68, %c0_69], %70 {strides = array<i32>} : memref<8x32x128xf32, #tpu.memory_space<vmem>>, vector<1x32x128xf32>,
    %c4 = arith.constant 4 : index
    %c0_70 = arith.constant 0 : index
    %c0_71 = arith.constant 0 : index
    %71 = vector.load %arg2[%c4, %c0_70, %c0_71] : memref<8x8x128xbf16, #tpu.memory_space<vmem>>, vector<1x8x128xbf16>
    %72 = vector.shape_cast %71 : vector<1x8x128xbf16> to vector<8x128xbf16>
    %cst_72 = arith.constant dense<0.000000e+00> : vector<32x128xf32>
    %73 = tpu.matmul %0, %72, %cst_72 {dimension_numbers = #tpu.dot_dimension_numbers<[1], [0], [0], [1], [0, 0, 1, 1], [], []>} : vector<32x8xbf16>, vector<8x128xbf16>, vector<32x128xf32> -> vector<32x128xf32>
    %74 = arith.addf %73, %3 : vector<32x128xf32>
    %cst_73 = arith.constant 0.000000e+00 : f32
    %75 = vector.broadcast %cst_73 : f32 to vector<32x128xf32>
    %76 = arith.maximumf %74, %75 : vector<32x128xf32>
    %c4_74 = arith.constant 4 : index
    %c0_75 = arith.constant 0 : index
    %c0_76 = arith.constant 0 : index
    %77 = vector.load %arg14[%c4_74, %c0_75, %c0_76] : memref<8x32x128xf32, #tpu.memory_space<vmem>>, vector<1x32x128xf32>
    %78 = vector.shape_cast %77 : vector<1x32x128xf32> to vector<32x128xf32>
    %79 = vector.shape_cast %76 : vector<32x128xf32> to vector<1x32x128xf32>
    tpu.vector_store %arg14[%c4_74, %c0_75, %c0_76], %79 {strides = array<i32>} : memref<8x32x128xf32, #tpu.memory_space<vmem>>, vector<1x32x128xf32>,
    %c4_77 = arith.constant 4 : index
    %c0_78 = arith.constant 0 : index
    %c0_79 = arith.constant 0 : index
    %80 = vector.load %arg1[%c4_77, %c0_78, %c0_79] : memref<8x32x128xbf16, #tpu.memory_space<vmem>>, vector<1x32x128xbf16>
    %81 = vector.shape_cast %80 : vector<1x32x128xbf16> to vector<32x128xbf16>
    %82 = arith.extf %81 : vector<32x128xbf16> to vector<32x128xf32>
    %c4_80 = arith.constant 4 : index
    %c0_81 = arith.constant 0 : index
    %c0_82 = arith.constant 0 : index
    %83 = vector.load %arg15[%c4_80, %c0_81, %c0_82] : memref<8x32x128xf32, #tpu.memory_space<vmem>>, vector<1x32x128xf32>
    %84 = vector.shape_cast %83 : vector<1x32x128xf32> to vector<32x128xf32>
    %85 = vector.shape_cast %82 : vector<32x128xf32> to vector<1x32x128xf32>
    tpu.vector_store %arg15[%c4_80, %c0_81, %c0_82], %85 {strides = array<i32>} : memref<8x32x128xf32, #tpu.memory_space<vmem>>, vector<1x32x128xf32>,
    %c5 = arith.constant 5 : index
    %c0_83 = arith.constant 0 : index
    %c0_84 = arith.constant 0 : index
    %86 = vector.load %arg2[%c5, %c0_83, %c0_84] : memref<8x8x128xbf16, #tpu.memory_space<vmem>>, vector<1x8x128xbf16>
    %87 = vector.shape_cast %86 : vector<1x8x128xbf16> to vector<8x128xbf16>
    %cst_85 = arith.constant dense<0.000000e+00> : vector<32x128xf32>
    %88 = tpu.matmul %0, %87, %cst_85 {dimension_numbers = #tpu.dot_dimension_numbers<[1], [0], [0], [1], [0, 0, 1, 1], [], []>} : vector<32x8xbf16>, vector<8x128xbf16>, vector<32x128xf32> -> vector<32x128xf32>
    %89 = arith.addf %88, %3 : vector<32x128xf32>
    %cst_86 = arith.constant 0.000000e+00 : f32
    %90 = vector.broadcast %cst_86 : f32 to vector<32x128xf32>
    %91 = arith.maximumf %89, %90 : vector<32x128xf32>
    %c5_87 = arith.constant 5 : index
    %c0_88 = arith.constant 0 : index
    %c0_89 = arith.constant 0 : index
    %92 = vector.load %arg14[%c5_87, %c0_88, %c0_89] : memref<8x32x128xf32, #tpu.memory_space<vmem>>, vector<1x32x128xf32>
    %93 = vector.shape_cast %92 : vector<1x32x128xf32> to vector<32x128xf32>
    %94 = vector.shape_cast %91 : vector<32x128xf32> to vector<1x32x128xf32>
    tpu.vector_store %arg14[%c5_87, %c0_88, %c0_89], %94 {strides = array<i32>} : memref<8x32x128xf32, #tpu.memory_space<vmem>>, vector<1x32x128xf32>,
    %c5_90 = arith.constant 5 : index
    %c0_91 = arith.constant 0 : index
    %c0_92 = arith.constant 0 : index
    %95 = vector.load %arg1[%c5_90, %c0_91, %c0_92] : memref<8x32x128xbf16, #tpu.memory_space<vmem>>, vector<1x32x128xbf16>
    %96 = vector.shape_cast %95 : vector<1x32x128xbf16> to vector<32x128xbf16>
    %97 = arith.extf %96 : vector<32x128xbf16> to vector<32x128xf32>
    %c5_93 = arith.constant 5 : index
    %c0_94 = arith.constant 0 : index
    %c0_95 = arith.constant 0 : index
    %98 = vector.load %arg15[%c5_93, %c0_94, %c0_95] : memref<8x32x128xf32, #tpu.memory_space<vmem>>, vector<1x32x128xf32>
    %99 = vector.shape_cast %98 : vector<1x32x128xf32> to vector<32x128xf32>
    %100 = vector.shape_cast %97 : vector<32x128xf32> to vector<1x32x128xf32>
    tpu.vector_store %arg15[%c5_93, %c0_94, %c0_95], %100 {strides = array<i32>} : memref<8x32x128xf32, #tpu.memory_space<vmem>>, vector<1x32x128xf32>,
    %c6 = arith.constant 6 : index
    %c0_96 = arith.constant 0 : index
    %c0_97 = arith.constant 0 : index
    %101 = vector.load %arg2[%c6, %c0_96, %c0_97] : memref<8x8x128xbf16, #tpu.memory_space<vmem>>, vector<1x8x128xbf16>
    %102 = vector.shape_cast %101 : vector<1x8x128xbf16> to vector<8x128xbf16>
    %cst_98 = arith.constant dense<0.000000e+00> : vector<32x128xf32>
    %103 = tpu.matmul %0, %102, %cst_98 {dimension_numbers = #tpu.dot_dimension_numbers<[1], [0], [0], [1], [0, 0, 1, 1], [], []>} : vector<32x8xbf16>, vector<8x128xbf16>, vector<32x128xf32> -> vector<32x128xf32>
    %104 = arith.addf %103, %3 : vector<32x128xf32>
    %cst_99 = arith.constant 0.000000e+00 : f32
    %105 = vector.broadcast %cst_99 : f32 to vector<32x128xf32>
    %106 = arith.maximumf %104, %105 : vector<32x128xf32>
    %c6_100 = arith.constant 6 : index
    %c0_101 = arith.constant 0 : index
    %c0_102 = arith.constant 0 : index
    %107 = vector.load %arg14[%c6_100, %c0_101, %c0_102] : memref<8x32x128xf32, #tpu.memory_space<vmem>>, vector<1x32x128xf32>
    %108 = vector.shape_cast %107 : vector<1x32x128xf32> to vector<32x128xf32>
    %109 = vector.shape_cast %106 : vector<32x128xf32> to vector<1x32x128xf32>
    tpu.vector_store %arg14[%c6_100, %c0_101, %c0_102], %109 {strides = array<i32>} : memref<8x32x128xf32, #tpu.memory_space<vmem>>, vector<1x32x128xf32>,
    %c6_103 = arith.constant 6 : index
    %c0_104 = arith.constant 0 : index
    %c0_105 = arith.constant 0 : index
    %110 = vector.load %arg1[%c6_103, %c0_104, %c0_105] : memref<8x32x128xbf16, #tpu.memory_space<vmem>>, vector<1x32x128xbf16>
    %111 = vector.shape_cast %110 : vector<1x32x128xbf16> to vector<32x128xbf16>
    %112 = arith.extf %111 : vector<32x128xbf16> to vector<32x128xf32>
    %c6_106 = arith.constant 6 : index
    %c0_107 = arith.constant 0 : index
    %c0_108 = arith.constant 0 : index
    %113 = vector.load %arg15[%c6_106, %c0_107, %c0_108] : memref<8x32x128xf32, #tpu.memory_space<vmem>>, vector<1x32x128xf32>
    %114 = vector.shape_cast %113 : vector<1x32x128xf32> to vector<32x128xf32>
    %115 = vector.shape_cast %112 : vector<32x128xf32> to vector<1x32x128xf32>
    tpu.vector_store %arg15[%c6_106, %c0_107, %c0_108], %115 {strides = array<i32>} : memref<8x32x128xf32, #tpu.memory_space<vmem>>, vector<1x32x128xf32>,
    %c7 = arith.constant 7 : index
    %c0_109 = arith.constant 0 : index
    %c0_110 = arith.constant 0 : index
    %116 = vector.load %arg2[%c7, %c0_109, %c0_110] : memref<8x8x128xbf16, #tpu.memory_space<vmem>>, vector<1x8x128xbf16>
    %117 = vector.shape_cast %116 : vector<1x8x128xbf16> to vector<8x128xbf16>
    %cst_111 = arith.constant dense<0.000000e+00> : vector<32x128xf32>
    %118 = tpu.matmul %0, %117, %cst_111 {dimension_numbers = #tpu.dot_dimension_numbers<[1], [0], [0], [1], [0, 0, 1, 1], [], []>} : vector<32x8xbf16>, vector<8x128xbf16>, vector<32x128xf32> -> vector<32x128xf32>
    %119 = arith.addf %118, %3 : vector<32x128xf32>
    %cst_112 = arith.constant 0.000000e+00 : f32
    %120 = vector.broadcast %cst_112 : f32 to vector<32x128xf32>
    %121 = arith.maximumf %119, %120 : vector<32x128xf32>
    %c7_113 = arith.constant 7 : index
    %c0_114 = arith.constant 0 : index
    %c0_115 = arith.constant 0 : index
    %122 = vector.load %arg14[%c7_113, %c0_114, %c0_115] : memref<8x32x128xf32, #tpu.memory_space<vmem>>, vector<1x32x128xf32>
    %123 = vector.shape_cast %122 : vector<1x32x128xf32> to vector<32x128xf32>
    %124 = vector.shape_cast %121 : vector<32x128xf32> to vector<1x32x128xf32>
    tpu.vector_store %arg14[%c7_113, %c0_114, %c0_115], %124 {strides = array<i32>} : memref<8x32x128xf32, #tpu.memory_space<vmem>>, vector<1x32x128xf32>,
    %c7_116 = arith.constant 7 : index
    %c0_117 = arith.constant 0 : index
    %c0_118 = arith.constant 0 : index
    %125 = vector.load %arg1[%c7_116, %c0_117, %c0_118] : memref<8x32x128xbf16, #tpu.memory_space<vmem>>, vector<1x32x128xbf16>
    %126 = vector.shape_cast %125 : vector<1x32x128xbf16> to vector<32x128xbf16>
    %127 = arith.extf %126 : vector<32x128xbf16> to vector<32x128xf32>
    %c7_119 = arith.constant 7 : index
    %c0_120 = arith.constant 0 : index
    %c0_121 = arith.constant 0 : index
    %128 = vector.load %arg15[%c7_119, %c0_120, %c0_121] : memref<8x32x128xf32, #tpu.memory_space<vmem>>, vector<1x32x128xf32>
    %129 = vector.shape_cast %128 : vector<1x32x128xf32> to vector<32x128xf32>
    %130 = vector.shape_cast %127 : vector<32x128xf32> to vector<1x32x128xf32>
    tpu.vector_store %arg15[%c7_119, %c0_120, %c0_121], %130 {strides = array<i32>} : memref<8x32x128xf32, #tpu.memory_space<vmem>>, vector<1x32x128xf32>,
    %cst_122 = arith.constant 0.000000e+00 : f32
    %131 = vector.broadcast %cst_122 : f32 to vector<32x128xf32>
    %cst_123 = arith.constant 0.000000e+00 : f32
    %132 = vector.broadcast %cst_123 : f32 to vector<8x32x128xf32>
    %c0_124 = arith.constant 0 : index
    %c0_125 = arith.constant 0 : index
    %c0_126 = arith.constant 0 : index
    %133 = vector.load %arg14[%c0_124, %c0_125, %c0_126] : memref<8x32x128xf32, #tpu.memory_space<vmem>>, vector<1x8x128xf32>
    %134 = vector.shape_cast %133 : vector<1x8x128xf32> to vector<8x128xf32>
    %c0_127 = arith.constant 0 : index
    %c0_128 = arith.constant 0 : index
    %c0_129 = arith.constant 0 : index
    %135 = vector.load %arg15[%c0_127, %c0_128, %c0_129] : memref<8x32x128xf32, #tpu.memory_space<vmem>>, vector<1x32x128xf32>
    %136 = vector.shape_cast %135 : vector<1x32x128xf32> to vector<32x128xf32>
    %137 = vector.shape_cast %134 : vector<8x128xf32> to vector<8x1x128xf32>
    %138 = vector.shape_cast %136 : vector<32x128xf32> to vector<1x32x128xf32>
    %139 = vector.broadcast %137 : vector<8x1x128xf32> to vector<8x32x128xf32>
    %140 = vector.broadcast %138 : vector<1x32x128xf32> to vector<8x32x128xf32>
    %141 = arith.mulf %139, %140 : vector<8x32x128xf32>
    %142 = arith.addf %132, %141 : vector<8x32x128xf32>
    %c1_130 = arith.constant 1 : index
    %c0_131 = arith.constant 0 : index
    %c0_132 = arith.constant 0 : index
    %143 = vector.load %arg14[%c1_130, %c0_131, %c0_132] : memref<8x32x128xf32, #tpu.memory_space<vmem>>, vector<1x8x128xf32>
    %144 = vector.shape_cast %143 : vector<1x8x128xf32> to vector<8x128xf32>
    %c1_133 = arith.constant 1 : index
    %c0_134 = arith.constant 0 : index
    %c0_135 = arith.constant 0 : index
    %145 = vector.load %arg15[%c1_133, %c0_134, %c0_135] : memref<8x32x128xf32, #tpu.memory_space<vmem>>, vector<1x32x128xf32>
    %146 = vector.shape_cast %145 : vector<1x32x128xf32> to vector<32x128xf32>
    %147 = vector.shape_cast %144 : vector<8x128xf32> to vector<8x1x128xf32>
    %148 = vector.shape_cast %146 : vector<32x128xf32> to vector<1x32x128xf32>
    %149 = vector.broadcast %147 : vector<8x1x128xf32> to vector<8x32x128xf32>
    %150 = vector.broadcast %148 : vector<1x32x128xf32> to vector<8x32x128xf32>
    %151 = arith.mulf %149, %150 : vector<8x32x128xf32>
    %152 = arith.addf %142, %151 : vector<8x32x128xf32>
    %c2_136 = arith.constant 2 : index
    %c0_137 = arith.constant 0 : index
    %c0_138 = arith.constant 0 : index
    %153 = vector.load %arg14[%c2_136, %c0_137, %c0_138] : memref<8x32x128xf32, #tpu.memory_space<vmem>>, vector<1x8x128xf32>
    %154 = vector.shape_cast %153 : vector<1x8x128xf32> to vector<8x128xf32>
    %c2_139 = arith.constant 2 : index
    %c0_140 = arith.constant 0 : index
    %c0_141 = arith.constant 0 : index
    %155 = vector.load %arg15[%c2_139, %c0_140, %c0_141] : memref<8x32x128xf32, #tpu.memory_space<vmem>>, vector<1x32x128xf32>
    %156 = vector.shape_cast %155 : vector<1x32x128xf32> to vector<32x128xf32>
    %157 = vector.shape_cast %154 : vector<8x128xf32> to vector<8x1x128xf32>
    %158 = vector.shape_cast %156 : vector<32x128xf32> to vector<1x32x128xf32>
    %159 = vector.broadcast %157 : vector<8x1x128xf32> to vector<8x32x128xf32>
    %160 = vector.broadcast %158 : vector<1x32x128xf32> to vector<8x32x128xf32>
    %161 = arith.mulf %159, %160 : vector<8x32x128xf32>
    %162 = arith.addf %152, %161 : vector<8x32x128xf32>
    %c3_142 = arith.constant 3 : index
    %c0_143 = arith.constant 0 : index
    %c0_144 = arith.constant 0 : index
    %163 = vector.load %arg14[%c3_142, %c0_143, %c0_144] : memref<8x32x128xf32, #tpu.memory_space<vmem>>, vector<1x8x128xf32>
    %164 = vector.shape_cast %163 : vector<1x8x128xf32> to vector<8x128xf32>
    %c3_145 = arith.constant 3 : index
    %c0_146 = arith.constant 0 : index
    %c0_147 = arith.constant 0 : index
    %165 = vector.load %arg15[%c3_145, %c0_146, %c0_147] : memref<8x32x128xf32, #tpu.memory_space<vmem>>, vector<1x32x128xf32>
    %166 = vector.shape_cast %165 : vector<1x32x128xf32> to vector<32x128xf32>
    %167 = vector.shape_cast %164 : vector<8x128xf32> to vector<8x1x128xf32>
    %168 = vector.shape_cast %166 : vector<32x128xf32> to vector<1x32x128xf32>
    %169 = vector.broadcast %167 : vector<8x1x128xf32> to vector<8x32x128xf32>
    %170 = vector.broadcast %168 : vector<1x32x128xf32> to vector<8x32x128xf32>
    %171 = arith.mulf %169, %170 : vector<8x32x128xf32>
    %172 = arith.addf %162, %171 : vector<8x32x128xf32>
    %c4_148 = arith.constant 4 : index
    %c0_149 = arith.constant 0 : index
    %c0_150 = arith.constant 0 : index
    %173 = vector.load %arg14[%c4_148, %c0_149, %c0_150] : memref<8x32x128xf32, #tpu.memory_space<vmem>>, vector<1x8x128xf32>
    %174 = vector.shape_cast %173 : vector<1x8x128xf32> to vector<8x128xf32>
    %c4_151 = arith.constant 4 : index
    %c0_152 = arith.constant 0 : index
    %c0_153 = arith.constant 0 : index
    %175 = vector.load %arg15[%c4_151, %c0_152, %c0_153] : memref<8x32x128xf32, #tpu.memory_space<vmem>>, vector<1x32x128xf32>
    %176 = vector.shape_cast %175 : vector<1x32x128xf32> to vector<32x128xf32>
    %177 = vector.shape_cast %174 : vector<8x128xf32> to vector<8x1x128xf32>
    %178 = vector.shape_cast %176 : vector<32x128xf32> to vector<1x32x128xf32>
    %179 = vector.broadcast %177 : vector<8x1x128xf32> to vector<8x32x128xf32>
    %180 = vector.broadcast %178 : vector<1x32x128xf32> to vector<8x32x128xf32>
    %181 = arith.mulf %179, %180 : vector<8x32x128xf32>
    %182 = arith.addf %172, %181 : vector<8x32x128xf32>
    %c5_154 = arith.constant 5 : index
    %c0_155 = arith.constant 0 : index
    %c0_156 = arith.constant 0 : index
    %183 = vector.load %arg14[%c5_154, %c0_155, %c0_156] : memref<8x32x128xf32, #tpu.memory_space<vmem>>, vector<1x8x128xf32>
    %184 = vector.shape_cast %183 : vector<1x8x128xf32> to vector<8x128xf32>
    %c5_157 = arith.constant 5 : index
    %c0_158 = arith.constant 0 : index
    %c0_159 = arith.constant 0 : index
    %185 = vector.load %arg15[%c5_157, %c0_158, %c0_159] : memref<8x32x128xf32, #tpu.memory_space<vmem>>, vector<1x32x128xf32>
    %186 = vector.shape_cast %185 : vector<1x32x128xf32> to vector<32x128xf32>
    %187 = vector.shape_cast %184 : vector<8x128xf32> to vector<8x1x128xf32>
    %188 = vector.shape_cast %186 : vector<32x128xf32> to vector<1x32x128xf32>
    %189 = vector.broadcast %187 : vector<8x1x128xf32> to vector<8x32x128xf32>
    %190 = vector.broadcast %188 : vector<1x32x128xf32> to vector<8x32x128xf32>
    %191 = arith.mulf %189, %190 : vector<8x32x128xf32>
    %192 = arith.addf %182, %191 : vector<8x32x128xf32>
    %c6_160 = arith.constant 6 : index
    %c0_161 = arith.constant 0 : index
    %c0_162 = arith.constant 0 : index
    %193 = vector.load %arg14[%c6_160, %c0_161, %c0_162] : memref<8x32x128xf32, #tpu.memory_space<vmem>>, vector<1x8x128xf32>
    %194 = vector.shape_cast %193 : vector<1x8x128xf32> to vector<8x128xf32>
    %c6_163 = arith.constant 6 : index
    %c0_164 = arith.constant 0 : index
    %c0_165 = arith.constant 0 : index
    %195 = vector.load %arg15[%c6_163, %c0_164, %c0_165] : memref<8x32x128xf32, #tpu.memory_space<vmem>>, vector<1x32x128xf32>
    %196 = vector.shape_cast %195 : vector<1x32x128xf32> to vector<32x128xf32>
    %197 = vector.shape_cast %194 : vector<8x128xf32> to vector<8x1x128xf32>
    %198 = vector.shape_cast %196 : vector<32x128xf32> to vector<1x32x128xf32>
    %199 = vector.broadcast %197 : vector<8x1x128xf32> to vector<8x32x128xf32>
    %200 = vector.broadcast %198 : vector<1x32x128xf32> to vector<8x32x128xf32>
    %201 = arith.mulf %199, %200 : vector<8x32x128xf32>
    %202 = arith.addf %192, %201 : vector<8x32x128xf32>
    %c7_166 = arith.constant 7 : index
    %c0_167 = arith.constant 0 : index
    %c0_168 = arith.constant 0 : index
    %203 = vector.load %arg14[%c7_166, %c0_167, %c0_168] : memref<8x32x128xf32, #tpu.memory_space<vmem>>, vector<1x8x128xf32>
    %204 = vector.shape_cast %203 : vector<1x8x128xf32> to vector<8x128xf32>
    %c7_169 = arith.constant 7 : index
    %c0_170 = arith.constant 0 : index
    %c0_171 = arith.constant 0 : index
    %205 = vector.load %arg15[%c7_169, %c0_170, %c0_171] : memref<8x32x128xf32, #tpu.memory_space<vmem>>, vector<1x32x128xf32>
    %206 = vector.shape_cast %205 : vector<1x32x128xf32> to vector<32x128xf32>
    %207 = vector.shape_cast %204 : vector<8x128xf32> to vector<8x1x128xf32>
    %208 = vector.shape_cast %206 : vector<32x128xf32> to vector<1x32x128xf32>
    %209 = vector.broadcast %207 : vector<8x1x128xf32> to vector<8x32x128xf32>
    %210 = vector.broadcast %208 : vector<1x32x128xf32> to vector<8x32x128xf32>
    %211 = arith.mulf %209, %210 : vector<8x32x128xf32>
    %212 = arith.addf %202, %211 : vector<8x32x128xf32>
    %213 = vector.extract_strided_slice %4 {offsets = [0, 0, 0], sizes = [1, 32, 256], strides = [1, 1, 1]} : vector<4x32x256xbf16> to vector<1x32x256xbf16>
    %214 = vector.shape_cast %213 : vector<1x32x256xbf16> to vector<32x256xbf16>
    %215 = vector.shape_cast %212 : vector<8x32x128xf32> to vector<256x128xf32>
    %216 = arith.truncf %215 : vector<256x128xf32> to vector<256x128xbf16>
    %cst_172 = arith.constant dense<0.000000e+00> : vector<32x128xf32>
    %217 = tpu.matmul %214, %216, %cst_172 {dimension_numbers = #tpu.dot_dimension_numbers<[1], [0], [0], [1], [0, 0, 1, 1], [], []>} : vector<32x256xbf16>, vector<256x128xbf16>, vector<32x128xf32> -> vector<32x128xf32>
    %218 = arith.addf %131, %217 : vector<32x128xf32>
    %cst_173 = arith.constant 0.000000e+00 : f32
    %219 = vector.broadcast %cst_173 : f32 to vector<8x32x128xf32>
    %c0_174 = arith.constant 0 : index
    %c8 = arith.constant 8 : index
    %c0_175 = arith.constant 0 : index
    %220 = vector.load %arg14[%c0_174, %c8, %c0_175] : memref<8x32x128xf32, #tpu.memory_space<vmem>>, vector<1x8x128xf32>
    %221 = vector.shape_cast %220 : vector<1x8x128xf32> to vector<8x128xf32>
    %c0_176 = arith.constant 0 : index
    %c0_177 = arith.constant 0 : index
    %c0_178 = arith.constant 0 : index
    %222 = vector.load %arg15[%c0_176, %c0_177, %c0_178] : memref<8x32x128xf32, #tpu.memory_space<vmem>>, vector<1x32x128xf32>
    %223 = vector.shape_cast %222 : vector<1x32x128xf32> to vector<32x128xf32>
    %224 = vector.shape_cast %221 : vector<8x128xf32> to vector<8x1x128xf32>
    %225 = vector.shape_cast %223 : vector<32x128xf32> to vector<1x32x128xf32>
    %226 = vector.broadcast %224 : vector<8x1x128xf32> to vector<8x32x128xf32>
    %227 = vector.broadcast %225 : vector<1x32x128xf32> to vector<8x32x128xf32>
    %228 = arith.mulf %226, %227 : vector<8x32x128xf32>
    %229 = arith.addf %219, %228 : vector<8x32x128xf32>
    %c1_179 = arith.constant 1 : index
    %c8_180 = arith.constant 8 : index
    %c0_181 = arith.constant 0 : index
    %230 = vector.load %arg14[%c1_179, %c8_180, %c0_181] : memref<8x32x128xf32, #tpu.memory_space<vmem>>, vector<1x8x128xf32>
    %231 = vector.shape_cast %230 : vector<1x8x128xf32> to vector<8x128xf32>
    %c1_182 = arith.constant 1 : index
    %c0_183 = arith.constant 0 : index
    %c0_184 = arith.constant 0 : index
    %232 = vector.load %arg15[%c1_182, %c0_183, %c0_184] : memref<8x32x128xf32, #tpu.memory_space<vmem>>, vector<1x32x128xf32>
    %233 = vector.shape_cast %232 : vector<1x32x128xf32> to vector<32x128xf32>
    %234 = vector.shape_cast %231 : vector<8x128xf32> to vector<8x1x128xf32>
    %235 = vector.shape_cast %233 : vector<32x128xf32> to vector<1x32x128xf32>
    %236 = vector.broadcast %234 : vector<8x1x128xf32> to vector<8x32x128xf32>
    %237 = vector.broadcast %235 : vector<1x32x128xf32> to vector<8x32x128xf32>
    %238 = arith.mulf %236, %237 : vector<8x32x128xf32>
    %239 = arith.addf %229, %238 : vector<8x32x128xf32>
    %c2_185 = arith.constant 2 : index
    %c8_186 = arith.constant 8 : index
    %c0_187 = arith.constant 0 : index
    %240 = vector.load %arg14[%c2_185, %c8_186, %c0_187] : memref<8x32x128xf32, #tpu.memory_space<vmem>>, vector<1x8x128xf32>
    %241 = vector.shape_cast %240 : vector<1x8x128xf32> to vector<8x128xf32>
    %c2_188 = arith.constant 2 : index
    %c0_189 = arith.constant 0 : index
    %c0_190 = arith.constant 0 : index
    %242 = vector.load %arg15[%c2_188, %c0_189, %c0_190] : memref<8x32x128xf32, #tpu.memory_space<vmem>>, vector<1x32x128xf32>
    %243 = vector.shape_cast %242 : vector<1x32x128xf32> to vector<32x128xf32>
    %244 = vector.shape_cast %241 : vector<8x128xf32> to vector<8x1x128xf32>
    %245 = vector.shape_cast %243 : vector<32x128xf32> to vector<1x32x128xf32>
    %246 = vector.broadcast %244 : vector<8x1x128xf32> to vector<8x32x128xf32>
    %247 = vector.broadcast %245 : vector<1x32x128xf32> to vector<8x32x128xf32>
    %248 = arith.mulf %246, %247 : vector<8x32x128xf32>
    %249 = arith.addf %239, %248 : vector<8x32x128xf32>
    %c3_191 = arith.constant 3 : index
    %c8_192 = arith.constant 8 : index
    %c0_193 = arith.constant 0 : index
    %250 = vector.load %arg14[%c3_191, %c8_192, %c0_193] : memref<8x32x128xf32, #tpu.memory_space<vmem>>, vector<1x8x128xf32>
    %251 = vector.shape_cast %250 : vector<1x8x128xf32> to vector<8x128xf32>
    %c3_194 = arith.constant 3 : index
    %c0_195 = arith.constant 0 : index
    %c0_196 = arith.constant 0 : index
    %252 = vector.load %arg15[%c3_194, %c0_195, %c0_196] : memref<8x32x128xf32, #tpu.memory_space<vmem>>, vector<1x32x128xf32>
    %253 = vector.shape_cast %252 : vector<1x32x128xf32> to vector<32x128xf32>
    %254 = vector.shape_cast %251 : vector<8x128xf32> to vector<8x1x128xf32>
    %255 = vector.shape_cast %253 : vector<32x128xf32> to vector<1x32x128xf32>
    %256 = vector.broadcast %254 : vector<8x1x128xf32> to vector<8x32x128xf32>
    %257 = vector.broadcast %255 : vector<1x32x128xf32> to vector<8x32x128xf32>
    %258 = arith.mulf %256, %257 : vector<8x32x128xf32>
    %259 = arith.addf %249, %258 : vector<8x32x128xf32>
    %c4_197 = arith.constant 4 : index
    %c8_198 = arith.constant 8 : index
    %c0_199 = arith.constant 0 : index
    %260 = vector.load %arg14[%c4_197, %c8_198, %c0_199] : memref<8x32x128xf32, #tpu.memory_space<vmem>>, vector<1x8x128xf32>
    %261 = vector.shape_cast %260 : vector<1x8x128xf32> to vector<8x128xf32>
    %c4_200 = arith.constant 4 : index
    %c0_201 = arith.constant 0 : index
    %c0_202 = arith.constant 0 : index
    %262 = vector.load %arg15[%c4_200, %c0_201, %c0_202] : memref<8x32x128xf32, #tpu.memory_space<vmem>>, vector<1x32x128xf32>
    %263 = vector.shape_cast %262 : vector<1x32x128xf32> to vector<32x128xf32>
    %264 = vector.shape_cast %261 : vector<8x128xf32> to vector<8x1x128xf32>
    %265 = vector.shape_cast %263 : vector<32x128xf32> to vector<1x32x128xf32>
    %266 = vector.broadcast %264 : vector<8x1x128xf32> to vector<8x32x128xf32>
    %267 = vector.broadcast %265 : vector<1x32x128xf32> to vector<8x32x128xf32>
    %268 = arith.mulf %266, %267 : vector<8x32x128xf32>
    %269 = arith.addf %259, %268 : vector<8x32x128xf32>
    %c5_203 = arith.constant 5 : index
    %c8_204 = arith.constant 8 : index
    %c0_205 = arith.constant 0 : index
    %270 = vector.load %arg14[%c5_203, %c8_204, %c0_205] : memref<8x32x128xf32, #tpu.memory_space<vmem>>, vector<1x8x128xf32>
    %271 = vector.shape_cast %270 : vector<1x8x128xf32> to vector<8x128xf32>
    %c5_206 = arith.constant 5 : index
    %c0_207 = arith.constant 0 : index
    %c0_208 = arith.constant 0 : index
    %272 = vector.load %arg15[%c5_206, %c0_207, %c0_208] : memref<8x32x128xf32, #tpu.memory_space<vmem>>, vector<1x32x128xf32>
    %273 = vector.shape_cast %272 : vector<1x32x128xf32> to vector<32x128xf32>
    %274 = vector.shape_cast %271 : vector<8x128xf32> to vector<8x1x128xf32>
    %275 = vector.shape_cast %273 : vector<32x128xf32> to vector<1x32x128xf32>
    %276 = vector.broadcast %274 : vector<8x1x128xf32> to vector<8x32x128xf32>
    %277 = vector.broadcast %275 : vector<1x32x128xf32> to vector<8x32x128xf32>
    %278 = arith.mulf %276, %277 : vector<8x32x128xf32>
    %279 = arith.addf %269, %278 : vector<8x32x128xf32>
    %c6_209 = arith.constant 6 : index
    %c8_210 = arith.constant 8 : index
    %c0_211 = arith.constant 0 : index
    %280 = vector.load %arg14[%c6_209, %c8_210, %c0_211] : memref<8x32x128xf32, #tpu.memory_space<vmem>>, vector<1x8x128xf32>
    %281 = vector.shape_cast %280 : vector<1x8x128xf32> to vector<8x128xf32>
    %c6_212 = arith.constant 6 : index
    %c0_213 = arith.constant 0 : index
    %c0_214 = arith.constant 0 : index
    %282 = vector.load %arg15[%c6_212, %c0_213, %c0_214] : memref<8x32x128xf32, #tpu.memory_space<vmem>>, vector<1x32x128xf32>
    %283 = vector.shape_cast %282 : vector<1x32x128xf32> to vector<32x128xf32>
    %284 = vector.shape_cast %281 : vector<8x128xf32> to vector<8x1x128xf32>
    %285 = vector.shape_cast %283 : vector<32x128xf32> to vector<1x32x128xf32>
    %286 = vector.broadcast %284 : vector<8x1x128xf32> to vector<8x32x128xf32>
    %287 = vector.broadcast %285 : vector<1x32x128xf32> to vector<8x32x128xf32>
    %288 = arith.mulf %286, %287 : vector<8x32x128xf32>
    %289 = arith.addf %279, %288 : vector<8x32x128xf32>
    %c7_215 = arith.constant 7 : index
    %c8_216 = arith.constant 8 : index
    %c0_217 = arith.constant 0 : index
    %290 = vector.load %arg14[%c7_215, %c8_216, %c0_217] : memref<8x32x128xf32, #tpu.memory_space<vmem>>, vector<1x8x128xf32>
    %291 = vector.shape_cast %290 : vector<1x8x128xf32> to vector<8x128xf32>
    %c7_218 = arith.constant 7 : index
    %c0_219 = arith.constant 0 : index
    %c0_220 = arith.constant 0 : index
    %292 = vector.load %arg15[%c7_218, %c0_219, %c0_220] : memref<8x32x128xf32, #tpu.memory_space<vmem>>, vector<1x32x128xf32>
    %293 = vector.shape_cast %292 : vector<1x32x128xf32> to vector<32x128xf32>
    %294 = vector.shape_cast %291 : vector<8x128xf32> to vector<8x1x128xf32>
    %295 = vector.shape_cast %293 : vector<32x128xf32> to vector<1x32x128xf32>
    %296 = vector.broadcast %294 : vector<8x1x128xf32> to vector<8x32x128xf32>
    %297 = vector.broadcast %295 : vector<1x32x128xf32> to vector<8x32x128xf32>
    %298 = arith.mulf %296, %297 : vector<8x32x128xf32>
    %299 = arith.addf %289, %298 : vector<8x32x128xf32>
    %300 = vector.extract_strided_slice %4 {offsets = [1, 0, 0], sizes = [1, 32, 256], strides = [1, 1, 1]} : vector<4x32x256xbf16> to vector<1x32x256xbf16>
    %301 = vector.shape_cast %300 : vector<1x32x256xbf16> to vector<32x256xbf16>
    %302 = vector.shape_cast %299 : vector<8x32x128xf32> to vector<256x128xf32>
    %303 = arith.truncf %302 : vector<256x128xf32> to vector<256x128xbf16>
    %cst_221 = arith.constant dense<0.000000e+00> : vector<32x128xf32>
    %304 = tpu.matmul %301, %303, %cst_221 {dimension_numbers = #tpu.dot_dimension_numbers<[1], [0], [0], [1], [0, 0, 1, 1], [], []>} : vector<32x256xbf16>, vector<256x128xbf16>, vector<32x128xf32> -> vector<32x128xf32>
    %305 = arith.addf %218, %304 : vector<32x128xf32>
    %cst_222 = arith.constant 0.000000e+00 : f32
    %306 = vector.broadcast %cst_222 : f32 to vector<8x32x128xf32>
    %c0_223 = arith.constant 0 : index
    %c16 = arith.constant 16 : index
    %c0_224 = arith.constant 0 : index
    %307 = vector.load %arg14[%c0_223, %c16, %c0_224] : memref<8x32x128xf32, #tpu.memory_space<vmem>>, vector<1x8x128xf32>
    %308 = vector.shape_cast %307 : vector<1x8x128xf32> to vector<8x128xf32>
    %c0_225 = arith.constant 0 : index
    %c0_226 = arith.constant 0 : index
    %c0_227 = arith.constant 0 : index
    %309 = vector.load %arg15[%c0_225, %c0_226, %c0_227] : memref<8x32x128xf32, #tpu.memory_space<vmem>>, vector<1x32x128xf32>
    %310 = vector.shape_cast %309 : vector<1x32x128xf32> to vector<32x128xf32>
    %311 = vector.shape_cast %308 : vector<8x128xf32> to vector<8x1x128xf32>
    %312 = vector.shape_cast %310 : vector<32x128xf32> to vector<1x32x128xf32>
    %313 = vector.broadcast %311 : vector<8x1x128xf32> to vector<8x32x128xf32>
    %314 = vector.broadcast %312 : vector<1x32x128xf32> to vector<8x32x128xf32>
    %315 = arith.mulf %313, %314 : vector<8x32x128xf32>
    %316 = arith.addf %306, %315 : vector<8x32x128xf32>
    %c1_228 = arith.constant 1 : index
    %c16_229 = arith.constant 16 : index
    %c0_230 = arith.constant 0 : index
    %317 = vector.load %arg14[%c1_228, %c16_229, %c0_230] : memref<8x32x128xf32, #tpu.memory_space<vmem>>, vector<1x8x128xf32>
    %318 = vector.shape_cast %317 : vector<1x8x128xf32> to vector<8x128xf32>
    %c1_231 = arith.constant 1 : index
    %c0_232 = arith.constant 0 : index
    %c0_233 = arith.constant 0 : index
    %319 = vector.load %arg15[%c1_231, %c0_232, %c0_233] : memref<8x32x128xf32, #tpu.memory_space<vmem>>, vector<1x32x128xf32>
    %320 = vector.shape_cast %319 : vector<1x32x128xf32> to vector<32x128xf32>
    %321 = vector.shape_cast %318 : vector<8x128xf32> to vector<8x1x128xf32>
    %322 = vector.shape_cast %320 : vector<32x128xf32> to vector<1x32x128xf32>
    %323 = vector.broadcast %321 : vector<8x1x128xf32> to vector<8x32x128xf32>
    %324 = vector.broadcast %322 : vector<1x32x128xf32> to vector<8x32x128xf32>
    %325 = arith.mulf %323, %324 : vector<8x32x128xf32>
    %326 = arith.addf %316, %325 : vector<8x32x128xf32>
    %c2_234 = arith.constant 2 : index
    %c16_235 = arith.constant 16 : index
    %c0_236 = arith.constant 0 : index
    %327 = vector.load %arg14[%c2_234, %c16_235, %c0_236] : memref<8x32x128xf32, #tpu.memory_space<vmem>>, vector<1x8x128xf32>
    %328 = vector.shape_cast %327 : vector<1x8x128xf32> to vector<8x128xf32>
    %c2_237 = arith.constant 2 : index
    %c0_238 = arith.constant 0 : index
    %c0_239 = arith.constant 0 : index
    %329 = vector.load %arg15[%c2_237, %c0_238, %c0_239] : memref<8x32x128xf32, #tpu.memory_space<vmem>>, vector<1x32x128xf32>
    %330 = vector.shape_cast %329 : vector<1x32x128xf32> to vector<32x128xf32>
    %331 = vector.shape_cast %328 : vector<8x128xf32> to vector<8x1x128xf32>
    %332 = vector.shape_cast %330 : vector<32x128xf32> to vector<1x32x128xf32>
    %333 = vector.broadcast %331 : vector<8x1x128xf32> to vector<8x32x128xf32>
    %334 = vector.broadcast %332 : vector<1x32x128xf32> to vector<8x32x128xf32>
    %335 = arith.mulf %333, %334 : vector<8x32x128xf32>
    %336 = arith.addf %326, %335 : vector<8x32x128xf32>
    %c3_240 = arith.constant 3 : index
    %c16_241 = arith.constant 16 : index
    %c0_242 = arith.constant 0 : index
    %337 = vector.load %arg14[%c3_240, %c16_241, %c0_242] : memref<8x32x128xf32, #tpu.memory_space<vmem>>, vector<1x8x128xf32>
    %338 = vector.shape_cast %337 : vector<1x8x128xf32> to vector<8x128xf32>
    %c3_243 = arith.constant 3 : index
    %c0_244 = arith.constant 0 : index
    %c0_245 = arith.constant 0 : index
    %339 = vector.load %arg15[%c3_243, %c0_244, %c0_245] : memref<8x32x128xf32, #tpu.memory_space<vmem>>, vector<1x32x128xf32>
    %340 = vector.shape_cast %339 : vector<1x32x128xf32> to vector<32x128xf32>
    %341 = vector.shape_cast %338 : vector<8x128xf32> to vector<8x1x128xf32>
    %342 = vector.shape_cast %340 : vector<32x128xf32> to vector<1x32x128xf32>
    %343 = vector.broadcast %341 : vector<8x1x128xf32> to vector<8x32x128xf32>
    %344 = vector.broadcast %342 : vector<1x32x128xf32> to vector<8x32x128xf32>
    %345 = arith.mulf %343, %344 : vector<8x32x128xf32>
    %346 = arith.addf %336, %345 : vector<8x32x128xf32>
    %c4_246 = arith.constant 4 : index
    %c16_247 = arith.constant 16 : index
    %c0_248 = arith.constant 0 : index
    %347 = vector.load %arg14[%c4_246, %c16_247, %c0_248] : memref<8x32x128xf32, #tpu.memory_space<vmem>>, vector<1x8x128xf32>
    %348 = vector.shape_cast %347 : vector<1x8x128xf32> to vector<8x128xf32>
    %c4_249 = arith.constant 4 : index
    %c0_250 = arith.constant 0 : index
    %c0_251 = arith.constant 0 : index
    %349 = vector.load %arg15[%c4_249, %c0_250, %c0_251] : memref<8x32x128xf32, #tpu.memory_space<vmem>>, vector<1x32x128xf32>
    %350 = vector.shape_cast %349 : vector<1x32x128xf32> to vector<32x128xf32>
    %351 = vector.shape_cast %348 : vector<8x128xf32> to vector<8x1x128xf32>
    %352 = vector.shape_cast %350 : vector<32x128xf32> to vector<1x32x128xf32>
    %353 = vector.broadcast %351 : vector<8x1x128xf32> to vector<8x32x128xf32>
    %354 = vector.broadcast %352 : vector<1x32x128xf32> to vector<8x32x128xf32>
    %355 = arith.mulf %353, %354 : vector<8x32x128xf32>
    %356 = arith.addf %346, %355 : vector<8x32x128xf32>
    %c5_252 = arith.constant 5 : index
    %c16_253 = arith.constant 16 : index
    %c0_254 = arith.constant 0 : index
    %357 = vector.load %arg14[%c5_252, %c16_253, %c0_254] : memref<8x32x128xf32, #tpu.memory_space<vmem>>, vector<1x8x128xf32>
    %358 = vector.shape_cast %357 : vector<1x8x128xf32> to vector<8x128xf32>
    %c5_255 = arith.constant 5 : index
    %c0_256 = arith.constant 0 : index
    %c0_257 = arith.constant 0 : index
    %359 = vector.load %arg15[%c5_255, %c0_256, %c0_257] : memref<8x32x128xf32, #tpu.memory_space<vmem>>, vector<1x32x128xf32>
    %360 = vector.shape_cast %359 : vector<1x32x128xf32> to vector<32x128xf32>
    %361 = vector.shape_cast %358 : vector<8x128xf32> to vector<8x1x128xf32>
    %362 = vector.shape_cast %360 : vector<32x128xf32> to vector<1x32x128xf32>
    %363 = vector.broadcast %361 : vector<8x1x128xf32> to vector<8x32x128xf32>
    %364 = vector.broadcast %362 : vector<1x32x128xf32> to vector<8x32x128xf32>
    %365 = arith.mulf %363, %364 : vector<8x32x128xf32>
    %366 = arith.addf %356, %365 : vector<8x32x128xf32>
    %c6_258 = arith.constant 6 : index
    %c16_259 = arith.constant 16 : index
    %c0_260 = arith.constant 0 : index
    %367 = vector.load %arg14[%c6_258, %c16_259, %c0_260] : memref<8x32x128xf32, #tpu.memory_space<vmem>>, vector<1x8x128xf32>
    %368 = vector.shape_cast %367 : vector<1x8x128xf32> to vector<8x128xf32>
    %c6_261 = arith.constant 6 : index
    %c0_262 = arith.constant 0 : index
    %c0_263 = arith.constant 0 : index
    %369 = vector.load %arg15[%c6_261, %c0_262, %c0_263] : memref<8x32x128xf32, #tpu.memory_space<vmem>>, vector<1x32x128xf32>
    %370 = vector.shape_cast %369 : vector<1x32x128xf32> to vector<32x128xf32>
    %371 = vector.shape_cast %368 : vector<8x128xf32> to vector<8x1x128xf32>
    %372 = vector.shape_cast %370 : vector<32x128xf32> to vector<1x32x128xf32>
    %373 = vector.broadcast %371 : vector<8x1x128xf32> to vector<8x32x128xf32>
    %374 = vector.broadcast %372 : vector<1x32x128xf32> to vector<8x32x128xf32>
    %375 = arith.mulf %373, %374 : vector<8x32x128xf32>
    %376 = arith.addf %366, %375 : vector<8x32x128xf32>
    %c7_264 = arith.constant 7 : index
    %c16_265 = arith.constant 16 : index
    %c0_266 = arith.constant 0 : index
    %377 = vector.load %arg14[%c7_264, %c16_265, %c0_266] : memref<8x32x128xf32, #tpu.memory_space<vmem>>, vector<1x8x128xf32>
    %378 = vector.shape_cast %377 : vector<1x8x128xf32> to vector<8x128xf32>
    %c7_267 = arith.constant 7 : index
    %c0_268 = arith.constant 0 : index
    %c0_269 = arith.constant 0 : index
    %379 = vector.load %arg15[%c7_267, %c0_268, %c0_269] : memref<8x32x128xf32, #tpu.memory_space<vmem>>, vector<1x32x128xf32>
    %380 = vector.shape_cast %379 : vector<1x32x128xf32> to vector<32x128xf32>
    %381 = vector.shape_cast %378 : vector<8x128xf32> to vector<8x1x128xf32>
    %382 = vector.shape_cast %380 : vector<32x128xf32> to vector<1x32x128xf32>
    %383 = vector.broadcast %381 : vector<8x1x128xf32> to vector<8x32x128xf32>
    %384 = vector.broadcast %382 : vector<1x32x128xf32> to vector<8x32x128xf32>
    %385 = arith.mulf %383, %384 : vector<8x32x128xf32>
    %386 = arith.addf %376, %385 : vector<8x32x128xf32>
    %387 = vector.extract_strided_slice %4 {offsets = [2, 0, 0], sizes = [1, 32, 256], strides = [1, 1, 1]} : vector<4x32x256xbf16> to vector<1x32x256xbf16>
    %388 = vector.shape_cast %387 : vector<1x32x256xbf16> to vector<32x256xbf16>
    %389 = vector.shape_cast %386 : vector<8x32x128xf32> to vector<256x128xf32>
    %390 = arith.truncf %389 : vector<256x128xf32> to vector<256x128xbf16>
    %cst_270 = arith.constant dense<0.000000e+00> : vector<32x128xf32>
    %391 = tpu.matmul %388, %390, %cst_270 {dimension_numbers = #tpu.dot_dimension_numbers<[1], [0], [0], [1], [0, 0, 1, 1], [], []>} : vector<32x256xbf16>, vector<256x128xbf16>, vector<32x128xf32> -> vector<32x128xf32>
    %392 = arith.addf %305, %391 : vector<32x128xf32>
    %cst_271 = arith.constant 0.000000e+00 : f32
    %393 = vector.broadcast %cst_271 : f32 to vector<8x32x128xf32>
    %c0_272 = arith.constant 0 : index
    %c24 = arith.constant 24 : index
    %c0_273 = arith.constant 0 : index
    %394 = vector.load %arg14[%c0_272, %c24, %c0_273] : memref<8x32x128xf32, #tpu.memory_space<vmem>>, vector<1x8x128xf32>
    %395 = vector.shape_cast %394 : vector<1x8x128xf32> to vector<8x128xf32>
    %c0_274 = arith.constant 0 : index
    %c0_275 = arith.constant 0 : index
    %c0_276 = arith.constant 0 : index
    %396 = vector.load %arg15[%c0_274, %c0_275, %c0_276] : memref<8x32x128xf32, #tpu.memory_space<vmem>>, vector<1x32x128xf32>
    %397 = vector.shape_cast %396 : vector<1x32x128xf32> to vector<32x128xf32>
    %398 = vector.shape_cast %395 : vector<8x128xf32> to vector<8x1x128xf32>
    %399 = vector.shape_cast %397 : vector<32x128xf32> to vector<1x32x128xf32>
    %400 = vector.broadcast %398 : vector<8x1x128xf32> to vector<8x32x128xf32>
    %401 = vector.broadcast %399 : vector<1x32x128xf32> to vector<8x32x128xf32>
    %402 = arith.mulf %400, %401 : vector<8x32x128xf32>
    %403 = arith.addf %393, %402 : vector<8x32x128xf32>
    %c1_277 = arith.constant 1 : index
    %c24_278 = arith.constant 24 : index
    %c0_279 = arith.constant 0 : index
    %404 = vector.load %arg14[%c1_277, %c24_278, %c0_279] : memref<8x32x128xf32, #tpu.memory_space<vmem>>, vector<1x8x128xf32>
    %405 = vector.shape_cast %404 : vector<1x8x128xf32> to vector<8x128xf32>
    %c1_280 = arith.constant 1 : index
    %c0_281 = arith.constant 0 : index
    %c0_282 = arith.constant 0 : index
    %406 = vector.load %arg15[%c1_280, %c0_281, %c0_282] : memref<8x32x128xf32, #tpu.memory_space<vmem>>, vector<1x32x128xf32>
    %407 = vector.shape_cast %406 : vector<1x32x128xf32> to vector<32x128xf32>
    %408 = vector.shape_cast %405 : vector<8x128xf32> to vector<8x1x128xf32>
    %409 = vector.shape_cast %407 : vector<32x128xf32> to vector<1x32x128xf32>
    %410 = vector.broadcast %408 : vector<8x1x128xf32> to vector<8x32x128xf32>
    %411 = vector.broadcast %409 : vector<1x32x128xf32> to vector<8x32x128xf32>
    %412 = arith.mulf %410, %411 : vector<8x32x128xf32>
    %413 = arith.addf %403, %412 : vector<8x32x128xf32>
    %c2_283 = arith.constant 2 : index
    %c24_284 = arith.constant 24 : index
    %c0_285 = arith.constant 0 : index
    %414 = vector.load %arg14[%c2_283, %c24_284, %c0_285] : memref<8x32x128xf32, #tpu.memory_space<vmem>>, vector<1x8x128xf32>
    %415 = vector.shape_cast %414 : vector<1x8x128xf32> to vector<8x128xf32>
    %c2_286 = arith.constant 2 : index
    %c0_287 = arith.constant 0 : index
    %c0_288 = arith.constant 0 : index
    %416 = vector.load %arg15[%c2_286, %c0_287, %c0_288] : memref<8x32x128xf32, #tpu.memory_space<vmem>>, vector<1x32x128xf32>
    %417 = vector.shape_cast %416 : vector<1x32x128xf32> to vector<32x128xf32>
    %418 = vector.shape_cast %415 : vector<8x128xf32> to vector<8x1x128xf32>
    %419 = vector.shape_cast %417 : vector<32x128xf32> to vector<1x32x128xf32>
    %420 = vector.broadcast %418 : vector<8x1x128xf32> to vector<8x32x128xf32>
    %421 = vector.broadcast %419 : vector<1x32x128xf32> to vector<8x32x128xf32>
    %422 = arith.mulf %420, %421 : vector<8x32x128xf32>
    %423 = arith.addf %413, %422 : vector<8x32x128xf32>
    %c3_289 = arith.constant 3 : index
    %c24_290 = arith.constant 24 : index
    %c0_291 = arith.constant 0 : index
    %424 = vector.load %arg14[%c3_289, %c24_290, %c0_291] : memref<8x32x128xf32, #tpu.memory_space<vmem>>, vector<1x8x128xf32>
    %425 = vector.shape_cast %424 : vector<1x8x128xf32> to vector<8x128xf32>
    %c3_292 = arith.constant 3 : index
    %c0_293 = arith.constant 0 : index
    %c0_294 = arith.constant 0 : index
    %426 = vector.load %arg15[%c3_292, %c0_293, %c0_294] : memref<8x32x128xf32, #tpu.memory_space<vmem>>, vector<1x32x128xf32>
    %427 = vector.shape_cast %426 : vector<1x32x128xf32> to vector<32x128xf32>
    %428 = vector.shape_cast %425 : vector<8x128xf32> to vector<8x1x128xf32>
    %429 = vector.shape_cast %427 : vector<32x128xf32> to vector<1x32x128xf32>
    %430 = vector.broadcast %428 : vector<8x1x128xf32> to vector<8x32x128xf32>
    %431 = vector.broadcast %429 : vector<1x32x128xf32> to vector<8x32x128xf32>
    %432 = arith.mulf %430, %431 : vector<8x32x128xf32>
    %433 = arith.addf %423, %432 : vector<8x32x128xf32>
    %c4_295 = arith.constant 4 : index
    %c24_296 = arith.constant 24 : index
    %c0_297 = arith.constant 0 : index
    %434 = vector.load %arg14[%c4_295, %c24_296, %c0_297] : memref<8x32x128xf32, #tpu.memory_space<vmem>>, vector<1x8x128xf32>
    %435 = vector.shape_cast %434 : vector<1x8x128xf32> to vector<8x128xf32>
    %c4_298 = arith.constant 4 : index
    %c0_299 = arith.constant 0 : index
    %c0_300 = arith.constant 0 : index
    %436 = vector.load %arg15[%c4_298, %c0_299, %c0_300] : memref<8x32x128xf32, #tpu.memory_space<vmem>>, vector<1x32x128xf32>
    %437 = vector.shape_cast %436 : vector<1x32x128xf32> to vector<32x128xf32>
    %438 = vector.shape_cast %435 : vector<8x128xf32> to vector<8x1x128xf32>
    %439 = vector.shape_cast %437 : vector<32x128xf32> to vector<1x32x128xf32>
    %440 = vector.broadcast %438 : vector<8x1x128xf32> to vector<8x32x128xf32>
    %441 = vector.broadcast %439 : vector<1x32x128xf32> to vector<8x32x128xf32>
    %442 = arith.mulf %440, %441 : vector<8x32x128xf32>
    %443 = arith.addf %433, %442 : vector<8x32x128xf32>
    %c5_301 = arith.constant 5 : index
    %c24_302 = arith.constant 24 : index
    %c0_303 = arith.constant 0 : index
    %444 = vector.load %arg14[%c5_301, %c24_302, %c0_303] : memref<8x32x128xf32, #tpu.memory_space<vmem>>, vector<1x8x128xf32>
    %445 = vector.shape_cast %444 : vector<1x8x128xf32> to vector<8x128xf32>
    %c5_304 = arith.constant 5 : index
    %c0_305 = arith.constant 0 : index
    %c0_306 = arith.constant 0 : index
    %446 = vector.load %arg15[%c5_304, %c0_305, %c0_306] : memref<8x32x128xf32, #tpu.memory_space<vmem>>, vector<1x32x128xf32>
    %447 = vector.shape_cast %446 : vector<1x32x128xf32> to vector<32x128xf32>
    %448 = vector.shape_cast %445 : vector<8x128xf32> to vector<8x1x128xf32>
    %449 = vector.shape_cast %447 : vector<32x128xf32> to vector<1x32x128xf32>
    %450 = vector.broadcast %448 : vector<8x1x128xf32> to vector<8x32x128xf32>
    %451 = vector.broadcast %449 : vector<1x32x128xf32> to vector<8x32x128xf32>
    %452 = arith.mulf %450, %451 : vector<8x32x128xf32>
    %453 = arith.addf %443, %452 : vector<8x32x128xf32>
    %c6_307 = arith.constant 6 : index
    %c24_308 = arith.constant 24 : index
    %c0_309 = arith.constant 0 : index
    %454 = vector.load %arg14[%c6_307, %c24_308, %c0_309] : memref<8x32x128xf32, #tpu.memory_space<vmem>>, vector<1x8x128xf32>
    %455 = vector.shape_cast %454 : vector<1x8x128xf32> to vector<8x128xf32>
    %c6_310 = arith.constant 6 : index
    %c0_311 = arith.constant 0 : index
    %c0_312 = arith.constant 0 : index
    %456 = vector.load %arg15[%c6_310, %c0_311, %c0_312] : memref<8x32x128xf32, #tpu.memory_space<vmem>>, vector<1x32x128xf32>
    %457 = vector.shape_cast %456 : vector<1x32x128xf32> to vector<32x128xf32>
    %458 = vector.shape_cast %455 : vector<8x128xf32> to vector<8x1x128xf32>
    %459 = vector.shape_cast %457 : vector<32x128xf32> to vector<1x32x128xf32>
    %460 = vector.broadcast %458 : vector<8x1x128xf32> to vector<8x32x128xf32>
    %461 = vector.broadcast %459 : vector<1x32x128xf32> to vector<8x32x128xf32>
    %462 = arith.mulf %460, %461 : vector<8x32x128xf32>
    %463 = arith.addf %453, %462 : vector<8x32x128xf32>
    %c7_313 = arith.constant 7 : index
    %c24_314 = arith.constant 24 : index
    %c0_315 = arith.constant 0 : index
    %464 = vector.load %arg14[%c7_313, %c24_314, %c0_315] : memref<8x32x128xf32, #tpu.memory_space<vmem>>, vector<1x8x128xf32>
    %465 = vector.shape_cast %464 : vector<1x8x128xf32> to vector<8x128xf32>
    %c7_316 = arith.constant 7 : index
    %c0_317 = arith.constant 0 : index
    %c0_318 = arith.constant 0 : index
    %466 = vector.load %arg15[%c7_316, %c0_317, %c0_318] : memref<8x32x128xf32, #tpu.memory_space<vmem>>, vector<1x32x128xf32>
    %467 = vector.shape_cast %466 : vector<1x32x128xf32> to vector<32x128xf32>
    %468 = vector.shape_cast %465 : vector<8x128xf32> to vector<8x1x128xf32>
    %469 = vector.shape_cast %467 : vector<32x128xf32> to vector<1x32x128xf32>
    %470 = vector.broadcast %468 : vector<8x1x128xf32> to vector<8x32x128xf32>
    %471 = vector.broadcast %469 : vector<1x32x128xf32> to vector<8x32x128xf32>
    %472 = arith.mulf %470, %471 : vector<8x32x128xf32>
    %473 = arith.addf %463, %472 : vector<8x32x128xf32>
    %474 = vector.extract_strided_slice %4 {offsets = [3, 0, 0], sizes = [1, 32, 256], strides = [1, 1, 1]} : vector<4x32x256xbf16> to vector<1x32x256xbf16>
    %475 = vector.shape_cast %474 : vector<1x32x256xbf16> to vector<32x256xbf16>
    %476 = vector.shape_cast %473 : vector<8x32x128xf32> to vector<256x128xf32>
    %477 = arith.truncf %476 : vector<256x128xf32> to vector<256x128xbf16>
    %cst_319 = arith.constant dense<0.000000e+00> : vector<32x128xf32>
    %478 = tpu.matmul %475, %477, %cst_319 {dimension_numbers = #tpu.dot_dimension_numbers<[1], [0], [0], [1], [0, 0, 1, 1], [], []>} : vector<32x256xbf16>, vector<256x128xbf16>, vector<32x128xf32> -> vector<32x128xf32>
    %479 = arith.addf %392, %478 : vector<32x128xf32>
    %480 = vector.broadcast %5 : vector<32x1xf32> to vector<32x128xf32>
    %481 = arith.addf %479, %480 : vector<32x128xf32>
    %cst_320 = arith.constant 0.000000e+00 : f32
    %482 = vector.broadcast %cst_320 : f32 to vector<32x128xf32>
    %483 = arith.maximumf %481, %482 : vector<32x128xf32>
    %484 = arith.truncf %483 : vector<32x128xf32> to vector<32x128xbf16>
    %cst_321 = arith.constant dense<0.000000e+00> : vector<64x128xf32>
    %485 = tpu.matmul %6, %484, %cst_321 {dimension_numbers = #tpu.dot_dimension_numbers<[1], [0], [0], [1], [0, 0, 1, 1], [], []>} : vector<64x32xbf16>, vector<32x128xbf16>, vector<64x128xf32> -> vector<64x128xf32>
    %c0_322 = arith.constant 0 : index
    %c0_323 = arith.constant 0 : index
    %486 = vector.load %arg3[%c0_322, %c0_323] : memref<16x128xbf16, #tpu.memory_space<vmem>>, vector<16x128xbf16>
    %cst_324 = arith.constant dense<0.000000e+00> : vector<64x128xf32>
    %487 = tpu.matmul %7, %486, %cst_324 {dimension_numbers = #tpu.dot_dimension_numbers<[1], [0], [0], [1], [0, 0, 1, 1], [], []>} : vector<64x16xbf16>, vector<16x128xbf16>, vector<64x128xf32> -> vector<64x128xf32>
    %488 = arith.addf %485, %487 : vector<64x128xf32>
    %489 = vector.broadcast %8 : vector<64x1xf32> to vector<64x128xf32>
    %490 = arith.addf %488, %489 : vector<64x128xf32>
    %cst_325 = arith.constant 0.000000e+00 : f32
    %491 = vector.broadcast %cst_325 : f32 to vector<64x128xf32>
    %492 = arith.maximumf %490, %491 : vector<64x128xf32>
    %493 = arith.truncf %492 : vector<64x128xf32> to vector<64x128xbf16>
    %cst_326 = arith.constant dense<0.000000e+00> : vector<64x128xf32>
    %494 = tpu.matmul %9, %493, %cst_326 {dimension_numbers = #tpu.dot_dimension_numbers<[1], [0], [0], [1], [0, 0, 1, 1], [], []>} : vector<64x64xbf16>, vector<64x128xbf16>, vector<64x128xf32> -> vector<64x128xf32>
    %495 = vector.broadcast %10 : vector<64x1xf32> to vector<64x128xf32>
    %496 = arith.addf %494, %495 : vector<64x128xf32>
    %cst_327 = arith.constant 0.000000e+00 : f32
    %497 = vector.broadcast %cst_327 : f32 to vector<64x128xf32>
    %498 = arith.maximumf %496, %497 : vector<64x128xf32>
    %c0_328 = arith.constant 0 : index
    %c0_329 = arith.constant 0 : index
    %499 = vector.load %arg13[%c0_328, %c0_329] : memref<64x128xf32, #tpu.memory_space<vmem>>, vector<64x128xf32>
    tpu.vector_store %arg13[%c0_328, %c0_329], %498 {strides = array<i32>} : memref<64x128xf32, #tpu.memory_space<vmem>>, vector<64x128xf32>,
    return
  }
  func.func @transform_0(%arg0: i32) -> (i32, i32, i32) {
    %c0_i32 = arith.constant 0 : i32
    %c0_i32_0 = arith.constant 0 : i32
    %c0_i32_1 = arith.constant 0 : i32
    return %c0_i32, %c0_i32_0, %arg0 : i32, i32, i32
  }
  func.func @transform_1(%arg0: i32) -> (i32, i32, i32) {
    %c0_i32 = arith.constant 0 : i32
    %c0_i32_0 = arith.constant 0 : i32
    %c0_i32_1 = arith.constant 0 : i32
    return %c0_i32, %c0_i32_0, %arg0 : i32, i32, i32
  }
  func.func @transform_2(%arg0: i32) -> (i32, i32) {
    %c0_i32 = arith.constant 0 : i32
    %c0_i32_0 = arith.constant 0 : i32
    return %c0_i32, %arg0 : i32, i32
  }
  func.func @transform_3(%arg0: i32) -> (i32, i32) {
    %c0_i32 = arith.constant 0 : i32
    %c0_i32_0 = arith.constant 0 : i32
    %c0_i32_1 = arith.constant 0 : i32
    return %c0_i32, %c0_i32_0 : i32, i32
  }
  func.func @transform_4(%arg0: i32) -> (i32, i32) {
    %c0_i32 = arith.constant 0 : i32
    %c0_i32_0 = arith.constant 0 : i32
    %c0_i32_1 = arith.constant 0 : i32
    return %c0_i32, %c0_i32_0 : i32, i32
  }
  func.func @transform_5(%arg0: i32) -> (i32, i32, i32) {
    %c0_i32 = arith.constant 0 : i32
    %c0_i32_0 = arith.constant 0 : i32
    %c0_i32_1 = arith.constant 0 : i32
    %c0_i32_2 = arith.constant 0 : i32
    return %c0_i32, %c0_i32_0, %c0_i32_1 : i32, i32, i32
  }
  func.func @transform_6(%arg0: i32) -> (i32, i32) {
    %c0_i32 = arith.constant 0 : i32
    %c0_i32_0 = arith.constant 0 : i32
    %c0_i32_1 = arith.constant 0 : i32
    return %c0_i32, %c0_i32_0 : i32, i32
  }
  func.func @transform_7(%arg0: i32) -> (i32, i32) {
    %c0_i32 = arith.constant 0 : i32
    %c0_i32_0 = arith.constant 0 : i32
    %c0_i32_1 = arith.constant 0 : i32
    return %c0_i32, %c0_i32_0 : i32, i32
  }
  func.func @transform_8(%arg0: i32) -> (i32, i32) {
    %c0_i32 = arith.constant 0 : i32
    %c0_i32_0 = arith.constant 0 : i32
    %c0_i32_1 = arith.constant 0 : i32
    return %c0_i32, %c0_i32_0 : i32, i32
  }
  func.func @transform_9(%arg0: i32) -> (i32, i32) {
    %c0_i32 = arith.constant 0 : i32
    %c0_i32_0 = arith.constant 0 : i32
    %c0_i32_1 = arith.constant 0 : i32
    return %c0_i32, %c0_i32_0 : i32, i32
  }
  func.func @transform_10(%arg0: i32) -> (i32, i32) {
    %c0_i32 = arith.constant 0 : i32
    %c0_i32_0 = arith.constant 0 : i32
    %c0_i32_1 = arith.constant 0 : i32
    return %c0_i32, %c0_i32_0 : i32, i32
  }
  func.func @transform_11(%arg0: i32) -> (i32, i32) {
    %c0_i32 = arith.constant 0 : i32
    %c0_i32_0 = arith.constant 0 : i32
    %c0_i32_1 = arith.constant 0 : i32
    return %c0_i32, %c0_i32_0 : i32, i32
  }
  func.func @transform_12(%arg0: i32) -> (i32, i32) {
    %c0_i32 = arith.constant 0 : i32
    %c0_i32_0 = arith.constant 0 : i32
    return %c0_i32, %arg0 : i32, i32
  }
}

</mosaic_0001>

<bundles_post_ra>
// kernel: neg.5
= control target key start
LH: loop header
LB: loop body
LE: loop exit
PB: predicated region body
PF: predicated region fallthrough
CT: control target
= control target key end

     0   :  { %s264_s0 = inlined_call_operand.vmem [shape: f32[2,64,64], index: 0, kind: input, shape index: {}]   ;;  %s265_s1 = inlined_call_operand.vmem [shape: f32[2,64,64], index: 1, kind: output, shape index: {}]  }
   0x1   :  { %v2_v0 = vld [vmem:[%s264_s0] sm:$0xff]  ;;  %v130_v2 = vld [vmem:[%s264_s0 + $0x8] sm:$0xff]  ;;  %v134_v7 = vld [vmem:[%s264_s0 + $0x10] sm:$0xff] }
   0x2   :  { %v128_v1 = vld [vmem:[%s264_s0 + $0x40] sm:$0xff]  ;;  %v5_v3 = vxor.u32 2147483648, %v2_v0  ;;  %v20_v5 = vxor.u32 2147483648, %v130_v2  ;;  %v132_v6 = vld [vmem:[%s264_s0 + $0x48] sm:$0xff]  ;;  %v136_v8 = vld [vmem:[%s264_s0 + $0x50] sm:$0xff]  ;;  %v36_v10 = vxor.u32 2147483648, %v134_v7 }
   0x3   :  { %v12_v4 = vxor.u32 2147483648, %v128_v1  ;;  %v28_v9 = vxor.u32 2147483648, %v132_v6  ;;  %v44_v11 = vxor.u32 2147483648, %v136_v8  ;;  %v138_v12 = vld [vmem:[%s264_s0 + $0x18] sm:$0xff]  ;;  %v142_v14 = vld [vmem:[%s264_s0 + $0x20] sm:$0xff]  ;;  %v146_v19 = vld [vmem:[%s264_s0 + $0x28] sm:$0xff] }
   0x4   :  { %v140_v13 = vld [vmem:[%s264_s0 + $0x58] sm:$0xff]  ;;  %7 = vst [vmem:[%s265_s1] sm:$0xff] %v5_v3  ;;  %131 = vst [vmem:[%s265_s1 + $0x8] sm:$0xff] %v20_v5  ;;  %v52_v15 = vxor.u32 2147483648, %v138_v12  ;;  %v68_v17 = vxor.u32 2147483648, %v142_v14  ;;  %v144_v18 = vld [vmem:[%s264_s0 + $0x60] sm:$0xff]  ;;  %v84_v22 = vxor.u32 2147483648, %v146_v19 }
   0x5   :  { %129 = vst [vmem:[%s265_s1 + $0x40] sm:$0xff] %v12_v4  ;;  %v60_v16 = vxor.u32 2147483648, %v140_v13  ;;  %v148_v20 = vld [vmem:[%s264_s0 + $0x68] sm:$0xff]  ;;  %133 = vst [vmem:[%s265_s1 + $0x48] sm:$0xff] %v28_v9  ;;  %v76_v21 = vxor.u32 2147483648, %v144_v18  ;;  %v150_v24 = vld [vmem:[%s264_s0 + $0x30] sm:$0xff] }
   0x6   :  { %135 = vst [vmem:[%s265_s1 + $0x10] sm:$0xff] %v36_v10  ;;  %137 = vst [vmem:[%s265_s1 + $0x50] sm:$0xff] %v44_v11  ;;  %v92_v23 = vxor.u32 2147483648, %v148_v20  ;;  %v152_v25 = vld [vmem:[%s264_s0 + $0x70] sm:$0xff]  ;;  %v154_v26 = vld [vmem:[%s264_s0 + $0x38] sm:$0xff]  ;;  %v100_v27 = vxor.u32 2147483648, %v150_v24 }
   0x7   :  { %139 = vst [vmem:[%s265_s1 + $0x18] sm:$0xff] %v52_v15  ;;  %141 = vst [vmem:[%s265_s1 + $0x58] sm:$0xff] %v60_v16  ;;  %v108_v28 = vxor.u32 2147483648, %v152_v25  ;;  %v116_v29 = vxor.u32 2147483648, %v154_v26  ;;  %v156_v30 = vld [vmem:[%s264_s0 + $0x78] sm:$0xff] }
   0x8   :  { %143 = vst [vmem:[%s265_s1 + $0x20] sm:$0xff] %v68_v17  ;;  %145 = vst [vmem:[%s265_s1 + $0x60] sm:$0xff] %v76_v21  ;;  %v124_v31 = vxor.u32 2147483648, %v156_v30 }
   0x9   :  { %147 = vst [vmem:[%s265_s1 + $0x28] sm:$0xff] %v84_v22  ;;  %149 = vst [vmem:[%s265_s1 + $0x68] sm:$0xff] %v92_v23 }
   0xa   :  { %151 = vst [vmem:[%s265_s1 + $0x30] sm:$0xff] %v100_v27  ;;  %153 = vst [vmem:[%s265_s1 + $0x70] sm:$0xff] %v108_v28 }
   0xb   :  { %155 = vst [vmem:[%s265_s1 + $0x38] sm:$0xff] %v116_v29  ;;  %157 = vst [vmem:[%s265_s1 + $0x78] sm:$0xff] %v124_v31 }

// kernel: neg.3
= control target key start
LH: loop header
LB: loop body
LE: loop exit
PB: predicated region body
PF: predicated region fallthrough
CT: control target
= control target key end

     0   :  { %s264_s0 = inlined_call_operand.vmem [shape: f32[2,64,16], index: 0, kind: input, shape index: {}]   ;;  %s265_s1 = inlined_call_operand.vmem [shape: f32[2,64,16], index: 1, kind: output, shape index: {}]  }
   0x1   :  { %v2_v0 = vld [vmem:[%s264_s0] sm:$0xff]  ;;  %v130_v2 = vld [vmem:[%s264_s0 + $0x8] sm:$0xff]  ;;  %v134_v7 = vld [vmem:[%s264_s0 + $0x10] sm:$0xff] }
   0x2   :  { %v128_v1 = vld [vmem:[%s264_s0 + $0x40] sm:$0xff]  ;;  %v5_v3 = vxor.u32 2147483648, %v2_v0  ;;  %v20_v5 = vxor.u32 2147483648, %v130_v2  ;;  %v132_v6 = vld [vmem:[%s264_s0 + $0x48] sm:$0xff]  ;;  %v136_v8 = vld [vmem:[%s264_s0 + $0x50] sm:$0xff]  ;;  %v36_v10 = vxor.u32 2147483648, %v134_v7 }
   0x3   :  { %v12_v4 = vxor.u32 2147483648, %v128_v1  ;;  %v28_v9 = vxor.u32 2147483648, %v132_v6  ;;  %v44_v11 = vxor.u32 2147483648, %v136_v8  ;;  %v138_v12 = vld [vmem:[%s264_s0 + $0x18] sm:$0xff]  ;;  %v142_v14 = vld [vmem:[%s264_s0 + $0x20] sm:$0xff]  ;;  %v146_v19 = vld [vmem:[%s264_s0 + $0x28] sm:$0xff] }
   0x4   :  { %v140_v13 = vld [vmem:[%s264_s0 + $0x58] sm:$0xff]  ;;  %7 = vst [vmem:[%s265_s1] sm:$0xff] %v5_v3  ;;  %131 = vst [vmem:[%s265_s1 + $0x8] sm:$0xff] %v20_v5  ;;  %v52_v15 = vxor.u32 2147483648, %v138_v12  ;;  %v68_v17 = vxor.u32 2147483648, %v142_v14  ;;  %v144_v18 = vld [vmem:[%s264_s0 + $0x60] sm:$0xff]  ;;  %v84_v22 = vxor.u32 2147483648, %v146_v19 }
   0x5   :  { %129 = vst [vmem:[%s265_s1 + $0x40] sm:$0xff] %v12_v4  ;;  %v60_v16 = vxor.u32 2147483648, %v140_v13  ;;  %v148_v20 = vld [vmem:[%s264_s0 + $0x68] sm:$0xff]  ;;  %133 = vst [vmem:[%s265_s1 + $0x48] sm:$0xff] %v28_v9  ;;  %v76_v21 = vxor.u32 2147483648, %v144_v18  ;;  %v150_v24 = vld [vmem:[%s264_s0 + $0x30] sm:$0xff] }
   0x6   :  { %135 = vst [vmem:[%s265_s1 + $0x10] sm:$0xff] %v36_v10  ;;  %137 = vst [vmem:[%s265_s1 + $0x50] sm:$0xff] %v44_v11  ;;  %v92_v23 = vxor.u32 2147483648, %v148_v20  ;;  %v152_v25 = vld [vmem:[%s264_s0 + $0x70] sm:$0xff]  ;;  %v154_v26 = vld [vmem:[%s264_s0 + $0x38] sm:$0xff]  ;;  %v100_v27 = vxor.u32 2147483648, %v150_v24 }
   0x7   :  { %139 = vst [vmem:[%s265_s1 + $0x18] sm:$0xff] %v52_v15  ;;  %141 = vst [vmem:[%s265_s1 + $0x58] sm:$0xff] %v60_v16  ;;  %v108_v28 = vxor.u32 2147483648, %v152_v25  ;;  %v116_v29 = vxor.u32 2147483648, %v154_v26  ;;  %v156_v30 = vld [vmem:[%s264_s0 + $0x78] sm:$0xff] }
   0x8   :  { %143 = vst [vmem:[%s265_s1 + $0x20] sm:$0xff] %v68_v17  ;;  %145 = vst [vmem:[%s265_s1 + $0x60] sm:$0xff] %v76_v21  ;;  %v124_v31 = vxor.u32 2147483648, %v156_v30 }
   0x9   :  { %147 = vst [vmem:[%s265_s1 + $0x28] sm:$0xff] %v84_v22  ;;  %149 = vst [vmem:[%s265_s1 + $0x68] sm:$0xff] %v92_v23 }
   0xa   :  { %151 = vst [vmem:[%s265_s1 + $0x30] sm:$0xff] %v100_v27  ;;  %153 = vst [vmem:[%s265_s1 + $0x70] sm:$0xff] %v108_v28 }
   0xb   :  { %155 = vst [vmem:[%s265_s1 + $0x38] sm:$0xff] %v116_v29  ;;  %157 = vst [vmem:[%s265_s1 + $0x78] sm:$0xff] %v124_v31 }

// kernel: _lambda_.8
= control target key start
LH: loop header
LB: loop body
LE: loop exit
PB: predicated region body
PF: predicated region fallthrough
CT: control target
= control target key end

     0   :  { %s612_s9 = smov 0   ;;  %s614_s10 = smov 0   ;;  %s668_s0 = inlined_call_operand.vmem [shape: f32[2,8,64], index: 0, kind: input, shape index: {}]   ;;  %s669_s1 = inlined_call_operand.vmem [shape: f32[2,8,64], index: 1, kind: input, shape index: {}]   ;;  %s670_s2 = inlined_call_operand.vmem [shape: f32[2,64,64], index: 2, kind: output, shape index: {}]  }
   0x1   :  { %s616_s11 = smov 0  }
   0x2 LB: > { %s31_s12 = sadd.s32 1, %s591_s10  ;;  %p507_p0 = scmp.ge.s32.totalorder %s595_s11, 1  ;;  %s595_s11 = sphi %s616_s11, %s12_s11   ;;  %s591_s10 = sphi %s614_s10, %s672_s10   ;;  %s587_s9 = sphi %s612_s9, %s671_s9  }
   0x3   : > { %p33_p1 = scmp.ge.s32.totalorder %s31_s12, 2  ;;  %p153_p2 = scmp.lt.s32.totalorder %s595_s11, 3 }
   0x5   : > { %s674_s12 = smov (%p33_p1, %s31_s12), 0  ;;  %p154_p3 = pnand %p507_p0, %p153_p2 }
   0x6   : > { %p191_p4 = scmp.lt.s32.totalorder (!%p154_p3), %s587_s9, 1  ;;  %vm252_vm0 = vcmask (!%p154_p3), 64512   ;;  %vm382_vm1 = vcmask (!%p154_p3), 523264  }
   0x7   : > { %157 = sbr.rel (%p154_p3) target bundleno = 389 (0x185), region = 28 }
   0xe   : > { %s676_s9 = smov (!%p191_p4, %s587_s9), 1 }
   0xf   : > { %s508_s13 = sshll.u32 %s676_s9, 3  ;;  %s522_s20 = sshll.u32 %s676_s9, 6 }
  0x10   : > { %s197_s16 = scalar_lea.vmem %s668_s0, %s508_s13  ;;  %s204_s19 = scalar_lea.vmem %s669_s1, %s508_s13 }
  0x11   : > { %v218_v0 = vld [vmem:[%s197_s16] sm:$0xff]  ;;  %s216_s23 = scalar_lea.vmem %s670_s2, %s522_s20 }
  0x12   : > { %v219_v1 = vld [vmem:[%s204_s19] sm:$0xff]  ;;  %220 = vxpose.xlu0.b32.start.end [1/1] (short) (narrow) %v218_v0, 64 }
  0x13   : > { %532 = vmatprep.subr.mxu0 %v219_v1  ;;  %546 = vmatprep.subr.mxu1 %v219_v1 }
  0x14   : > { %533 = vmatpush3.msra.mxu0 %v219_v1  ;;  %547 = vmatpush3.msra.mxu1 %v219_v1 }
  0x92   : > { %v236_v2 = vpop.trf.xlu0 }
  0x93   : > { %534 = vmatprep.mubr.msk.f32.mxu0 %vm252_vm0, %v236_v2 }
  0x96   : > { %v237_v3 = vpop.trf.xlu0 }
  0x97   : > { %535 = vmatmul.mubr.msk.f32.vlgmr.msra.gmra.mrb[0].mxu0 %vm252_vm0, %v237_v3 }
  0x9a   : > { %v238_v4 = vpop.trf.xlu0 }
  0x9b   : > { %537 = vmatprep.mubr.msk.f32.mxu0 %vm252_vm0, %v238_v4 }
  0x9e   : > { %v239_v5 = vpop.trf.xlu0 }
  0x9f   : > { %538 = vmatmul.mubr.msk.f32.gmra.mrb[2].mxu0 %vm252_vm0, %v239_v5 }
  0xa2   : > { %v240_v6 = vpop.trf.xlu0 }
  0xa3   : > { %540 = vmatprep.mubr.msk.f32.mxu1 %vm252_vm0, %v240_v6 }
  0xa6   : > { %v241_v7 = vpop.trf.xlu0 }
  0xa7   : > { %541 = vmatmul.mubr.msk.f32.vlgmr.msra.gmra.mrb[0].mxu1 %vm252_vm0, %v241_v7 }
  0xaa   : > { %v242_v8 = vpop.trf.xlu0 }
  0xab   : > { %543 = vmatprep.mubr.msk.f32.mxu1 %vm252_vm0, %v242_v8 }
  0xae   : > { %v243_v9 = vpop.trf.xlu0 }
  0xaf   : > { %544 = vmatmul.mubr.msk.f32.gmra.mrb[2].mxu1 %vm252_vm0, %v243_v9 }
 0x16a   : > { %v536_v10 = vpop.f32.mrb[0].mxu0 }
 0x16b   : > { %384 = vst.msk [vmem:[%s216_s23 + $0x8] sm:$0xff] %vm382_vm1, %v536_v10  ;;  %v343_v11 = vpop.f32.mrb[1].mxu0 }
 0x16c   : > { %383 = vst.msk [vmem:[%s216_s23] sm:$0xff] %vm382_vm1, %v343_v11 }
 0x172   : > { %v539_v12 = vpop.f32.mrb[2].mxu0 }
 0x173   : > { %386 = vst.msk [vmem:[%s216_s23 + $0x18] sm:$0xff] %vm382_vm1, %v539_v12  ;;  %v353_v13 = vpop.f32.mrb[3].mxu0 }
 0x174   : > { %385 = vst.msk [vmem:[%s216_s23 + $0x10] sm:$0xff] %vm382_vm1, %v353_v13 }
 0x17a   : > { %v542_v14 = vpop.f32.mrb[0].mxu1 }
 0x17b   : > { %388 = vst.msk [vmem:[%s216_s23 + $0x28] sm:$0xff] %vm382_vm1, %v542_v14  ;;  %v363_v15 = vpop.f32.mrb[1].mxu1 }
 0x17c   : > { %387 = vst.msk [vmem:[%s216_s23 + $0x20] sm:$0xff] %vm382_vm1, %v363_v15 }
 0x182   : > { %v545_v16 = vpop.f32.mrb[2].mxu1 }
 0x183   : > { %390 = vst.msk [vmem:[%s216_s23 + $0x38] sm:$0xff] %vm382_vm1, %v545_v16  ;;  %v373_v17 = vpop.f32.mrb[3].mxu1 }
 0x184   : > { %389 = vst.msk [vmem:[%s216_s23 + $0x30] sm:$0xff] %vm382_vm1, %v373_v17 }
 0x185 PF: > { %s12_s11 = sadd.s32 1, %s595_s11   ;;  %s671_s9 = smov %s591_s10 }
 0x186   : > { %p9_p5 = scmp.ge.s32.totalorder %s12_s11, 4   ;;  %s672_s10 = smov %s674_s12 }
 0x188   :  { %11 = sbr.rel (!%p9_p5) target bundleno = 2 (0x2), region = 61 }

// kernel: _lambda_.5
= control target key start
LH: loop header
LB: loop body
LE: loop exit
PB: predicated region body
PF: predicated region fallthrough
CT: control target
= control target key end

     0   :  { %s612_s9 = smov 0   ;;  %s614_s10 = smov 0   ;;  %s668_s0 = inlined_call_operand.vmem [shape: f32[2,8,64], index: 0, kind: input, shape index: {}]   ;;  %s669_s1 = inlined_call_operand.vmem [shape: f32[2,8,16], index: 1, kind: input, shape index: {}]   ;;  %s670_s2 = inlined_call_operand.vmem [shape: f32[2,64,16], index: 2, kind: output, shape index: {}]  }
   0x1   :  { %s616_s11 = smov 0  }
   0x2 LB: > { %s31_s12 = sadd.s32 1, %s591_s10  ;;  %p507_p0 = scmp.ge.s32.totalorder %s595_s11, 1  ;;  %s595_s11 = sphi %s616_s11, %s12_s11   ;;  %s591_s10 = sphi %s614_s10, %s672_s10   ;;  %s587_s9 = sphi %s612_s9, %s671_s9  }
   0x3   : > { %p33_p1 = scmp.ge.s32.totalorder %s31_s12, 2  ;;  %p153_p2 = scmp.lt.s32.totalorder %s595_s11, 3 }
   0x5   : > { %s674_s12 = smov (%p33_p1, %s31_s12), 0  ;;  %p154_p3 = pnand %p507_p0, %p153_p2 }
   0x6   : > { %p191_p4 = scmp.lt.s32.totalorder (!%p154_p3), %s587_s9, 1  ;;  %vm252_vm0 = vcmask (!%p154_p3), 64512   ;;  %vm382_vm1 = vcmask (!%p154_p3), 130048  }
   0x7   : > { %157 = sbr.rel (%p154_p3) target bundleno = 389 (0x185), region = 28 }
   0xe   : > { %s676_s9 = smov (!%p191_p4, %s587_s9), 1 }
   0xf   : > { %s508_s13 = sshll.u32 %s676_s9, 3  ;;  %s522_s20 = sshll.u32 %s676_s9, 6 }
  0x10   : > { %s197_s16 = scalar_lea.vmem %s668_s0, %s508_s13  ;;  %s204_s19 = scalar_lea.vmem %s669_s1, %s508_s13 }
  0x11   : > { %v218_v0 = vld [vmem:[%s197_s16] sm:$0xff]  ;;  %s216_s23 = scalar_lea.vmem %s670_s2, %s522_s20 }
  0x12   : > { %v219_v1 = vld [vmem:[%s204_s19] sm:$0xff]  ;;  %220 = vxpose.xlu0.b32.start.end [1/1] (short) (narrow) %v218_v0, 64 }
  0x13   : > { %532 = vmatprep.subr.mxu0 %v219_v1  ;;  %546 = vmatprep.subr.mxu1 %v219_v1 }
  0x14   : > { %533 = vmatpush3.msra.mxu0 %v219_v1  ;;  %547 = vmatpush3.msra.mxu1 %v219_v1 }
  0x92   : > { %v236_v2 = vpop.trf.xlu0 }
  0x93   : > { %534 = vmatprep.mubr.msk.f32.mxu0 %vm252_vm0, %v236_v2 }
  0x96   : > { %v237_v3 = vpop.trf.xlu0 }
  0x97   : > { %535 = vmatmul.mubr.msk.f32.vlgmr.msra.gmra.mrb[0].mxu0 %vm252_vm0, %v237_v3 }
  0x9a   : > { %v238_v4 = vpop.trf.xlu0 }
  0x9b   : > { %537 = vmatprep.mubr.msk.f32.mxu0 %vm252_vm0, %v238_v4 }
  0x9e   : > { %v239_v5 = vpop.trf.xlu0 }
  0x9f   : > { %538 = vmatmul.mubr.msk.f32.gmra.mrb[2].mxu0 %vm252_vm0, %v239_v5 }
  0xa2   : > { %v240_v6 = vpop.trf.xlu0 }
  0xa3   : > { %540 = vmatprep.mubr.msk.f32.mxu1 %vm252_vm0, %v240_v6 }
  0xa6   : > { %v241_v7 = vpop.trf.xlu0 }
  0xa7   : > { %541 = vmatmul.mubr.msk.f32.vlgmr.msra.gmra.mrb[0].mxu1 %vm252_vm0, %v241_v7 }
  0xaa   : > { %v242_v8 = vpop.trf.xlu0 }
  0xab   : > { %543 = vmatprep.mubr.msk.f32.mxu1 %vm252_vm0, %v242_v8 }
  0xae   : > { %v243_v9 = vpop.trf.xlu0 }
  0xaf   : > { %544 = vmatmul.mubr.msk.f32.gmra.mrb[2].mxu1 %vm252_vm0, %v243_v9 }
 0x16a   : > { %v536_v10 = vpop.f32.mrb[0].mxu0 }
 0x16b   : > { %384 = vst.msk [vmem:[%s216_s23 + $0x8] sm:$0xff] %vm382_vm1, %v536_v10  ;;  %v343_v11 = vpop.f32.mrb[1].mxu0 }
 0x16c   : > { %383 = vst.msk [vmem:[%s216_s23] sm:$0xff] %vm382_vm1, %v343_v11 }
 0x172   : > { %v539_v12 = vpop.f32.mrb[2].mxu0 }
 0x173   : > { %386 = vst.msk [vmem:[%s216_s23 + $0x18] sm:$0xff] %vm382_vm1, %v539_v12  ;;  %v353_v13 = vpop.f32.mrb[3].mxu0 }
 0x174   : > { %385 = vst.msk [vmem:[%s216_s23 + $0x10] sm:$0xff] %vm382_vm1, %v353_v13 }
 0x17a   : > { %v542_v14 = vpop.f32.mrb[0].mxu1 }
 0x17b   : > { %388 = vst.msk [vmem:[%s216_s23 + $0x28] sm:$0xff] %vm382_vm1, %v542_v14  ;;  %v363_v15 = vpop.f32.mrb[1].mxu1 }
 0x17c   : > { %387 = vst.msk [vmem:[%s216_s23 + $0x20] sm:$0xff] %vm382_vm1, %v363_v15 }
 0x182   : > { %v545_v16 = vpop.f32.mrb[2].mxu1 }
 0x183   : > { %390 = vst.msk [vmem:[%s216_s23 + $0x38] sm:$0xff] %vm382_vm1, %v545_v16  ;;  %v373_v17 = vpop.f32.mrb[3].mxu1 }
 0x184   : > { %389 = vst.msk [vmem:[%s216_s23 + $0x30] sm:$0xff] %vm382_vm1, %v373_v17 }
 0x185 PF: > { %s12_s11 = sadd.s32 1, %s595_s11   ;;  %s671_s9 = smov %s591_s10 }
 0x186   : > { %p9_p5 = scmp.ge.s32.totalorder %s12_s11, 4   ;;  %s672_s10 = smov %s674_s12 }
 0x188   :  { %11 = sbr.rel (!%p9_p5) target bundleno = 2 (0x2), region = 61 }

// kernel: _lambda_.6
= control target key start
LH: loop header
LB: loop body
LE: loop exit
PB: predicated region body
PF: predicated region fallthrough
CT: control target
= control target key end

     0   :  { %s835_s18 = smov 0   ;;  %s907_s0 = inlined_call_operand.vmem [shape: bf16[2,16,64], index: 0, kind: input, shape index: {}]   ;;  %s908_s1 = inlined_call_operand.vmem [shape: f32[2,32,16], index: 1, kind: input, shape index: {}]   ;;  %s909_s2 = inlined_call_operand.vmem [shape: bf16[16,32], index: 2, kind: input, shape index: {}]   ;;  %s910_s3 = inlined_call_operand.vmem [shape: bf16[32,16], index: 3, kind: input, shape index: {}]   ;;  %s911_s4 = inlined_call_operand.vmem [shape: bf16[32,16], index: 4, kind: input, shape index: {}]   ;;  %s912_s5 = inlined_call_operand.vmem [shape: bf16[2,32,16], index: 5, kind: output, shape index: {}]  }
   0x1 LB: > { %s687_s19 = sadd.s32 4294967295, %s801_s18   ;;  %p691_p0 = scmp.ge.s32.totalorder %s801_s18, 1  ;;  %s801_s18 = sphi %s835_s18, %s15_s18  }
   0x2   : > { %p197_p1 = scmp.lt.s32.totalorder %s801_s18, 3 }
   0x4   : > { %p198_p2 = pnand %p691_p0, %p197_p1 }
   0x5   : > { %p230_p3 = scmp.lt.s32.totalorder (!%p198_p2), %s687_s19, 1  ;;  %v803_v0 = vmov (!%p198_p2), 0.0   ;;  %vm804_vm0 = vmmov (!%p198_p2), 0   ;;  %v783_v1 = vld [vmem:[%s910_s3] sm:$0xff] (!%p198_p2)   ;;  %vm326_vm1 = vcmask (!%p198_p2), 130048   ;;  %v784_v9 = vld [vmem:[%s910_s3 + $0x8] sm:$0xff] (!%p198_p2)  }
   0x6   : > { %201 = sbr.rel (%p198_p2) target bundleno = 1325 (0x52d), region = 40  ;;  %737 = vmatprep.subr.bf16.mxu0 (!%p198_p2), %v803_v0  ;;  %741 = vmatprep.mubr.msk.bf16.mxu0 (!%p198_p2), %vm804_vm0, %v803_v0  ;;  %v781_v10 = vld [vmem:[%s909_s2] sm:$0xff] (!%p198_p2)   ;;  %vm259_vm2 = vcmask (!%p198_p2), 261120   ;;  %vm446_vm3 = vcmask (!%p198_p2), 523264   ;;  %v786_v56 = vld [vmem:[%s911_s4 + $0x8] sm:$0xff] (!%p198_p2)   ;;  %vm615_vm4 = vcmask (!%p198_p2), 125952  }
   0x7   : > { %747 = vmatprep.mubr.msk.bf16.mxu1 (!%p198_p2), %vm326_vm1, %v783_v1  ;;  %v785_v49 = vld [vmem:[%s911_s4] sm:$0xff] (!%p198_p2)  }
   0xd   : > { %s914_s19 = smov (!%p230_p3, %s687_s19), 1 }
   0xe   : > { %s718_s22 = sshll.u32 %s914_s19, 5  ;;  %s717_s23 = sshll.u32 %s914_s19, 3 }
   0xf   : > { %s239_s26 = scalar_lea.vmem %s908_s1, %s718_s22  ;;  %s234_s29 = scalar_lea.vmem %s907_s0, %s717_s23 }
  0x10   : > { %v858_v2 = vld [vmem:[%s239_s26] sm:$0xff]  ;;  %v860_v3 = vld [vmem:[%s239_s26 + $0x8] sm:$0xff]  ;;  %v862_v4 = vld [vmem:[%s239_s26 + $0x10] sm:$0xff]  ;;  %s719_s13 = sshll.u32 %s914_s19, 4 }
  0x11   : > { %v252_v5 = vpack.c.bf16 %v860_v3, %v858_v2  ;;  %v866_v6 = vld [vmem:[%s239_s26 + $0x18] sm:$0xff]  ;;  %v782_v7 = vld [vmem:[%s234_s29] sm:$0xff]   ;;  %s244_s16 = scalar_lea.vmem %s912_s5, %s719_s13 }
  0x12   : > { %v253_v8 = vpack.c.bf16 %v866_v6, %v862_v4  ;;  %745 = vmatprep.subr.bf16.mxu1 %v782_v7 }
  0x13   : > { %738 = vmatpush3.bf16.msra.mxu0 %v252_v5  ;;  %746 = vmatpush3.bf16.msra.mxu1 %v782_v7 }
  0x14   : > { %739 = vmatprep.subr.bf16.mxu0 %v803_v0  ;;  %751 = vmatprep.subr.bf16.mxu1 %v803_v0 }
  0x16   : > { %748 = vmatmul.mubr.msk.bf16.vlgmr.msra.gmra.mrb[0].mxu1 %vm326_vm1, %v784_v9 }
  0x17   : > { %740 = vmatpush3.bf16.msra.mxu0 %v253_v8  ;;  %753 = vmatprep.mubr.msk.bf16.mxu1 %vm804_vm0, %v803_v0 }
  0x18   : > { %757 = vmatprep.subr.bf16.mxu0 %v803_v0 }
  0x1a   : > { %742 = vmatmul.mubr.msk.bf16.vlgmr.msra.gmra.mrb[0].mxu0 %vm259_vm2, %v781_v10 }
  0x1b   : > { %759 = vmatprep.mubr.msk.bf16.mxu0 %vm804_vm0, %v803_v0 }
  0xe9   : > { %v749_v11 = vpop.f32.mrb[0].mxu1 }
  0xea   : > { %v367_v12 = vpop.f32.mrb[1].mxu1 }
  0xeb   : > { %v750_v14 = vpop.f32.mrb[2].mxu1 }
  0xec   : > { %v470_v16 = vpack.c.bf16 %v750_v14, %v749_v11  ;;  %v370_v17 = vpop.f32.mrb[3].mxu1 }
  0xed   : > { %v297_v13 = vpop.f32.mrb[0].mxu0  ;;  %v383_v19 = vpack.c.bf16 %v370_v17, %v367_v12 }
  0xee   : > { %v743_v15 = vpop.f32.mrb[1].mxu0  ;;  %v475_v22 = vsel %vm446_vm3, %v470_v16, 0 }
  0xef   : > { %v300_v18 = vpop.f32.mrb[2].mxu0  ;;  %752 = vmatpush3.bf16.msra.mxu1 %v383_v19  ;;  %758 = vmatpush3.bf16.xpose.msra.mxu0 %v475_v22 }
  0xf0   : > { %v744_v20 = vpop.f32.mrb[3].mxu0  ;;  %v382_v21 = vpack.c.bf16 %v300_v18, %v297_v13 }
  0xf2   : > { %384 = vxpose.xlu0.c.b16.start.end [1/1] (short) (narrow) %v382_v21, 16 }
 0x158   : > { %v392_v23 = vpop.trf.xlu0 }
 0x159   : > { %754 = vmatmul.mubr.msk.bf16.vlgmr.msra.gmra.mrb[4].mxu1 %vm326_vm1, %v392_v23 }
 0x15a   : > { %765 = vmatprep.mubr.msk.bf16.mxu1 %vm326_vm1, %v785_v49 }
 0x22c   : > { %v437_v24 = vpop.f32.mrb[4].mxu1 }
 0x22d   : > { %v444_v25 = vmul.f32 0.25, %v437_v24  ;;  %v755_v26 = vpop.f32.mrb[5].mxu1 }
 0x22e   : > { %v440_v27 = vpop.f32.mrb[6].mxu1 }
 0x22f   : > { %v445_v28 = vmul.f32 0.25, %v440_v27  ;;  %v756_v29 = vpop.f32.mrb[7].mxu1  ;;  %v447_v30 = vsel %vm446_vm3, %v444_v25, -inf }
 0x230   : > { %448 = vmax.xlane.f32.xlu0 %v447_v30 }
 0x231   : > { %v450_v31 = vsel %vm446_vm3, %v445_v28, -inf }
 0x232   : > { %451 = vmax.xlane.f32.xlu1 %v450_v31 }
 0x2bd   : > { %v449_v32 = vpop.xlane.xlu0 %448 }
 0x2be   : > { %v453_v33 = vsub.f32 %v444_v25, %v449_v32 }
 0x2bf   : > { %v452_v34 = vpop.xlane.xlu1 %451 }
 0x2c0   : > { %v455_v35 = vmul.f32 1.442695, %v453_v33  ;;  %v454_v36 = vsub.f32 %v445_v28, %v452_v34 }
 0x2c2   : > { %787 = vpow2.f32 %v455_v35  ;;  %v457_v37 = vmul.f32 1.442695, %v454_v36 }
 0x2c4   : > { %789 = vpow2.f32 %v457_v37 }
 0x2cc   : > { %v788_v38 = vpop.eup %787 }
 0x2cd   : > { %v459_v39 = vsel %vm446_vm3, %v788_v38, 0.0 }
 0x2ce   : > { %v790_v40 = vpop.eup %789  ;;  %460 = vadd.xlane.f32.xlu1 %v459_v39 }
 0x2cf   : > { %v462_v41 = vsel %vm446_vm3, %v790_v40, 0.0 }
 0x2d2   : > { %463 = vadd.xlane.f32.xlu1 %v462_v41 }
 0x35b   : > { %v461_v42 = vpop.xlane.xlu1 %460 }
 0x35c   : > { %791 = vrcp.f32 %v461_v42 }
 0x35f   : > { %v464_v43 = vpop.xlane.xlu1 %463 }
 0x360   : > { %793 = vrcp.f32 %v464_v43 }
 0x366   : > { %v792_v44 = vpop.eup %791 }
 0x367   : > { %v467_v46 = vmul.f32 %v792_v44, %v788_v38 }
 0x36a   : > { %v794_v45 = vpop.eup %793 }
 0x36b   : > { %v468_v47 = vmul.f32 %v794_v45, %v790_v40 }
 0x36d   : > { %v469_v48 = vpack.c.bf16 %v468_v47, %v467_v46 }
 0x36f   : > { %760 = vmatmul.mubr.msk.bf16.vlgmr.msra.gmra.mrb[4].mxu0 %vm446_vm3, %v469_v48 }
 0x442   : > { %v511_v50 = vpop.f32.mrb[4].mxu0 }
 0x443   : > { %v761_v51 = vpop.f32.mrb[5].mxu0 }
 0x444   : > { %v514_v52 = vpop.f32.mrb[6].mxu0 }
 0x445   : > { %v522_v53 = vpack.c.bf16 %v514_v52, %v511_v50  ;;  %v762_v54 = vpop.f32.mrb[7].mxu0 }
 0x447   : > { %v540_v55 = vsel %vm326_vm1, %v522_v53, 0  ;;  %769 = vmatprep.subr.msk.bf16.mxu1 %vm326_vm1, %v522_v53 }
 0x448   : > { %764 = vmatpush3.bf16.xpose.msra.mxu1 %v540_v55 }
 0x44f   : > { %766 = vmatmul.mubr.msk.bf16.vlgmr.msra.gmra.mrb[8].mxu1 %vm326_vm1, %v786_v56 }
 0x522   : > { %v767_v57 = vpop.f32.mrb[8].mxu1 }
 0x523   : > { %v593_v58 = vmax.f32 %v767_v57, 0.0  ;;  %v576_v59 = vpop.f32.mrb[9].mxu1 }
 0x524   : > { %v591_v60 = vmax.f32 %v576_v59, 0.0  ;;  %v768_v61 = vpop.f32.mrb[10].mxu1 }
 0x525   : > { %v597_v62 = vadd.f32 %v593_v58, %v862_v4  ;;  %v594_v63 = vmax.f32 %v768_v61, 0.0  ;;  %v579_v0 = vpop.f32.mrb[11].mxu1 }
 0x526   : > { %v595_v1 = vadd.f32 %v591_v60, %v858_v2  ;;  %v592_v5 = vmax.f32 %v579_v0, 0.0 }
 0x527   : > { %v722_v7 = vpack.c.bf16 %v597_v62, %v597_v62  ;;  %v598_v8 = vadd.f32 %v594_v63, %v866_v6 }
 0x528   : > { %v720_v9 = vpack.c.bf16 %v595_v1, %v595_v1  ;;  %v596_v10 = vadd.f32 %v592_v5, %v860_v3 }
 0x529   : > { %618 = vst.msk [vmem:[%s244_s16 + $0x8] sm:$0xf] %vm615_vm4, %v722_v7  ;;  %v723_v11 = vpack.c.bf16 %v598_v8, %v598_v8 }
 0x52a   : > { %616 = vst.msk [vmem:[%s244_s16] sm:$0xf] %vm615_vm4, %v720_v9  ;;  %v721_v4 = vpack.c.bf16 %v596_v10, %v596_v10 }
 0x52b   : > { %619 = vst.msk [vmem:[%s244_s16 + $0xc] sm:$0xf] %vm615_vm4, %v723_v11 }
 0x52c   : > { %617 = vst.msk [vmem:[%s244_s16 + $0x4] sm:$0xf] %vm615_vm4, %v721_v4 }
 0x52d PF: > { %s15_s18 = sadd.s32 1, %s801_s18  }
 0x52e   : > { %p12_p4 = scmp.ge.s32.totalorder %s15_s18, 4  }
 0x530   :  { %14 = sbr.rel (!%p12_p4) target bundleno = 1 (0x1), region = 73 }

// kernel: _lambda_.7
= control target key start
LH: loop header
LB: loop body
LE: loop exit
PB: predicated region body
PF: predicated region fallthrough
CT: control target
= control target key end

     0   :  { %s917_s21 = smov 0   ;;  %s919_s22 = smov 0   ;;  %s1011_s0 = inlined_call_operand.vmem [shape: bf16[2,32,16], index: 0, kind: input, shape index: {}]   ;;  %s1012_s1 = inlined_call_operand.vmem [shape: bf16[2,64,16], index: 1, kind: input, shape index: {}]   ;;  %s1013_s2 = inlined_call_operand.vmem [shape: bf16[32,32], index: 2, kind: input, shape index: {}]   ;;  %s1014_s3 = inlined_call_operand.vmem [shape: f32[32,1], index: 3, kind: input, shape index: {}]   ;;  %s1015_s4 = inlined_call_operand.vmem [shape: bf16[32,32], index: 4, kind: input, shape index: {}]   ;;  %s1016_s5 = inlined_call_operand.vmem [shape: f32[32,1], index: 5, kind: input, shape index: {}]   ;;  %s1017_s6 = inlined_call_operand.vmem [shape: bf16[2,32,64], index: 6, kind: output, shape index: {}]  }
   0x1   :  { %s921_s23 = smov 0  }
   0x2 LB: > { %s28_s24 = sadd.s32 1, %s875_s22  ;;  %p738_p0 = scmp.ge.s32.totalorder %s879_s23, 1  ;;  %s879_s23 = sphi %s921_s23, %s16_s23   ;;  %s875_s22 = sphi %s919_s22, %s1019_s22   ;;  %s871_s21 = sphi %s917_s21, %s1018_s21  }
   0x3   : > { %p30_p1 = scmp.ge.s32.totalorder %s28_s24, 2  ;;  %p243_p2 = scmp.lt.s32.totalorder %s879_s23, 3 }
   0x5   : > { %s1021_s24 = smov (%p30_p1, %s28_s24), 0  ;;  %p244_p3 = pnand %p738_p0, %p243_p2 }
   0x6   : > { %p285_p4 = scmp.lt.s32.totalorder (!%p244_p3), %s871_s21, 1  ;;  %vm351_vm0 = vcmask (!%p244_p3), 130048   ;;  %v853_v10 = vld [vmem:[%s1013_s2] sm:$0xff] (!%p244_p3)   ;;  %vm459_vm1 = vcmask (!%p244_p3), 261120   ;;  %v427_v12 = vld [vmem:[%s1014_s3 + $0x10] sm:$0xff] (!%p244_p3)  ;;  %v881_v13 = vmov (!%p244_p3), 0  }
   0x7   : > { %247 = sbr.rel (%p244_p3) target bundleno = 726 (0x2d6), region = 44  ;;  %804 = vmatprep.mubr.msk.bf16.mxu1 (!%p244_p3), %vm459_vm1, %v853_v10  ;;  %v425_v11 = vld [vmem:[%s1014_s3] sm:$0xff] (!%p244_p3)  ;;  %845 = vset.pattern.permute.xlu0 (!%p244_p3), %v881_v13  ;;  %v426_v14 = vld [vmem:[%s1014_s3 + $0x8] sm:$0xff] (!%p244_p3)  ;;  %v428_v15 = vld [vmem:[%s1014_s3 + $0x18] sm:$0xff] (!%p244_p3)  ;;  %vm634_vm2 = vcmask (!%p244_p3), 519168  }
   0x8   : > { %846 = vset.pattern.permute.xlu1 (!%p244_p3), %v881_v13  ;;  %431 = vperm.xlu0 (!%p244_p3), %845, %v425_v11   ;;  %v525_v16 = vld [vmem:[%s1016_s5] sm:$0xff] (!%p244_p3)  ;;  %v526_v17 = vld [vmem:[%s1016_s5 + $0x8] sm:$0xff] (!%p244_p3)  ;;  %v527_v18 = vld [vmem:[%s1016_s5 + $0x10] sm:$0xff] (!%p244_p3) }
   0x9   : > { %441 = vperm.xlu1 (!%p244_p3), %846, %v427_v12   ;;  %v528_v19 = vld [vmem:[%s1016_s5 + $0x18] sm:$0xff] (!%p244_p3)  ;;  %v854_v26 = vld [vmem:[%s1013_s2 + $0x8] sm:$0xff] (!%p244_p3)   ;;  %v855_v27 = vld [vmem:[%s1015_s4] sm:$0xff] (!%p244_p3)  }
   0xa   : > { %v856_v46 = vld [vmem:[%s1015_s4 + $0x8] sm:$0xff] (!%p244_p3)  }
   0xc   : > { %436 = vperm.xlu0 (!%p244_p3), %845, %v426_v14  }
   0xd   : > { %446 = vperm.xlu1 (!%p244_p3), %846, %v428_v15  }
   0xe   : > { %s1023_s21 = smov (!%p285_p4, %s871_s21), 1 }
   0xf   : > { %s768_s25 = sshll.u32 %s1023_s21, 5  ;;  %s767_s26 = sshll.u32 %s1023_s21, 4 }
  0x10   : > { %s298_s29 = scalar_lea.vmem %s1012_s1, %s768_s25  ;;  %s289_s8 = scalar_lea.vmem %s1011_s0, %s767_s26  ;;  %531 = vperm.xlu0 %845, %v525_v16  }
  0x11   : > { %v847_v0 = vld [vmem:[%s298_s29] sm:$0xff]   ;;  %v848_v1 = vld [vmem:[%s298_s29 + $0x8] sm:$0xff]   ;;  %v849_v5 = vld [vmem:[%s298_s29 + $0x10] sm:$0xff]   ;;  %536 = vperm.xlu1 %846, %v526_v17   ;;  %s307_s16 = scalar_lea.vmem %s1017_s6, %s767_s26 }
  0x12   : > { %816 = vmatprep.subr.msk.bf16.mxu0 %vm351_vm0, %v847_v0  ;;  %v359_v2 = vsel %vm351_vm0, %v847_v0, 0  ;;  %v851_v3 = vld [vmem:[%s289_s8] sm:$0xff]   ;;  %v362_v4 = vsel %vm351_vm0, %v848_v1, 0  ;;  %v365_v6 = vsel %vm351_vm0, %v849_v5, 0  ;;  %v850_v7 = vld [vmem:[%s298_s29 + $0x18] sm:$0xff]   ;;  %v852_v9 = vld [vmem:[%s289_s8 + $0x8] sm:$0xff]  }
  0x13   : > { %789 = vmatpush3.bf16.xpose.msra.mxu0 %v359_v2  ;;  %796 = vmatprep.mubr.msk.bf16.mxu0 %vm351_vm0, %v851_v3  ;;  %v368_v8 = vsel %vm351_vm0, %v850_v7, 0 }
  0x14   : > { %817 = vmatprep.subr.msk.bf16.mxu0 %vm351_vm0, %v848_v1  ;;  %541 = vperm.xlu0 %845, %v527_v18  }
  0x15   : > { %546 = vperm.xlu1 %846, %v528_v19  }
  0x1b   : > { %791 = vmatpush3.bf16.xpose.msra.mxu0 %v362_v4 }
  0x1c   : > { %818 = vmatprep.subr.msk.bf16.mxu0 %vm351_vm0, %v849_v5 }
  0x23   : > { %793 = vmatpush3.bf16.xpose.msra.mxu0 %v365_v6 }
  0x24   : > { %819 = vmatprep.subr.msk.bf16.mxu0 %vm351_vm0, %v850_v7 }
  0x2b   : > { %795 = vmatpush3.bf16.xpose.msra.mxu0 %v368_v8 }
  0x32   : > { %797 = vmatmul.mubr.msk.bf16.vlgmr.msra.gmra.mrb[0].mxu0 %vm351_vm0, %v852_v9 }
  0x87   : > { %v432_v29 = vpop.permute.xlu0 %431 }
  0x88   : > { %v442_v28 = vpop.permute.xlu1 %441 }
  0x8b   : > { %v437_v36 = vpop.permute.xlu0 %436 }
  0x8c   : > { %v447_v33 = vpop.permute.xlu1 %446 }
  0x8f   : > { %v532_v47 = vpop.permute.xlu0 %531 }
  0x90   : > { %v537_v48 = vpop.permute.xlu1 %536 }
  0x93   : > { %v542_v49 = vpop.permute.xlu0 %541 }
  0x94   : > { %v547_v53 = vpop.permute.xlu1 %546 }
 0x105   : > { %v798_v20 = vpop.f32.mrb[0].mxu0 }
 0x106   : > { %v404_v21 = vpop.f32.mrb[1].mxu0 }
 0x107   : > { %v799_v22 = vpop.f32.mrb[2].mxu0 }
 0x108   : > { %v424_v23 = vpack.c.bf16 %v799_v22, %v798_v20  ;;  %v407_v24 = vpop.f32.mrb[3].mxu0 }
 0x109   : > { %v423_v25 = vpack.c.bf16 %v407_v24, %v404_v21 }
 0x10b   : > { %800 = vmatprep.subr.bf16.mxu1 %v423_v25 }
 0x10c   : > { %801 = vmatpush3.bf16.msra.mxu1 %v423_v25 }
 0x10d   : > { %802 = vmatprep.subr.bf16.mxu1 %v424_v23 }
 0x110   : > { %803 = vmatpush3.bf16.msra.mxu1 %v424_v23 }
 0x113   : > { %805 = vmatmul.mubr.msk.bf16.vlgmr.msra.gmra.mrb[0].mxu1 %vm459_vm1, %v854_v26 }
 0x114   : > { %812 = vmatprep.mubr.msk.bf16.mxu1 %vm459_vm1, %v855_v27 }
 0x1e6   : > { %v806_v30 = vpop.f32.mrb[0].mxu1 }
 0x1e7   : > { %v509_v31 = vadd.f32 %v806_v30, %v442_v28  ;;  %v500_v32 = vpop.f32.mrb[1].mxu1 }
 0x1e8   : > { %v501_v34 = vadd.f32 %v500_v32, %v432_v29  ;;  %v807_v35 = vpop.f32.mrb[2].mxu1 }
 0x1e9   : > { %v512_v37 = vadd.f32 %v807_v35, %v447_v33  ;;  %v503_v38 = vpop.f32.mrb[3].mxu1  ;;  %v517_v40 = vmax.f32 %v509_v31, 0.0 }
 0x1ea   : > { %v504_v39 = vadd.f32 %v503_v38, %v437_v36  ;;  %v515_v42 = vmax.f32 %v501_v34, 0.0 }
 0x1eb   : > { %v518_v41 = vmax.f32 %v512_v37, 0.0 }
 0x1ec   : > { %v516_v43 = vmax.f32 %v504_v39, 0.0 }
 0x1ed   : > { %v524_v44 = vpack.c.bf16 %v518_v41, %v517_v40 }
 0x1ee   : > { %v523_v45 = vpack.c.bf16 %v516_v43, %v515_v42 }
 0x1f0   : > { %808 = vmatprep.subr.bf16.mxu1 %v523_v45 }
 0x1f1   : > { %809 = vmatpush3.bf16.msra.mxu1 %v523_v45 }
 0x1f2   : > { %810 = vmatprep.subr.bf16.mxu1 %v524_v44 }
 0x1f5   : > { %811 = vmatpush3.bf16.msra.mxu1 %v524_v44 }
 0x1f8   : > { %813 = vmatmul.mubr.msk.bf16.vlgmr.msra.gmra.mrb[4].mxu1 %vm459_vm1, %v856_v46 }
 0x2cb   : > { %v814_v50 = vpop.f32.mrb[4].mxu1 }
 0x2cc   : > { %v608_v51 = vadd.f32 %v814_v50, %v542_v49  ;;  %v599_v52 = vpop.f32.mrb[5].mxu1 }
 0x2cd   : > { %v600_v54 = vadd.f32 %v599_v52, %v532_v47  ;;  %v815_v55 = vpop.f32.mrb[6].mxu1 }
 0x2ce   : > { %v616_v56 = vmax.f32 %v608_v51, 0.0  ;;  %v611_v57 = vadd.f32 %v815_v55, %v547_v53  ;;  %v602_v58 = vpop.f32.mrb[7].mxu1 }
 0x2cf   : > { %v614_v59 = vmax.f32 %v600_v54, 0.0  ;;  %v603_v60 = vadd.f32 %v602_v58, %v537_v48 }
 0x2d0   : > { %v772_v61 = vpack.c.bf16 %v616_v56, %v616_v56  ;;  %v617_v62 = vmax.f32 %v611_v57, 0.0 }
 0x2d1   : > { %v770_v63 = vpack.c.bf16 %v614_v59, %v614_v59  ;;  %v615_v0 = vmax.f32 %v603_v60, 0.0 }
 0x2d2   : > { %637 = vst.msk [vmem:[%s307_s16 + $0x8] sm:$0xf] %vm634_vm2, %v772_v61  ;;  %v773_v1 = vpack.c.bf16 %v617_v62, %v617_v62 }
 0x2d3   : > { %635 = vst.msk [vmem:[%s307_s16] sm:$0xf] %vm634_vm2, %v770_v63  ;;  %v771_v2 = vpack.c.bf16 %v615_v0, %v615_v0 }
 0x2d4   : > { %638 = vst.msk [vmem:[%s307_s16 + $0xc] sm:$0xf] %vm634_vm2, %v773_v1 }
 0x2d5   : > { %636 = vst.msk [vmem:[%s307_s16 + $0x4] sm:$0xf] %vm634_vm2, %v771_v2 }
 0x2d6 PF: > { %s16_s23 = sadd.s32 1, %s879_s23   ;;  %s1018_s21 = smov %s875_s22 }
 0x2d7   : > { %p13_p5 = scmp.ge.s32.totalorder %s16_s23, 4   ;;  %s1019_s22 = smov %s1021_s24 }
 0x2d9   :  { %15 = sbr.rel (!%p13_p5) target bundleno = 2 (0x2), region = 77 }

// kernel: _lambda_.9
= control target key start
LH: loop header
LB: loop body
LE: loop exit
PB: predicated region body
PF: predicated region fallthrough
CT: control target
= control target key end

     0   :  { %vm148_vm0 = vcmask 1043456   ;;  %vm141_vm1 = vcmask 64512   ;;  %v7025_v2 = vmov 0   ;;  %v7026_v43 = vmov 1966171168   ;;  %s11463_s1 = inlined_call_operand.vmem [shape: bf16[8,8,128], index: 1, kind: input, shape index: {}]   ;;  %s11464_s3 = inlined_call_operand.vmem [shape: bf16[32,8], index: 3, kind: input, shape index: {}]   ;;  %s11465_s4 = inlined_call_operand.vmem [shape: f32[32,1], index: 4, kind: input, shape index: {}]   ;;  %s11466_s6 = inlined_call_operand.vmem [shape: f32[32,1], index: 6, kind: input, shape index: {}]   ;;  %s11467_s9 = inlined_call_operand.vmem [shape: f32[64,1], index: 9, kind: input, shape index: {}]   ;;  %s11468_s11 = inlined_call_operand.vmem [shape: f32[64,1], index: 11, kind: input, shape index: {}]   ;;  %s11469_s0 = inlined_call_operand.vmem [shape: bf16[8,32,128], index: 0, kind: input, shape index: {}]   ;;  %s11470_s5 = inlined_call_operand.vmem [shape: bf16[4,32,256], index: 5, kind: input, shape index: {}]   ;;  %s11471_s2 = inlined_call_operand.vmem [shape: bf16[16,128], index: 2, kind: input, shape index: {}]   ;;  %s11472_s8 = inlined_call_operand.vmem [shape: bf16[64,16], index: 8, kind: input, shape index: {}]   ;;  %s11473_s7 = inlined_call_operand.vmem [shape: bf16[64,32], index: 7, kind: input, shape index: {}]   ;;  %s11474_s10 = inlined_call_operand.vmem [shape: bf16[64,64], index: 10, kind: input, shape index: {}]   ;;  %s11475_s12 = inlined_call_operand.vmem [shape: f32[64,128], index: 12, kind: output, shape index: {}]  }
   0x1   :  { %v130_v0 = vld [vmem:[%s11463_s1] sm:$0xf]  ;;  %v6563_v1 = vld [vmem:[%s11463_s1 + $0x8] sm:$0xf]  ;;  %6984 = vset.pattern.permute.xlu0 %v7025_v2  ;;  %6985 = vset.pattern.permute.xlu1 %v7025_v2  ;;  %v6556_v7 = vld [vmem:[%s11463_s1 + $0x4] sm:$0xf]  ;;  %v768_v44 = vunpack.c.l.s4 %v7026_v43  ;;  %v770_v45 = vlaneseq }
   0x2   :  { %6974 = vmatprep.subr.msk.bf16.mxu1 %vm148_vm0, %v130_v0  ;;  %v150_v3 = vsel %vm148_vm0, %v130_v0, 0  ;;  %6976 = vmatprep.subr.msk.bf16.mxu0 %vm148_vm0, %v6563_v1  ;;  %v7104_v4 = vld [vmem:[%s11464_s3] sm:$0xff]   ;;  %v301_v5 = vsel %vm148_vm0, %v6563_v1, 0  ;;  %v7110_v6 = vld [vmem:[%s11464_s3 + $0x8] sm:$0xff]   ;;  %v224_v8 = vsel %vm148_vm0, %v6556_v7, 0  ;;  %v48_v14 = vld [vmem:[%s11465_s4 + $0x10] sm:$0xff] }
   0x3   :  { %6881 = vmatpush3.bf16.msra.mxu1 %v150_v3  ;;  %6893 = vmatpush3.bf16.msra.mxu0 %v301_v5  ;;  %v6577_v9 = vld [vmem:[%s11463_s1 + $0x10] sm:$0xf]  ;;  %v6570_v11 = vld [vmem:[%s11463_s1 + $0xc] sm:$0xf]  ;;  %v6591_v12 = vld [vmem:[%s11463_s1 + $0x18] sm:$0xf]  ;;  %v769_v48 = vunpack.c.0.s8 %v768_v44 }
   0x4   :  { %6882 = vmatprep.mubr.msk.bf16.mxu1 %vm141_vm1, %v7104_v4  ;;  %6894 = vmatprep.mubr.msk.bf16.mxu0 %vm141_vm1, %v7104_v4  ;;  %v455_v10 = vsel %vm148_vm0, %v6577_v9, 0  ;;  %v47_v13 = vld [vmem:[%s11465_s4 + $0x8] sm:$0xff]  ;;  %v378_v15 = vsel %vm148_vm0, %v6570_v11, 0  ;;  %v609_v16 = vsel %vm148_vm0, %v6591_v12, 0  ;;  %v6584_v17 = vld [vmem:[%s11463_s1 + $0x14] sm:$0xf] }
   0x5   :  { %6975 = vmatprep.subr.msk.bf16.mxu1 %vm148_vm0, %v6556_v7  ;;  %6978 = vmatprep.subr.msk.bf16.mxu0 %vm148_vm0, %v6577_v9  ;;  %v46_v18 = vld [vmem:[%s11465_s4] sm:$0xff]  ;;  %v49_v19 = vld [vmem:[%s11465_s4 + $0x18] sm:$0xff]  ;;  %v532_v21 = vsel %vm148_vm0, %v6584_v17, 0  ;;  %v87_v23 = vld [vmem:[%s11466_s6 + $0x8] sm:$0xff]  ;;  %v771_v49 = vshrl.u32 %v770_v45, 7  ;;  %vm6158_vm2 = vcmask 130048  }
   0x6   :  { %6883 = vmatmul.mubr.msk.bf16.vlgmr.msra.gmra.mrb[0].mxu1 %vm141_vm1, %v7110_v6  ;;  %6895 = vmatmul.mubr.msk.bf16.vlgmr.msra.gmra.mrb[0].mxu0 %vm141_vm1, %v7110_v6  ;;  %v86_v20 = vld [vmem:[%s11466_s6] sm:$0xff]  ;;  %v6598_v22 = vld [vmem:[%s11463_s1 + $0x1c] sm:$0xf]  ;;  %v88_v24 = vld [vmem:[%s11466_s6 + $0x10] sm:$0xff]  ;;  %vm6256_vm3 = vcmask 261120   ;;  %vm6454_vm4 = vcmask 523264  }
   0x7   :  { %6887 = vmatpush3.bf16.msra.mxu1 %v224_v8  ;;  %6888 = vmatprep.mubr.msk.bf16.mxu1 %vm141_vm1, %v7104_v4  ;;  %v89_v25 = vld [vmem:[%s11466_s6 + $0x18] sm:$0xff]  ;;  %v106_v26 = vld [vmem:[%s11467_s9] sm:$0xff]  ;;  %v686_v27 = vsel %vm148_vm0, %v6598_v22, 0  ;;  %v107_v28 = vld [vmem:[%s11467_s9 + $0x8] sm:$0xff]  ;;  %v7268_v57 = vsub.s32 %v769_v48, %v771_v49  ;;  %v7270_v58 = vsub.s32 0, %v771_v49 }
   0x8   :  { %6905 = vmatpush3.bf16.msra.mxu0 %v455_v10  ;;  %6906 = vmatprep.mubr.msk.bf16.mxu0 %vm141_vm1, %v7104_v4  ;;  %v108_v29 = vld [vmem:[%s11467_s9 + $0x10] sm:$0xff]  ;;  %v109_v30 = vld [vmem:[%s11467_s9 + $0x18] sm:$0xff]  ;;  %v110_v31 = vld [vmem:[%s11467_s9 + $0x20] sm:$0xff] }
   0x9   :  { %6977 = vmatprep.subr.msk.bf16.mxu1 %vm148_vm0, %v6570_v11  ;;  %6980 = vmatprep.subr.msk.bf16.mxu0 %vm148_vm0, %v6591_v12  ;;  %v111_v32 = vld [vmem:[%s11467_s9 + $0x28] sm:$0xff]  ;;  %v112_v33 = vld [vmem:[%s11467_s9 + $0x30] sm:$0xff]  ;;  %v113_v34 = vld [vmem:[%s11467_s9 + $0x38] sm:$0xff] }
   0xa   :  { %57 = vperm.xlu0 %6984, %v47_v13   ;;  %62 = vperm.xlu1 %6985, %v48_v14   ;;  %v122_v35 = vld [vmem:[%s11468_s11] sm:$0xff]  ;;  %v123_v36 = vld [vmem:[%s11468_s11 + $0x8] sm:$0xff]  ;;  %v124_v37 = vld [vmem:[%s11468_s11 + $0x10] sm:$0xff] }
   0xb   :  { %v125_v38 = vld [vmem:[%s11468_s11 + $0x18] sm:$0xff]  ;;  %v126_v39 = vld [vmem:[%s11468_s11 + $0x20] sm:$0xff]  ;;  %v127_v40 = vld [vmem:[%s11468_s11 + $0x28] sm:$0xff] }
   0xc   :  { %v128_v41 = vld [vmem:[%s11468_s11 + $0x30] sm:$0xff]  ;;  %v129_v42 = vld [vmem:[%s11468_s11 + $0x38] sm:$0xff]  ;;  %v6647_v50 = vld [vmem:[%s11469_s0] sm:$0xff]  }
   0xd   :  { %v6710_v51 = vld [vmem:[%s11469_s0 + $0x8] sm:$0xff]   ;;  %v6711_v52 = vld [vmem:[%s11469_s0 + $0x10] sm:$0xff]   ;;  %v6712_v53 = vld [vmem:[%s11469_s0 + $0x18] sm:$0xff]   ;;  %v7264_v55 = vunpack.c.l.bf16 %v6647_v50  ;;  %v7266_v56 = vunpack.c.h.bf16 %v6647_v50 }
   0xe   :  { %6889 = vmatmul.mubr.msk.bf16.vlgmr.msra.gmra.mrb[4].mxu1 %vm141_vm1, %v7110_v6  ;;  %6907 = vmatmul.mubr.msk.bf16.vlgmr.msra.gmra.mrb[4].mxu0 %vm141_vm1, %v7110_v6  ;;  %v6713_v60 = vld [vmem:[%s11469_s0 + $0x20] sm:$0xff]   ;;  %v7277_v62 = vunpack.c.l.bf16 %v6710_v51  ;;  %v7279_v63 = vunpack.c.h.bf16 %v6710_v51  ;;  %v7281_v0 = vunpack.c.l.bf16 %v6711_v52  ;;  %v7283_v1 = vunpack.c.h.bf16 %v6711_v52  ;;  %v6714_v3 = vld [vmem:[%s11469_s0 + $0x28] sm:$0xff]  }
   0xf   :  { %6899 = vmatpush3.bf16.msra.mxu1 %v378_v15  ;;  %6900 = vmatprep.mubr.msk.bf16.mxu1 %vm141_vm1, %v7104_v4  ;;  %11700 = vst [vmem:[#allocation7_spill] sm:$0xff] %v7264_v55  ;;  %11701 = vst [vmem:[#allocation8_spill] sm:$0xff] %v7266_v56  ;;  %v7291_v7 = vunpack.c.h.bf16 %v6712_v53  ;;  %v7295_v12 = vunpack.c.l.bf16 %v6713_v60  ;;  %v7297_v13 = vunpack.c.h.bf16 %v6713_v60 }
  0x10   :  { %6917 = vmatpush3.bf16.msra.mxu0 %v609_v16  ;;  %6918 = vmatprep.mubr.msk.bf16.mxu0 %vm141_vm1, %v7104_v4  ;;  %11703 = vst [vmem:[#allocation10_spill] sm:$0xff] %v7277_v62  ;;  %11704 = vst [vmem:[#allocation11_spill] sm:$0xff] %v7279_v63 }
  0x11   :  { %6979 = vmatprep.subr.msk.bf16.mxu1 %vm148_vm0, %v6584_v17  ;;  %52 = vperm.xlu0 %6984, %v46_v18   ;;  %11705 = vst [vmem:[#allocation12_spill] sm:$0xff] %v7281_v0  ;;  %11706 = vst [vmem:[#allocation13_spill] sm:$0xff] %v7283_v1 }
  0x12   :  { %67 = vperm.xlu1 %6985, %v49_v19   ;;  %11708 = vst [vmem:[#allocation15_spill] sm:$0xff] %v7291_v7  ;;  %11709 = vst [vmem:[#allocation16_spill] sm:$0xff] %v7295_v12  ;;  %v7303_v19 = vunpack.c.l.bf16 %v6714_v3 }
  0x13   :  { %11710 = vst [vmem:[#allocation17_spill] sm:$0xff] %v7297_v13 }
  0x14   :  { %11711 = vst [vmem:[#allocation18_spill] sm:$0xff] %v7303_v19 }
  0x15   :  { %6102 = vperm.xlu0 %6984, %v86_v20  }
  0x16   :  { %6901 = vmatmul.mubr.msk.bf16.vlgmr.msra.gmra.mrb[8].mxu1 %vm141_vm1, %v7110_v6  ;;  %6919 = vmatmul.mubr.msk.bf16.vlgmr.msra.gmra.mrb[8].mxu0 %vm141_vm1, %v7110_v6 }
  0x17   :  { %6911 = vmatpush3.bf16.msra.mxu1 %v532_v21  ;;  %6912 = vmatprep.mubr.msk.bf16.mxu1 %vm141_vm1, %v7104_v4 }
  0x18   :  { %6981 = vmatprep.subr.msk.bf16.mxu1 %vm148_vm0, %v6598_v22  ;;  %6107 = vperm.xlu1 %6985, %v87_v23   ;;  %v7306_v22 = vunpack.c.h.bf16 %v6714_v3 }
  0x19   :  { %6112 = vperm.xlu0 %6984, %v88_v24  }
  0x1a   :  { %11712 = vst [vmem:[#allocation19_spill] sm:$0xff] %v7306_v22 }
  0x1c   :  { %6117 = vperm.xlu1 %6985, %v89_v25  }
  0x1d   :  { %6336 = vperm.xlu0 %6984, %v106_v26  }
  0x1e   :  { %6913 = vmatmul.mubr.msk.bf16.vlgmr.msra.gmra.mrb[12].mxu1 %vm141_vm1, %v7110_v6 }
  0x1f   :  { %6923 = vmatpush3.bf16.msra.mxu1 %v686_v27  ;;  %6924 = vmatprep.mubr.msk.bf16.mxu1 %vm141_vm1, %v7104_v4 }
  0x20   :  { %6341 = vperm.xlu1 %6985, %v107_v28  }
  0x21   :  { %6346 = vperm.xlu0 %6984, %v108_v29  }
  0x24   :  { %6351 = vperm.xlu1 %6985, %v109_v30  }
  0x25   :  { %6356 = vperm.xlu0 %6984, %v110_v31  }
  0x26   :  { %6925 = vmatmul.mubr.msk.bf16.vlgmr.msra.gmra.mrb[16].mxu1 %vm141_vm1, %v7110_v6  ;;  %v7289_v6 = vunpack.c.l.bf16 %v6712_v53 }
  0x28   :  { %6361 = vperm.xlu1 %6985, %v111_v32   ;;  %11707 = vst [vmem:[#allocation14_spill] sm:$0xff] %v7289_v6 }
  0x29   :  { %6366 = vperm.xlu0 %6984, %v112_v33  }
  0x2c   :  { %6371 = vperm.xlu1 %6985, %v113_v34  }
  0x2d   :  { %6396 = vperm.xlu0 %6984, %v122_v35  }
  0x30   :  { %6401 = vperm.xlu1 %6985, %v123_v36  }
  0x31   :  { %6406 = vperm.xlu0 %6984, %v124_v37  }
  0x34   :  { %6411 = vperm.xlu1 %6985, %v125_v38  }
  0x35   :  { %6416 = vperm.xlu0 %6984, %v126_v39  }
  0x38   :  { %6421 = vperm.xlu1 %6985, %v127_v40  }
  0x39   :  { %6426 = vperm.xlu0 %6984, %v128_v41  }
  0x3c   :  { %6431 = vperm.xlu1 %6985, %v129_v42  }
  0x89   :  { %v7246_v46 = vpop.permute.xlu0 %57  ;;  %v7248_v47 = vpop.permute.xlu1 %62 }
  0x8a   :  { %11697 = vst [vmem:[#allocation4_spill] sm:$0xff] %v7246_v46  ;;  %11698 = vst [vmem:[#allocation5_spill] sm:$0xff] %v7248_v47 }
  0x90   :  { %v7262_v54 = vpop.permute.xlu0 %52 }
  0x91   :  { %11699 = vst [vmem:[#allocation6_spill] sm:$0xff] %v7262_v54  ;;  %v7272_v59 = vpop.permute.xlu1 %67 }
  0x92   :  { %11702 = vst [vmem:[#allocation9_spill] sm:$0xff] %v7272_v59 }
  0xd9   :  { %v6884_v61 = vpop.f32.mrb[0].mxu1  ;;  %v6896_v2 = vpop.f32.mrb[0].mxu0 }
  0xda   :  { %v195_v4 = vadd.f32 %v6884_v61, %v7248_v47  ;;  %v186_v5 = vpop.f32.mrb[1].mxu1  ;;  %v346_v8 = vadd.f32 %v6896_v2, %v7248_v47  ;;  %v337_v9 = vpop.f32.mrb[1].mxu0 }
  0xdb   :  { %v187_v10 = vadd.f32 %v186_v5, %v7262_v54  ;;  %v6885_v11 = vpop.f32.mrb[2].mxu1  ;;  %v338_v14 = vadd.f32 %v337_v9, %v7262_v54  ;;  %v7336_v41 = vpop.f32.mrb[2].mxu0 }
  0xdc   :  { %v203_v15 = vmax.f32 %v195_v4, 0.0  ;;  %v198_v16 = vadd.f32 %v6885_v11, %v7272_v59  ;;  %v189_v17 = vpop.f32.mrb[3].mxu1  ;;  %v7301_v18 = vmax.f32 %v346_v8, 0.0  ;;  %11715 = vst [vmem:[#allocation22_spill] sm:$0xff] %v7336_v41 }
  0xdd   :  { %v201_v20 = vmax.f32 %v187_v10, 0.0  ;;  %v190_v21 = vadd.f32 %v189_v17, %v7246_v46  ;;  %v7308_v23 = vmax.f32 %v338_v14, 0.0 }
  0xde   :  { %v3444_v24 = vcombine.high %v203_v15, %v203_v15  ;;  %v3451_v25 = vrot.slane %v203_v15, %v7268_v57  ;;  %v7311_v26 = vmax.f32 %v198_v16, 0.0  ;;  %v7320_v31 = vrot.slane %v7301_v18, %v7268_v57 }
  0xdf   :  { %11713 = vst [vmem:[#allocation20_spill] sm:$0xff] %v7308_v23  ;;  %v766_v28 = vcombine.high %v201_v20, %v201_v20  ;;  %v773_v29 = vrot.slane %v201_v20, %v7268_v57  ;;  %v7316_v30 = vmax.f32 %v190_v21, 0.0 }
  0xe0   :  { %11714 = vst [vmem:[#allocation21_spill] sm:$0xff] %v7320_v31  ;;  %v3458_v32 = vrot.slane %v3444_v24, %v7268_v57  ;;  %v3459_v33 = vcombine.high %v3451_v25, %v3451_v25  ;;  %v3467_v34 = vrot.slane %v3451_v25, %v7268_v57  ;;  %v7332_v39 = vrot.slane %v7311_v26, %v7268_v57 }
  0xe1   :  { %v780_v36 = vrot.slane %v766_v28, %v7268_v57  ;;  %v781_v37 = vcombine.high %v773_v29, %v773_v29  ;;  %v7328_v38 = vrot.slane %v773_v29, %v7268_v57  ;;  %v7334_v40 = vpop.f32.mrb[4].mxu1 }
  0xe2   :  { %v3460_v42 = vcombine.high %v3458_v32, %v3458_v32  ;;  %v3474_v43 = vrot.slane %v3458_v32, %v7268_v57  ;;  %v3481_v44 = vrot.slane %v3459_v33, %v7268_v57  ;;  %v3489_v45 = vcombine.high %v3467_v34, %v3467_v34  ;;  %v7340_v48 = vpop.f32.mrb[5].mxu1 }
  0xe3   :  { %v3496_v49 = vrot.slane %v3467_v34, %v7270_v58  ;;  %v782_v50 = vcombine.high %v780_v36, %v780_v36  ;;  %v796_v51 = vrot.slane %v780_v36, %v7268_v57  ;;  %v803_v52 = vrot.slane %v781_v37, %v7268_v57  ;;  %v7345_v53 = vpop.f32.mrb[6].mxu1 }
  0xe4   :  { %v3488_v60 = vrot.slane %v3460_v42, %v7268_v57  ;;  %v3490_v61 = vcombine.high %v3474_v43, %v3474_v43  ;;  %v3491_v2 = vcombine.high %v3481_v44, %v3481_v44  ;;  %v3500_v3 = vrot.slane %v3481_v44, %v7270_v58  ;;  %v7349_v4 = vpop.f32.mrb[7].mxu1 }
  0xe5   :  { %11716 = vst [vmem:[#allocation23_spill] sm:$0xff] %v7349_v4  ;;  %v3504_v5 = vrot.slane %v3489_v45, %v7270_v58  ;;  %v3512_v8 = vrot.slane %v3474_v43, %v7270_v58  ;;  %v7354_v9 = vmul.f32 %v7264_v55, %v3496_v49  ;;  %v7357_v10 = vmul.f32 %v7266_v56, %v3496_v49 }
  0xe6   :  { %v3492_v11 = vcombine.high %v3488_v60, %v3488_v60  ;;  %v3508_v14 = vrot.slane %v3491_v2, %v7270_v58  ;;  %v3516_v15 = vrot.slane %v3488_v60, %v7270_v58  ;;  %v3520_v16 = vrot.slane %v3490_v61, %v7270_v58 }
  0xe7   :  { %v7363_v17 = vmul.f32 %v7277_v62, %v3496_v49  ;;  %v7366_v20 = vmul.f32 %v7279_v63, %v3496_v49  ;;  %v7369_v21 = vmul.f32 %v7264_v55, %v3500_v3  ;;  %v7372_v24 = vmul.f32 %v7266_v56, %v3500_v3 }
  0xe8   :  { %v7375_v25 = vrot.slane %v3492_v11, %v7270_v58  ;;  %v7378_v28 = vmul.f32 %v7277_v62, %v3500_v3  ;;  %v7381_v29 = vmul.f32 %v7279_v63, %v3500_v3  ;;  %v7384_v32 = vmul.f32 %v7264_v55, %v3504_v5 }
  0xe9   :  { %v7387_v33 = vmul.f32 %v7266_v56, %v3504_v5  ;;  %v7390_v34 = vmul.f32 %v7277_v62, %v3504_v5  ;;  %v7393_v36 = vmul.f32 %v7279_v63, %v3504_v5  ;;  %v7396_v37 = vmul.f32 %v7264_v55, %v3508_v14 }
  0xea   :  { %11717 = vst [vmem:[#allocation24_spill] sm:$0xff] %v7375_v25  ;;  %v7399_v42 = vmul.f32 %v7266_v56, %v3508_v14  ;;  %v7402_v43 = vmul.f32 %v7277_v62, %v3508_v14  ;;  %v7405_v44 = vmul.f32 %v7279_v63, %v3508_v14  ;;  %v7408_v45 = vmul.f32 %v7264_v55, %v3512_v8 }
  0xeb   :  { %v7411_v49 = vmul.f32 %v7266_v56, %v3512_v8  ;;  %v7414_v60 = vmul.f32 %v7277_v62, %v3512_v8  ;;  %v7417_v61 = vmul.f32 %v7279_v63, %v3512_v8  ;;  %v7420_v2 = vmul.f32 %v7264_v55, %v3516_v15 }
  0xec   :  { %11718 = vst [vmem:[#allocation25_spill] sm:$0xff] %v7408_v45  ;;  %v7423_v3 = vmul.f32 %v7266_v56, %v3516_v15  ;;  %v7426_v5 = vmul.f32 %v7277_v62, %v3516_v15  ;;  %v7429_v11 = vmul.f32 %v7279_v63, %v3516_v15  ;;  %v7432_v14 = vmul.f32 %v7264_v55, %v3520_v16 }
  0xed   :  { %11719 = vst [vmem:[#allocation26_spill] sm:$0xff] %v7411_v49  ;;  %11720 = vst [vmem:[#allocation27_spill] sm:$0xff] %v7414_v60  ;;  %v7435_v27 = vmul.f32 %v7266_v56, %v3520_v16  ;;  %v7438_v8 = vmul.f32 %v7277_v62, %v3520_v16  ;;  %v7441_v35 = vmul.f32 %v7279_v63, %v3520_v16  ;;  %v7457_v60 = vpop.f32.mrb[3].mxu0 }
  0xee   :  { %11721 = vst [vmem:[#allocation28_spill] sm:$0xff] %v7417_v61  ;;  %11722 = vst [vmem:[#allocation29_spill] sm:$0xff] %v7420_v2  ;;  %v810_v25 = vrot.slane %v782_v50, %v7268_v57  ;;  %v813_v15 = vcombine.high %v803_v52, %v803_v52  ;;  %v822_v2 = vrot.slane %v803_v52, %v7270_v58 }
  0xef   :  { %11723 = vst [vmem:[#allocation30_spill] sm:$0xff] %v7423_v3  ;;  %11724 = vst [vmem:[#allocation31_spill] sm:$0xff] %v7426_v5  ;;  %v811_v5 = vcombine.high %v7328_v38, %v7328_v38  ;;  %v812_v3 = vcombine.high %v796_v51, %v796_v51 }
  0xf0   :  { %11725 = vst [vmem:[#allocation32_spill] sm:$0xff] %v7429_v11  ;;  %11726 = vst [vmem:[#allocation33_spill] sm:$0xff] %v7432_v14  ;;  %v818_v11 = vrot.slane %v7328_v38, %v7270_v58  ;;  %v814_v14 = vcombine.high %v810_v25, %v810_v25 }
  0xf1   :  { %11727 = vst [vmem:[#allocation34_spill] sm:$0xff] %v7435_v27  ;;  %11728 = vst [vmem:[#allocation35_spill] sm:$0xff] %v7438_v8  ;;  %v834_v27 = vrot.slane %v796_v51, %v7270_v58  ;;  %v838_v8 = vrot.slane %v810_v25, %v7270_v58  ;;  %v826_v16 = vrot.slane %v811_v5, %v7270_v58 }
  0xf2   :  { %11729 = vst [vmem:[#allocation36_spill] sm:$0xff] %v7441_v35  ;;  %v830_v35 = vrot.slane %v813_v15, %v7270_v58  ;;  %v842_v50 = vrot.slane %v812_v3, %v7270_v58  ;;  %v7455_v61 = vmul.f32 %v7264_v55, %v818_v11  ;;  %11730 = vst [vmem:[#allocation37_spill] sm:$0xff] %v7457_v60 }
  0xf3   :  { %v7460_v38 = vrot.slane %v814_v14, %v7270_v58  ;;  %v7463_v52 = vmul.f32 %v7266_v56, %v818_v11  ;;  %v7466_v51 = vmul.f32 %v7277_v62, %v818_v11  ;;  %v7469_v25 = vmul.f32 %v7279_v63, %v818_v11 }
  0xf4   :  { %v7472_v5 = vmul.f32 %v7264_v55, %v822_v2  ;;  %v7475_v3 = vmul.f32 %v7266_v56, %v822_v2  ;;  %v7478_v15 = vmul.f32 %v7277_v62, %v822_v2  ;;  %v7481_v14 = vmul.f32 %v7279_v63, %v822_v2 }
  0xf5   :  { %11731 = vst [vmem:[#allocation38_spill] sm:$0xff] %v7460_v38  ;;  %v7484_v49 = vmul.f32 %v7264_v55, %v826_v16  ;;  %v7487_v45 = vmul.f32 %v7266_v56, %v826_v16  ;;  %v7490_v11 = vmul.f32 %v7277_v62, %v826_v16  ;;  %v7493_v38 = vmul.f32 %v7279_v63, %v826_v16 }
  0xf6   :  { %v7496_v60 = vmul.f32 %v7264_v55, %v830_v35  ;;  %v7499_v41 = vmul.f32 %v7266_v56, %v830_v35  ;;  %v7502_v2 = vmul.f32 %v7277_v62, %v830_v35  ;;  %v7505_v23 = vmul.f32 %v7279_v63, %v830_v35 }
  0xf7   :  { %v7508_v4 = vmul.f32 %v7264_v55, %v834_v27  ;;  %v7511_v46 = vmul.f32 %v7266_v56, %v834_v27  ;;  %v7514_v16 = vmul.f32 %v7277_v62, %v834_v27  ;;  %v7517_v22 = vmul.f32 %v7279_v63, %v834_v27 }
  0xf8   :  { %11732 = vst [vmem:[#allocation39_spill] sm:$0xff] %v7496_v60  ;;  %11733 = vst [vmem:[#allocation40_spill] sm:$0xff] %v7499_v41  ;;  %v7520_v19 = vmul.f32 %v7264_v55, %v838_v8  ;;  %v7523_v13 = vmul.f32 %v7266_v56, %v838_v8  ;;  %v7526_v35 = vmul.f32 %v7277_v62, %v838_v8 }
  0xf9   :  { %11734 = vst [vmem:[#allocation41_spill] sm:$0xff] %v7502_v2  ;;  %11735 = vst [vmem:[#allocation42_spill] sm:$0xff] %v7505_v23  ;;  %v7538_v27 = vmul.f32 %v7277_v62, %v842_v50 }
  0xfa   :  { %11736 = vst [vmem:[#allocation43_spill] sm:$0xff] %v7508_v4  ;;  %11737 = vst [vmem:[#allocation44_spill] sm:$0xff] %v7511_v46  ;;  %v7529_v4 = vmul.f32 %v7279_v63, %v838_v8  ;;  %v7532_v46 = vmul.f32 %v7264_v55, %v842_v50  ;;  %v4788_v8 = vcombine.high %v7332_v39, %v7332_v39 }
  0xfb   :  { %11738 = vst [vmem:[#allocation45_spill] sm:$0xff] %v7514_v16  ;;  %11739 = vst [vmem:[#allocation46_spill] sm:$0xff] %v7517_v22  ;;  %v7535_v16 = vmul.f32 %v7266_v56, %v842_v50 }
  0xfc   :  { %11740 = vst [vmem:[#allocation47_spill] sm:$0xff] %v7520_v19  ;;  %11741 = vst [vmem:[#allocation48_spill] sm:$0xff] %v7523_v13  ;;  %v7541_v19 = vmul.f32 %v7279_v63, %v842_v50  ;;  %v11748_v13 = vcombine.high %v7311_v26, %v7311_v26  ;;  %v269_v50 = vadd.f32 %v7334_v40, %v7248_v47 }
  0xfd   :  { %11742 = vst [vmem:[#allocation49_spill] sm:$0xff] %v7526_v35  ;;  %11743 = vst [vmem:[#allocation50_spill] sm:$0xff] %v7529_v4 }
  0xfe   :  { %11744 = vst [vmem:[#allocation51_spill] sm:$0xff] %v7532_v46  ;;  %11745 = vst [vmem:[#allocation52_spill] sm:$0xff] %v7535_v16  ;;  %v4787_v35 = vrot.slane %v11748_v13, %v7268_v57  ;;  %v4796_v46 = vrot.slane %v7332_v39, %v7268_v57  ;;  %v2050_v16 = vcombine.high %v7316_v30, %v7316_v30 }
  0xff   :  { %11746 = vst [vmem:[#allocation53_spill] sm:$0xff] %v7538_v27  ;;  %11747 = vst [vmem:[#allocation54_spill] sm:$0xff] %v7541_v19  ;;  %v2057_v27 = vrot.slane %v7316_v30, %v7268_v57  ;;  %v261_v19 = vadd.f32 %v7340_v48, %v7262_v54  ;;  %v272_v13 = vadd.f32 %v7345_v53, %v7272_v59  ;;  %v7568_v53 = vpop.f32.mrb[4].mxu0 }
 0x100   :  { %v4789_v26 = vcombine.high %v4787_v35, %v4787_v35  ;;  %v4803_v4 = vrot.slane %v4787_v35, %v7268_v57  ;;  %v4810_v39 = vrot.slane %v4788_v8, %v7268_v57  ;;  %v4818_v22 = vcombine.high %v4796_v46, %v4796_v46  ;;  %11749 = vst [vmem:[#allocation55_spill] sm:$0xff] %v7568_v53 }
 0x101   :  { %v4825_v12 = vrot.slane %v4796_v46, %v7270_v58  ;;  %v2064_v31 = vrot.slane %v2050_v16, %v7268_v57  ;;  %v2065_v30 = vcombine.high %v2057_v27, %v2057_v27  ;;  %v2073_v23 = vrot.slane %v2057_v27, %v7268_v57 }
 0x102   :  { %v4817_v40 = vrot.slane %v4789_v26, %v7268_v57  ;;  %v4819_v47 = vcombine.high %v4803_v4, %v4803_v4  ;;  %v4820_v48 = vcombine.high %v4810_v39, %v4810_v39  ;;  %v4829_v54 = vrot.slane %v4810_v39, %v7270_v58 }
 0x103   :  { %v4833_v35 = vrot.slane %v4818_v22, %v7270_v58  ;;  %v4841_v8 = vrot.slane %v4803_v4, %v7270_v58  ;;  %v7573_v59 = vmul.f32 %v7264_v55, %v4825_v12  ;;  %v7576_v46 = vmul.f32 %v7266_v56, %v4825_v12 }
 0x104   :  { %v4821_v16 = vcombine.high %v4817_v40, %v4817_v40  ;;  %v4837_v27 = vrot.slane %v4820_v48, %v7270_v58  ;;  %v4845_v26 = vrot.slane %v4817_v40, %v7270_v58  ;;  %v4849_v2 = vrot.slane %v4819_v47, %v7270_v58 }
 0x105   :  { %11750 = vst [vmem:[#allocation56_spill] sm:$0xff] %v7573_v59  ;;  %11751 = vst [vmem:[#allocation57_spill] sm:$0xff] %v7576_v46  ;;  %v7582_v39 = vmul.f32 %v7277_v62, %v4825_v12  ;;  %v7585_v22 = vmul.f32 %v7279_v63, %v4825_v12  ;;  %v7588_v4 = vmul.f32 %v7264_v55, %v4829_v54 }
 0x106   :  { %v7591_v53 = vmul.f32 %v7266_v56, %v4829_v54  ;;  %v7594_v46 = vrot.slane %v4821_v16, %v7270_v58  ;;  %v7597_v48 = vmul.f32 %v7277_v62, %v4829_v54  ;;  %v7600_v47 = vmul.f32 %v7279_v63, %v4829_v54 }
 0x107   :  { %11752 = vst [vmem:[#allocation58_spill] sm:$0xff] %v7582_v39  ;;  %11753 = vst [vmem:[#allocation59_spill] sm:$0xff] %v7585_v22  ;;  %v7603_v40 = vmul.f32 %v7264_v55, %v4833_v35  ;;  %v7606_v12 = vmul.f32 %v7266_v56, %v4833_v35  ;;  %v7615_v16 = vmul.f32 %v7264_v55, %v4837_v27 }
 0x108   :  { %11754 = vst [vmem:[#allocation60_spill] sm:$0xff] %v7588_v4  ;;  %11755 = vst [vmem:[#allocation61_spill] sm:$0xff] %v7591_v53  ;;  %v7609_v4 = vmul.f32 %v7277_v62, %v4833_v35  ;;  %v7612_v53 = vmul.f32 %v7279_v63, %v4833_v35  ;;  %v7621_v54 = vmul.f32 %v7277_v62, %v4837_v27 }
 0x109   :  { %11756 = vst [vmem:[#allocation62_spill] sm:$0xff] %v7594_v46  ;;  %11757 = vst [vmem:[#allocation63_spill] sm:$0xff] %v7597_v48  ;;  %v7618_v46 = vmul.f32 %v7266_v56, %v4837_v27  ;;  %v7633_v35 = vmul.f32 %v7277_v62, %v4841_v8 }
 0x10a   :  { %11758 = vst [vmem:[#allocation64_spill] sm:$0xff] %v7600_v47  ;;  %11759 = vst [vmem:[#allocation65_spill] sm:$0xff] %v7603_v40  ;;  %v7624_v40 = vmul.f32 %v7279_v63, %v4837_v27  ;;  %v7644_v27 = vmul.f32 %v7266_v56, %v4845_v26  ;;  %v278_v47 = vmax.f32 %v272_v13, 0.0 }
 0x10b   :  { %11760 = vst [vmem:[#allocation66_spill] sm:$0xff] %v7606_v12  ;;  %11761 = vst [vmem:[#allocation67_spill] sm:$0xff] %v7609_v4  ;;  %v7627_v12 = vmul.f32 %v7264_v55, %v4841_v8  ;;  %v7630_v4 = vmul.f32 %v7266_v56, %v4841_v8 }
 0x10c   :  { %11762 = vst [vmem:[#allocation68_spill] sm:$0xff] %v7612_v53  ;;  %11763 = vst [vmem:[#allocation69_spill] sm:$0xff] %v7615_v16  ;;  %v7636_v16 = vmul.f32 %v7279_v63, %v4841_v8  ;;  %v7641_v53 = vpop.f32.mrb[5].mxu0  ;;  %v7656_v8 = vmul.f32 %v7266_v56, %v4849_v2 }
 0x10d   :  { %11764 = vst [vmem:[#allocation70_spill] sm:$0xff] %v7618_v46  ;;  %11765 = vst [vmem:[#allocation71_spill] sm:$0xff] %v7621_v54  ;;  %v7639_v46 = vmul.f32 %v7264_v55, %v4845_v26  ;;  %v275_v54 = vmax.f32 %v261_v19, 0.0 }
 0x10e   :  { %11766 = vst [vmem:[#allocation72_spill] sm:$0xff] %v7624_v40  ;;  %11767 = vst [vmem:[#allocation73_spill] sm:$0xff] %v7627_v12  ;;  %v7647_v40 = vmul.f32 %v7277_v62, %v4845_v26  ;;  %v7650_v12 = vmul.f32 %v7279_v63, %v4845_v26  ;;  %v2102_v26 = vrot.slane %v2073_v23, %v7270_v58 }
 0x10f   :  { %11768 = vst [vmem:[#allocation74_spill] sm:$0xff] %v7630_v4  ;;  %11769 = vst [vmem:[#allocation75_spill] sm:$0xff] %v7633_v35  ;;  %v7653_v4 = vmul.f32 %v7264_v55, %v4849_v2  ;;  %v2066_v35 = vcombine.high %v2064_v31, %v2064_v31 }
 0x110   :  { %11770 = vst [vmem:[#allocation76_spill] sm:$0xff] %v7636_v16  ;;  %11771 = vst [vmem:[#allocation77_spill] sm:$0xff] %v7639_v46  ;;  %v7659_v16 = vmul.f32 %v7277_v62, %v4849_v2  ;;  %v7662_v46 = vmul.f32 %v7279_v63, %v4849_v2  ;;  %v7678_v19 = vmul.f32 %v7266_v56, %v2102_v26 }
 0x111   :  { %11772 = vst [vmem:[#allocation78_spill] sm:$0xff] %v7641_v53  ;;  %11773 = vst [vmem:[#allocation79_spill] sm:$0xff] %v7644_v27  ;;  %v2080_v27 = vrot.slane %v2064_v31, %v7268_v57  ;;  %v2095_v53 = vcombine.high %v2073_v23, %v2073_v23  ;;  %v7681_v13 = vmul.f32 %v7277_v62, %v2102_v26 }
 0x112   :  { %11774 = vst [vmem:[#allocation80_spill] sm:$0xff] %v7647_v40  ;;  %11775 = vst [vmem:[#allocation81_spill] sm:$0xff] %v7650_v12  ;;  %v2087_v40 = vrot.slane %v2065_v30, %v7268_v57  ;;  %v2094_v12 = vrot.slane %v2066_v35, %v7268_v57  ;;  %v7673_v30 = vmul.f32 %v7264_v55, %v2102_v26 }
 0x113   :  { %11776 = vst [vmem:[#allocation82_spill] sm:$0xff] %v7653_v4  ;;  %11777 = vst [vmem:[#allocation83_spill] sm:$0xff] %v7656_v8  ;;  %v277_v4 = vmax.f32 %v269_v50, 0.0  ;;  %v2096_v8 = vcombine.high %v2080_v27, %v2080_v27  ;;  %v2110_v2 = vrot.slane %v2095_v53, %v7270_v58  ;;  %v2118_v22 = vrot.slane %v2080_v27, %v7270_v58 }
 0x114   :  { %11778 = vst [vmem:[#allocation84_spill] sm:$0xff] %v7659_v16  ;;  %11779 = vst [vmem:[#allocation85_spill] sm:$0xff] %v7662_v46  ;;  %v2097_v48 = vcombine.high %v2087_v40, %v2087_v40  ;;  %v2106_v16 = vrot.slane %v2087_v40, %v7270_v58  ;;  %v2098_v46 = vcombine.high %v2094_v12, %v2094_v12 }
 0x115   :  { %v2122_v31 = vrot.slane %v2094_v12, %v7270_v58  ;;  %11780 = vst [vmem:[#allocation86_spill] sm:$0xff] %v7673_v30  ;;  %v2126_v50 = vrot.slane %v2096_v8, %v7270_v58  ;;  %11781 = vst [vmem:[#allocation87_spill] sm:$0xff] %v7678_v19  ;;  %v7687_v40 = vmul.f32 %v7279_v63, %v2102_v26 }
 0x116   :  { %v2114_v23 = vrot.slane %v2097_v48, %v7270_v58  ;;  %11782 = vst [vmem:[#allocation88_spill] sm:$0xff] %v7681_v13  ;;  %v7684_v53 = vrot.slane %v2098_v46, %v7270_v58  ;;  %v7690_v12 = vmul.f32 %v7264_v55, %v2106_v16  ;;  %v7693_v35 = vmul.f32 %v7266_v56, %v2106_v16 }
 0x117   :  { %11784 = vst [vmem:[#allocation90_spill] sm:$0xff] %v7687_v40  ;;  %v7696_v48 = vmul.f32 %v7277_v62, %v2106_v16  ;;  %v7699_v27 = vmul.f32 %v7279_v63, %v2106_v16  ;;  %v7702_v8 = vmul.f32 %v7264_v55, %v2110_v2  ;;  %v7705_v46 = vmul.f32 %v7266_v56, %v2110_v2 }
 0x118   :  { %11783 = vst [vmem:[#allocation89_spill] sm:$0xff] %v7684_v53  ;;  %11785 = vst [vmem:[#allocation91_spill] sm:$0xff] %v7690_v12  ;;  %v7708_v26 = vmul.f32 %v7277_v62, %v2110_v2  ;;  %v7711_v53 = vmul.f32 %v7279_v63, %v2110_v2  ;;  %v7720_v16 = vmul.f32 %v7277_v62, %v2114_v23  ;;  %v7731_v2 = vpop.f32.mrb[8].mxu1 }
 0x119   :  { %11786 = vst [vmem:[#allocation92_spill] sm:$0xff] %v7693_v35  ;;  %11787 = vst [vmem:[#allocation93_spill] sm:$0xff] %v7696_v48  ;;  %v7714_v35 = vmul.f32 %v7264_v55, %v2114_v23  ;;  %v7717_v48 = vmul.f32 %v7266_v56, %v2114_v23 }
 0x11a   :  { %11788 = vst [vmem:[#allocation94_spill] sm:$0xff] %v7699_v27  ;;  %11789 = vst [vmem:[#allocation95_spill] sm:$0xff] %v7702_v8  ;;  %v7723_v8 = vmul.f32 %v7279_v63, %v2114_v23  ;;  %v7743_v23 = vmul.f32 %v7266_v56, %v2122_v31 }
 0x11b   :  { %11790 = vst [vmem:[#allocation96_spill] sm:$0xff] %v7705_v46  ;;  %11791 = vst [vmem:[#allocation97_spill] sm:$0xff] %v7708_v26  ;;  %v7726_v46 = vmul.f32 %v7264_v55, %v2118_v22  ;;  %v7729_v26 = vmul.f32 %v7266_v56, %v2118_v22 }
 0x11c   :  { %11792 = vst [vmem:[#allocation98_spill] sm:$0xff] %v7711_v53  ;;  %11793 = vst [vmem:[#allocation99_spill] sm:$0xff] %v7714_v35  ;;  %v7734_v53 = vmul.f32 %v7277_v62, %v2118_v22  ;;  %v7737_v35 = vmul.f32 %v7279_v63, %v2118_v22  ;;  %v7758_v22 = vmul.f32 %v7277_v62, %v2126_v50 }
 0x11d   :  { %11794 = vst [vmem:[#allocation100_spill] sm:$0xff] %v7717_v48  ;;  %11795 = vst [vmem:[#allocation101_spill] sm:$0xff] %v7720_v16  ;;  %v7740_v48 = vmul.f32 %v7264_v55, %v2122_v31 }
 0x11e   :  { %11796 = vst [vmem:[#allocation102_spill] sm:$0xff] %v7723_v8  ;;  %11797 = vst [vmem:[#allocation103_spill] sm:$0xff] %v7726_v46  ;;  %v7746_v8 = vmul.f32 %v7277_v62, %v2122_v31  ;;  %v7749_v46 = vmul.f32 %v7279_v63, %v2122_v31  ;;  %v4928_v31 = vcombine.high %v278_v47, %v278_v47 }
 0x11f   :  { %11798 = vst [vmem:[#allocation104_spill] sm:$0xff] %v7729_v26  ;;  %11799 = vst [vmem:[#allocation105_spill] sm:$0xff] %v7731_v2  ;;  %v7752_v26 = vmul.f32 %v7264_v55, %v2126_v50  ;;  %v925_v2 = vcombine.high %v275_v54, %v275_v54 }
 0x120   :  { %11800 = vst [vmem:[#allocation106_spill] sm:$0xff] %v7734_v53  ;;  %11801 = vst [vmem:[#allocation107_spill] sm:$0xff] %v7737_v35  ;;  %v7755_v53 = vmul.f32 %v7266_v56, %v2126_v50  ;;  %v3599_v35 = vcombine.high %v277_v4, %v277_v4 }
 0x121   :  { %11802 = vst [vmem:[#allocation108_spill] sm:$0xff] %v7740_v48  ;;  %11803 = vst [vmem:[#allocation109_spill] sm:$0xff] %v7743_v23  ;;  %v7761_v48 = vmul.f32 %v7279_v63, %v2126_v50  ;;  %v3606_v23 = vrot.slane %v277_v4, %v7268_v57  ;;  %v11811_v50 = vcombine.high %v7301_v18, %v7301_v18 }
 0x122   :  { %11804 = vst [vmem:[#allocation110_spill] sm:$0xff] %v7746_v8  ;;  %11805 = vst [vmem:[#allocation111_spill] sm:$0xff] %v7749_v46  ;;  %v932_v8 = vrot.slane %v275_v54, %v7268_v57  ;;  %v7766_v46 = vrot.slane %v278_v47, %v7268_v57  ;;  %v3613_v55 = vrot.slane %v3599_v35, %v7268_v57 }
 0x123   :  { %11806 = vst [vmem:[#allocation112_spill] sm:$0xff] %v7752_v26  ;;  %11807 = vst [vmem:[#allocation113_spill] sm:$0xff] %v7755_v53  ;;  %v3614_v56 = vcombine.high %v3606_v23, %v3606_v23  ;;  %v3622_v53 = vrot.slane %v3606_v23, %v7268_v57  ;;  %v7774_v63 = vrot.slane %v11811_v50, %v7268_v57 }
 0x124   :  { %11808 = vst [vmem:[#allocation114_spill] sm:$0xff] %v7758_v22  ;;  %11809 = vst [vmem:[#allocation115_spill] sm:$0xff] %v7761_v48  ;;  %v7777_v4 = vrot.slane %v925_v2, %v7268_v57  ;;  %v940_v62 = vcombine.high %v932_v8, %v932_v8  ;;  %v7780_v54 = vrot.slane %v932_v8, %v7268_v57 }
 0x125   :  { %11810 = vst [vmem:[#allocation116_spill] sm:$0xff] %v7766_v46  ;;  %11812 = vst [vmem:[#allocation117_spill] sm:$0xff] %v7774_v63  ;;  %v7783_v47 = vrot.slane %v4928_v31, %v7268_v57  ;;  %v3615_v35 = vcombine.high %v3613_v55, %v3613_v55  ;;  %v3629_v48 = vrot.slane %v3613_v55, %v7268_v57 }
 0x126   :  { %v3636_v23 = vrot.slane %v3614_v56, %v7268_v57  ;;  %v3644_v22 = vcombine.high %v3622_v53, %v3622_v53  ;;  %v3651_v18 = vrot.slane %v3622_v53, %v7270_v58  ;;  %v941_v50 = vcombine.high %v7777_v4, %v7777_v4 }
 0x127   :  { %11813 = vst [vmem:[#allocation118_spill] sm:$0xff] %v7783_v47  ;;  %v7792_v2 = vrot.slane %v7777_v4, %v7268_v57  ;;  %v7795_v8 = vrot.slane %v940_v62, %v7268_v57  ;;  %v3643_v31 = vrot.slane %v3615_v35, %v7268_v57  ;;  %v3645_v26 = vcombine.high %v3629_v48, %v3629_v48 }
 0x128   :  { %v3646_v16 = vcombine.high %v3636_v23, %v3636_v23  ;;  %v3655_v55 = vrot.slane %v3636_v23, %v7270_v58  ;;  %v3659_v56 = vrot.slane %v3644_v22, %v7270_v58  ;;  %v3667_v53 = vrot.slane %v3629_v48, %v7270_v58 }
 0x129   :  { %v3688_v27 = vmul.f32 %v7281_v0, %v3651_v18  ;;  %v3689_v12 = vmul.f32 %v7283_v1, %v3651_v18  ;;  %v3647_v40 = vcombine.high %v3643_v31, %v3643_v31  ;;  %v3671_v62 = vrot.slane %v3643_v31, %v7270_v58  ;;  %v7816_v31 = vpop.f32.mrb[6].mxu0 }
 0x12a   :  { %v3663_v4 = vrot.slane %v3646_v16, %v7270_v58  ;;  %v3675_v13 = vrot.slane %v3645_v26, %v7270_v58  ;;  %v3690_v35 = vmul.f32 %v7289_v6, %v3651_v18  ;;  %v3691_v19 = vmul.f32 %v7291_v7, %v3651_v18  ;;  %11815 = vst [vmem:[#allocation120_spill] sm:$0xff] %v7816_v31 }
 0x12b   :  { %v3692_v23 = vmul.f32 %v7281_v0, %v3655_v55  ;;  %v3693_v22 = vmul.f32 %v7283_v1, %v3655_v55  ;;  %v7811_v48 = vrot.slane %v3647_v40, %v7270_v58  ;;  %v3694_v30 = vmul.f32 %v7289_v6, %v3655_v55 }
 0x12c   :  { %v3695_v39 = vmul.f32 %v7291_v7, %v3655_v55  ;;  %v3696_v16 = vmul.f32 %v7281_v0, %v3659_v56  ;;  %v3697_v26 = vmul.f32 %v7283_v1, %v3659_v56  ;;  %v3698_v59 = vmul.f32 %v7289_v6, %v3659_v56 }
 0x12d   :  { %11814 = vst [vmem:[#allocation119_spill] sm:$0xff] %v7811_v48  ;;  %v3699_v18 = vmul.f32 %v7291_v7, %v3659_v56  ;;  %v3700_v63 = vmul.f32 %v7281_v0, %v3663_v4  ;;  %v3701_v47 = vmul.f32 %v7283_v1, %v3663_v4  ;;  %v3702_v40 = vmul.f32 %v7289_v6, %v3663_v4 }
 0x12e   :  { %v3703_v48 = vmul.f32 %v7291_v7, %v3663_v4  ;;  %v7826_v55 = vmul.f32 %v7281_v0, %v3667_v53  ;;  %v7829_v46 = vmul.f32 %v7283_v1, %v3667_v53  ;;  %v7832_v31 = vmul.f32 %v7289_v6, %v3667_v53 }
 0x12f   :  { %v7835_v41 = vmul.f32 %v7291_v7, %v3667_v53  ;;  %v7838_v56 = vmul.f32 %v7281_v0, %v3671_v62  ;;  %v7841_v60 = vmul.f32 %v7283_v1, %v3671_v62  ;;  %v7844_v4 = vmul.f32 %v7289_v6, %v3671_v62 }
 0x130   :  { %11816 = vst [vmem:[#allocation121_spill] sm:$0xff] %v7826_v55  ;;  %11817 = vst [vmem:[#allocation122_spill] sm:$0xff] %v7829_v46  ;;  %v7847_v55 = vmul.f32 %v7291_v7, %v3671_v62  ;;  %v7850_v46 = vmul.f32 %v7281_v0, %v3675_v13  ;;  %v7856_v53 = vmul.f32 %v7289_v6, %v3675_v13 }
 0x131   :  { %11818 = vst [vmem:[#allocation123_spill] sm:$0xff] %v7832_v31  ;;  %11819 = vst [vmem:[#allocation124_spill] sm:$0xff] %v7835_v41  ;;  %v7853_v31 = vmul.f32 %v7283_v1, %v3675_v13  ;;  %v7868_v62 = vadd.f32 %v3690_v35, %v7363_v17  ;;  %v7888_v17 = vpop.f32.mrb[9].mxu1 }
 0x132   :  { %11820 = vst [vmem:[#allocation125_spill] sm:$0xff] %v7838_v56  ;;  %11821 = vst [vmem:[#allocation126_spill] sm:$0xff] %v7841_v60  ;;  %v7859_v56 = vmul.f32 %v7291_v7, %v3675_v13  ;;  %v7862_v60 = vadd.f32 %v3688_v27, %v7354_v9  ;;  %v7880_v13 = vadd.f32 %v3694_v30, %v7378_v28 }
 0x133   :  { %11822 = vst [vmem:[#allocation127_spill] sm:$0xff] %v7844_v4  ;;  %11823 = vst [vmem:[#allocation128_spill] sm:$0xff] %v7847_v55  ;;  %v7865_v4 = vadd.f32 %v3689_v12, %v7357_v10  ;;  %v7883_v9 = vadd.f32 %v3695_v39, %v7381_v29  ;;  %v7886_v10 = vadd.f32 %v3696_v16, %v7384_v32  ;;  %v7983_v55 = vpop.f32.mrb[7].mxu0 }
 0x134   :  { %11824 = vst [vmem:[#allocation129_spill] sm:$0xff] %v7850_v46  ;;  %11825 = vst [vmem:[#allocation130_spill] sm:$0xff] %v7853_v31  ;;  %v7871_v46 = vadd.f32 %v3691_v19, %v7366_v20  ;;  %v7874_v31 = vadd.f32 %v3692_v23, %v7369_v21  ;;  %v7891_v20 = vadd.f32 %v3697_v26, %v7387_v33 }
 0x135   :  { %11826 = vst [vmem:[#allocation131_spill] sm:$0xff] %v7856_v53  ;;  %11827 = vst [vmem:[#allocation132_spill] sm:$0xff] %v7859_v56  ;;  %v7877_v53 = vadd.f32 %v3693_v22, %v7372_v24  ;;  %v7894_v21 = vadd.f32 %v3698_v59, %v7390_v34  ;;  %v7897_v24 = vadd.f32 %v3699_v18, %v7393_v36 }
 0x136   :  { %11828 = vst [vmem:[#allocation133_spill] sm:$0xff] %v7888_v17  ;;  %v7900_v28 = vadd.f32 %v3700_v63, %v7396_v37  ;;  %v7903_v29 = vadd.f32 %v3701_v47, %v7399_v42  ;;  %v7906_v32 = vadd.f32 %v3702_v40, %v7402_v43  ;;  %v7909_v39 = vadd.f32 %v3703_v48, %v7405_v44  ;;  %v11880_v17 = vld [vmem:[#allocation61_spill] sm:$0xff] }
 0x137   :  { %v969_v33 = vrot.slane %v941_v50, %v7268_v57  ;;  %v970_v59 = vcombine.high %v7780_v54, %v7780_v54  ;;  %v971_v34 = vcombine.high %v7792_v2, %v7792_v2  ;;  %v972_v63 = vcombine.high %v7795_v8, %v7795_v8  ;;  %11846 = vst [vmem:[#allocation151_spill] sm:$0xff] %v7983_v55  ;;  %v11878_v55 = vld [vmem:[#allocation60_spill] sm:$0xff] }
 0x138   :  { %11829 = vst [vmem:[#allocation134_spill] sm:$0xff] %v7900_v28  ;;  %11830 = vst [vmem:[#allocation135_spill] sm:$0xff] %v7903_v29  ;;  %v977_v36 = vrot.slane %v7780_v54, %v7270_v58  ;;  %v981_v42 = vrot.slane %v7795_v8, %v7270_v58  ;;  %v993_v43 = vrot.slane %v7792_v2, %v7270_v58 }
 0x139   :  { %11831 = vst [vmem:[#allocation136_spill] sm:$0xff] %v7906_v32  ;;  %11832 = vst [vmem:[#allocation137_spill] sm:$0xff] %v7909_v39  ;;  %v973_v37 = vcombine.high %v969_v33, %v969_v33  ;;  %v997_v44 = vrot.slane %v969_v33, %v7270_v58  ;;  %v985_v30 = vrot.slane %v970_v59, %v7270_v58 }
 0x13a   :  { %v989_v19 = vrot.slane %v972_v63, %v7270_v58  ;;  %v1001_v12 = vrot.slane %v971_v34, %v7270_v58  ;;  %v1014_v27 = vmul.f32 %v7281_v0, %v977_v36  ;;  %v1015_v54 = vmul.f32 %v7283_v1, %v977_v36 }
 0x13b   :  { %v7930_v47 = vrot.slane %v973_v37, %v7270_v58  ;;  %v1016_v50 = vmul.f32 %v7289_v6, %v977_v36  ;;  %v1017_v8 = vmul.f32 %v7291_v7, %v977_v36  ;;  %v1018_v2 = vmul.f32 %v7281_v0, %v981_v42 }
 0x13c   :  { %v1019_v35 = vmul.f32 %v7283_v1, %v981_v42  ;;  %v1020_v23 = vmul.f32 %v7289_v6, %v981_v42  ;;  %v1021_v22 = vmul.f32 %v7291_v7, %v981_v42  ;;  %v1022_v48 = vmul.f32 %v7281_v0, %v985_v30 }
 0x13d   :  { %11833 = vst [vmem:[#allocation138_spill] sm:$0xff] %v7930_v47  ;;  %v1023_v16 = vmul.f32 %v7283_v1, %v985_v30  ;;  %v1024_v26 = vmul.f32 %v7289_v6, %v985_v30  ;;  %v1025_v18 = vmul.f32 %v7291_v7, %v985_v30  ;;  %v1026_v40 = vmul.f32 %v7281_v0, %v989_v19 }
 0x13e   :  { %v1027_v33 = vmul.f32 %v7283_v1, %v989_v19  ;;  %v1028_v59 = vmul.f32 %v7289_v6, %v989_v19  ;;  %v1029_v34 = vmul.f32 %v7291_v7, %v989_v19  ;;  %v7948_v63 = vmul.f32 %v7281_v0, %v993_v43 }
 0x13f   :  { %v7951_v36 = vmul.f32 %v7283_v1, %v993_v43  ;;  %v7954_v37 = vmul.f32 %v7289_v6, %v993_v43  ;;  %v7957_v42 = vmul.f32 %v7291_v7, %v993_v43  ;;  %v7960_v30 = vmul.f32 %v7281_v0, %v997_v44 }
 0x140   :  { %11834 = vst [vmem:[#allocation139_spill] sm:$0xff] %v7948_v63  ;;  %v7963_v39 = vmul.f32 %v7283_v1, %v997_v44  ;;  %v7966_v19 = vmul.f32 %v7289_v6, %v997_v44  ;;  %v7969_v32 = vmul.f32 %v7291_v7, %v997_v44  ;;  %v7972_v29 = vmul.f32 %v7281_v0, %v1001_v12  ;;  %v11874_v63 = vld [vmem:[#allocation57_spill] sm:$0xff] }
 0x141   :  { %11835 = vst [vmem:[#allocation140_spill] sm:$0xff] %v7951_v36  ;;  %11836 = vst [vmem:[#allocation141_spill] sm:$0xff] %v7954_v37  ;;  %v7975_v28 = vmul.f32 %v7283_v1, %v1001_v12  ;;  %v7978_v43 = vmul.f32 %v7289_v6, %v1001_v12  ;;  %v7981_v56 = vmul.f32 %v7291_v7, %v1001_v12 }
 0x142   :  { %11837 = vst [vmem:[#allocation142_spill] sm:$0xff] %v7957_v42  ;;  %11838 = vst [vmem:[#allocation143_spill] sm:$0xff] %v7960_v30  ;;  %v7986_v41 = vadd.f32 %v1014_v27, %v7455_v61  ;;  %v7989_v44 = vadd.f32 %v1015_v54, %v7463_v52  ;;  %v7992_v47 = vadd.f32 %v1016_v50, %v7466_v51 }
 0x143   :  { %11839 = vst [vmem:[#allocation144_spill] sm:$0xff] %v7963_v39  ;;  %11840 = vst [vmem:[#allocation145_spill] sm:$0xff] %v7966_v19  ;;  %v8001_v12 = vadd.f32 %v1019_v35, %v7475_v3  ;;  %v8007_v61 = vadd.f32 %v1021_v22, %v7481_v14  ;;  %v8010_v52 = vadd.f32 %v1022_v48, %v7484_v49  ;;  %v11847_v3 = vld [vmem:[#allocation39_spill] sm:$0xff]  ;;  %v11851_v14 = vld [vmem:[#allocation41_spill] sm:$0xff] }
 0x144   :  { %11841 = vst [vmem:[#allocation146_spill] sm:$0xff] %v7969_v32  ;;  %11842 = vst [vmem:[#allocation147_spill] sm:$0xff] %v7972_v29  ;;  %v7995_v29 = vadd.f32 %v1017_v8, %v7469_v25  ;;  %v8013_v51 = vadd.f32 %v1023_v16, %v7487_v45  ;;  %v8016_v25 = vadd.f32 %v1024_v26, %v7490_v11  ;;  %v11853_v49 = vld [vmem:[#allocation42_spill] sm:$0xff]  ;;  %v11855_v45 = vld [vmem:[#allocation116_spill] sm:$0xff] }
 0x145   :  { %11843 = vst [vmem:[#allocation148_spill] sm:$0xff] %v7975_v28  ;;  %11844 = vst [vmem:[#allocation149_spill] sm:$0xff] %v7978_v43  ;;  %v7998_v28 = vadd.f32 %v1018_v2, %v7472_v5  ;;  %v8019_v5 = vadd.f32 %v1025_v18, %v7493_v38  ;;  %v8022_v27 = vadd.f32 %v1026_v40, %v11847_v3  ;;  %v11856_v11 = vld [vmem:[#allocation118_spill] sm:$0xff]  ;;  %v11857_v22 = vld [vmem:[#allocation21_spill] sm:$0xff] }
 0x146   :  { %11845 = vst [vmem:[#allocation150_spill] sm:$0xff] %v7981_v56  ;;  %v8004_v56 = vadd.f32 %v1020_v23, %v7478_v15  ;;  %v11849_v15 = vld [vmem:[#allocation40_spill] sm:$0xff]  ;;  %v8028_v50 = vadd.f32 %v1028_v59, %v11851_v14  ;;  %v8031_v8 = vadd.f32 %v1029_v34, %v11853_v49  ;;  %v4943_v2 = vcombine.high %v11855_v45, %v11855_v45  ;;  %v11858_v16 = vld [vmem:[#allocation117_spill] sm:$0xff] }
 0x147   :  { %11848 = vst [vmem:[#allocation39_spill] sm:$0xff] %v8022_v27  ;;  %v8025_v54 = vadd.f32 %v1027_v33, %v11849_v15  ;;  %v4944_v35 = vcombine.high %v11856_v11, %v11856_v11  ;;  %v4951_v38 = vrot.slane %v11855_v45, %v7268_v57  ;;  %v4958_v23 = vrot.slane %v11856_v11, %v7268_v57  ;;  %v8055_v15 = vpop.f32.mrb[10].mxu1 }
 0x148   :  { %11852 = vst [vmem:[#allocation41_spill] sm:$0xff] %v8028_v50  ;;  %11854 = vst [vmem:[#allocation42_spill] sm:$0xff] %v8031_v8  ;;  %v3769_v48 = vcombine.high %v11857_v22, %v11857_v22  ;;  %v3770_v26 = vcombine.high %v11858_v16, %v11858_v16  ;;  %v8047_v18 = vrot.slane %v11857_v22, %v7268_v57 }
 0x149   :  { %11850 = vst [vmem:[#allocation40_spill] sm:$0xff] %v8025_v54  ;;  %v8051_v40 = vrot.slane %v11858_v16, %v7268_v57  ;;  %v4965_v33 = vrot.slane %v4943_v2, %v7268_v57  ;;  %v4972_v59 = vrot.slane %v4944_v35, %v7268_v57  ;;  %v4973_v34 = vcombine.high %v4951_v38, %v4951_v38 }
 0x14a   :  { %v4974_v3 = vcombine.high %v4958_v23, %v4958_v23  ;;  %11859 = vst [vmem:[#allocation116_spill] sm:$0xff] %v8055_v15  ;;  %v4980_v14 = vrot.slane %v4951_v38, %v7270_v58  ;;  %v4996_v49 = vrot.slane %v4958_v23, %v7270_v58  ;;  %v8060_v45 = vrot.slane %v3769_v48, %v7268_v57  ;;  %v11876_v15 = vld [vmem:[#allocation59_spill] sm:$0xff] }
 0x14b   :  { %v8063_v11 = vrot.slane %v3770_v26, %v7268_v57  ;;  %v4975_v22 = vcombine.high %v4965_v33, %v4965_v33  ;;  %v4976_v16 = vcombine.high %v4972_v59, %v4972_v59  ;;  %v4984_v2 = vrot.slane %v4965_v33, %v7270_v58 }
 0x14c   :  { %v4988_v35 = vrot.slane %v4973_v34, %v7270_v58  ;;  %v5000_v8 = vrot.slane %v4972_v59, %v7270_v58  ;;  %v5004_v50 = vrot.slane %v4974_v3, %v7270_v58  ;;  %v5017_v38 = vmul.f32 %v7281_v0, %v4980_v14 }
 0x14d   :  { %v5018_v23 = vmul.f32 %v7283_v1, %v4980_v14  ;;  %v4992_v48 = vrot.slane %v4975_v22, %v7270_v58  ;;  %v8073_v54 = vrot.slane %v4976_v16, %v7270_v58  ;;  %v5019_v26 = vmul.f32 %v7289_v6, %v4980_v14 }
 0x14e   :  { %v5020_v27 = vmul.f32 %v7291_v7, %v4980_v14  ;;  %v5021_v33 = vmul.f32 %v7281_v0, %v4984_v2  ;;  %v5022_v34 = vmul.f32 %v7283_v1, %v4984_v2  ;;  %v5023_v59 = vmul.f32 %v7289_v6, %v4984_v2 }
 0x14f   :  { %11860 = vst [vmem:[#allocation118_spill] sm:$0xff] %v8073_v54  ;;  %v5024_v3 = vmul.f32 %v7291_v7, %v4984_v2  ;;  %v5025_v43 = vmul.f32 %v7281_v0, %v4988_v35  ;;  %v5026_v32 = vmul.f32 %v7283_v1, %v4988_v35  ;;  %v5027_v22 = vmul.f32 %v7289_v6, %v4988_v35 }
 0x150   :  { %v5028_v16 = vmul.f32 %v7291_v7, %v4988_v35  ;;  %v5029_v54 = vmul.f32 %v7281_v0, %v4992_v48  ;;  %v5030_v14 = vmul.f32 %v7283_v1, %v4992_v48  ;;  %v5031_v19 = vmul.f32 %v7289_v6, %v4992_v48 }
 0x151   :  { %v5032_v39 = vmul.f32 %v7291_v7, %v4992_v48  ;;  %v8090_v30 = vmul.f32 %v7281_v0, %v4996_v49  ;;  %v8093_v2 = vmul.f32 %v7283_v1, %v4996_v49  ;;  %v8096_v42 = vmul.f32 %v7289_v6, %v4996_v49 }
 0x152   :  { %v8099_v37 = vmul.f32 %v7291_v7, %v4996_v49  ;;  %v8102_v35 = vmul.f32 %v7281_v0, %v5000_v8  ;;  %v8105_v36 = vmul.f32 %v7283_v1, %v5000_v8  ;;  %v8108_v48 = vmul.f32 %v7289_v6, %v5000_v8 }
 0x153   :  { %11861 = vst [vmem:[#allocation21_spill] sm:$0xff] %v8090_v30  ;;  %11862 = vst [vmem:[#allocation117_spill] sm:$0xff] %v8093_v2  ;;  %v8111_v30 = vmul.f32 %v7291_v7, %v5000_v8  ;;  %v8114_v2 = vmul.f32 %v7281_v0, %v5004_v50  ;;  %v8120_v49 = vmul.f32 %v7289_v6, %v5004_v50  ;;  %v11875_v8 = vld [vmem:[#allocation58_spill] sm:$0xff] }
 0x154   :  { %11863 = vst [vmem:[#allocation152_spill] sm:$0xff] %v8096_v42  ;;  %11864 = vst [vmem:[#allocation153_spill] sm:$0xff] %v8099_v37  ;;  %v8117_v42 = vmul.f32 %v7283_v1, %v5004_v50  ;;  %v11873_v37 = vld [vmem:[#allocation56_spill] sm:$0xff] }
 0x155   :  { %11865 = vst [vmem:[#allocation154_spill] sm:$0xff] %v8102_v35  ;;  %11866 = vst [vmem:[#allocation155_spill] sm:$0xff] %v8105_v36  ;;  %v8123_v35 = vmul.f32 %v7291_v7, %v5004_v50  ;;  %v8126_v36 = vadd.f32 %v5017_v38, %v11873_v37  ;;  %v11882_v50 = vld [vmem:[#allocation63_spill] sm:$0xff]  ;;  %v11884_v37 = vld [vmem:[#allocation64_spill] sm:$0xff] }
 0x156   :  { %11867 = vst [vmem:[#allocation156_spill] sm:$0xff] %v8108_v48  ;;  %11868 = vst [vmem:[#allocation157_spill] sm:$0xff] %v8111_v30  ;;  %v8129_v48 = vadd.f32 %v5018_v23, %v11874_v63  ;;  %v8132_v30 = vadd.f32 %v5019_v26, %v11875_v8  ;;  %v8147_v38 = vadd.f32 %v5024_v3, %v11884_v37  ;;  %v11886_v63 = vld [vmem:[#allocation65_spill] sm:$0xff]  ;;  %v11888_v26 = vld [vmem:[#allocation66_spill] sm:$0xff] }
 0x157   :  { %11869 = vst [vmem:[#allocation158_spill] sm:$0xff] %v8114_v2  ;;  %11870 = vst [vmem:[#allocation159_spill] sm:$0xff] %v8117_v42  ;;  %v8135_v2 = vadd.f32 %v5020_v27, %v11876_v15  ;;  %v8138_v42 = vadd.f32 %v5021_v33, %v11878_v55  ;;  %v8150_v23 = vadd.f32 %v5025_v43, %v11886_v63  ;;  %v11890_v27 = vld [vmem:[#allocation67_spill] sm:$0xff]  ;;  %v11892_v55 = vld [vmem:[#allocation68_spill] sm:$0xff] }
 0x158   :  { %11871 = vst [vmem:[#allocation160_spill] sm:$0xff] %v8120_v49  ;;  %11872 = vst [vmem:[#allocation161_spill] sm:$0xff] %v8123_v35  ;;  %v8141_v49 = vadd.f32 %v5022_v34, %v11880_v17  ;;  %v8144_v35 = vadd.f32 %v5023_v59, %v11882_v50  ;;  %v8153_v8 = vadd.f32 %v5026_v32, %v11888_v26  ;;  %v8161_v17 = vpop.f32.mrb[8].mxu0  ;;  %v11895_v34 = vld [vmem:[#allocation69_spill] sm:$0xff]  ;;  %v11897_v50 = vld [vmem:[#allocation70_spill] sm:$0xff]  ;;  %v8175_v26 = vpop.f32.mrb[11].mxu1 }
 0x159   :  { %11877 = vst [vmem:[#allocation56_spill] sm:$0xff] %v8135_v2  ;;  %11879 = vst [vmem:[#allocation57_spill] sm:$0xff] %v8138_v42  ;;  %v8156_v15 = vadd.f32 %v5027_v22, %v11890_v27  ;;  %v8159_v33 = vadd.f32 %v5028_v16, %v11892_v55  ;;  %v8164_v59 = vadd.f32 %v5029_v54, %v11895_v34  ;;  %v11899_v37 = vld [vmem:[#allocation71_spill] sm:$0xff]  ;;  %v11901_v63 = vld [vmem:[#allocation72_spill] sm:$0xff] }
 0x15a   :  { %11881 = vst [vmem:[#allocation58_spill] sm:$0xff] %v8141_v49  ;;  %11883 = vst [vmem:[#allocation59_spill] sm:$0xff] %v8144_v35  ;;  %v8167_v3 = vadd.f32 %v5030_v14, %v11897_v50  ;;  %v8170_v43 = vadd.f32 %v5031_v19, %v11899_v37  ;;  %v8173_v32 = vadd.f32 %v5032_v39, %v11901_v63  ;;  %v11959_v2 = vld [vmem:[#allocation87_spill] sm:$0xff] }
 0x15b   :  { %11885 = vst [vmem:[#allocation60_spill] sm:$0xff] %v8147_v38  ;;  %11887 = vst [vmem:[#allocation61_spill] sm:$0xff] %v8150_v23  ;;  %v3799_v22 = vcombine.high %v8047_v18, %v8047_v18  ;;  %v3800_v16 = vcombine.high %v8051_v40, %v8051_v40  ;;  %v3801_v54 = vcombine.high %v8060_v45, %v8060_v45 }
 0x15c   :  { %11889 = vst [vmem:[#allocation63_spill] sm:$0xff] %v8153_v8  ;;  %11891 = vst [vmem:[#allocation64_spill] sm:$0xff] %v8156_v15  ;;  %v3802_v14 = vcombine.high %v8063_v11, %v8063_v11  ;;  %v3806_v19 = vrot.slane %v8047_v18, %v7270_v58  ;;  %v3810_v39 = vrot.slane %v8060_v45, %v7270_v58  ;;  %v11907_v18 = vld [vmem:[#allocation16_spill] sm:$0xff]  ;;  %v11908_v45 = vld [vmem:[#allocation17_spill] sm:$0xff] }
 0x15d   :  { %11893 = vst [vmem:[#allocation65_spill] sm:$0xff] %v8159_v33  ;;  %11894 = vst [vmem:[#allocation66_spill] sm:$0xff] %v8161_v17  ;;  %v3822_v27 = vrot.slane %v8051_v40, %v7270_v58  ;;  %v8193_v55 = vrot.slane %v8063_v11, %v7270_v58  ;;  %v3814_v34 = vrot.slane %v3799_v22, %v7270_v58 }
 0x15e   :  { %11896 = vst [vmem:[#allocation67_spill] sm:$0xff] %v8164_v59  ;;  %11898 = vst [vmem:[#allocation68_spill] sm:$0xff] %v8167_v3  ;;  %v3818_v50 = vrot.slane %v3801_v54, %v7270_v58  ;;  %v8198_v37 = vrot.slane %v3800_v16, %v7270_v58  ;;  %v8201_v63 = vrot.slane %v3802_v14, %v7270_v58  ;;  %v11909_v3 = vld [vmem:[#allocation18_spill] sm:$0xff]  ;;  %v11910_v59 = vld [vmem:[#allocation19_spill] sm:$0xff] }
 0x15f   :  { %11900 = vst [vmem:[#allocation69_spill] sm:$0xff] %v8170_v43  ;;  %11902 = vst [vmem:[#allocation70_spill] sm:$0xff] %v8173_v32  ;;  %v3843_v32 = vmul.f32 %v11907_v18, %v3806_v19  ;;  %v3844_v43 = vmul.f32 %v11908_v45, %v3806_v19  ;;  %v3845_v40 = vmul.f32 %v11909_v3, %v3806_v19 }
 0x160   :  { %11903 = vst [vmem:[#allocation71_spill] sm:$0xff] %v8175_v26  ;;  %11904 = vst [vmem:[#allocation72_spill] sm:$0xff] %v8193_v55  ;;  %v3846_v26 = vmul.f32 %v11910_v59, %v3806_v19  ;;  %v3847_v11 = vmul.f32 %v11907_v18, %v3810_v39  ;;  %v3848_v22 = vmul.f32 %v11908_v45, %v3810_v39 }
 0x161   :  { %11905 = vst [vmem:[#allocation162_spill] sm:$0xff] %v8198_v37  ;;  %11906 = vst [vmem:[#allocation163_spill] sm:$0xff] %v8201_v63  ;;  %v3849_v54 = vmul.f32 %v11909_v3, %v3810_v39  ;;  %v3850_v16 = vmul.f32 %v11910_v59, %v3810_v39  ;;  %v3851_v37 = vmul.f32 %v11907_v18, %v3814_v34 }
 0x162   :  { %v3852_v14 = vmul.f32 %v11908_v45, %v3814_v34  ;;  %v3853_v63 = vmul.f32 %v11909_v3, %v3814_v34  ;;  %v3854_v55 = vmul.f32 %v11910_v59, %v3814_v34  ;;  %v8216_v17 = vmul.f32 %v11907_v18, %v3818_v50 }
 0x163   :  { %v8219_v19 = vmul.f32 %v11908_v45, %v3818_v50  ;;  %v8222_v33 = vmul.f32 %v11909_v3, %v3818_v50  ;;  %v8225_v15 = vmul.f32 %v11910_v59, %v3818_v50  ;;  %v8228_v39 = vmul.f32 %v11907_v18, %v3822_v27 }
 0x164   :  { %11911 = vst [vmem:[#allocation164_spill] sm:$0xff] %v8216_v17  ;;  %v8231_v8 = vmul.f32 %v11908_v45, %v3822_v27  ;;  %v8234_v34 = vmul.f32 %v11909_v3, %v3822_v27  ;;  %v8237_v17 = vmul.f32 %v11910_v59, %v3822_v27  ;;  %v8246_v50 = vadd.f32 %v3845_v40, %v7868_v62 }
 0x165   :  { %11912 = vst [vmem:[#allocation165_spill] sm:$0xff] %v8219_v19  ;;  %11913 = vst [vmem:[#allocation166_spill] sm:$0xff] %v8222_v33  ;;  %v8240_v19 = vadd.f32 %v3843_v32, %v7862_v60  ;;  %v8243_v33 = vadd.f32 %v3844_v43, %v7865_v4  ;;  %v8258_v27 = vadd.f32 %v3849_v54, %v7880_v13  ;;  %v6717_v4 = vld [vmem:[%s11469_s0 + $0x40] sm:$0xff]   ;;  %v11932_v43 = vld [vmem:[#allocation23_spill] sm:$0xff] }
 0x166   :  { %11914 = vst [vmem:[#allocation167_spill] sm:$0xff] %v8225_v15  ;;  %11915 = vst [vmem:[#allocation168_spill] sm:$0xff] %v8228_v39  ;;  %v8249_v15 = vadd.f32 %v3846_v26, %v7871_v46  ;;  %v8261_v60 = vadd.f32 %v3850_v16, %v7883_v9  ;;  %v8267_v62 = vadd.f32 %v3851_v37, %v7886_v10  ;;  %v11931_v13 = vld [vmem:[#allocation4_spill] sm:$0xff]  ;;  %v11934_v10 = vld [vmem:[#allocation9_spill] sm:$0xff]  ;;  %v8295_v54 = vunpack.c.l.bf16 %v6717_v4 }
 0x167   :  { %11916 = vst [vmem:[#allocation169_spill] sm:$0xff] %v8231_v8  ;;  %11917 = vst [vmem:[#allocation170_spill] sm:$0xff] %v8234_v34  ;;  %v8252_v8 = vadd.f32 %v3847_v11, %v7874_v31  ;;  %v8255_v34 = vadd.f32 %v3848_v22, %v7877_v53  ;;  %v8270_v46 = vadd.f32 %v3852_v14, %v7891_v20  ;;  %v11933_v32 = vld [vmem:[#allocation20_spill] sm:$0xff]  ;;  %v11935_v37 = vld [vmem:[#allocation22_spill] sm:$0xff]  ;;  %v8297_v16 = vunpack.c.h.bf16 %v6717_v4 }
 0x168   :  { %11918 = vst [vmem:[#allocation171_spill] sm:$0xff] %v8237_v17  ;;  %11919 = vst [vmem:[#allocation172_spill] sm:$0xff] %v8240_v19  ;;  %v8273_v31 = vadd.f32 %v3853_v63, %v7894_v21  ;;  %v8276_v53 = vadd.f32 %v3854_v55, %v7897_v24  ;;  %v264_v9 = vadd.f32 %v11932_v43, %v11931_v13  ;;  %v8289_v20 = vld [vmem:[%s11469_s0 + $0x48] sm:$0xff]   ;;  %v11938_v63 = vld [vmem:[#allocation55_spill] sm:$0xff] }
 0x169   :  { %11920 = vst [vmem:[#allocation173_spill] sm:$0xff] %v8243_v33  ;;  %11921 = vst [vmem:[#allocation174_spill] sm:$0xff] %v8246_v50  ;;  %v1084_v26 = vcombine.high %v11933_v32, %v11933_v32  ;;  %v1091_v40 = vrot.slane %v11933_v32, %v7268_v57  ;;  %v349_v11 = vadd.f32 %v11935_v37, %v11934_v10  ;;  %v11936_v21 = vld [vmem:[#allocation37_spill] sm:$0xff] }
 0x16a   :  { %11922 = vst [vmem:[#allocation175_spill] sm:$0xff] %v8249_v15  ;;  %11923 = vst [vmem:[#allocation176_spill] sm:$0xff] %v8252_v8  ;;  %v341_v24 = vadd.f32 %v11936_v21, %v11931_v13  ;;  %v11937_v55 = vld [vmem:[#allocation5_spill] sm:$0xff]  ;;  %v276_v14 = vmax.f32 %v264_v9, 0.0  ;;  %v8308_v21 = vunpack.c.l.bf16 %v8289_v20 }
 0x16b   :  { %11924 = vst [vmem:[#allocation177_spill] sm:$0xff] %v8255_v34  ;;  %11925 = vst [vmem:[#allocation178_spill] sm:$0xff] %v8258_v27  ;;  %v500_v22 = vadd.f32 %v11938_v63, %v11937_v55  ;;  %v1098_v43 = vrot.slane %v1084_v26, %v7268_v57  ;;  %v1099_v32 = vcombine.high %v1091_v40, %v1091_v40  ;;  %v8310_v63 = vpop.f32.mrb[9].mxu0 }
 0x16c   :  { %11926 = vst [vmem:[#allocation179_spill] sm:$0xff] %v8261_v60  ;;  %11927 = vst [vmem:[#allocation180_spill] sm:$0xff] %v8267_v62  ;;  %v1107_v37 = vrot.slane %v1091_v40, %v7268_v57  ;;  %v2205_v62 = vcombine.high %v276_v14, %v276_v14  ;;  %v2212_v4 = vrot.slane %v276_v14, %v7268_v57 }
 0x16d   :  { %11928 = vst [vmem:[#allocation181_spill] sm:$0xff] %v8270_v46  ;;  %11929 = vst [vmem:[#allocation182_spill] sm:$0xff] %v8273_v31  ;;  %v8303_v31 = vmax.f32 %v341_v24, 0.0  ;;  %v8305_v46 = vmax.f32 %v500_v22, 0.0  ;;  %v1100_v9 = vcombine.high %v1098_v43, %v1098_v43  ;;  %v8314_v26 = vrot.slane %v1098_v43, %v7268_v57 }
 0x16e   :  { %11930 = vst [vmem:[#allocation183_spill] sm:$0xff] %v8276_v53  ;;  %11939 = vst [vmem:[#allocation23_spill] sm:$0xff] %v8295_v54  ;;  %v8301_v53 = vmax.f32 %v349_v11, 0.0  ;;  %v1121_v40 = vrot.slane %v1099_v32, %v7268_v57  ;;  %v1129_v11 = vcombine.high %v1107_v37, %v1107_v37  ;;  %v8318_v24 = vrot.slane %v1107_v37, %v7270_v58 }
 0x16f   :  { %11940 = vst [vmem:[#allocation20_spill] sm:$0xff] %v8297_v16  ;;  %11941 = vst [vmem:[#allocation22_spill] sm:$0xff] %v8308_v21  ;;  %v2219_v60 = vrot.slane %v2205_v62, %v7268_v57  ;;  %v2220_v27 = vcombine.high %v2212_v4, %v2212_v4  ;;  %v2228_v34 = vrot.slane %v2212_v4, %v7268_v57 }
 0x170   :  { %11942 = vst [vmem:[#allocation37_spill] sm:$0xff] %v8310_v63  ;;  %v8325_v14 = vrot.slane %v1100_v9, %v7268_v57  ;;  %v1131_v8 = vcombine.high %v1121_v40, %v1121_v40  ;;  %v8330_v32 = vrot.slane %v1121_v40, %v7270_v58  ;;  %v8333_v37 = vrot.slane %v1129_v11, %v7270_v58  ;;  %v8347_v11 = vpop.f32.mrb[10].mxu0 }
 0x171   :  { %v2221_v17 = vcombine.high %v2219_v60, %v2219_v60  ;;  %v2235_v22 = vrot.slane %v2219_v60, %v7268_v57  ;;  %v2242_v62 = vrot.slane %v2220_v27, %v7268_v57  ;;  %v2250_v39 = vcombine.high %v2228_v34, %v2228_v34  ;;  %11943 = vst [vmem:[#allocation55_spill] sm:$0xff] %v8347_v11  ;;  %v8355_v19 = vpop.f32.mrb[11].mxu0 }
 0x172   :  { %v2257_v4 = vrot.slane %v2228_v34, %v7270_v58  ;;  %v1132_v9 = vcombine.high %v8325_v14, %v8325_v14  ;;  %v8341_v43 = vrot.slane %v1131_v8, %v7270_v58  ;;  %v8345_v40 = vrot.slane %v8314_v26, %v7270_v58  ;;  %11944 = vst [vmem:[#allocation184_spill] sm:$0xff] %v8355_v19 }
 0x173   :  { %v2249_v63 = vrot.slane %v2221_v17, %v7268_v57  ;;  %v2251_v60 = vcombine.high %v2235_v22, %v2235_v22  ;;  %v2252_v15 = vcombine.high %v2242_v62, %v2242_v62  ;;  %v2261_v27 = vrot.slane %v2242_v62, %v7270_v58 }
 0x174   :  { %v2265_v34 = vrot.slane %v2250_v39, %v7270_v58  ;;  %v2273_v50 = vrot.slane %v2235_v22, %v7270_v58  ;;  %v2294_v33 = vmul.f32 %v7281_v0, %v2257_v4  ;;  %v2295_v8 = vmul.f32 %v7283_v1, %v2257_v4 }
 0x175   :  { %v2253_v13 = vcombine.high %v2249_v63, %v2249_v63  ;;  %v2269_v10 = vrot.slane %v2252_v15, %v7270_v58  ;;  %v2277_v11 = vrot.slane %v2249_v63, %v7270_v58  ;;  %v2281_v17 = vrot.slane %v2251_v60, %v7270_v58 }
 0x176   :  { %v2296_v21 = vmul.f32 %v7289_v6, %v2257_v4  ;;  %v2297_v62 = vmul.f32 %v7291_v7, %v2257_v4  ;;  %v2298_v39 = vmul.f32 %v7281_v0, %v2261_v27  ;;  %v2299_v22 = vmul.f32 %v7283_v1, %v2261_v27 }
 0x177   :  { %v8365_v16 = vrot.slane %v2253_v13, %v7270_v58  ;;  %v2300_v19 = vmul.f32 %v7289_v6, %v2261_v27  ;;  %v2301_v54 = vmul.f32 %v7291_v7, %v2261_v27  ;;  %v2302_v15 = vmul.f32 %v7281_v0, %v2265_v34 }
 0x178   :  { %v2303_v63 = vmul.f32 %v7283_v1, %v2265_v34  ;;  %v2304_v60 = vmul.f32 %v7289_v6, %v2265_v34  ;;  %v2305_v55 = vmul.f32 %v7291_v7, %v2265_v34  ;;  %v2306_v4 = vmul.f32 %v7281_v0, %v2269_v10 }
 0x179   :  { %11945 = vst [vmem:[#allocation185_spill] sm:$0xff] %v8365_v16  ;;  %v2307_v23 = vmul.f32 %v7283_v1, %v2269_v10  ;;  %v2308_v38 = vmul.f32 %v7289_v6, %v2269_v10  ;;  %v2309_v13 = vmul.f32 %v7291_v7, %v2269_v10  ;;  %v8378_v16 = vmul.f32 %v7281_v0, %v2273_v50 }
 0x17a   :  { %v8381_v27 = vmul.f32 %v7283_v1, %v2273_v50  ;;  %v8384_v35 = vmul.f32 %v7289_v6, %v2273_v50  ;;  %v8387_v49 = vmul.f32 %v7291_v7, %v2273_v50  ;;  %v8390_v34 = vmul.f32 %v7281_v0, %v2277_v11 }
 0x17b   :  { %11946 = vst [vmem:[#allocation186_spill] sm:$0xff] %v8378_v16  ;;  %v8393_v42 = vmul.f32 %v7283_v1, %v2277_v11  ;;  %v8396_v10 = vmul.f32 %v7289_v6, %v2277_v11  ;;  %v8399_v16 = vmul.f32 %v7291_v7, %v2277_v11  ;;  %v8408_v50 = vmul.f32 %v7289_v6, %v2281_v17  ;;  %v11960_v11 = vld [vmem:[#allocation88_spill] sm:$0xff] }
 0x17c   :  { %11947 = vst [vmem:[#allocation187_spill] sm:$0xff] %v8381_v27  ;;  %11948 = vst [vmem:[#allocation188_spill] sm:$0xff] %v8384_v35  ;;  %v8402_v27 = vmul.f32 %v7281_v0, %v2281_v17  ;;  %v8405_v35 = vmul.f32 %v7283_v1, %v2281_v17  ;;  %v11961_v0 = vld [vmem:[#allocation90_spill] sm:$0xff]  ;;  %v11962_v1 = vld [vmem:[#allocation91_spill] sm:$0xff] }
 0x17d   :  { %11949 = vst [vmem:[#allocation189_spill] sm:$0xff] %v8387_v49  ;;  %11950 = vst [vmem:[#allocation190_spill] sm:$0xff] %v8390_v34  ;;  %v8411_v34 = vmul.f32 %v7291_v7, %v2281_v17  ;;  %v11958_v49 = vld [vmem:[#allocation86_spill] sm:$0xff]  ;;  %v11963_v6 = vld [vmem:[#allocation92_spill] sm:$0xff] }
 0x17e   :  { %11951 = vst [vmem:[#allocation191_spill] sm:$0xff] %v8393_v42  ;;  %11952 = vst [vmem:[#allocation192_spill] sm:$0xff] %v8396_v10  ;;  %v8414_v42 = vadd.f32 %v2294_v33, %v11958_v49  ;;  %v8417_v10 = vadd.f32 %v2295_v8, %v11959_v2  ;;  %v11964_v17 = vld [vmem:[#allocation93_spill] sm:$0xff]  ;;  %v11965_v49 = vld [vmem:[#allocation94_spill] sm:$0xff] }
 0x17f   :  { %11953 = vst [vmem:[#allocation193_spill] sm:$0xff] %v8399_v16  ;;  %11954 = vst [vmem:[#allocation194_spill] sm:$0xff] %v8402_v27  ;;  %v8420_v16 = vadd.f32 %v2296_v21, %v11960_v11  ;;  %v8423_v27 = vadd.f32 %v2297_v62, %v11961_v0  ;;  %v8432_v7 = vadd.f32 %v2300_v19, %v11964_v17  ;;  %v11966_v2 = vld [vmem:[#allocation95_spill] sm:$0xff]  ;;  %v11967_v21 = vld [vmem:[#allocation96_spill] sm:$0xff] }
 0x180   :  { %11955 = vst [vmem:[#allocation195_spill] sm:$0xff] %v8405_v35  ;;  %11956 = vst [vmem:[#allocation196_spill] sm:$0xff] %v8408_v50  ;;  %v8426_v35 = vadd.f32 %v2298_v39, %v11962_v1  ;;  %v8429_v50 = vadd.f32 %v2299_v22, %v11963_v6  ;;  %v8435_v33 = vadd.f32 %v2301_v54, %v11965_v49  ;;  %v11968_v0 = vld [vmem:[#allocation97_spill] sm:$0xff]  ;;  %v11969_v1 = vld [vmem:[#allocation98_spill] sm:$0xff] }
 0x181   :  { %11957 = vst [vmem:[#allocation197_spill] sm:$0xff] %v8411_v34  ;;  %v8438_v8 = vadd.f32 %v2302_v15, %v11966_v2  ;;  %v8441_v11 = vadd.f32 %v2303_v63, %v11967_v21  ;;  %v8444_v62 = vadd.f32 %v2304_v60, %v11968_v0  ;;  %v8447_v39 = vadd.f32 %v2305_v55, %v11969_v1  ;;  %v11970_v6 = vld [vmem:[#allocation99_spill] sm:$0xff]  ;;  %v11972_v19 = vld [vmem:[#allocation100_spill] sm:$0xff]  ;;  %v11974_v54 = vld [vmem:[#allocation101_spill] sm:$0xff] }
 0x182   :  { %v8450_v22 = vadd.f32 %v2306_v4, %v11970_v6  ;;  %v8453_v17 = vadd.f32 %v2307_v23, %v11972_v19  ;;  %v8456_v49 = vadd.f32 %v2308_v38, %v11974_v54  ;;  %v11976_v15 = vld [vmem:[#allocation102_spill] sm:$0xff]  ;;  %v8463_v63 = vrot.slane %v8325_v14, %v7270_v58 }
 0x183   :  { %v8459_v2 = vadd.f32 %v2309_v13, %v11976_v15  ;;  %v11979_v55 = vcombine.high %v8314_v26, %v8314_v26  ;;  %v8472_v4 = vrot.slane %v1132_v9, %v7270_v58  ;;  %v1173_v38 = vmul.f32 %v11907_v18, %v8318_v24 }
 0x184   :  { %11971 = vst [vmem:[#allocation86_spill] sm:$0xff] %v8450_v22  ;;  %11973 = vst [vmem:[#allocation87_spill] sm:$0xff] %v8453_v17  ;;  %v1174_v23 = vmul.f32 %v11908_v45, %v8318_v24  ;;  %v1175_v13 = vmul.f32 %v11909_v3, %v8318_v24  ;;  %v1176_v14 = vmul.f32 %v11910_v59, %v8318_v24 }
 0x185   :  { %11975 = vst [vmem:[#allocation88_spill] sm:$0xff] %v8456_v49  ;;  %11977 = vst [vmem:[#allocation90_spill] sm:$0xff] %v8459_v2  ;;  %v8469_v60 = vrot.slane %v11979_v55, %v7270_v58  ;;  %v1177_v26 = vmul.f32 %v11907_v18, %v8330_v32  ;;  %v1178_v21 = vmul.f32 %v11908_v45, %v8330_v32 }
 0x186   :  { %11978 = vst [vmem:[#allocation91_spill] sm:$0xff] %v8463_v63  ;;  %11981 = vst [vmem:[#allocation93_spill] sm:$0xff] %v8472_v4  ;;  %v1179_v9 = vmul.f32 %v11909_v3, %v8330_v32  ;;  %v1180_v0 = vmul.f32 %v11910_v59, %v8330_v32  ;;  %v1181_v1 = vmul.f32 %v11907_v18, %v8333_v37  ;;  %v8506_v32 = vpop.f32.mrb[12].mxu1 }
 0x187   :  { %11980 = vst [vmem:[#allocation92_spill] sm:$0xff] %v8469_v60  ;;  %v1182_v6 = vmul.f32 %v11908_v45, %v8333_v37  ;;  %v1183_v24 = vmul.f32 %v11909_v3, %v8333_v37  ;;  %v1184_v19 = vmul.f32 %v11910_v59, %v8333_v37  ;;  %v8500_v54 = vmul.f32 %v11907_v18, %v8341_v43 }
 0x188   :  { %v8504_v15 = vmul.f32 %v11908_v45, %v8341_v43  ;;  %v8510_v55 = vmul.f32 %v11909_v3, %v8341_v43  ;;  %v8514_v2 = vmul.f32 %v11910_v59, %v8341_v43  ;;  %v8518_v37 = vmul.f32 %v11907_v18, %v8345_v40 }
 0x189   :  { %11982 = vst [vmem:[#allocation94_spill] sm:$0xff] %v8500_v54  ;;  %v8522_v49 = vmul.f32 %v11908_v45, %v8345_v40  ;;  %v8526_v17 = vmul.f32 %v11909_v3, %v8345_v40  ;;  %v8530_v22 = vmul.f32 %v11910_v59, %v8345_v40  ;;  %v8536_v43 = vadd.f32 %v1174_v23, %v7989_v44  ;;  %v8550_v40 = vpop.f32.mrb[13].mxu1 }
 0x18a   :  { %11983 = vst [vmem:[#allocation95_spill] sm:$0xff] %v8504_v15  ;;  %11984 = vst [vmem:[#allocation96_spill] sm:$0xff] %v8510_v55  ;;  %v8533_v55 = vadd.f32 %v1173_v38, %v7986_v41  ;;  %v8542_v15 = vadd.f32 %v1176_v14, %v7995_v29  ;;  %v8545_v54 = vadd.f32 %v1177_v26, %v7998_v28 }
 0x18b   :  { %11985 = vst [vmem:[#allocation97_spill] sm:$0xff] %v8514_v2  ;;  %11986 = vst [vmem:[#allocation98_spill] sm:$0xff] %v8530_v22  ;;  %v8539_v2 = vadd.f32 %v1175_v13, %v7992_v47  ;;  %v8548_v4 = vadd.f32 %v1178_v21, %v8001_v12  ;;  %v8553_v41 = vadd.f32 %v1179_v9, %v8004_v56 }
 0x18c   :  { %11987 = vst [vmem:[#allocation99_spill] sm:$0xff] %v8545_v54  ;;  %v8556_v44 = vadd.f32 %v1180_v0, %v8007_v61  ;;  %v8559_v47 = vadd.f32 %v1181_v1, %v8010_v52  ;;  %v8562_v29 = vadd.f32 %v1182_v6, %v8013_v51  ;;  %v8565_v28 = vadd.f32 %v1183_v24, %v8016_v25 }
 0x18d   :  { %11988 = vst [vmem:[#allocation100_spill] sm:$0xff] %v8548_v4  ;;  %11989 = vst [vmem:[#allocation101_spill] sm:$0xff] %v8553_v41  ;;  %v8568_v12 = vadd.f32 %v1184_v19, %v8019_v5  ;;  %v5090_v38 = vrot.slane %v8301_v53, %v7268_v57  ;;  %v11995_v56 = vcombine.high %v8301_v53, %v8301_v53  ;;  %v8581_v25 = vunpack.c.h.bf16 %v8289_v20  ;;  %v12009_v41 = vld [vmem:[#allocation57_spill] sm:$0xff]  ;;  %v12011_v4 = vld [vmem:[#allocation58_spill] sm:$0xff] }
 0x18e   :  { %11990 = vst [vmem:[#allocation102_spill] sm:$0xff] %v8556_v44  ;;  %11991 = vst [vmem:[#allocation198_spill] sm:$0xff] %v8559_v47  ;;  %v2360_v52 = vcombine.high %v8303_v31, %v8303_v31  ;;  %v2367_v51 = vrot.slane %v8303_v31, %v7268_v57  ;;  %v8593_v31 = vrot.slane %v8305_v46, %v7268_v57 }
 0x18f   :  { %11992 = vst [vmem:[#allocation199_spill] sm:$0xff] %v8562_v29  ;;  %11993 = vst [vmem:[#allocation200_spill] sm:$0xff] %v8565_v28  ;;  %v5097_v61 = vrot.slane %v11995_v56, %v7268_v57  ;;  %v5098_v23 = vcombine.high %v5090_v38, %v5090_v38  ;;  %v5106_v14 = vrot.slane %v5090_v38, %v7268_v57 }
 0x190   :  { %11994 = vst [vmem:[#allocation201_spill] sm:$0xff] %v8568_v12  ;;  %11996 = vst [vmem:[#allocation202_spill] sm:$0xff] %v8581_v25  ;;  %v2374_v53 = vrot.slane %v2360_v52, %v7268_v57  ;;  %v2375_v21 = vcombine.high %v2367_v51, %v2367_v51  ;;  %v8589_v9 = vrot.slane %v2367_v51, %v7268_v57 }
 0x191   :  { %v5099_v13 = vcombine.high %v5097_v61, %v5097_v61  ;;  %v5113_v26 = vrot.slane %v5097_v61, %v7268_v57  ;;  %v5120_v20 = vrot.slane %v5098_v23, %v7268_v57  ;;  %v5128_v1 = vcombine.high %v5106_v14, %v5106_v14 }
 0x192   :  { %v5135_v24 = vrot.slane %v5106_v14, %v7270_v58  ;;  %v2376_v38 = vcombine.high %v2374_v53, %v2374_v53  ;;  %v2390_v56 = vrot.slane %v2374_v53, %v7268_v57 }
 0x193   :  { %v5127_v0 = vrot.slane %v5099_v13, %v7268_v57  ;;  %v5129_v6 = vcombine.high %v5113_v26, %v5113_v26  ;;  %v5151_v19 = vrot.slane %v5113_v26, %v7270_v58  ;;  %v5130_v61 = vcombine.high %v5120_v20, %v5120_v20 }
 0x194   :  { %v5139_v51 = vrot.slane %v5120_v20, %v7270_v58  ;;  %v5143_v5 = vrot.slane %v5128_v1, %v7270_v58  ;;  %v5172_v13 = vmul.f32 %v11907_v18, %v5135_v24  ;;  %v5173_v14 = vmul.f32 %v11908_v45, %v5135_v24 }
 0x195   :  { %v5131_v52 = vcombine.high %v5127_v0, %v5127_v0  ;;  %v8603_v12 = vrot.slane %v5127_v0, %v7270_v58  ;;  %v8606_v23 = vrot.slane %v5129_v6, %v7270_v58  ;;  %v5147_v26 = vrot.slane %v5130_v61, %v7270_v58 }
 0x196   :  { %v5174_v28 = vmul.f32 %v11909_v3, %v5135_v24  ;;  %v5175_v20 = vmul.f32 %v11910_v59, %v5135_v24  ;;  %v5176_v1 = vmul.f32 %v11907_v18, %v5139_v51  ;;  %v5177_v0 = vmul.f32 %v11908_v45, %v5139_v51 }
 0x197   :  { %11997 = vst [vmem:[#allocation203_spill] sm:$0xff] %v8603_v12  ;;  %11998 = vst [vmem:[#allocation204_spill] sm:$0xff] %v8606_v23  ;;  %v8612_v53 = vrot.slane %v5131_v52, %v7270_v58  ;;  %v5178_v6 = vmul.f32 %v11909_v3, %v5139_v51  ;;  %v5179_v23 = vmul.f32 %v11910_v59, %v5139_v51  ;;  %v8620_v12 = vpop.f32.mrb[14].mxu1 }
 0x198   :  { %v5180_v34 = vmul.f32 %v11907_v18, %v5143_v5  ;;  %v5181_v61 = vmul.f32 %v11908_v45, %v5143_v5  ;;  %v5182_v52 = vmul.f32 %v11909_v3, %v5143_v5  ;;  %v8627_v24 = vmul.f32 %v11907_v18, %v5147_v26 }
 0x199   :  { %11999 = vst [vmem:[#allocation205_spill] sm:$0xff] %v8612_v53  ;;  %v5183_v53 = vmul.f32 %v11910_v59, %v5143_v5  ;;  %v8630_v29 = vmul.f32 %v11908_v45, %v5147_v26  ;;  %v8633_v47 = vmul.f32 %v11909_v3, %v5147_v26  ;;  %v8636_v51 = vmul.f32 %v11910_v59, %v5147_v26 }
 0x19a   :  { %12000 = vst [vmem:[#allocation206_spill] sm:$0xff] %v8627_v24  ;;  %v8639_v60 = vmul.f32 %v11907_v18, %v5151_v19  ;;  %v8642_v44 = vmul.f32 %v11908_v45, %v5151_v19  ;;  %v8645_v5 = vmul.f32 %v11909_v3, %v5151_v19  ;;  %v8648_v24 = vmul.f32 %v11910_v59, %v5151_v19  ;;  %v12013_v19 = vld [vmem:[#allocation59_spill] sm:$0xff] }
 0x19b   :  { %12001 = vst [vmem:[#allocation207_spill] sm:$0xff] %v8630_v29  ;;  %12002 = vst [vmem:[#allocation208_spill] sm:$0xff] %v8633_v47  ;;  %v8651_v29 = vadd.f32 %v5172_v13, %v8126_v36  ;;  %v8654_v47 = vadd.f32 %v5173_v14, %v8129_v48  ;;  %v8657_v26 = vadd.f32 %v5174_v28, %v8132_v30  ;;  %v12015_v36 = vld [vmem:[#allocation60_spill] sm:$0xff]  ;;  %v8674_v48 = vpop.f32.mrb[15].mxu1  ;;  %v12017_v14 = vld [vmem:[#allocation61_spill] sm:$0xff] }
 0x19c   :  { %12003 = vst [vmem:[#allocation209_spill] sm:$0xff] %v8636_v51  ;;  %12004 = vst [vmem:[#allocation210_spill] sm:$0xff] %v8639_v60  ;;  %v12008_v51 = vld [vmem:[#allocation56_spill] sm:$0xff]  ;;  %v8672_v13 = vadd.f32 %v5179_v23, %v12015_v36  ;;  %v8677_v30 = vadd.f32 %v5180_v34, %v12017_v14  ;;  %v12019_v28 = vld [vmem:[#allocation63_spill] sm:$0xff]  ;;  %v2405_v23 = vcombine.high %v8589_v9, %v8589_v9 }
 0x19d   :  { %12005 = vst [vmem:[#allocation211_spill] sm:$0xff] %v8642_v44  ;;  %12006 = vst [vmem:[#allocation212_spill] sm:$0xff] %v8645_v5  ;;  %v8660_v60 = vadd.f32 %v5175_v20, %v12008_v51  ;;  %v8663_v44 = vadd.f32 %v5176_v1, %v12009_v41  ;;  %v8666_v5 = vadd.f32 %v5177_v0, %v12011_v4  ;;  %v12021_v51 = vld [vmem:[#allocation64_spill] sm:$0xff]  ;;  %v12023_v1 = vld [vmem:[#allocation65_spill] sm:$0xff] }
 0x19e   :  { %12007 = vst [vmem:[#allocation213_spill] sm:$0xff] %v8648_v24  ;;  %v8669_v24 = vadd.f32 %v5178_v6, %v12013_v19  ;;  %12016 = vst [vmem:[#allocation59_spill] sm:$0xff] %v8672_v13  ;;  %v8680_v20 = vadd.f32 %v5181_v61, %v12019_v28  ;;  %v8683_v41 = vadd.f32 %v5182_v52, %v12021_v51 }
 0x19f   :  { %12010 = vst [vmem:[#allocation56_spill] sm:$0xff] %v8663_v44  ;;  %12012 = vst [vmem:[#allocation57_spill] sm:$0xff] %v8666_v5  ;;  %v8686_v4 = vadd.f32 %v5183_v53, %v12023_v1  ;;  %v2397_v0 = vrot.slane %v2375_v21, %v7268_v57  ;;  %v2404_v6 = vrot.slane %v2376_v38, %v7268_v57 }
 0x1a0   :  { %12014 = vst [vmem:[#allocation58_spill] sm:$0xff] %v8669_v24  ;;  %12018 = vst [vmem:[#allocation60_spill] sm:$0xff] %v8677_v30  ;;  %v2406_v19 = vcombine.high %v2390_v56, %v2390_v56  ;;  %v2412_v34 = vrot.slane %v8589_v9, %v7270_v58  ;;  %v2428_v61 = vrot.slane %v2390_v56, %v7270_v58 }
 0x1a1   :  { %12020 = vst [vmem:[#allocation61_spill] sm:$0xff] %v8680_v20  ;;  %12022 = vst [vmem:[#allocation63_spill] sm:$0xff] %v8683_v41  ;;  %v12025_v52 = vcombine.high %v8305_v46, %v8305_v46  ;;  %v4079_v53 = vcombine.high %v8593_v31, %v8593_v31  ;;  %v2407_v21 = vcombine.high %v2397_v0, %v2397_v0 }
 0x1a2   :  { %12024 = vst [vmem:[#allocation64_spill] sm:$0xff] %v8686_v4  ;;  %v2408_v14 = vcombine.high %v2404_v6, %v2404_v6  ;;  %v2416_v38 = vrot.slane %v2397_v0, %v7270_v58  ;;  %v2420_v28 = vrot.slane %v2405_v23, %v7270_v58  ;;  %v8704_v51 = vrot.slane %v2404_v6, %v7270_v58 }
 0x1a3   :  { %v4078_v36 = vrot.slane %v12025_v52, %v7268_v57  ;;  %v8707_v9 = vrot.slane %v2406_v19, %v7270_v58  ;;  %v2449_v56 = vmul.f32 %v11907_v18, %v2412_v34  ;;  %v2450_v46 = vmul.f32 %v11908_v45, %v2412_v34 }
 0x1a4   :  { %12026 = vst [vmem:[#allocation65_spill] sm:$0xff] %v8704_v51  ;;  %v2424_v1 = vrot.slane %v2407_v21, %v7270_v58  ;;  %v8713_v52 = vrot.slane %v2408_v14, %v7270_v58  ;;  %v2451_v4 = vmul.f32 %v11909_v3, %v2412_v34  ;;  %v2452_v0 = vmul.f32 %v11910_v59, %v2412_v34 }
 0x1a5   :  { %12027 = vst [vmem:[#allocation214_spill] sm:$0xff] %v8707_v9  ;;  %v2453_v23 = vmul.f32 %v11907_v18, %v2416_v38  ;;  %v2454_v6 = vmul.f32 %v11908_v45, %v2416_v38  ;;  %v2455_v19 = vmul.f32 %v11909_v3, %v2416_v38  ;;  %v2456_v41 = vmul.f32 %v11910_v59, %v2416_v38 }
 0x1a6   :  { %12028 = vst [vmem:[#allocation215_spill] sm:$0xff] %v8713_v52  ;;  %v2457_v20 = vmul.f32 %v11907_v18, %v2420_v28  ;;  %v2458_v30 = vmul.f32 %v11908_v45, %v2420_v28  ;;  %v2459_v21 = vmul.f32 %v11909_v3, %v2420_v28  ;;  %v2460_v14 = vmul.f32 %v11910_v59, %v2420_v28  ;;  %v8761_v52 = vpop.f32.mrb[16].mxu1 }
 0x1a7   :  { %v8726_v13 = vmul.f32 %v11907_v18, %v2424_v1  ;;  %v8729_v34 = vmul.f32 %v11908_v45, %v2424_v1  ;;  %v8732_v24 = vmul.f32 %v11909_v3, %v2424_v1  ;;  %v8735_v5 = vmul.f32 %v11910_v59, %v2424_v1 }
 0x1a8   :  { %v8738_v38 = vmul.f32 %v11907_v18, %v2428_v61  ;;  %v8741_v44 = vmul.f32 %v11908_v45, %v2428_v61  ;;  %v8744_v28 = vmul.f32 %v11909_v3, %v2428_v61  ;;  %v8756_v1 = vadd.f32 %v2451_v4, %v8420_v16  ;;  %v6715_v16 = vld [vmem:[%s11469_s0 + $0x30] sm:$0xff]  }
 0x1a9   :  { %12029 = vst [vmem:[#allocation216_spill] sm:$0xff] %v8726_v13  ;;  %12030 = vst [vmem:[#allocation217_spill] sm:$0xff] %v8729_v34  ;;  %v8747_v13 = vmul.f32 %v11910_v59, %v2428_v61  ;;  %v8750_v34 = vadd.f32 %v2449_v56, %v8414_v42  ;;  %v8764_v9 = vadd.f32 %v2453_v23, %v8426_v35  ;;  %v12045_v23 = vld [vmem:[#allocation5_spill] sm:$0xff] }
 0x1aa   :  { %12031 = vst [vmem:[#allocation218_spill] sm:$0xff] %v8732_v24  ;;  %12032 = vst [vmem:[#allocation219_spill] sm:$0xff] %v8735_v5  ;;  %v8753_v24 = vadd.f32 %v2450_v46, %v8417_v10  ;;  %v8759_v5 = vadd.f32 %v2452_v0, %v8423_v27  ;;  %v8767_v61 = vadd.f32 %v2454_v6, %v8429_v50  ;;  %v8778_v27 = vpop.f32.mrb[17].mxu1  ;;  %v12043_v0 = vld [vmem:[#allocation6_spill] sm:$0xff]  ;;  %v8800_v6 = vunpack.c.l.bf16 %v6715_v16 }
 0x1ab   :  { %12033 = vst [vmem:[#allocation220_spill] sm:$0xff] %v8744_v28  ;;  %12034 = vst [vmem:[#allocation221_spill] sm:$0xff] %v8747_v13  ;;  %v8770_v42 = vadd.f32 %v2455_v19, %v8432_v7  ;;  %v8773_v10 = vadd.f32 %v2456_v41, %v8435_v33  ;;  %v8781_v4 = vadd.f32 %v2457_v20, %v8438_v8  ;;  %v12044_v8 = vld [vmem:[#allocation78_spill] sm:$0xff] }
 0x1ac   :  { %12035 = vst [vmem:[#allocation222_spill] sm:$0xff] %v8764_v9  ;;  %12036 = vst [vmem:[#allocation223_spill] sm:$0xff] %v8767_v61  ;;  %v8784_v35 = vadd.f32 %v2458_v30, %v8441_v11  ;;  %v8787_v50 = vadd.f32 %v2459_v21, %v8444_v62  ;;  %v8790_v7 = vadd.f32 %v2460_v14, %v8447_v39  ;;  %v12046_v11 = vld [vmem:[#allocation105_spill] sm:$0xff]  ;;  %v8802_v62 = vunpack.c.h.bf16 %v6715_v16  ;;  %v12073_v9 = vld [vmem:[#allocation151_spill] sm:$0xff] }
 0x1ad   :  { %12037 = vst [vmem:[#allocation224_spill] sm:$0xff] %v8770_v42  ;;  %12038 = vst [vmem:[#allocation225_spill] sm:$0xff] %v8773_v10  ;;  %v4080_v33 = vcombine.high %v4078_v36, %v4078_v36  ;;  %v4087_v41 = vrot.slane %v8593_v31, %v7268_v57  ;;  %v4094_v56 = vrot.slane %v4078_v36, %v7268_v57  ;;  %v8805_v31 = vpop.f32.mrb[18].mxu1 }
 0x1ae   :  { %12039 = vst [vmem:[#allocation226_spill] sm:$0xff] %v8781_v4  ;;  %12040 = vst [vmem:[#allocation227_spill] sm:$0xff] %v8784_v35  ;;  %v4101_v46 = vrot.slane %v4079_v53, %v7268_v57  ;;  %v492_v20 = vadd.f32 %v12044_v8, %v12043_v0  ;;  %v423_v30 = vadd.f32 %v12046_v11, %v12045_v23  ;;  %v12053_v4 = vld [vmem:[#allocation23_spill] sm:$0xff] }
 0x1af   :  { %12041 = vst [vmem:[#allocation228_spill] sm:$0xff] %v8787_v50  ;;  %12042 = vst [vmem:[#allocation229_spill] sm:$0xff] %v8790_v7  ;;  %v4108_v39 = vrot.slane %v4080_v33, %v7268_v57  ;;  %v4109_v19 = vcombine.high %v4087_v41, %v4087_v41  ;;  %v4110_v21 = vcombine.high %v4094_v56, %v4094_v56 }
 0x1b0   :  { %12047 = vst [vmem:[#allocation6_spill] sm:$0xff] %v8800_v6  ;;  %12048 = vst [vmem:[#allocation78_spill] sm:$0xff] %v8802_v62  ;;  %v4111_v14 = vcombine.high %v4101_v46, %v4101_v46  ;;  %v4116_v36 = vrot.slane %v4087_v41, %v7270_v58  ;;  %v4120_v53 = vrot.slane %v4101_v46, %v7270_v58  ;;  %v506_v7 = vmax.f32 %v492_v20, 0.0  ;;  %v12055_v46 = vld [vmem:[#allocation20_spill] sm:$0xff] }
 0x1b1   :  { %v8810_v8 = vrot.slane %v4094_v56, %v7270_v58  ;;  %v4112_v11 = vcombine.high %v4108_v39, %v4108_v39  ;;  %v4124_v50 = vrot.slane %v4109_v19, %v7270_v58  ;;  %v8817_v33 = vrot.slane %v4108_v39, %v7270_v58  ;;  %v12057_v56 = vld [vmem:[#allocation22_spill] sm:$0xff] }
 0x1b2   :  { %v8814_v16 = vrot.slane %v4111_v14, %v7270_v58  ;;  %v8820_v35 = vrot.slane %v4110_v21, %v7270_v58  ;;  %v8823_v41 = vmul.f32 %v12053_v4, %v4116_v36  ;;  %v8826_v10 = vmul.f32 %v12055_v46, %v4116_v36 }
 0x1b3   :  { %12049 = vst [vmem:[#allocation5_spill] sm:$0xff] %v8810_v8  ;;  %12051 = vst [vmem:[#allocation230_spill] sm:$0xff] %v8817_v33  ;;  %v8829_v20 = vmul.f32 %v12057_v56, %v4116_v36  ;;  %v8832_v19 = vrot.slane %v4112_v11, %v7270_v58  ;;  %v8835_v14 = vmul.f32 %v8581_v25, %v4116_v36 }
 0x1b4   :  { %12050 = vst [vmem:[#allocation105_spill] sm:$0xff] %v8814_v16  ;;  %12052 = vst [vmem:[#allocation231_spill] sm:$0xff] %v8820_v35  ;;  %v8838_v39 = vmul.f32 %v12053_v4, %v4120_v53  ;;  %v8841_v21 = vmul.f32 %v12055_v46, %v4120_v53  ;;  %v6716_v16 = vld [vmem:[%s11469_s0 + $0x38] sm:$0xff]   ;;  %v8847_v35 = vmul.f32 %v12057_v56, %v4120_v53 }
 0x1b5   :  { %12054 = vst [vmem:[#allocation232_spill] sm:$0xff] %v8823_v41  ;;  %12056 = vst [vmem:[#allocation233_spill] sm:$0xff] %v8826_v10  ;;  %v8850_v33 = vmul.f32 %v8581_v25, %v4120_v53  ;;  %v8853_v11 = vmul.f32 %v12053_v4, %v4124_v50  ;;  %v8856_v36 = vmul.f32 %v12055_v46, %v4124_v50  ;;  %v8867_v53 = vunpack.c.l.bf16 %v6716_v16  ;;  %v12070_v10 = vld [vmem:[#allocation120_spill] sm:$0xff] }
 0x1b6   :  { %12058 = vst [vmem:[#allocation22_spill] sm:$0xff] %v8829_v20  ;;  %12059 = vst [vmem:[#allocation234_spill] sm:$0xff] %v8832_v19  ;;  %v8858_v19 = vpop.f32.mrb[19].mxu1  ;;  %v431_v20 = vmax.f32 %v423_v30, 0.0  ;;  %v12072_v30 = vld [vmem:[#allocation4_spill] sm:$0xff] }
 0x1b7   :  { %12060 = vst [vmem:[#allocation235_spill] sm:$0xff] %v8835_v14  ;;  %12061 = vst [vmem:[#allocation236_spill] sm:$0xff] %v8838_v39  ;;  %v8864_v39 = vmul.f32 %v8581_v25, %v4124_v50  ;;  %v1402_v14 = vcombine.high %v506_v7, %v506_v7 }
 0x1b8   :  { %12062 = vst [vmem:[#allocation237_spill] sm:$0xff] %v8841_v21  ;;  %12063 = vst [vmem:[#allocation238_spill] sm:$0xff] %v8847_v35  ;;  %v8861_v21 = vmul.f32 %v12057_v56, %v4124_v50  ;;  %v1409_v35 = vrot.slane %v506_v7, %v7268_v57  ;;  %v3916_v61 = vrot.slane %v431_v20, %v7268_v57 }
 0x1b9   :  { %12064 = vst [vmem:[#allocation239_spill] sm:$0xff] %v8850_v33  ;;  %12065 = vst [vmem:[#allocation240_spill] sm:$0xff] %v8853_v11  ;;  %v8869_v33 = vunpack.c.h.bf16 %v6716_v16  ;;  %v12069_v11 = vld [vmem:[#allocation9_spill] sm:$0xff]  ;;  %v8882_v16 = vadd.f32 %v12073_v9, %v12072_v30 }
 0x1ba   :  { %12066 = vst [vmem:[#allocation241_spill] sm:$0xff] %v8856_v36  ;;  %12067 = vst [vmem:[#allocation242_spill] sm:$0xff] %v8861_v21  ;;  %v503_v41 = vadd.f32 %v12070_v10, %v12069_v11  ;;  %v1416_v36 = vrot.slane %v1402_v14, %v7268_v57  ;;  %v1417_v8 = vcombine.high %v1409_v35, %v1409_v35  ;;  %v12071_v21 = vld [vmem:[#allocation133_spill] sm:$0xff] }
 0x1bb   :  { %12068 = vst [vmem:[#allocation243_spill] sm:$0xff] %v8864_v39  ;;  %v1425_v42 = vrot.slane %v1409_v35, %v7268_v57  ;;  %v415_v50 = vadd.f32 %v12071_v21, %v12043_v0  ;;  %v3909_v39 = vcombine.high %v431_v20, %v431_v20  ;;  %v3924_v21 = vcombine.high %v3916_v61, %v3916_v61 }
 0x1bc   :  { %v8878_v7 = vmax.f32 %v503_v41, 0.0  ;;  %v1418_v59 = vcombine.high %v1416_v36, %v1416_v36  ;;  %v1432_v10 = vrot.slane %v1416_v36, %v7268_v57  ;;  %v1439_v14 = vrot.slane %v1417_v8, %v7268_v57 }
 0x1bd   :  { %v1447_v3 = vcombine.high %v1425_v42, %v1425_v42  ;;  %v1454_v35 = vrot.slane %v1425_v42, %v7270_v58  ;;  %v3923_v54 = vrot.slane %v3909_v39, %v7268_v57  ;;  %v3932_v51 = vrot.slane %v3916_v61, %v7268_v57 }
 0x1be   :  { %v1446_v41 = vrot.slane %v1418_v59, %v7268_v57  ;;  %v1448_v20 = vcombine.high %v1432_v10, %v1432_v10  ;;  %v1449_v45 = vcombine.high %v1439_v14, %v1439_v14  ;;  %v1458_v9 = vrot.slane %v1439_v14, %v7270_v58 }
 0x1bf   :  { %v1462_v18 = vrot.slane %v1447_v3, %v7270_v58  ;;  %v8893_v36 = vrot.slane %v1432_v10, %v7270_v58  ;;  %v8896_v8 = vmul.f32 %v12053_v4, %v1454_v35  ;;  %v8899_v42 = vmul.f32 %v12055_v46, %v1454_v35 }
 0x1c0   :  { %v1450_v39 = vcombine.high %v1446_v41, %v1446_v41  ;;  %v8902_v61 = vrot.slane %v1449_v45, %v7270_v58  ;;  %v8905_v59 = vrot.slane %v1446_v41, %v7270_v58  ;;  %v8908_v14 = vrot.slane %v1448_v20, %v7270_v58 }
 0x1c1   :  { %v8911_v3 = vmul.f32 %v12057_v56, %v1454_v35  ;;  %v8914_v10 = vmul.f32 %v8581_v25, %v1454_v35  ;;  %v8917_v63 = vmul.f32 %v12053_v4, %v1458_v9  ;;  %v8920_v13 = vmul.f32 %v12055_v46, %v1458_v9 }
 0x1c2   :  { %12074 = vst [vmem:[#allocation9_spill] sm:$0xff] %v8902_v61  ;;  %12075 = vst [vmem:[#allocation120_spill] sm:$0xff] %v8905_v59  ;;  %v8923_v45 = vrot.slane %v1450_v39, %v7270_v58  ;;  %v8926_v41 = vmul.f32 %v12057_v56, %v1458_v9  ;;  %v8929_v20 = vmul.f32 %v8581_v25, %v1458_v9 }
 0x1c3   :  { %12076 = vst [vmem:[#allocation133_spill] sm:$0xff] %v8908_v14  ;;  %12077 = vst [vmem:[#allocation4_spill] sm:$0xff] %v8911_v3  ;;  %v8932_v61 = vmul.f32 %v12053_v4, %v1462_v18  ;;  %v8935_v35 = vmul.f32 %v12055_v46, %v1462_v18  ;;  %v8938_v14 = vmul.f32 %v12057_v56, %v1462_v18 }
 0x1c4   :  { %12078 = vst [vmem:[#allocation151_spill] sm:$0xff] %v8914_v10  ;;  %12079 = vst [vmem:[#allocation244_spill] sm:$0xff] %v8917_v63  ;;  %v3925_v39 = vcombine.high %v3923_v54, %v3923_v54  ;;  %v3954_v63 = vcombine.high %v3932_v51, %v3932_v51  ;;  %v3961_v9 = vrot.slane %v3932_v51, %v7270_v58 }
 0x1c5   :  { %12080 = vst [vmem:[#allocation245_spill] sm:$0xff] %v8920_v13  ;;  %12081 = vst [vmem:[#allocation246_spill] sm:$0xff] %v8923_v45  ;;  %v8941_v13 = vmul.f32 %v8581_v25, %v1462_v18  ;;  %v3939_v45 = vrot.slane %v3923_v54, %v7268_v57 }
 0x1c6   :  { %12082 = vst [vmem:[#allocation247_spill] sm:$0xff] %v8926_v41  ;;  %12083 = vst [vmem:[#allocation248_spill] sm:$0xff] %v8929_v20  ;;  %v3946_v41 = vrot.slane %v3924_v21, %v7268_v57  ;;  %v3953_v20 = vrot.slane %v3925_v39, %v7268_v57  ;;  %v3969_v54 = vrot.slane %v3954_v63, %v7270_v58 }
 0x1c7   :  { %12084 = vst [vmem:[#allocation249_spill] sm:$0xff] %v8932_v61  ;;  %12085 = vst [vmem:[#allocation250_spill] sm:$0xff] %v8935_v35  ;;  %v5393_v61 = vcombine.high %v8878_v7, %v8878_v7  ;;  %v5400_v35 = vrot.slane %v8878_v7, %v7268_v57  ;;  %v3955_v59 = vcombine.high %v3939_v45, %v3939_v45 }
 0x1c8   :  { %12086 = vst [vmem:[#allocation251_spill] sm:$0xff] %v8938_v14  ;;  %12087 = vst [vmem:[#allocation252_spill] sm:$0xff] %v8941_v13  ;;  %v429_v14 = vmax.f32 %v415_v50, 0.0  ;;  %v3956_v18 = vcombine.high %v3946_v41, %v3946_v41  ;;  %v3965_v13 = vrot.slane %v3946_v41, %v7270_v58  ;;  %v3957_v10 = vcombine.high %v3953_v20, %v3953_v20 }
 0x1c9   :  { %v8954_v21 = vrot.slane %v3939_v45, %v7270_v58  ;;  %v8957_v51 = vrot.slane %v3953_v20, %v7270_v58  ;;  %v3998_v39 = vmul.f32 %v8800_v6, %v3961_v9  ;;  %v8962_v7 = vrot.slane %v3955_v59, %v7270_v58 }
 0x1ca   :  { %v3973_v3 = vrot.slane %v3956_v18, %v7270_v58  ;;  %v3999_v50 = vmul.f32 %v8802_v62, %v3961_v9  ;;  %v4000_v41 = vmul.f32 %v8867_v53, %v3961_v9  ;;  %v8967_v63 = vrot.slane %v3957_v10, %v7270_v58 }
 0x1cb   :  { %12088 = vst [vmem:[#allocation253_spill] sm:$0xff] %v8954_v21  ;;  %12089 = vst [vmem:[#allocation254_spill] sm:$0xff] %v8957_v51  ;;  %v4001_v45 = vmul.f32 %v8869_v33, %v3961_v9  ;;  %v8971_v21 = vmul.f32 %v8800_v6, %v3965_v13  ;;  %v8974_v20 = vmul.f32 %v8802_v62, %v3965_v13  ;;  %v12110_v51 = vld [vmem:[#allocation175_spill] sm:$0xff] }
 0x1cc   :  { %12090 = vst [vmem:[#allocation255_spill] sm:$0xff] %v8962_v7  ;;  %12091 = vst [vmem:[#allocation256_spill] sm:$0xff] %v8967_v63  ;;  %v8977_v18 = vmul.f32 %v8867_v53, %v3965_v13  ;;  %v8980_v59 = vmul.f32 %v8869_v33, %v3965_v13  ;;  %v8983_v7 = vmul.f32 %v8800_v6, %v3969_v54 }
 0x1cd   :  { %12092 = vst [vmem:[#allocation257_spill] sm:$0xff] %v8971_v21  ;;  %12093 = vst [vmem:[#allocation258_spill] sm:$0xff] %v8974_v20  ;;  %v8986_v10 = vmul.f32 %v8802_v62, %v3969_v54  ;;  %v8989_v9 = vmul.f32 %v8867_v53, %v3969_v54  ;;  %v8992_v63 = vmul.f32 %v8869_v33, %v3969_v54  ;;  %v12106_v21 = vld [vmem:[#allocation173_spill] sm:$0xff]  ;;  %v12108_v54 = vld [vmem:[#allocation174_spill] sm:$0xff] }
 0x1ce   :  { %12094 = vst [vmem:[#allocation259_spill] sm:$0xff] %v8977_v18  ;;  %12095 = vst [vmem:[#allocation260_spill] sm:$0xff] %v8980_v59  ;;  %v8995_v20 = vmul.f32 %v8800_v6, %v3973_v3  ;;  %v8998_v18 = vmul.f32 %v8802_v62, %v3973_v3  ;;  %v9001_v13 = vmul.f32 %v8867_v53, %v3973_v3  ;;  %v12104_v59 = vld [vmem:[#allocation172_spill] sm:$0xff] }
 0x1cf   :  { %12096 = vst [vmem:[#allocation261_spill] sm:$0xff] %v8983_v7  ;;  %12097 = vst [vmem:[#allocation262_spill] sm:$0xff] %v8986_v10  ;;  %v9004_v7 = vmul.f32 %v8869_v33, %v3973_v3  ;;  %v9007_v10 = vadd.f32 %v3998_v39, %v12104_v59  ;;  %v5408_v28 = vcombine.high %v5400_v35, %v5400_v35  ;;  %v9022_v39 = vmax.f32 %v8882_v16, 0.0 }
 0x1d0   :  { %12098 = vst [vmem:[#allocation263_spill] sm:$0xff] %v8989_v9  ;;  %12099 = vst [vmem:[#allocation264_spill] sm:$0xff] %v8992_v63  ;;  %v9010_v9 = vadd.f32 %v3999_v50, %v12106_v21  ;;  %v9013_v63 = vadd.f32 %v4000_v41, %v12108_v54  ;;  %v1243_v22 = vcombine.high %v429_v14, %v429_v14  ;;  %v12112_v41 = vld [vmem:[#allocation116_spill] sm:$0xff] }
 0x1d1   :  { %12100 = vst [vmem:[#allocation265_spill] sm:$0xff] %v8995_v20  ;;  %12101 = vst [vmem:[#allocation266_spill] sm:$0xff] %v8998_v18  ;;  %v9016_v20 = vadd.f32 %v4001_v45, %v12110_v51  ;;  %v5407_v18 = vrot.slane %v5393_v61, %v7268_v57  ;;  %v1250_v3 = vrot.slane %v429_v14, %v7268_v57 }
 0x1d2   :  { %12102 = vst [vmem:[#allocation267_spill] sm:$0xff] %v9001_v13  ;;  %12103 = vst [vmem:[#allocation268_spill] sm:$0xff] %v9004_v7  ;;  %v5416_v13 = vrot.slane %v5400_v35, %v7268_v57  ;;  %v5430_v50 = vrot.slane %v5408_v28, %v7268_v57  ;;  %v426_v51 = vadd.f32 %v12112_v41, %v12069_v11 }
 0x1d3   :  { %12105 = vst [vmem:[#allocation172_spill] sm:$0xff] %v9007_v10  ;;  %12107 = vst [vmem:[#allocation173_spill] sm:$0xff] %v9010_v9  ;;  %v5409_v59 = vcombine.high %v5407_v18, %v5407_v18  ;;  %v5423_v21 = vrot.slane %v5407_v18, %v7268_v57  ;;  %v1257_v54 = vrot.slane %v1243_v22, %v7268_v57 }
 0x1d4   :  { %12109 = vst [vmem:[#allocation174_spill] sm:$0xff] %v9013_v63  ;;  %12111 = vst [vmem:[#allocation175_spill] sm:$0xff] %v9016_v20  ;;  %v5438_v45 = vcombine.high %v5416_v13, %v5416_v13  ;;  %v5445_v61 = vrot.slane %v5416_v13, %v7270_v58  ;;  %v1258_v35 = vcombine.high %v1250_v3, %v1250_v3 }
 0x1d5   :  { %v5437_v7 = vrot.slane %v5409_v59, %v7268_v57  ;;  %v5439_v14 = vcombine.high %v5423_v21, %v5423_v21  ;;  %v5440_v20 = vcombine.high %v5430_v50, %v5430_v50  ;;  %v5449_v16 = vrot.slane %v5430_v50, %v7270_v58 }
 0x1d6   :  { %v5453_v63 = vrot.slane %v5438_v45, %v7270_v58  ;;  %v9034_v18 = vrot.slane %v5423_v21, %v7270_v58  ;;  %v9037_v28 = vmul.f32 %v12053_v4, %v5445_v61  ;;  %v9040_v41 = vmul.f32 %v12055_v46, %v5445_v61 }
 0x1d7   :  { %v5441_v13 = vcombine.high %v5437_v7, %v5437_v7  ;;  %v9043_v22 = vrot.slane %v5440_v20, %v7270_v58  ;;  %v9046_v59 = vrot.slane %v5437_v7, %v7270_v58  ;;  %v9049_v50 = vrot.slane %v5439_v14, %v7270_v58 }
 0x1d8   :  { %12113 = vst [vmem:[#allocation116_spill] sm:$0xff] %v9034_v18  ;;  %12114 = vst [vmem:[#allocation269_spill] sm:$0xff] %v9037_v28  ;;  %v9052_v45 = vmul.f32 %v12057_v56, %v5445_v61  ;;  %v9055_v21 = vmul.f32 %v8581_v25, %v5445_v61  ;;  %v9058_v9 = vmul.f32 %v12053_v4, %v5449_v16 }
 0x1d9   :  { %12115 = vst [vmem:[#allocation270_spill] sm:$0xff] %v9040_v41  ;;  %12116 = vst [vmem:[#allocation271_spill] sm:$0xff] %v9043_v22  ;;  %v9061_v10 = vmul.f32 %v12055_v46, %v5449_v16  ;;  %v9064_v20 = vrot.slane %v5441_v13, %v7270_v58  ;;  %v9067_v7 = vmul.f32 %v12057_v56, %v5449_v16 }
 0x1da   :  { %12117 = vst [vmem:[#allocation272_spill] sm:$0xff] %v9046_v59  ;;  %12118 = vst [vmem:[#allocation273_spill] sm:$0xff] %v9049_v50  ;;  %v9070_v14 = vmul.f32 %v8581_v25, %v5449_v16  ;;  %v9073_v22 = vmul.f32 %v12053_v4, %v5453_v63  ;;  %v9076_v61 = vmul.f32 %v12055_v46, %v5453_v63 }
 0x1db   :  { %12119 = vst [vmem:[#allocation274_spill] sm:$0xff] %v9052_v45  ;;  %12120 = vst [vmem:[#allocation275_spill] sm:$0xff] %v9055_v21  ;;  %v9079_v50 = vmul.f32 %v12057_v56, %v5453_v63  ;;  %v1259_v13 = vcombine.high %v1257_v54, %v1257_v54  ;;  %v1280_v16 = vrot.slane %v1258_v35, %v7268_v57 }
 0x1dc   :  { %12121 = vst [vmem:[#allocation276_spill] sm:$0xff] %v9058_v9  ;;  %12122 = vst [vmem:[#allocation277_spill] sm:$0xff] %v9061_v10  ;;  %v9082_v10 = vmul.f32 %v8581_v25, %v5453_v63  ;;  %v432_v9 = vmax.f32 %v426_v51, 0.0 }
 0x1dd   :  { %12123 = vst [vmem:[#allocation278_spill] sm:$0xff] %v9064_v20  ;;  %12124 = vst [vmem:[#allocation279_spill] sm:$0xff] %v9067_v7  ;;  %v1266_v20 = vrot.slane %v1250_v3, %v7268_v57  ;;  %v1273_v7 = vrot.slane %v1257_v54, %v7268_v57  ;;  %v1290_v21 = vcombine.high %v1280_v16, %v1280_v16 }
 0x1de   :  { %12125 = vst [vmem:[#allocation280_spill] sm:$0xff] %v9070_v14  ;;  %12126 = vst [vmem:[#allocation281_spill] sm:$0xff] %v9073_v22  ;;  %v2670_v14 = vcombine.high %v9022_v39, %v9022_v39  ;;  %v1287_v22 = vrot.slane %v1259_v13, %v7268_v57  ;;  %v1299_v35 = vrot.slane %v1280_v16, %v7270_v58 }
 0x1df   :  { %12127 = vst [vmem:[#allocation282_spill] sm:$0xff] %v9076_v61  ;;  %12128 = vst [vmem:[#allocation283_spill] sm:$0xff] %v9079_v50  ;;  %v2677_v61 = vrot.slane %v9022_v39, %v7268_v57  ;;  %v12130_v50 = vld [vmem:[#allocation66_spill] sm:$0xff]  ;;  %v1289_v59 = vcombine.high %v1273_v7, %v1273_v7  ;;  %v1295_v3 = vrot.slane %v1266_v20, %v7270_v58 }
 0x1e0   :  { %12129 = vst [vmem:[#allocation284_spill] sm:$0xff] %v9082_v10  ;;  %v654_v63 = vadd.f32 %v12130_v50, %v12045_v23  ;;  %v1288_v10 = vcombine.high %v1266_v20, %v1266_v20  ;;  %v1291_v54 = vcombine.high %v1287_v22, %v1287_v22  ;;  %v9097_v45 = vrot.slane %v1273_v7, %v7270_v58 }
 0x1e1   :  { %v9100_v13 = vrot.slane %v1287_v22, %v7270_v58  ;;  %v1307_v51 = vrot.slane %v1290_v21, %v7270_v58  ;;  %v9105_v50 = vrot.slane %v1289_v59, %v7270_v58  ;;  %v1332_v41 = vmul.f32 %v8800_v6, %v1295_v3 }
 0x1e2   :  { %v1303_v39 = vrot.slane %v1288_v10, %v7270_v58  ;;  %v9109_v20 = vrot.slane %v1291_v54, %v7270_v58  ;;  %v1333_v16 = vmul.f32 %v8802_v62, %v1295_v3  ;;  %v1334_v7 = vmul.f32 %v8867_v53, %v1295_v3 }
 0x1e3   :  { %12131 = vst [vmem:[#allocation66_spill] sm:$0xff] %v9100_v13  ;;  %12132 = vst [vmem:[#allocation285_spill] sm:$0xff] %v9105_v50  ;;  %v1335_v28 = vmul.f32 %v8869_v33, %v1295_v3  ;;  %v9115_v22 = vmul.f32 %v8800_v6, %v1299_v35  ;;  %v9118_v10 = vmul.f32 %v8802_v62, %v1299_v35 }
 0x1e4   :  { %12133 = vst [vmem:[#allocation286_spill] sm:$0xff] %v9109_v20  ;;  %v9121_v59 = vmul.f32 %v8867_v53, %v1299_v35  ;;  %v9124_v21 = vmul.f32 %v8869_v33, %v1299_v35  ;;  %v9127_v54 = vmul.f32 %v8800_v6, %v1303_v39  ;;  %v9130_v18 = vmul.f32 %v8802_v62, %v1303_v39 }
 0x1e5   :  { %12134 = vst [vmem:[#allocation287_spill] sm:$0xff] %v9115_v22  ;;  %12135 = vst [vmem:[#allocation288_spill] sm:$0xff] %v9118_v10  ;;  %v9133_v3 = vmul.f32 %v8867_v53, %v1303_v39  ;;  %v9136_v20 = vmul.f32 %v8869_v33, %v1303_v39  ;;  %v9139_v50 = vmul.f32 %v8800_v6, %v1307_v51 }
 0x1e6   :  { %12136 = vst [vmem:[#allocation289_spill] sm:$0xff] %v9121_v59  ;;  %12137 = vst [vmem:[#allocation290_spill] sm:$0xff] %v9124_v21  ;;  %v9142_v59 = vmul.f32 %v8802_v62, %v1307_v51  ;;  %v9145_v35 = vmul.f32 %v8867_v53, %v1307_v51  ;;  %v9157_v39 = vadd.f32 %v1334_v7, %v8539_v2 }
 0x1e7   :  { %12138 = vst [vmem:[#allocation291_spill] sm:$0xff] %v9127_v54  ;;  %12139 = vst [vmem:[#allocation292_spill] sm:$0xff] %v9130_v18  ;;  %v9148_v54 = vmul.f32 %v8869_v33, %v1307_v51  ;;  %v9151_v18 = vadd.f32 %v1332_v41, %v8533_v55  ;;  %v5238_v21 = vcombine.high %v432_v9, %v432_v9  ;;  %v12148_v55 = vld [vmem:[#allocation71_spill] sm:$0xff]  ;;  %v12149_v41 = vld [vmem:[#allocation37_spill] sm:$0xff] }
 0x1e8   :  { %12140 = vst [vmem:[#allocation293_spill] sm:$0xff] %v9133_v3  ;;  %12141 = vst [vmem:[#allocation294_spill] sm:$0xff] %v9136_v20  ;;  %v9154_v3 = vadd.f32 %v1333_v16, %v8536_v43  ;;  %v2685_v20 = vcombine.high %v2677_v61, %v2677_v61  ;;  %v5245_v51 = vrot.slane %v432_v9, %v7268_v57 }
 0x1e9   :  { %12142 = vst [vmem:[#allocation295_spill] sm:$0xff] %v9139_v50  ;;  %12143 = vst [vmem:[#allocation296_spill] sm:$0xff] %v9142_v59  ;;  %v9160_v50 = vadd.f32 %v1335_v28, %v8542_v15  ;;  %v2684_v59 = vrot.slane %v2670_v14, %v7268_v57  ;;  %v418_v43 = vadd.f32 %v12148_v55, %v12072_v30 }
 0x1ea   :  { %12144 = vst [vmem:[#allocation297_spill] sm:$0xff] %v9145_v35  ;;  %12145 = vst [vmem:[#allocation298_spill] sm:$0xff] %v9148_v54  ;;  %v2693_v35 = vrot.slane %v2677_v61, %v7268_v57  ;;  %v9165_v54 = vmax.f32 %v654_v63, 0.0  ;;  %v9171_v2 = vadd.f32 %v12149_v41, %v12043_v0  ;;  %v2707_v28 = vrot.slane %v2685_v20, %v7268_v57 }
 0x1eb   :  { %12146 = vst [vmem:[#allocation299_spill] sm:$0xff] %v9157_v39  ;;  %12147 = vst [vmem:[#allocation300_spill] sm:$0xff] %v9160_v50  ;;  %v2686_v16 = vcombine.high %v2684_v59, %v2684_v59  ;;  %v2700_v15 = vrot.slane %v2684_v59, %v7268_v57  ;;  %v5252_v7 = vrot.slane %v5238_v21, %v7268_v57 }
 0x1ec   :  { %v2715_v14 = vcombine.high %v2693_v35, %v2693_v35  ;;  %v2722_v61 = vrot.slane %v2693_v35, %v7270_v58  ;;  %v5253_v9 = vcombine.high %v5245_v51, %v5245_v51  ;;  %v5261_v63 = vrot.slane %v5245_v51, %v7268_v57 }
 0x1ed   :  { %v2714_v10 = vrot.slane %v2686_v16, %v7268_v57  ;;  %v2716_v55 = vcombine.high %v2700_v15, %v2700_v15  ;;  %v2717_v22 = vcombine.high %v2707_v28, %v2707_v28  ;;  %v2726_v41 = vrot.slane %v2707_v28, %v7270_v58 }
 0x1ee   :  { %v2730_v13 = vrot.slane %v2715_v14, %v7270_v58  ;;  %v9182_v59 = vrot.slane %v2700_v15, %v7270_v58  ;;  %v9185_v20 = vmul.f32 %v12053_v4, %v2722_v61  ;;  %v9188_v35 = vmul.f32 %v12055_v46, %v2722_v61 }
 0x1ef   :  { %v2718_v21 = vcombine.high %v2714_v10, %v2714_v10  ;;  %v9191_v51 = vrot.slane %v2717_v22, %v7270_v58  ;;  %v9194_v16 = vrot.slane %v2714_v10, %v7270_v58  ;;  %v9197_v28 = vrot.slane %v2716_v55, %v7270_v58 }
 0x1f0   :  { %v9200_v14 = vmul.f32 %v12057_v56, %v2722_v61  ;;  %v9203_v15 = vmul.f32 %v8581_v25, %v2722_v61  ;;  %v9206_v50 = vmul.f32 %v12053_v4, %v2726_v41  ;;  %v9209_v39 = vmul.f32 %v12055_v46, %v2726_v41 }
 0x1f1   :  { %12150 = vst [vmem:[#allocation71_spill] sm:$0xff] %v9191_v51  ;;  %12151 = vst [vmem:[#allocation37_spill] sm:$0xff] %v9194_v16  ;;  %v9212_v22 = vrot.slane %v2718_v21, %v7270_v58  ;;  %v9215_v10 = vmul.f32 %v12057_v56, %v2726_v41  ;;  %v9218_v55 = vmul.f32 %v8581_v25, %v2726_v41 }
 0x1f2   :  { %12152 = vst [vmem:[#allocation301_spill] sm:$0xff] %v9197_v28  ;;  %12153 = vst [vmem:[#allocation302_spill] sm:$0xff] %v9200_v14  ;;  %v9221_v51 = vmul.f32 %v12053_v4, %v2730_v13  ;;  %v9224_v61 = vmul.f32 %v12055_v46, %v2730_v13  ;;  %v9227_v28 = vmul.f32 %v12057_v56, %v2730_v13 }
 0x1f3   :  { %12154 = vst [vmem:[#allocation303_spill] sm:$0xff] %v9203_v15  ;;  %12155 = vst [vmem:[#allocation304_spill] sm:$0xff] %v9206_v50  ;;  %v5254_v21 = vcombine.high %v5252_v7, %v5252_v7  ;;  %v5283_v50 = vcombine.high %v5261_v63, %v5261_v63  ;;  %v5290_v41 = vrot.slane %v5261_v63, %v7270_v58 }
 0x1f4   :  { %12156 = vst [vmem:[#allocation305_spill] sm:$0xff] %v9209_v39  ;;  %12157 = vst [vmem:[#allocation306_spill] sm:$0xff] %v9212_v22  ;;  %v9230_v39 = vmul.f32 %v8581_v25, %v2730_v13  ;;  %v5268_v22 = vrot.slane %v5252_v7, %v7268_v57 }
 0x1f5   :  { %12158 = vst [vmem:[#allocation307_spill] sm:$0xff] %v9215_v10  ;;  %12159 = vst [vmem:[#allocation308_spill] sm:$0xff] %v9218_v55  ;;  %v5275_v10 = vrot.slane %v5253_v9, %v7268_v57  ;;  %v5282_v55 = vrot.slane %v5254_v21, %v7268_v57  ;;  %v5298_v7 = vrot.slane %v5283_v50, %v7270_v58 }
 0x1f6   :  { %12160 = vst [vmem:[#allocation309_spill] sm:$0xff] %v9221_v51  ;;  %12161 = vst [vmem:[#allocation310_spill] sm:$0xff] %v9224_v61  ;;  %v4374_v51 = vcombine.high %v9165_v54, %v9165_v54  ;;  %v4381_v61 = vrot.slane %v9165_v54, %v7268_v57  ;;  %v5284_v16 = vcombine.high %v5268_v22, %v5268_v22 }
 0x1f7   :  { %12162 = vst [vmem:[#allocation311_spill] sm:$0xff] %v9227_v28  ;;  %12163 = vst [vmem:[#allocation312_spill] sm:$0xff] %v9230_v39  ;;  %v430_v28 = vmax.f32 %v418_v43, 0.0  ;;  %v5285_v13 = vcombine.high %v5275_v10, %v5275_v10  ;;  %v5294_v39 = vrot.slane %v5275_v10, %v7270_v58  ;;  %v5286_v15 = vcombine.high %v5282_v55, %v5282_v55 }
 0x1f8   :  { %v9243_v9 = vrot.slane %v5268_v22, %v7270_v58  ;;  %v9246_v63 = vrot.slane %v5282_v55, %v7270_v58  ;;  %v5327_v21 = vmul.f32 %v8800_v6, %v5290_v41  ;;  %v9251_v54 = vrot.slane %v5284_v16, %v7270_v58 }
 0x1f9   :  { %v5302_v14 = vrot.slane %v5285_v13, %v7270_v58  ;;  %v5328_v43 = vmul.f32 %v8802_v62, %v5290_v41  ;;  %v5329_v10 = vmul.f32 %v8867_v53, %v5290_v41  ;;  %v9256_v50 = vrot.slane %v5286_v15, %v7270_v58 }
 0x1fa   :  { %12164 = vst [vmem:[#allocation313_spill] sm:$0xff] %v9243_v9  ;;  %12165 = vst [vmem:[#allocation314_spill] sm:$0xff] %v9246_v63  ;;  %v5330_v22 = vmul.f32 %v8869_v33, %v5290_v41  ;;  %v9260_v9 = vmul.f32 %v8800_v6, %v5294_v39  ;;  %v9263_v55 = vmul.f32 %v8802_v62, %v5294_v39 }
 0x1fb   :  { %12166 = vst [vmem:[#allocation315_spill] sm:$0xff] %v9251_v54  ;;  %12167 = vst [vmem:[#allocation316_spill] sm:$0xff] %v9256_v50  ;;  %v9266_v13 = vmul.f32 %v8867_v53, %v5294_v39  ;;  %v9269_v16 = vmul.f32 %v8869_v33, %v5294_v39  ;;  %v9272_v54 = vmul.f32 %v8800_v6, %v5298_v7 }
 0x1fc   :  { %12168 = vst [vmem:[#allocation317_spill] sm:$0xff] %v9260_v9  ;;  %12169 = vst [vmem:[#allocation318_spill] sm:$0xff] %v9263_v55  ;;  %v9275_v15 = vmul.f32 %v8802_v62, %v5298_v7  ;;  %v9278_v41 = vmul.f32 %v8867_v53, %v5298_v7  ;;  %v9281_v50 = vmul.f32 %v8869_v33, %v5298_v7 }
 0x1fd   :  { %12170 = vst [vmem:[#allocation319_spill] sm:$0xff] %v9266_v13  ;;  %12171 = vst [vmem:[#allocation320_spill] sm:$0xff] %v9269_v16  ;;  %v9284_v55 = vmul.f32 %v8800_v6, %v5302_v14  ;;  %v9287_v13 = vmul.f32 %v8802_v62, %v5302_v14  ;;  %v9290_v39 = vmul.f32 %v8867_v53, %v5302_v14 }
 0x1fe   :  { %12172 = vst [vmem:[#allocation321_spill] sm:$0xff] %v9272_v54  ;;  %12173 = vst [vmem:[#allocation322_spill] sm:$0xff] %v9275_v15  ;;  %v9293_v54 = vmul.f32 %v8869_v33, %v5302_v14  ;;  %v9296_v15 = vadd.f32 %v5327_v21, %v8651_v29  ;;  %v9302_v7 = vadd.f32 %v5329_v10, %v8657_v26  ;;  %v660_v29 = vmax.f32 %v9171_v2, 0.0  ;;  %v12184_v26 = vld [vmem:[#allocation55_spill] sm:$0xff] }
 0x1ff   :  { %12174 = vst [vmem:[#allocation323_spill] sm:$0xff] %v9278_v41  ;;  %12175 = vst [vmem:[#allocation324_spill] sm:$0xff] %v9281_v50  ;;  %v9299_v41 = vadd.f32 %v5328_v43, %v8654_v47  ;;  %v4389_v50 = vcombine.high %v4381_v61, %v4381_v61  ;;  %v2515_v16 = vcombine.high %v430_v28, %v430_v28 }
 0x200   :  { %12176 = vst [vmem:[#allocation325_spill] sm:$0xff] %v9284_v55  ;;  %12177 = vst [vmem:[#allocation326_spill] sm:$0xff] %v9287_v13  ;;  %v9305_v55 = vadd.f32 %v5330_v22, %v8660_v60  ;;  %v4388_v13 = vrot.slane %v4374_v51, %v7268_v57  ;;  %v2522_v14 = vrot.slane %v430_v28, %v7268_v57 }
 0x201   :  { %12178 = vst [vmem:[#allocation327_spill] sm:$0xff] %v9290_v39  ;;  %12179 = vst [vmem:[#allocation328_spill] sm:$0xff] %v9293_v54  ;;  %v4397_v39 = vrot.slane %v4381_v61, %v7268_v57  ;;  %v4411_v43 = vrot.slane %v4389_v50, %v7268_v57  ;;  %v657_v10 = vadd.f32 %v12184_v26, %v12069_v11 }
 0x202   :  { %12180 = vst [vmem:[#allocation329_spill] sm:$0xff] %v9296_v15  ;;  %12181 = vst [vmem:[#allocation330_spill] sm:$0xff] %v9299_v41  ;;  %v4390_v21 = vcombine.high %v4388_v13, %v4388_v13  ;;  %v4404_v47 = vrot.slane %v4388_v13, %v7268_v57  ;;  %v2529_v51 = vrot.slane %v2515_v16, %v7268_v57 }
 0x203   :  { %12182 = vst [vmem:[#allocation331_spill] sm:$0xff] %v9302_v7  ;;  %12183 = vst [vmem:[#allocation332_spill] sm:$0xff] %v9305_v55  ;;  %v4419_v60 = vcombine.high %v4397_v39, %v4397_v39  ;;  %v9316_v22 = vrot.slane %v4397_v39, %v7270_v58  ;;  %v2530_v61 = vcombine.high %v2522_v14, %v2522_v14 }
 0x204   :  { %v4418_v54 = vrot.slane %v4390_v21, %v7268_v57  ;;  %v4420_v28 = vcombine.high %v4404_v47, %v4404_v47  ;;  %v4421_v9 = vcombine.high %v4411_v43, %v4411_v43  ;;  %v9321_v2 = vrot.slane %v4411_v43, %v7270_v58 }
 0x205   :  { %12185 = vst [vmem:[#allocation55_spill] sm:$0xff] %v9316_v22  ;;  %v9324_v13 = vrot.slane %v4419_v60, %v7270_v58  ;;  %v9327_v50 = vrot.slane %v4404_v47, %v7270_v58  ;;  %v2531_v26 = vcombine.high %v2529_v51, %v2529_v51  ;;  %v2538_v39 = vrot.slane %v2522_v14, %v7268_v57 }
 0x206   :  { %12186 = vst [vmem:[#allocation333_spill] sm:$0xff] %v9321_v2  ;;  %v4422_v63 = vcombine.high %v4418_v54, %v4418_v54  ;;  %v9331_v16 = vrot.slane %v4421_v9, %v7270_v58  ;;  %v9334_v21 = vrot.slane %v4418_v54, %v7270_v58  ;;  %v9337_v55 = vrot.slane %v4420_v28, %v7270_v58 }
 0x207   :  { %12187 = vst [vmem:[#allocation334_spill] sm:$0xff] %v9324_v13  ;;  %12188 = vst [vmem:[#allocation335_spill] sm:$0xff] %v9327_v50  ;;  %v2545_v43 = vrot.slane %v2529_v51, %v7268_v57  ;;  %v2552_v60 = vrot.slane %v2530_v61, %v7268_v57  ;;  %v2559_v47 = vrot.slane %v2531_v26, %v7268_v57 }
 0x208   :  { %12189 = vst [vmem:[#allocation336_spill] sm:$0xff] %v9331_v16  ;;  %12190 = vst [vmem:[#allocation337_spill] sm:$0xff] %v9334_v21  ;;  %v2560_v13 = vcombine.high %v2538_v39, %v2538_v39  ;;  %v9343_v2 = vrot.slane %v4422_v63, %v7270_v58  ;;  %v2567_v14 = vrot.slane %v2538_v39, %v7270_v58 }
 0x209   :  { %12191 = vst [vmem:[#allocation338_spill] sm:$0xff] %v9337_v55  ;;  %v1720_v9 = vcombine.high %v660_v29, %v660_v29  ;;  %v1727_v16 = vrot.slane %v660_v29, %v7268_v57  ;;  %v2561_v54 = vcombine.high %v2545_v43, %v2545_v43  ;;  %v2562_v21 = vcombine.high %v2552_v60, %v2552_v60 }
 0x20a   :  { %12192 = vst [vmem:[#allocation339_spill] sm:$0xff] %v9343_v2  ;;  %v2563_v7 = vcombine.high %v2559_v47, %v2559_v47  ;;  %v2571_v28 = vrot.slane %v2552_v60, %v7270_v58  ;;  %v2575_v51 = vrot.slane %v2560_v13, %v7270_v58  ;;  %v9350_v61 = vrot.slane %v2545_v43, %v7270_v58 }
 0x20b   :  { %v9353_v26 = vrot.slane %v2559_v47, %v7270_v58  ;;  %v2604_v63 = vmul.f32 %v8800_v6, %v2567_v14  ;;  %v2579_v39 = vrot.slane %v2562_v21, %v7270_v58  ;;  %v9358_v2 = vrot.slane %v2561_v54, %v7270_v58 }
 0x20c   :  { %v9361_v29 = vrot.slane %v2563_v7, %v7270_v58  ;;  %v2605_v60 = vmul.f32 %v8802_v62, %v2567_v14  ;;  %v2606_v13 = vmul.f32 %v8867_v53, %v2567_v14  ;;  %v2607_v43 = vmul.f32 %v8869_v33, %v2567_v14 }
 0x20d   :  { %12193 = vst [vmem:[#allocation340_spill] sm:$0xff] %v9353_v26  ;;  %12194 = vst [vmem:[#allocation341_spill] sm:$0xff] %v9358_v2  ;;  %v9367_v55 = vmul.f32 %v8800_v6, %v2571_v28  ;;  %v9370_v47 = vmul.f32 %v8802_v62, %v2571_v28  ;;  %v9373_v21 = vmul.f32 %v8867_v53, %v2571_v28 }
 0x20e   :  { %12195 = vst [vmem:[#allocation342_spill] sm:$0xff] %v9361_v29  ;;  %v9376_v54 = vmul.f32 %v8869_v33, %v2571_v28  ;;  %v9379_v7 = vmul.f32 %v8800_v6, %v2575_v51  ;;  %v9382_v22 = vmul.f32 %v8802_v62, %v2575_v51  ;;  %v9385_v14 = vmul.f32 %v8867_v53, %v2575_v51 }
 0x20f   :  { %12196 = vst [vmem:[#allocation343_spill] sm:$0xff] %v9367_v55  ;;  %12197 = vst [vmem:[#allocation344_spill] sm:$0xff] %v9370_v47  ;;  %v9388_v41 = vmul.f32 %v8869_v33, %v2575_v51  ;;  %v9391_v15 = vmul.f32 %v8800_v6, %v2579_v39  ;;  %v9394_v50 = vmul.f32 %v8802_v62, %v2579_v39  ;;  %v6719_v51 = vld [vmem:[%s11469_s0 + $0x50] sm:$0xff]  }
 0x210   :  { %12198 = vst [vmem:[#allocation345_spill] sm:$0xff] %v9373_v21  ;;  %12199 = vst [vmem:[#allocation346_spill] sm:$0xff] %v9376_v54  ;;  %v9397_v28 = vmul.f32 %v8867_v53, %v2579_v39  ;;  %v9400_v29 = vmul.f32 %v8869_v33, %v2579_v39  ;;  %v1735_v39 = vcombine.high %v1727_v16, %v1727_v16 }
 0x211   :  { %12200 = vst [vmem:[#allocation347_spill] sm:$0xff] %v9379_v7  ;;  %12201 = vst [vmem:[#allocation348_spill] sm:$0xff] %v9382_v22  ;;  %v9403_v22 = vadd.f32 %v2604_v63, %v8750_v34  ;;  %v663_v34 = vmax.f32 %v657_v10, 0.0  ;;  %v12210_v63 = vld [vmem:[#allocation184_spill] sm:$0xff] }
 0x212   :  { %12202 = vst [vmem:[#allocation349_spill] sm:$0xff] %v9385_v14  ;;  %12203 = vst [vmem:[#allocation350_spill] sm:$0xff] %v9388_v41  ;;  %v9406_v14 = vadd.f32 %v2605_v60, %v8753_v24  ;;  %v649_v24 = vadd.f32 %v12210_v63, %v12072_v30  ;;  %v577_v60 = vadd.f32 %v8506_v32, %v12045_v23 }
 0x213   :  { %12204 = vst [vmem:[#allocation351_spill] sm:$0xff] %v9391_v15  ;;  %12205 = vst [vmem:[#allocation352_spill] sm:$0xff] %v9394_v50  ;;  %v9412_v15 = vadd.f32 %v2606_v13, %v8756_v1  ;;  %v9415_v50 = vadd.f32 %v2607_v43, %v8759_v5  ;;  %v1757_v1 = vrot.slane %v1735_v39, %v7268_v57  ;;  %v9425_v13 = vunpack.c.l.bf16 %v6719_v51 }
 0x214   :  { %12206 = vst [vmem:[#allocation353_spill] sm:$0xff] %v9397_v28  ;;  %12207 = vst [vmem:[#allocation354_spill] sm:$0xff] %v9400_v29  ;;  %v1734_v28 = vrot.slane %v1720_v9, %v7268_v57  ;;  %v1743_v29 = vrot.slane %v1727_v16, %v7268_v57  ;;  %v5703_v43 = vcombine.high %v663_v34, %v663_v34  ;;  %v661_v55 = vmax.f32 %v649_v24, 0.0 }
 0x215   :  { %12208 = vst [vmem:[#allocation355_spill] sm:$0xff] %v9412_v15  ;;  %12209 = vst [vmem:[#allocation356_spill] sm:$0xff] %v9415_v50  ;;  %v5710_v10 = vrot.slane %v663_v34, %v7268_v57  ;;  %v1767_v2 = vcombine.high %v1757_v1, %v1757_v1  ;;  %v9433_v32 = vrot.slane %v1757_v1, %v7270_v58 }
 0x216   :  { %v1736_v41 = vcombine.high %v1734_v28, %v1734_v28  ;;  %v1750_v7 = vrot.slane %v1734_v28, %v7268_v57  ;;  %v1765_v5 = vcombine.high %v1743_v29, %v1743_v29  ;;  %v9428_v9 = vrot.slane %v1743_v29, %v7270_v58 }
 0x217   :  { %12211 = vst [vmem:[#allocation184_spill] sm:$0xff] %v9433_v32  ;;  %v5717_v54 = vrot.slane %v5703_v43, %v7268_v57  ;;  %v5718_v29 = vcombine.high %v5710_v10, %v5710_v10  ;;  %v9443_v47 = vrot.slane %v1767_v2, %v7270_v58  ;;  %v585_v32 = vmax.f32 %v577_v60, 0.0 }
 0x218   :  { %v1764_v16 = vrot.slane %v1736_v41, %v7268_v57  ;;  %v1766_v63 = vcombine.high %v1750_v7, %v1750_v7  ;;  %v9436_v28 = vrot.slane %v1765_v5, %v7270_v58  ;;  %v9439_v39 = vrot.slane %v1750_v7, %v7270_v58 }
 0x219   :  { %12213 = vst [vmem:[#allocation358_spill] sm:$0xff] %v9443_v47  ;;  %v5719_v1 = vcombine.high %v5717_v54, %v5717_v54  ;;  %v5726_v5 = vrot.slane %v5710_v10, %v7268_v57  ;;  %v5740_v7 = vrot.slane %v5718_v29, %v7268_v57  ;;  %v9457_v2 = vunpack.c.h.bf16 %v6719_v51  ;;  %v6720_v10 = vld [vmem:[%s11469_s0 + $0x58] sm:$0xff]  }
 0x21a   :  { %12212 = vst [vmem:[#allocation357_spill] sm:$0xff] %v9436_v28  ;;  %v1768_v21 = vcombine.high %v1764_v16, %v1764_v16  ;;  %v9446_v41 = vrot.slane %v1764_v16, %v7270_v58  ;;  %v9449_v34 = vrot.slane %v1766_v63, %v7270_v58  ;;  %v5733_v28 = vrot.slane %v5717_v54, %v7268_v57 }
 0x21b   :  { %v5747_v16 = vrot.slane %v5719_v1, %v7268_v57  ;;  %v5748_v47 = vcombine.high %v5726_v5, %v5726_v5  ;;  %v5750_v63 = vcombine.high %v5740_v7, %v5740_v7  ;;  %v9464_v54 = vrot.slane %v5726_v5, %v7270_v58 }
 0x21c   :  { %12214 = vst [vmem:[#allocation359_spill] sm:$0xff] %v9446_v41  ;;  %12215 = vst [vmem:[#allocation360_spill] sm:$0xff] %v9449_v34  ;;  %v9455_v43 = vrot.slane %v1768_v21, %v7270_v58  ;;  %v5749_v26 = vcombine.high %v5733_v28, %v5733_v28  ;;  %v9467_v29 = vrot.slane %v5740_v7, %v7270_v58 }
 0x21d   :  { %12217 = vst [vmem:[#allocation362_spill] sm:$0xff] %v9464_v54  ;;  %v9470_v21 = vrot.slane %v5733_v28, %v7270_v58  ;;  %v2980_v51 = vcombine.high %v661_v55, %v661_v55  ;;  %v5751_v24 = vcombine.high %v5747_v16, %v5747_v16  ;;  %v9473_v60 = vrot.slane %v5748_v47, %v7270_v58 }
 0x21e   :  { %12216 = vst [vmem:[#allocation361_spill] sm:$0xff] %v9455_v43  ;;  %12218 = vst [vmem:[#allocation363_spill] sm:$0xff] %v9467_v29  ;;  %v9476_v1 = vrot.slane %v5750_v63, %v7270_v58  ;;  %v9479_v43 = vrot.slane %v5747_v16, %v7270_v58  ;;  %v9482_v5 = vrot.slane %v5749_v26, %v7270_v58  ;;  %v9486_v28 = vunpack.c.l.bf16 %v6720_v10 }
 0x21f   :  { %12219 = vst [vmem:[#allocation364_spill] sm:$0xff] %v9470_v21  ;;  %12220 = vst [vmem:[#allocation365_spill] sm:$0xff] %v9473_v60  ;;  %v2987_v7 = vrot.slane %v661_v55, %v7268_v57  ;;  %v2994_v29 = vrot.slane %v2980_v51, %v7268_v57  ;;  %v9489_v54 = vrot.slane %v5751_v24, %v7270_v58  ;;  %v9491_v47 = vunpack.c.h.bf16 %v6720_v10 }
 0x220   :  { %12221 = vst [vmem:[#allocation366_spill] sm:$0xff] %v9476_v1  ;;  %12222 = vst [vmem:[#allocation367_spill] sm:$0xff] %v9479_v43  ;;  %v4219_v60 = vcombine.high %v585_v32, %v585_v32  ;;  %v4226_v63 = vrot.slane %v585_v32, %v7268_v57  ;;  %v569_v24 = vadd.f32 %v8550_v40, %v12043_v0 }
 0x221   :  { %12223 = vst [vmem:[#allocation368_spill] sm:$0xff] %v9482_v5  ;;  %12224 = vst [vmem:[#allocation369_spill] sm:$0xff] %v9489_v54  ;;  %v2995_v1 = vcombine.high %v2987_v7, %v2987_v7  ;;  %v2996_v16 = vcombine.high %v2994_v29, %v2994_v29  ;;  %v3003_v43 = vrot.slane %v2987_v7, %v7268_v57 }
 0x222   :  { %v3010_v26 = vrot.slane %v2994_v29, %v7268_v57  ;;  %v4233_v55 = vrot.slane %v4219_v60, %v7268_v57  ;;  %v4234_v5 = vcombine.high %v4226_v63, %v4226_v63  ;;  %v4242_v51 = vrot.slane %v4226_v63, %v7268_v57 }
 0x223   :  { %v3017_v10 = vrot.slane %v2995_v1, %v7268_v57  ;;  %v3024_v54 = vrot.slane %v2996_v16, %v7268_v57  ;;  %v3025_v21 = vcombine.high %v3003_v43, %v3003_v43  ;;  %v9503_v34 = vrot.slane %v3003_v43, %v7270_v58 }
 0x224   :  { %v3026_v32 = vcombine.high %v3010_v26, %v3010_v26  ;;  %v9506_v7 = vrot.slane %v3010_v26, %v7270_v58  ;;  %v4235_v29 = vcombine.high %v4233_v55, %v4233_v55  ;;  %v4249_v60 = vrot.slane %v4233_v55, %v7268_v57 }
 0x225   :  { %v3027_v50 = vcombine.high %v3017_v10, %v3017_v10  ;;  %v3028_v63 = vcombine.high %v3024_v54, %v3024_v54  ;;  %v9510_v15 = vrot.slane %v3017_v10, %v7270_v58  ;;  %v9513_v40 = vrot.slane %v3025_v21, %v7270_v58 }
 0x226   :  { %v9516_v1 = vrot.slane %v3024_v54, %v7270_v58  ;;  %v9519_v43 = vrot.slane %v3026_v32, %v7270_v58  ;;  %v4256_v16 = vrot.slane %v4234_v5, %v7268_v57  ;;  %v4263_v26 = vrot.slane %v4235_v29, %v7268_v57 }
 0x227   :  { %12225 = vst [vmem:[#allocation370_spill] sm:$0xff] %v9510_v15  ;;  %12226 = vst [vmem:[#allocation371_spill] sm:$0xff] %v9513_v40  ;;  %v9524_v55 = vrot.slane %v3027_v50, %v7270_v58  ;;  %v9527_v41 = vrot.slane %v3028_v63, %v7270_v58  ;;  %v4264_v10 = vcombine.high %v4242_v51, %v4242_v51 }
 0x228   :  { %12227 = vst [vmem:[#allocation372_spill] sm:$0xff] %v9516_v1  ;;  %12228 = vst [vmem:[#allocation373_spill] sm:$0xff] %v9519_v43  ;;  %v4265_v15 = vcombine.high %v4249_v60, %v4249_v60  ;;  %v4266_v21 = vcombine.high %v4256_v16, %v4256_v16  ;;  %v4267_v40 = vcombine.high %v4263_v26, %v4263_v26 }
 0x229   :  { %12229 = vst [vmem:[#allocation374_spill] sm:$0xff] %v9524_v55  ;;  %12230 = vst [vmem:[#allocation375_spill] sm:$0xff] %v9527_v41  ;;  %v4271_v54 = vrot.slane %v4242_v51, %v7270_v58  ;;  %v9531_v1 = vrot.slane %v4256_v16, %v7270_v58  ;;  %v9534_v32 = vrot.slane %v4264_v10, %v7270_v58 }
 0x22a   :  { %v9537_v5 = vrot.slane %v4249_v60, %v7270_v58  ;;  %v9540_v50 = vrot.slane %v4263_v26, %v7270_v58  ;;  %v9543_v29 = vrot.slane %v4265_v15, %v7270_v58  ;;  %v9546_v63 = vrot.slane %v4266_v21, %v7270_v58 }
 0x22b   :  { %12231 = vst [vmem:[#allocation376_spill] sm:$0xff] %v9531_v1  ;;  %12232 = vst [vmem:[#allocation377_spill] sm:$0xff] %v9534_v32  ;;  %v9549_v51 = vrot.slane %v4267_v40, %v7270_v58  ;;  %v9552_v16 = vmul.f32 %v9425_v13, %v4271_v54  ;;  %v9555_v10 = vmul.f32 %v9457_v2, %v4271_v54  ;;  %v583_v15 = vmax.f32 %v569_v24, 0.0 }
 0x22c   :  { %12233 = vst [vmem:[#allocation378_spill] sm:$0xff] %v9537_v5  ;;  %12234 = vst [vmem:[#allocation379_spill] sm:$0xff] %v9540_v50  ;;  %v9558_v60 = vmul.f32 %v9486_v28, %v4271_v54  ;;  %v9561_v26 = vmul.f32 %v9491_v47, %v4271_v54  ;;  %v580_v21 = vadd.f32 %v8620_v12, %v12069_v11 }
 0x22d   :  { %12235 = vst [vmem:[#allocation380_spill] sm:$0xff] %v9543_v29  ;;  %12236 = vst [vmem:[#allocation381_spill] sm:$0xff] %v9546_v63  ;;  %v572_v40 = vadd.f32 %v8674_v48, %v12072_v30  ;;  %v731_v63 = vadd.f32 %v8761_v52, %v12045_v23  ;;  %v734_v32 = vadd.f32 %v8805_v31, %v12069_v11 }
 0x22e   :  { %12237 = vst [vmem:[#allocation382_spill] sm:$0xff] %v9549_v51  ;;  %12238 = vst [vmem:[#allocation383_spill] sm:$0xff] %v9552_v16  ;;  %v723_v51 = vadd.f32 %v8778_v27, %v12043_v0  ;;  %v1561_v29 = vcombine.high %v583_v15, %v583_v15  ;;  %v1568_v54 = vrot.slane %v583_v15, %v7268_v57  ;;  %v586_v1 = vmax.f32 %v580_v21, 0.0 }
 0x22f   :  { %12239 = vst [vmem:[#allocation384_spill] sm:$0xff] %v9555_v10  ;;  %12240 = vst [vmem:[#allocation385_spill] sm:$0xff] %v9558_v60  ;;  %v9576_v24 = vadd.f32 %v8858_v19, %v12072_v30  ;;  %v584_v12 = vmax.f32 %v572_v40, 0.0  ;;  %v739_v50 = vmax.f32 %v731_v63, 0.0 }
 0x230   :  { %12241 = vst [vmem:[#allocation386_spill] sm:$0xff] %v9561_v26  ;;  %v9578_v48 = vmax.f32 %v723_v51, 0.0  ;;  %v9580_v26 = vmax.f32 %v734_v32, 0.0  ;;  %v1575_v52 = vrot.slane %v1561_v29, %v7268_v57  ;;  %v1576_v27 = vcombine.high %v1568_v54, %v1568_v54 }
 0x231   :  { %v1584_v0 = vrot.slane %v1568_v54, %v7268_v57  ;;  %v5548_v23 = vcombine.high %v586_v1, %v586_v1  ;;  %v5555_v31 = vrot.slane %v586_v1, %v7268_v57  ;;  %v2825_v11 = vcombine.high %v584_v12, %v584_v12 }
 0x232   :  { %v2832_v15 = vrot.slane %v584_v12, %v7268_v57  ;;  %v4529_v21 = vcombine.high %v739_v50, %v739_v50  ;;  %v1577_v19 = vcombine.high %v1575_v52, %v1575_v52  ;;  %v1591_v30 = vrot.slane %v1575_v52, %v7268_v57 }
 0x233   :  { %v1598_v63 = vrot.slane %v1576_v27, %v7268_v57  ;;  %v1606_v51 = vcombine.high %v1584_v0, %v1584_v0  ;;  %v1613_v32 = vrot.slane %v1584_v0, %v7270_v58  ;;  %v5562_v29 = vrot.slane %v5548_v23, %v7268_v57 }
 0x234   :  { %v5563_v40 = vcombine.high %v5555_v31, %v5555_v31  ;;  %v5571_v54 = vrot.slane %v5555_v31, %v7268_v57  ;;  %v1605_v60 = vrot.slane %v1577_v19, %v7268_v57  ;;  %v1607_v1 = vcombine.high %v1591_v30, %v1591_v30 }
 0x235   :  { %v1608_v10 = vcombine.high %v1598_v63, %v1598_v63  ;;  %v9593_v12 = vrot.slane %v1598_v63, %v7270_v58  ;;  %v9596_v16 = vrot.slane %v1606_v51, %v7270_v58  ;;  %v9599_v52 = vrot.slane %v1591_v30, %v7270_v58 }
 0x236   :  { %v9602_v27 = vmul.f32 %v9425_v13, %v1613_v32  ;;  %v9605_v0 = vmul.f32 %v9457_v2, %v1613_v32  ;;  %v1609_v23 = vcombine.high %v1605_v60, %v1605_v60  ;;  %v9611_v19 = vrot.slane %v1605_v60, %v7270_v58 }
 0x237   :  { %12242 = vst [vmem:[#allocation387_spill] sm:$0xff] %v9593_v12  ;;  %12243 = vst [vmem:[#allocation388_spill] sm:$0xff] %v9596_v16  ;;  %v9608_v31 = vrot.slane %v1608_v10, %v7270_v58  ;;  %v9614_v63 = vrot.slane %v1607_v1, %v7270_v58  ;;  %v9617_v51 = vmul.f32 %v9486_v28, %v1613_v32 }
 0x238   :  { %12245 = vst [vmem:[#allocation390_spill] sm:$0xff] %v9611_v19  ;;  %v9620_v30 = vmul.f32 %v9491_v47, %v1613_v32  ;;  %v5564_v5 = vcombine.high %v5562_v29, %v5562_v29  ;;  %v5578_v55 = vrot.slane %v5562_v29, %v7268_v57  ;;  %v9624_v41 = vrot.slane %v1609_v23, %v7270_v58  ;;  %v12296_v19 = vld [vmem:[#allocation140_spill] sm:$0xff] }
 0x239   :  { %12244 = vst [vmem:[#allocation389_spill] sm:$0xff] %v9608_v31  ;;  %12246 = vst [vmem:[#allocation391_spill] sm:$0xff] %v9614_v63  ;;  %v5585_v10 = vrot.slane %v5563_v40, %v7268_v57  ;;  %v5593_v31 = vcombine.high %v5571_v54, %v5571_v54  ;;  %v5600_v60 = vrot.slane %v5571_v54, %v7270_v58 }
 0x23a   :  { %12247 = vst [vmem:[#allocation392_spill] sm:$0xff] %v9617_v51  ;;  %12248 = vst [vmem:[#allocation393_spill] sm:$0xff] %v9620_v30  ;;  %v5592_v1 = vrot.slane %v5564_v5, %v7268_v57  ;;  %v5594_v16 = vcombine.high %v5578_v55, %v5578_v55  ;;  %v9630_v43 = vrot.slane %v5578_v55, %v7270_v58 }
 0x23b   :  { %12249 = vst [vmem:[#allocation394_spill] sm:$0xff] %v9624_v41  ;;  %v2839_v32 = vrot.slane %v2825_v11, %v7268_v57  ;;  %v5595_v63 = vcombine.high %v5585_v10, %v5585_v10  ;;  %v9634_v12 = vrot.slane %v5585_v10, %v7270_v58  ;;  %v9637_v29 = vrot.slane %v5593_v31, %v7270_v58 }
 0x23c   :  { %12250 = vst [vmem:[#allocation395_spill] sm:$0xff] %v9630_v43  ;;  %v9640_v40 = vmul.f32 %v9425_v13, %v5600_v60  ;;  %v5596_v23 = vcombine.high %v5592_v1, %v5592_v1  ;;  %v9643_v54 = vrot.slane %v5592_v1, %v7270_v58  ;;  %v9646_v5 = vrot.slane %v5594_v16, %v7270_v58 }
 0x23d   :  { %12251 = vst [vmem:[#allocation396_spill] sm:$0xff] %v9634_v12  ;;  %12252 = vst [vmem:[#allocation397_spill] sm:$0xff] %v9637_v29  ;;  %v9649_v55 = vmul.f32 %v9457_v2, %v5600_v60  ;;  %v9652_v11 = vrot.slane %v5595_v63, %v7270_v58  ;;  %v9655_v10 = vmul.f32 %v9486_v28, %v5600_v60 }
 0x23e   :  { %12253 = vst [vmem:[#allocation398_spill] sm:$0xff] %v9640_v40  ;;  %12254 = vst [vmem:[#allocation399_spill] sm:$0xff] %v9643_v54  ;;  %v9658_v31 = vmul.f32 %v9491_v47, %v5600_v60  ;;  %v2840_v29 = vcombine.high %v2832_v15, %v2832_v15  ;;  %v9661_v12 = vrot.slane %v5596_v23, %v7270_v58 }
 0x23f   :  { %12255 = vst [vmem:[#allocation400_spill] sm:$0xff] %v9646_v5  ;;  %12256 = vst [vmem:[#allocation401_spill] sm:$0xff] %v9649_v55  ;;  %v2841_v1 = vcombine.high %v2839_v32, %v2839_v32  ;;  %v2848_v16 = vrot.slane %v2832_v15, %v7268_v57  ;;  %v2855_v5 = vrot.slane %v2839_v32, %v7268_v57 }
 0x240   :  { %12257 = vst [vmem:[#allocation402_spill] sm:$0xff] %v9652_v11  ;;  %12258 = vst [vmem:[#allocation403_spill] sm:$0xff] %v9655_v10  ;;  %v2862_v54 = vrot.slane %v2840_v29, %v7268_v57  ;;  %v4536_v63 = vrot.slane %v739_v50, %v7268_v57  ;;  %v4543_v11 = vrot.slane %v4529_v21, %v7268_v57 }
 0x241   :  { %12259 = vst [vmem:[#allocation404_spill] sm:$0xff] %v9658_v31  ;;  %12260 = vst [vmem:[#allocation405_spill] sm:$0xff] %v9661_v12  ;;  %v1879_v10 = vcombine.high %v9578_v48, %v9578_v48  ;;  %v2869_v60 = vrot.slane %v2841_v1, %v7268_v57  ;;  %v2870_v31 = vcombine.high %v2848_v16, %v2848_v16 }
 0x242   :  { %v2871_v55 = vcombine.high %v2855_v5, %v2855_v5  ;;  %v2877_v23 = vrot.slane %v2848_v16, %v7270_v58  ;;  %v2872_v12 = vcombine.high %v2862_v54, %v2862_v54  ;;  %v9673_v15 = vrot.slane %v2862_v54, %v7270_v58 }
 0x243   :  { %v9676_v32 = vrot.slane %v2855_v5, %v7270_v58  ;;  %v4544_v29 = vcombine.high %v4536_v63, %v4536_v63  ;;  %v2873_v50 = vcombine.high %v2869_v60, %v2869_v60  ;;  %v9679_v21 = vrot.slane %v2870_v31, %v7270_v58 }
 0x244   :  { %12261 = vst [vmem:[#allocation406_spill] sm:$0xff] %v9673_v15  ;;  %v9682_v40 = vrot.slane %v2869_v60, %v7270_v58  ;;  %v9685_v1 = vrot.slane %v2871_v55, %v7270_v58  ;;  %v9688_v16 = vrot.slane %v2872_v12, %v7270_v58  ;;  %v9691_v54 = vmul.f32 %v9425_v13, %v2877_v23 }
 0x245   :  { %12262 = vst [vmem:[#allocation407_spill] sm:$0xff] %v9679_v21  ;;  %v9694_v5 = vmul.f32 %v9457_v2, %v2877_v23  ;;  %v9697_v43 = vmul.f32 %v9486_v28, %v2877_v23  ;;  %v9700_v31 = vrot.slane %v2873_v50, %v7270_v58  ;;  %v9703_v60 = vmul.f32 %v9491_v47, %v2877_v23 }
 0x246   :  { %12263 = vst [vmem:[#allocation408_spill] sm:$0xff] %v9682_v40  ;;  %12264 = vst [vmem:[#allocation409_spill] sm:$0xff] %v9685_v1  ;;  %v4545_v55 = vcombine.high %v4543_v11, %v4543_v11  ;;  %v4552_v41 = vrot.slane %v4536_v63, %v7268_v57  ;;  %v4559_v12 = vrot.slane %v4543_v11, %v7268_v57 }
 0x247   :  { %12265 = vst [vmem:[#allocation410_spill] sm:$0xff] %v9688_v16  ;;  %12266 = vst [vmem:[#allocation411_spill] sm:$0xff] %v9691_v54  ;;  %v4566_v16 = vrot.slane %v4544_v29, %v7268_v57  ;;  %v1886_v21 = vrot.slane %v9578_v48, %v7268_v57  ;;  %v1893_v1 = vrot.slane %v1879_v10, %v7268_v57 }
 0x248   :  { %12267 = vst [vmem:[#allocation412_spill] sm:$0xff] %v9694_v5  ;;  %12268 = vst [vmem:[#allocation413_spill] sm:$0xff] %v9697_v43  ;;  %v4573_v15 = vrot.slane %v4545_v55, %v7268_v57  ;;  %v4574_v40 = vcombine.high %v4552_v41, %v4552_v41  ;;  %v9713_v50 = vrot.slane %v4552_v41, %v7270_v58 }
 0x249   :  { %12269 = vst [vmem:[#allocation414_spill] sm:$0xff] %v9700_v31  ;;  %12270 = vst [vmem:[#allocation415_spill] sm:$0xff] %v9703_v60  ;;  %v5858_v23 = vcombine.high %v9580_v26, %v9580_v26  ;;  %v4575_v31 = vcombine.high %v4559_v12, %v4559_v12  ;;  %v4576_v63 = vcombine.high %v4566_v16, %v4566_v16 }
 0x24a   :  { %12271 = vst [vmem:[#allocation416_spill] sm:$0xff] %v9713_v50  ;;  %v9718_v11 = vrot.slane %v4566_v16, %v7270_v58  ;;  %v9721_v29 = vrot.slane %v4559_v12, %v7270_v58  ;;  %v4577_v48 = vcombine.high %v4573_v15, %v4573_v15  ;;  %v9724_v10 = vrot.slane %v4574_v40, %v7270_v58 }
 0x24b   :  { %v9727_v55 = vrot.slane %v4573_v15, %v7270_v58  ;;  %v1894_v41 = vcombine.high %v1886_v21, %v1886_v21  ;;  %v9730_v50 = vrot.slane %v4576_v63, %v7270_v58  ;;  %v9733_v60 = vrot.slane %v4575_v31, %v7270_v58 }
 0x24c   :  { %12272 = vst [vmem:[#allocation417_spill] sm:$0xff] %v9718_v11  ;;  %12273 = vst [vmem:[#allocation418_spill] sm:$0xff] %v9721_v29  ;;  %v1895_v43 = vcombine.high %v1893_v1, %v1893_v1  ;;  %v1902_v16 = vrot.slane %v1886_v21, %v7268_v57  ;;  %v9737_v12 = vrot.slane %v4577_v48, %v7270_v58 }
 0x24d   :  { %12274 = vst [vmem:[#allocation419_spill] sm:$0xff] %v9724_v10  ;;  %12275 = vst [vmem:[#allocation420_spill] sm:$0xff] %v9727_v55  ;;  %v1909_v11 = vrot.slane %v1893_v1, %v7268_v57  ;;  %v1916_v40 = vrot.slane %v1894_v41, %v7268_v57  ;;  %v5865_v15 = vrot.slane %v9580_v26, %v7268_v57 }
 0x24e   :  { %12276 = vst [vmem:[#allocation421_spill] sm:$0xff] %v9730_v50  ;;  %12277 = vst [vmem:[#allocation422_spill] sm:$0xff] %v9733_v60  ;;  %v1923_v10 = vrot.slane %v1895_v43, %v7268_v57  ;;  %v1924_v63 = vcombine.high %v1902_v16, %v1902_v16  ;;  %v9745_v50 = vrot.slane %v1902_v16, %v7270_v58 }
 0x24f   :  { %12278 = vst [vmem:[#allocation423_spill] sm:$0xff] %v9737_v12  ;;  %v5872_v31 = vrot.slane %v5858_v23, %v7268_v57  ;;  %v1925_v60 = vcombine.high %v1909_v11, %v1909_v11  ;;  %v1926_v21 = vcombine.high %v1916_v40, %v1916_v40  ;;  %v9749_v48 = vrot.slane %v1916_v40, %v7270_v58  ;;  %v6721_v23 = vld [vmem:[%s11469_s0 + $0x60] sm:$0xff]  }
 0x250   :  { %v9752_v1 = vrot.slane %v1909_v11, %v7270_v58  ;;  %v1927_v41 = vcombine.high %v1923_v10, %v1923_v10  ;;  %v9755_v12 = vrot.slane %v1924_v63, %v7270_v58  ;;  %v9758_v43 = vrot.slane %v1923_v10, %v7270_v58 }
 0x251   :  { %12279 = vst [vmem:[#allocation424_spill] sm:$0xff] %v9749_v48  ;;  %v5873_v26 = vcombine.high %v5865_v15, %v5865_v15  ;;  %v9764_v16 = vrot.slane %v1926_v21, %v7270_v58  ;;  %v9767_v40 = vrot.slane %v1925_v60, %v7270_v58  ;;  %v5874_v11 = vcombine.high %v5872_v31, %v5872_v31 }
 0x252   :  { %12280 = vst [vmem:[#allocation425_spill] sm:$0xff] %v9755_v12  ;;  %12281 = vst [vmem:[#allocation426_spill] sm:$0xff] %v9758_v43  ;;  %v5881_v55 = vrot.slane %v5865_v15, %v7268_v57  ;;  %v9771_v63 = vrot.slane %v1927_v41, %v7270_v58  ;;  %v5888_v10 = vrot.slane %v5872_v31, %v7268_v57  ;;  %v738_v12 = vmax.f32 %v9576_v24, 0.0  ;;  %v6723_v24 = vld [vmem:[%s11469_s0 + $0x70] sm:$0xff]  }
 0x253   :  { %12282 = vst [vmem:[#allocation427_spill] sm:$0xff] %v9764_v16  ;;  %12283 = vst [vmem:[#allocation428_spill] sm:$0xff] %v9767_v40  ;;  %v5895_v29 = vrot.slane %v5873_v26, %v7268_v57  ;;  %v5902_v48 = vrot.slane %v5874_v11, %v7268_v57  ;;  %v9780_v60 = vunpack.c.l.bf16 %v6721_v23 }
 0x254   :  { %12284 = vst [vmem:[#allocation429_spill] sm:$0xff] %v9771_v63  ;;  %v5903_v43 = vcombine.high %v5881_v55, %v5881_v55  ;;  %v9778_v21 = vrot.slane %v5881_v55, %v7270_v58  ;;  %v5904_v16 = vcombine.high %v5888_v10, %v5888_v10  ;;  %v9786_v41 = vrot.slane %v5888_v10, %v7270_v58  ;;  %v12294_v63 = vld [vmem:[#allocation139_spill] sm:$0xff] }
 0x255   :  { %v5905_v40 = vcombine.high %v5895_v29, %v5895_v29  ;;  %v9783_v15 = vrot.slane %v5895_v29, %v7270_v58  ;;  %v5906_v31 = vcombine.high %v5902_v48, %v5902_v48  ;;  %v9795_v55 = vrot.slane %v5902_v48, %v7270_v58 }
 0x256   :  { %12285 = vst [vmem:[#allocation430_spill] sm:$0xff] %v9778_v21  ;;  %12287 = vst [vmem:[#allocation432_spill] sm:$0xff] %v9786_v41  ;;  %v9792_v26 = vrot.slane %v5903_v43, %v7270_v58  ;;  %v3135_v11 = vcombine.high %v738_v12, %v738_v12  ;;  %v9801_v29 = vrot.slane %v5904_v16, %v7270_v58  ;;  %v9812_v48 = vunpack.c.h.bf16 %v6723_v24 }
 0x257   :  { %12286 = vst [vmem:[#allocation431_spill] sm:$0xff] %v9783_v15  ;;  %12289 = vst [vmem:[#allocation434_spill] sm:$0xff] %v9795_v55  ;;  %v9798_v21 = vrot.slane %v5905_v40, %v7270_v58  ;;  %v3142_v10 = vrot.slane %v738_v12, %v7268_v57  ;;  %v9804_v15 = vunpack.c.h.bf16 %v6721_v23  ;;  %v9807_v41 = vrot.slane %v5906_v31, %v7270_v58 }
 0x258   :  { %12288 = vst [vmem:[#allocation433_spill] sm:$0xff] %v9792_v26  ;;  %12291 = vst [vmem:[#allocation436_spill] sm:$0xff] %v9801_v29  ;;  %v3149_v43 = vrot.slane %v3135_v11, %v7268_v57  ;;  %v9810_v26 = vunpack.c.l.bf16 %v6723_v24  ;;  %v12295_v29 = vld [vmem:[#allocation44_spill] sm:$0xff]  ;;  %v1348_v31 = vmul.f32 %v8800_v6, %v9097_v45  ;;  %v1349_v11 = vmul.f32 %v8802_v62, %v9097_v45 }
 0x259   :  { %12290 = vst [vmem:[#allocation435_spill] sm:$0xff] %v9798_v21  ;;  %12292 = vst [vmem:[#allocation437_spill] sm:$0xff] %v9807_v41  ;;  %v3150_v55 = vcombine.high %v3142_v10, %v3142_v10  ;;  %v3158_v40 = vrot.slane %v3142_v10, %v7268_v57  ;;  %v12293_v21 = vld [vmem:[#allocation43_spill] sm:$0xff]  ;;  %v1063_v12 = vadd.f32 %v12296_v19, %v12295_v29 }
 0x25a   :  { %v1062_v16 = vadd.f32 %v12294_v63, %v12293_v21  ;;  %v3151_v23 = vcombine.high %v3149_v43, %v3149_v43  ;;  %v3165_v30 = vrot.slane %v3149_v43, %v7268_v57 }
 0x25b   :  { %v3172_v24 = vrot.slane %v3150_v55, %v7268_v57  ;;  %v3180_v41 = vcombine.high %v3158_v40, %v3158_v40  ;;  %v9826_v10 = vrot.slane %v3158_v40, %v7270_v58  ;;  %v1222_v43 = vadd.f32 %v8522_v49, %v1063_v12 }
 0x25c   :  { %v1221_v63 = vadd.f32 %v8518_v37, %v1062_v16  ;;  %v3179_v21 = vrot.slane %v3151_v23, %v7268_v57  ;;  %v3181_v19 = vcombine.high %v3165_v30, %v3165_v30  ;;  %v9831_v29 = vrot.slane %v3165_v30, %v7270_v58 }
 0x25d   :  { %12297 = vst [vmem:[#allocation43_spill] sm:$0xff] %v9826_v10  ;;  %v3182_v51 = vcombine.high %v3172_v24, %v3172_v24  ;;  %v9835_v5 = vrot.slane %v3172_v24, %v7270_v58  ;;  %v9838_v55 = vrot.slane %v3180_v41, %v7270_v58  ;;  %v1381_v37 = vadd.f32 %v1349_v11, %v1222_v43 }
 0x25e   :  { %v1380_v54 = vadd.f32 %v1348_v31, %v1221_v63  ;;  %v3183_v40 = vcombine.high %v3179_v21, %v3179_v21  ;;  %v9841_v10 = vrot.slane %v3179_v21, %v7270_v58  ;;  %v9844_v57 = vrot.slane %v3181_v19, %v7270_v58 }
 0x25f   :  { %12298 = vst [vmem:[#allocation139_spill] sm:$0xff] %v9835_v5  ;;  %12299 = vst [vmem:[#allocation44_spill] sm:$0xff] %v9838_v55  ;;  %v9847_v30 = vrot.slane %v3182_v51, %v7270_v58  ;;  %v1507_v49 = vmul.f32 %v12053_v4, %v8893_v36  ;;  %v1508_v16 = vmul.f32 %v12055_v46, %v8893_v36  ;;  %v12307_v55 = vld [vmem:[#allocation187_spill] sm:$0xff] }
 0x260   :  { %12300 = vst [vmem:[#allocation140_spill] sm:$0xff] %v9841_v10  ;;  %12301 = vst [vmem:[#allocation438_spill] sm:$0xff] %v9844_v57  ;;  %v1666_v41 = vmul.f32 %v9425_v13, %v9599_v52  ;;  %v9856_v12 = vrot.slane %v3183_v40, %v7270_v58  ;;  %v1667_v23 = vmul.f32 %v9457_v2, %v9599_v52 }
 0x261   :  { %12302 = vst [vmem:[#allocation439_spill] sm:$0xff] %v9847_v30  ;;  %v1825_v31 = vmul.f32 %v9780_v60, %v9439_v39  ;;  %v1826_v51 = vmul.f32 %v9804_v15, %v9439_v39  ;;  %v1539_v11 = vadd.f32 %v1507_v49, %v1380_v54  ;;  %v1540_v24 = vadd.f32 %v1508_v16, %v1381_v37 }
 0x262   :  { %12303 = vst [vmem:[#allocation440_spill] sm:$0xff] %v9856_v12  ;;  %v1984_v63 = vmul.f32 %v9810_v26, %v9752_v1  ;;  %v1985_v21 = vmul.f32 %v9812_v48, %v9752_v1  ;;  %v1523_v58 = vadd.f32 %v8896_v8, %v9151_v18  ;;  %v1524_v19 = vadd.f32 %v8899_v42, %v9154_v3  ;;  %v12304_v18 = vld [vmem:[#allocation103_spill] sm:$0xff]  ;;  %v12305_v42 = vld [vmem:[#allocation186_spill] sm:$0xff]  ;;  %v12306_v12 = vld [vmem:[#allocation104_spill] sm:$0xff] }
 0x263   :  { %v1809_v43 = vmul.f32 %v9780_v60, %v9428_v9  ;;  %v1810_v40 = vmul.f32 %v9804_v15, %v9428_v9  ;;  %v1698_v54 = vadd.f32 %v1666_v41, %v1539_v11  ;;  %v1699_v37 = vadd.f32 %v1667_v23, %v1540_v24 }
 0x264   :  { %v1968_v49 = vmul.f32 %v9810_v26, %v9745_v50  ;;  %v1969_v16 = vmul.f32 %v9812_v48, %v9745_v50  ;;  %v1682_v30 = vadd.f32 %v9602_v27, %v1523_v58  ;;  %v1683_v8 = vadd.f32 %v9605_v0, %v1524_v19 }
 0x265   :  { %v2342_v3 = vadd.f32 %v12305_v42, %v12304_v18  ;;  %v2343_v57 = vadd.f32 %v12307_v55, %v12306_v12  ;;  %v1857_v5 = vadd.f32 %v1825_v31, %v1698_v54  ;;  %v1858_v10 = vadd.f32 %v1826_v51, %v1699_v37 }
 0x266   :  { %v2620_v41 = vmul.f32 %v8800_v6, %v9350_v61  ;;  %v2621_v23 = vmul.f32 %v8802_v62, %v9350_v61  ;;  %v1841_v11 = vadd.f32 %v1809_v43, %v1682_v30  ;;  %v1842_v24 = vadd.f32 %v1810_v40, %v1683_v8  ;;  %v6722_v30 = vld [vmem:[%s11469_s0 + $0x68] sm:$0xff]  }
 0x267   :  { %v2497_v27 = vadd.f32 %v8738_v38, %v2342_v3  ;;  %v2498_v0 = vadd.f32 %v8741_v44, %v2343_v57  ;;  %v2016_v58 = vadd.f32 %v1984_v63, %v1857_v5  ;;  %v2017_v19 = vadd.f32 %v1985_v21, %v1858_v10  ;;  %v6724_v10 = vld [vmem:[%s11469_s0 + $0x78] sm:$0xff]  }
 0x268   :  { %v2775_v18 = vmul.f32 %v12053_v4, %v9182_v59  ;;  %v2776_v55 = vmul.f32 %v12055_v46, %v9182_v59  ;;  %v2000_v12 = vadd.f32 %v1968_v49, %v1841_v11  ;;  %v2001_v31 = vadd.f32 %v1969_v16, %v1842_v24  ;;  %v12309_v11 = vld [vmem:[#allocation45_spill] sm:$0xff] }
 0x269   :  { %v2652_v51 = vadd.f32 %v2620_v41, %v2497_v27  ;;  %v2653_v54 = vadd.f32 %v2621_v23, %v2498_v0  ;;  %v2040_v43 = vpack.c.bf16 %v2017_v19, %v2016_v58  ;;  %v2930_v44 = vmul.f32 %v9425_v13, %v9676_v32  ;;  %v12310_v24 = vld [vmem:[#allocation141_spill] sm:$0xff]  ;;  %v12311_v0 = vld [vmem:[#allocation46_spill] sm:$0xff] }
 0x26a   :  { %v2931_v38 = vmul.f32 %v9457_v2, %v9676_v32  ;;  %v3085_v5 = vmul.f32 %v9780_v60, %v9506_v7  ;;  %v2032_v57 = vpack.c.bf16 %v2001_v31, %v2000_v12  ;;  %v3086_v40 = vmul.f32 %v9804_v15, %v9506_v7  ;;  %v12312_v58 = vld [vmem:[#allocation142_spill] sm:$0xff] }
 0x26b   :  { %v2807_v63 = vadd.f32 %v2775_v18, %v2652_v51  ;;  %v2808_v21 = vadd.f32 %v2776_v55, %v2653_v54  ;;  %6777 = vmatprep.subr.bf16.mxu1 %v2040_v43  ;;  %v3240_v37 = vmul.f32 %v9810_v26, %v9831_v29  ;;  %v3241_v49 = vmul.f32 %v9812_v48, %v9831_v29  ;;  %v12313_v43 = vld [vmem:[#allocation98_spill] sm:$0xff] }
 0x26c   :  { %v9914_v16 = vunpack.c.l.bf16 %v6722_v30  ;;  %v9916_v8 = vunpack.c.h.bf16 %v6722_v30  ;;  %6778 = vmatpush3.bf16.msra.mxu1 %v2032_v57  ;;  %v9918_v41 = vunpack.c.l.bf16 %v6724_v10  ;;  %v9920_v23 = vunpack.c.h.bf16 %v6724_v10 }
 0x26d   :  { %v2962_v42 = vadd.f32 %v2930_v44, %v2807_v63  ;;  %v2963_v3 = vadd.f32 %v2931_v38, %v2808_v21  ;;  %v1064_v27 = vadd.f32 %v12310_v24, %v12309_v11  ;;  %v1065_v19 = vadd.f32 %v12312_v58, %v12311_v0  ;;  %v12314_v24 = vld [vmem:[#allocation43_spill] sm:$0xff]  ;;  %v12316_v58 = vld [vmem:[#allocation412_spill] sm:$0xff] }
 0x26e   :  { %12308 = vst [vmem:[#allocation103_spill] sm:$0xff] %v9918_v41  ;;  %v1350_v18 = vmul.f32 %v8867_v53, %v9097_v45  ;;  %v1351_v55 = vmul.f32 %v8869_v33, %v9097_v45  ;;  %v1509_v51 = vmul.f32 %v12057_v56, %v8893_v36  ;;  %v1510_v54 = vmul.f32 %v8581_v25, %v8893_v36 }
 0x26f   :  { %v3117_v12 = vadd.f32 %v3085_v5, %v2962_v42  ;;  %v3118_v31 = vadd.f32 %v3086_v40, %v2963_v3  ;;  %v1223_v30 = vadd.f32 %v8526_v17, %v1064_v27  ;;  %v1224_v44 = vadd.f32 %v12313_v43, %v1065_v19 }
 0x270   :  { %v1668_v38 = vmul.f32 %v9486_v28, %v9599_v52  ;;  %v1669_v10 = vmul.f32 %v9491_v47, %v9599_v52  ;;  %v1827_v5 = vmul.f32 %v9914_v16, %v9439_v39  ;;  %v1828_v63 = vmul.f32 %v9916_v8, %v9439_v39 }
 0x271   :  { %v3272_v57 = vadd.f32 %v3240_v37, %v3117_v12  ;;  %v3273_v45 = vadd.f32 %v3241_v49, %v3118_v31  ;;  %v1382_v21 = vadd.f32 %v1350_v18, %v1223_v30  ;;  %v1383_v36 = vadd.f32 %v1351_v55, %v1224_v44  ;;  %v12319_v12 = vld [vmem:[#allocation107_spill] sm:$0xff]  ;;  %v12320_v31 = vld [vmem:[#allocation189_spill] sm:$0xff]  ;;  %v12321_v44 = vld [vmem:[#allocation220_spill] sm:$0xff] }
 0x272   :  { %v1986_v17 = vmul.f32 %v9918_v41, %v9752_v1  ;;  %v1987_v40 = vmul.f32 %v9920_v23, %v9752_v1  ;;  %v2791_v52 = vadd.f32 %v9185_v20, %v9403_v22  ;;  %v2792_v37 = vadd.f32 %v9188_v35, %v9406_v14  ;;  %v12315_v1 = vld [vmem:[#allocation411_spill] sm:$0xff]  ;;  %v12317_v35 = vld [vmem:[#allocation106_spill] sm:$0xff]  ;;  %v12318_v22 = vld [vmem:[#allocation188_spill] sm:$0xff] }
 0x273   :  { %v3296_v42 = vpack.c.bf16 %v3273_v45, %v3272_v57  ;;  %v3069_v49 = vmul.f32 %v9780_v60, %v9503_v34  ;;  %v1541_v3 = vadd.f32 %v1509_v51, %v1382_v21  ;;  %v1542_v39 = vadd.f32 %v1510_v54, %v1383_v36 }
 0x274   :  { %v3070_v11 = vmul.f32 %v9804_v15, %v9503_v34  ;;  %v3224_v27 = vmul.f32 %v9810_v26, %v12314_v24  ;;  %v2946_v0 = vadd.f32 %v12315_v1, %v2791_v52  ;;  %v2947_v19 = vadd.f32 %v12316_v58, %v2792_v37 }
 0x275   :  { %6749 = vmatprep.subr.bf16.mxu0 %v3296_v42  ;;  %v3225_v20 = vmul.f32 %v9812_v48, %v12314_v24  ;;  %v2344_v14 = vadd.f32 %v12318_v22, %v12317_v35  ;;  %v1700_v18 = vadd.f32 %v1668_v38, %v1541_v3  ;;  %v1701_v55 = vadd.f32 %v1669_v10, %v1542_v39  ;;  %v12322_v42 = vld [vmem:[#allocation221_spill] sm:$0xff]  ;;  %v12323_v35 = vld [vmem:[#allocation299_spill] sm:$0xff]  ;;  %v12324_v22 = vld [vmem:[#allocation4_spill] sm:$0xff] }
 0x276   :  { %v2345_v51 = vadd.f32 %v12320_v31, %v12319_v12  ;;  %v2622_v54 = vmul.f32 %v8867_v53, %v9350_v61  ;;  %v3101_v30 = vadd.f32 %v3069_v49, %v2946_v0  ;;  %v3102_v43 = vadd.f32 %v3070_v11, %v2947_v19 }
 0x277   :  { %v2499_v57 = vadd.f32 %v12321_v44, %v2344_v14  ;;  %v2623_v45 = vmul.f32 %v8869_v33, %v9350_v61  ;;  %v1859_v21 = vadd.f32 %v1827_v5, %v1700_v18  ;;  %v1860_v36 = vadd.f32 %v1828_v63, %v1701_v55  ;;  %v12326_v18 = vld [vmem:[#allocation151_spill] sm:$0xff] }
 0x278   :  { %v2500_v52 = vadd.f32 %v12322_v42, %v2345_v51  ;;  %v2777_v38 = vmul.f32 %v12057_v56, %v9182_v59  ;;  %v3256_v10 = vadd.f32 %v3224_v27, %v3101_v30  ;;  %v3257_v37 = vadd.f32 %v3225_v20, %v3102_v43  ;;  %v12327_v30 = vld [vmem:[#allocation392_spill] sm:$0xff]  ;;  %v12328_v43 = vld [vmem:[#allocation393_spill] sm:$0xff] }
 0x279   :  { %v2654_v3 = vadd.f32 %v2622_v54, %v2499_v57  ;;  %v2778_v39 = vmul.f32 %v8581_v25, %v9182_v59  ;;  %v2018_v49 = vadd.f32 %v1986_v17, %v1859_v21  ;;  %v2019_v11 = vadd.f32 %v1987_v40, %v1860_v36  ;;  %v12329_v21 = vld [vmem:[#allocation47_spill] sm:$0xff] }
 0x27a   :  { %v2655_v1 = vadd.f32 %v2623_v45, %v2500_v52  ;;  %v2932_v0 = vmul.f32 %v9486_v28, %v9676_v32  ;;  %v3288_v61 = vpack.c.bf16 %v3257_v37, %v3256_v10  ;;  %v2933_v63 = vmul.f32 %v9491_v47, %v9676_v32  ;;  %v12325_v32 = vld [vmem:[#allocation300_spill] sm:$0xff]  ;;  %v12330_v36 = vld [vmem:[#allocation143_spill] sm:$0xff] }
 0x27b   :  { %v2809_v5 = vadd.f32 %v2777_v38, %v2654_v3  ;;  %v3087_v58 = vmul.f32 %v9914_v16, %v9506_v7  ;;  %v2041_v27 = vpack.c.bf16 %v2019_v11, %v2018_v49  ;;  %v3088_v20 = vmul.f32 %v9916_v8, %v9506_v7  ;;  %v12331_v52 = vld [vmem:[#allocation48_spill] sm:$0xff]  ;;  %v12333_v37 = vld [vmem:[#allocation91_spill] sm:$0xff] }
 0x27c   :  { %v2810_v19 = vadd.f32 %v2778_v39, %v2655_v1  ;;  %v3242_v59 = vmul.f32 %v9918_v41, %v9831_v29  ;;  %6750 = vmatpush3.bf16.msra.mxu0 %v3288_v61  ;;  %v3243_v40 = vmul.f32 %v9920_v23, %v9831_v29  ;;  %v1525_v14 = vadd.f32 %v12324_v22, %v12323_v35  ;;  %v12332_v38 = vld [vmem:[#allocation144_spill] sm:$0xff]  ;;  %v12335_v1 = vld [vmem:[#allocation17_spill] sm:$0xff] }
 0x27d   :  { %v2964_v17 = vadd.f32 %v2932_v0, %v2809_v5  ;;  %v1526_v55 = vadd.f32 %v12326_v18, %v12325_v32  ;;  %6779 = vmatprep.subr.bf16.mxu1 %v2041_v27  ;;  %v1811_v31 = vmul.f32 %v9914_v16, %v9428_v9  ;;  %v1812_v7 = vmul.f32 %v9916_v8, %v9428_v9  ;;  %v12334_v9 = vld [vmem:[#allocation16_spill] sm:$0xff]  ;;  %v12338_v32 = vld [vmem:[#allocation390_spill] sm:$0xff] }
 0x27e   :  { %v2965_v12 = vadd.f32 %v2933_v63, %v2810_v19  ;;  %v1970_v51 = vmul.f32 %v9918_v41, %v9745_v50  ;;  %v1684_v29 = vadd.f32 %v12327_v30, %v1525_v14  ;;  %v1971_v57 = vmul.f32 %v9920_v23, %v9745_v50  ;;  %v12336_v63 = vld [vmem:[#allocation66_spill] sm:$0xff] }
 0x27f   :  { %v3119_v54 = vadd.f32 %v3087_v58, %v2964_v17  ;;  %v1685_v44 = vadd.f32 %v12328_v43, %v1526_v55  ;;  %v1066_v42 = vadd.f32 %v12330_v36, %v12329_v21  ;;  %v1067_v10 = vadd.f32 %v12332_v38, %v12331_v52  ;;  %v12337_v17 = vld [vmem:[#allocation120_spill] sm:$0xff]  ;;  %v12340_v30 = vld [vmem:[#allocation426_spill] sm:$0xff] }
 0x280   :  { %v3120_v45 = vadd.f32 %v3088_v20, %v2965_v12  ;;  %v1193_v3 = vmul.f32 %v12334_v9, %v12333_v37  ;;  %v1843_v49 = vadd.f32 %v1811_v31, %v1684_v29  ;;  %v1194_v0 = vmul.f32 %v12335_v1, %v12333_v37  ;;  %v12339_v31 = vld [vmem:[#allocation359_spill] sm:$0xff]  ;;  %v12343_v36 = vld [vmem:[#allocation356_spill] sm:$0xff] }
 0x281   :  { %v3274_v39 = vadd.f32 %v3242_v59, %v3119_v54  ;;  %v1844_v11 = vadd.f32 %v1812_v7, %v1685_v44  ;;  %v1352_v50 = vmul.f32 %v8800_v6, %v12336_v63  ;;  %v1353_v58 = vmul.f32 %v8802_v62, %v12336_v63 }
 0x282   :  { %v3275_v61 = vadd.f32 %v3243_v40, %v3120_v45  ;;  %v1225_v5 = vadd.f32 %v1193_v3, %v1066_v42  ;;  %v2002_v27 = vadd.f32 %v1970_v51, %v1843_v49  ;;  %v1226_v20 = vadd.f32 %v1194_v0, %v1067_v10  ;;  %v12342_v45 = vld [vmem:[#allocation302_spill] sm:$0xff]  ;;  %v12344_v42 = vld [vmem:[#allocation303_spill] sm:$0xff]  ;;  %v12345_v0 = vld [vmem:[#allocation413_spill] sm:$0xff] }
 0x283   :  { %v2003_v19 = vadd.f32 %v1971_v57, %v1844_v11  ;;  %v1511_v35 = vmul.f32 %v12053_v4, %v12337_v17  ;;  %v1512_v14 = vmul.f32 %v12055_v46, %v12337_v17  ;;  %v1670_v40 = vmul.f32 %v9425_v13, %v12338_v32  ;;  %v12341_v57 = vld [vmem:[#allocation355_spill] sm:$0xff] }
 0x284   :  { %v3297_v59 = vpack.c.bf16 %v3275_v61, %v3274_v39  ;;  %v1384_v22 = vadd.f32 %v1352_v50, %v1225_v5  ;;  %v1385_v55 = vadd.f32 %v1353_v58, %v1226_v20  ;;  %v1671_v12 = vmul.f32 %v9457_v2, %v12338_v32  ;;  %v12346_v5 = vld [vmem:[#allocation415_spill] sm:$0xff]  ;;  %v12347_v58 = vld [vmem:[#allocation108_spill] sm:$0xff] }
 0x285   :  { %v2033_v18 = vpack.c.bf16 %v2003_v19, %v2002_v27  ;;  %v1829_v7 = vmul.f32 %v9780_v60, %v12339_v31  ;;  %v1830_v54 = vmul.f32 %v9804_v15, %v12339_v31  ;;  %v1988_v29 = vmul.f32 %v9810_v26, %v12340_v30  ;;  %v12348_v27 = vld [vmem:[#allocation190_spill] sm:$0xff] }
 0x286   :  { %6751 = vmatprep.subr.bf16.mxu0 %v3297_v59  ;;  %v1543_v51 = vadd.f32 %v1511_v35, %v1384_v22  ;;  %v1989_v43 = vmul.f32 %v9812_v48, %v12340_v30  ;;  %v1544_v44 = vadd.f32 %v1512_v14, %v1385_v55  ;;  %v2793_v21 = vadd.f32 %v12342_v45, %v12341_v57  ;;  %v12349_v35 = vld [vmem:[#allocation109_spill] sm:$0xff]  ;;  %v12350_v59 = vld [vmem:[#allocation191_spill] sm:$0xff] }
 0x287   :  { %6780 = vmatpush3.bf16.msra.mxu1 %v2033_v18  ;;  %v2794_v52 = vadd.f32 %v12344_v42, %v12343_v36  ;;  %v3071_v38 = vmul.f32 %v9914_v16, %v9503_v34  ;;  %v3072_v3 = vmul.f32 %v9916_v8, %v9503_v34  ;;  %v3226_v39 = vmul.f32 %v9918_v41, %v12314_v24  ;;  %v12351_v14 = vld [vmem:[#allocation65_spill] sm:$0xff] }
 0x288   :  { %v1702_v10 = vadd.f32 %v1670_v40, %v1543_v51  ;;  %v3227_v49 = vmul.f32 %v9920_v23, %v12314_v24  ;;  %v1703_v11 = vadd.f32 %v1671_v12, %v1544_v44  ;;  %v2948_v61 = vadd.f32 %v12345_v0, %v2793_v21  ;;  %v12352_v12 = vld [vmem:[#allocation340_spill] sm:$0xff] }
 0x289   :  { %v2949_v50 = vadd.f32 %v12346_v5, %v2794_v52  ;;  %v2346_v19 = vadd.f32 %v12348_v27, %v12347_v58  ;;  %v2347_v22 = vadd.f32 %v12350_v59, %v12349_v35  ;;  %v2469_v34 = vmul.f32 %v12334_v9, %v12351_v14  ;;  %v12353_v52 = vld [vmem:[#allocation37_spill] sm:$0xff]  ;;  %v12356_v27 = vld [vmem:[#allocation140_spill] sm:$0xff]  ;;  %v12357_v35 = vld [vmem:[#allocation99_spill] sm:$0xff] }
 0x28a   :  { %v1861_v20 = vadd.f32 %v1829_v7, %v1702_v10  ;;  %v2470_v40 = vmul.f32 %v12335_v1, %v12351_v14  ;;  %v1862_v18 = vadd.f32 %v1830_v54, %v1703_v11  ;;  %v3103_v24 = vadd.f32 %v3071_v38, %v2948_v61  ;;  %v12354_v38 = vld [vmem:[#allocation408_spill] sm:$0xff]  ;;  %v12358_v59 = vld [vmem:[#allocation287_spill] sm:$0xff] }
 0x28b   :  { %v3104_v55 = vadd.f32 %v3072_v3, %v2949_v50  ;;  %v2624_v51 = vmul.f32 %v8800_v6, %v12352_v12  ;;  %v2501_v57 = vadd.f32 %v2469_v34, %v2346_v19  ;;  %v2625_v7 = vmul.f32 %v8802_v62, %v12352_v12  ;;  %v12355_v50 = vld [vmem:[#allocation372_spill] sm:$0xff] }
 0x28c   :  { %v2020_v44 = vadd.f32 %v1988_v29, %v1861_v20  ;;  %v2502_v45 = vadd.f32 %v2470_v40, %v2347_v22  ;;  %v2021_v21 = vadd.f32 %v1989_v43, %v1862_v18  ;;  %v3258_v36 = vadd.f32 %v3226_v39, %v3103_v24  ;;  %v12359_v34 = vld [vmem:[#allocation100_spill] sm:$0xff] }
 0x28d   :  { %v3259_v42 = vadd.f32 %v3227_v49, %v3104_v55  ;;  %v2779_v10 = vmul.f32 %v12053_v4, %v12353_v52  ;;  %v2656_v0 = vadd.f32 %v2624_v51, %v2501_v57  ;;  %v2780_v54 = vmul.f32 %v12055_v46, %v12353_v52  ;;  %v12360_v40 = vld [vmem:[#allocation288_spill] sm:$0xff]  ;;  %v12361_v51 = vld [vmem:[#allocation387_spill] sm:$0xff] }
 0x28e   :  { %v2657_v5 = vadd.f32 %v2625_v7, %v2502_v45  ;;  %v2934_v3 = vmul.f32 %v9425_v13, %v12354_v38  ;;  %v2042_v29 = vpack.c.bf16 %v2021_v21, %v2020_v44  ;;  %v2935_v61 = vmul.f32 %v9457_v2, %v12354_v38  ;;  %v12362_v45 = vld [vmem:[#allocation244_spill] sm:$0xff]  ;;  %v12363_v21 = vld [vmem:[#allocation245_spill] sm:$0xff] }
 0x28f   :  { %v3289_v11 = vpack.c.bf16 %v3259_v42, %v3258_v36  ;;  %v3089_v43 = vmul.f32 %v9780_v60, %v12355_v50  ;;  %v2811_v39 = vadd.f32 %v2779_v10, %v2656_v0  ;;  %v3090_v58 = vmul.f32 %v9804_v15, %v12355_v50  ;;  %v12364_v42 = vld [vmem:[#allocation184_spill] sm:$0xff] }
 0x290   :  { %v2812_v49 = vadd.f32 %v2780_v54, %v2657_v5  ;;  %v3244_v19 = vmul.f32 %v9810_v26, %v12356_v27  ;;  %6781 = vmatprep.subr.bf16.mxu1 %v2042_v29  ;;  %v3245_v20 = vmul.f32 %v9812_v48, %v12356_v27  ;;  %v1368_v22 = vadd.f32 %v12358_v59, %v12357_v35  ;;  %v12367_v35 = vld [vmem:[#allocation145_spill] sm:$0xff] }
 0x291   :  { %6752 = vmatpush3.bf16.msra.mxu0 %v3289_v11  ;;  %v1369_v18 = vadd.f32 %v12360_v40, %v12359_v34  ;;  %v2966_v24 = vadd.f32 %v2934_v3, %v2811_v39  ;;  %v1654_v44 = vmul.f32 %v9425_v13, %v12361_v51  ;;  %v1655_v57 = vmul.f32 %v9457_v2, %v12361_v51  ;;  %v12365_v3 = vld [vmem:[#allocation424_spill] sm:$0xff]  ;;  %v12369_v34 = vld [vmem:[#allocation146_spill] sm:$0xff] }
 0x292   :  { %v2967_v55 = vadd.f32 %v2935_v61, %v2812_v49  ;;  %v1527_v7 = vadd.f32 %v12362_v45, %v1368_v22  ;;  %v1813_v10 = vmul.f32 %v9780_v60, %v12364_v42  ;;  %v1814_v0 = vmul.f32 %v9804_v15, %v12364_v42  ;;  %v12366_v49 = vld [vmem:[#allocation49_spill] sm:$0xff]  ;;  %v12368_v22 = vld [vmem:[#allocation50_spill] sm:$0xff] }
 0x293   :  { %v1528_v36 = vadd.f32 %v12363_v21, %v1369_v18  ;;  %v3121_v5 = vadd.f32 %v3089_v43, %v2966_v24  ;;  %v1972_v29 = vmul.f32 %v9810_v26, %v12365_v3  ;;  %v1973_v11 = vmul.f32 %v9812_v48, %v12365_v3  ;;  %v12370_v21 = vld [vmem:[#allocation18_spill] sm:$0xff] }
 0x294   :  { %v3122_v54 = vadd.f32 %v3090_v58, %v2967_v55  ;;  %v1686_v61 = vadd.f32 %v1654_v44, %v1527_v7  ;;  %v1068_v59 = vadd.f32 %v12367_v35, %v12366_v49  ;;  %v1069_v40 = vadd.f32 %v12369_v34, %v12368_v22  ;;  %v12371_v58 = vld [vmem:[#allocation19_spill] sm:$0xff] }
 0x295   :  { %v1687_v39 = vadd.f32 %v1655_v57, %v1528_v36  ;;  %v3276_v18 = vadd.f32 %v3244_v19, %v3121_v5  ;;  %v1195_v43 = vmul.f32 %v12370_v21, %v12333_v37  ;;  %v1196_v24 = vmul.f32 %v12371_v58, %v12333_v37  ;;  %v12373_v22 = vld [vmem:[#allocation343_spill] sm:$0xff] }
 0x296   :  { %v3277_v45 = vadd.f32 %v3245_v20, %v3122_v54  ;;  %v1845_v55 = vadd.f32 %v1813_v10, %v1686_v61  ;;  %v1354_v44 = vmul.f32 %v8867_v53, %v12336_v63  ;;  %v1355_v57 = vmul.f32 %v8869_v33, %v12336_v63 }
 0x297   :  { %v1846_v46 = vadd.f32 %v1814_v0, %v1687_v39  ;;  %v1227_v36 = vadd.f32 %v1195_v43, %v1068_v59  ;;  %v1228_v49 = vadd.f32 %v1196_v24, %v1069_v40  ;;  %v1513_v19 = vmul.f32 %v12057_v56, %v12337_v17  ;;  %v12372_v59 = vld [vmem:[#allocation222_spill] sm:$0xff]  ;;  %v12374_v40 = vld [vmem:[#allocation223_spill] sm:$0xff] }
 0x298   :  { %v3298_v7 = vpack.c.bf16 %v3277_v45, %v3276_v18  ;;  %v2004_v20 = vadd.f32 %v1972_v29, %v1845_v55  ;;  %v1514_v54 = vmul.f32 %v8581_v25, %v12337_v17  ;;  %v1672_v37 = vmul.f32 %v9486_v28, %v12338_v32  ;;  %v12376_v45 = vld [vmem:[#allocation406_spill] sm:$0xff] }
 0x299   :  { %v2005_v5 = vadd.f32 %v1973_v11, %v1846_v46  ;;  %v1386_v10 = vadd.f32 %v1354_v44, %v1227_v36  ;;  %v1387_v0 = vadd.f32 %v1355_v57, %v1228_v49  ;;  %v1673_v63 = vmul.f32 %v9491_v47, %v12338_v32  ;;  %v12375_v32 = vld [vmem:[#allocation344_spill] sm:$0xff]  ;;  %v12377_v24 = vld [vmem:[#allocation370_spill] sm:$0xff]  ;;  %v12379_v49 = vld [vmem:[#allocation305_spill] sm:$0xff] }
 0x29a   :  { %6753 = vmatprep.subr.bf16.mxu0 %v3298_v7  ;;  %v1831_v61 = vmul.f32 %v9914_v16, %v12339_v31  ;;  %v1832_v29 = vmul.f32 %v9916_v8, %v12339_v31  ;;  %v1990_v46 = vmul.f32 %v9918_v41, %v12340_v30  ;;  %v1991_v17 = vmul.f32 %v9920_v23, %v12340_v30  ;;  %v12378_v7 = vld [vmem:[#allocation304_spill] sm:$0xff] }
 0x29b   :  { %v2034_v39 = vpack.c.bf16 %v2005_v5, %v2004_v20  ;;  %v1545_v11 = vadd.f32 %v1513_v19, %v1386_v10  ;;  %v1546_v35 = vadd.f32 %v1514_v54, %v1387_v0  ;;  %v2640_v34 = vadd.f32 %v12373_v22, %v12372_v59  ;;  %v12380_v20 = vld [vmem:[#allocation139_spill] sm:$0xff]  ;;  %v12381_v10 = vld [vmem:[#allocation110_spill] sm:$0xff]  ;;  %v12382_v0 = vld [vmem:[#allocation192_spill] sm:$0xff] }
 0x29c   :  { %v2641_v18 = vadd.f32 %v12375_v32, %v12374_v40  ;;  %v2918_v43 = vmul.f32 %v9425_v13, %v12376_v45  ;;  %v2919_v31 = vmul.f32 %v9457_v2, %v12376_v45  ;;  %v3073_v55 = vmul.f32 %v9780_v60, %v12377_v24  ;;  %v12383_v59 = vld [vmem:[#allocation111_spill] sm:$0xff]  ;;  %v12384_v22 = vld [vmem:[#allocation193_spill] sm:$0xff] }
 0x29d   :  { %6782 = vmatpush3.bf16.msra.mxu1 %v2034_v39  ;;  %v3074_v30 = vmul.f32 %v9804_v15, %v12377_v24  ;;  %v1704_v44 = vadd.f32 %v1672_v37, %v1545_v11  ;;  %v1705_v57 = vadd.f32 %v1673_v63, %v1546_v35  ;;  %v2795_v36 = vadd.f32 %v12378_v7, %v2640_v34  ;;  %v6990_v7 = vld [vmem:[%s11470_s5 + $0x4] ss:$8 sps:$4 sm:$0xff]  }
 0x29e   :  { %v2796_v19 = vadd.f32 %v12379_v49, %v2641_v18  ;;  %v3228_v5 = vmul.f32 %v9810_v26, %v12380_v20  ;;  %v3229_v54 = vmul.f32 %v9812_v48, %v12380_v20  ;;  %v2348_v39 = vadd.f32 %v12382_v0, %v12381_v10  ;;  %3425 = vmatprep.mubr.bf16.mxu1 %v6990_v7  ;;  %v12389_v7 = vld [vmem:[#allocation247_spill] sm:$0xff] }
 0x29f   :  { %v2349_v40 = vadd.f32 %v12384_v22, %v12383_v59  ;;  %v1863_v32 = vadd.f32 %v1831_v61, %v1704_v44  ;;  %v1864_v24 = vadd.f32 %v1832_v29, %v1705_v57  ;;  %v2950_v37 = vadd.f32 %v2918_v43, %v2795_v36  ;;  %v12385_v59 = vld [vmem:[#allocation101_spill] sm:$0xff] }
 0x2a0   :  { %v2951_v63 = vadd.f32 %v2919_v31, %v2796_v19  ;;  %v2471_v11 = vmul.f32 %v12370_v21, %v12351_v14  ;;  %v2472_v35 = vmul.f32 %v12371_v58, %v12351_v14  ;;  %v2626_v34 = vmul.f32 %v8867_v53, %v12352_v12  ;;  %v12386_v22 = vld [vmem:[#allocation289_spill] sm:$0xff] }
 0x2a1   :  { %v2627_v18 = vmul.f32 %v8869_v33, %v12352_v12  ;;  %v2022_v61 = vadd.f32 %v1990_v46, %v1863_v32  ;;  %v2023_v29 = vadd.f32 %v1991_v17, %v1864_v24  ;;  %v3105_v43 = vadd.f32 %v3073_v55, %v2950_v37  ;;  %v6993_v55 = vld [vmem:[%s11470_s5 + $0x24] ss:$8 sps:$4 sm:$0xff]   ;;  %v12387_v32 = vld [vmem:[#allocation102_spill] sm:$0xff] }
 0x2a2   :  { %v3106_v31 = vadd.f32 %v3074_v30, %v2951_v63  ;;  %v2503_v44 = vadd.f32 %v2471_v11, %v2348_v39  ;;  %v2504_v57 = vadd.f32 %v2472_v35, %v2349_v40  ;;  %v2781_v36 = vmul.f32 %v12057_v56, %v12353_v52  ;;  %v12388_v37 = vld [vmem:[#allocation290_spill] sm:$0xff]  ;;  %3356 = vmatprep.mubr.bf16.mxu0 %v6993_v55 }
 0x2a3   :  { %v2782_v14 = vmul.f32 %v8581_v25, %v12353_v52  ;;  %v2043_v49 = vpack.c.bf16 %v2023_v29, %v2022_v61  ;;  %v3260_v19 = vadd.f32 %v3228_v5, %v3105_v43  ;;  %v2936_v10 = vmul.f32 %v9486_v28, %v12354_v38  ;;  %v12390_v29 = vld [vmem:[#allocation248_spill] sm:$0xff] }
 0x2a4   :  { %v3261_v12 = vadd.f32 %v3229_v54, %v3106_v31  ;;  %v2658_v0 = vadd.f32 %v2626_v34, %v2503_v44  ;;  %v2659_v46 = vadd.f32 %v2627_v18, %v2504_v57  ;;  %v2937_v17 = vmul.f32 %v9491_v47, %v12354_v38  ;;  %v12391_v57 = vld [vmem:[#allocation51_spill] sm:$0xff] }
 0x2a5   :  { %v3091_v24 = vmul.f32 %v9914_v16, %v12355_v50  ;;  %6783 = vmatprep.subr.bf16.mxu1 %v2043_v49  ;;  %v3092_v30 = vmul.f32 %v9916_v8, %v12355_v50  ;;  %v3246_v5 = vmul.f32 %v9918_v41, %v12356_v27  ;;  %v3247_v54 = vmul.f32 %v9920_v23, %v12356_v27  ;;  %v12394_v49 = vld [vmem:[#allocation148_spill] sm:$0xff] }
 0x2a6   :  { %v3290_v52 = vpack.c.bf16 %v3261_v12, %v3260_v19  ;;  %v2813_v39 = vadd.f32 %v2781_v36, %v2658_v0  ;;  %v2814_v38 = vadd.f32 %v2782_v14, %v2659_v46  ;;  %v1370_v40 = vadd.f32 %v12386_v22, %v12385_v59  ;;  %v12393_v14 = vld [vmem:[#allocation52_spill] sm:$0xff] }
 0x2a7   :  { %v1371_v63 = vadd.f32 %v12388_v37, %v12387_v32  ;;  %v1656_v11 = vmul.f32 %v9486_v28, %v12361_v51  ;;  %v1657_v50 = vmul.f32 %v9491_v47, %v12361_v51  ;;  %v1815_v35 = vmul.f32 %v9914_v16, %v12364_v42  ;;  %v12392_v51 = vld [vmem:[#allocation147_spill] sm:$0xff]  ;;  %v12395_v46 = vld [vmem:[#allocation92_spill] sm:$0xff]  ;;  %v12397_v32 = vld [vmem:[#allocation133_spill] sm:$0xff] }
 0x2a8   :  { %6754 = vmatpush3.bf16.msra.mxu0 %v3290_v52  ;;  %v1816_v27 = vmul.f32 %v9916_v8, %v12364_v42  ;;  %v2968_v34 = vadd.f32 %v2936_v10, %v2813_v39  ;;  %v2969_v18 = vadd.f32 %v2937_v17, %v2814_v38  ;;  %v1529_v61 = vadd.f32 %v12389_v7, %v1370_v40  ;;  %v12396_v52 = vld [vmem:[#allocation285_spill] sm:$0xff]  ;;  %v12399_v7 = vld [vmem:[#allocation391_spill] sm:$0xff] }
 0x2a9   :  { %v1530_v43 = vadd.f32 %v12390_v29, %v1371_v63  ;;  %v1974_v31 = vmul.f32 %v9918_v41, %v12365_v3  ;;  %v1975_v44 = vmul.f32 %v9920_v23, %v12365_v3  ;;  %v1070_v36 = vadd.f32 %v12392_v51, %v12391_v57  ;;  %v12398_v63 = vld [vmem:[#allocation20_spill] sm:$0xff] }
 0x2aa   :  { %v1071_v19 = vadd.f32 %v12394_v49, %v12393_v14  ;;  %v3123_v12 = vadd.f32 %v3091_v24, %v2968_v34  ;;  %v3124_v42 = vadd.f32 %v3092_v30, %v2969_v18  ;;  %v1688_v10 = vadd.f32 %v1656_v11, %v1529_v61  ;;  %v12401_v51 = vld [vmem:[#allocation428_spill] sm:$0xff] }
 0x2ab   :  { %v1689_v0 = vadd.f32 %v1657_v50, %v1530_v43  ;;  %v1197_v17 = vmul.f32 %v12334_v9, %v12395_v46  ;;  %v1198_v55 = vmul.f32 %v12335_v1, %v12395_v46  ;;  %v1356_v39 = vmul.f32 %v8800_v6, %v12396_v52  ;;  %v12402_v49 = vld [vmem:[#allocation224_spill] sm:$0xff] }
 0x2ac   :  { %v1357_v3 = vmul.f32 %v8802_v62, %v12396_v52  ;;  %v3278_v38 = vadd.f32 %v3246_v5, %v3123_v12  ;;  %v3279_v59 = vadd.f32 %v3247_v54, %v3124_v42  ;;  %v1847_v22 = vadd.f32 %v1815_v35, %v1688_v10  ;;  %v12400_v54 = vld [vmem:[#allocation360_spill] sm:$0xff]  ;;  %v12404_v42 = vld [vmem:[#allocation225_spill] sm:$0xff]  ;;  %v12405_v10 = vld [vmem:[#allocation346_spill] sm:$0xff] }
 0x2ad   :  { %v1848_v40 = vadd.f32 %v1816_v27, %v1689_v0  ;;  %v1229_v24 = vadd.f32 %v1197_v17, %v1070_v36  ;;  %v1230_v30 = vadd.f32 %v1198_v55, %v1071_v19  ;;  %v1515_v37 = vmul.f32 %v12053_v4, %v12397_v32  ;;  %v12403_v19 = vld [vmem:[#allocation345_spill] sm:$0xff] }
 0x2ae   :  { %v1516_v11 = vmul.f32 %v12398_v63, %v12397_v32  ;;  %v3299_v50 = vpack.c.bf16 %v3279_v59, %v3278_v38  ;;  %v2006_v34 = vadd.f32 %v1974_v31, %v1847_v22  ;;  %v1674_v61 = vmul.f32 %v9425_v13, %v12399_v7 }
 0x2af   :  { %v2007_v18 = vadd.f32 %v1975_v44, %v1848_v40  ;;  %v1388_v29 = vadd.f32 %v1356_v39, %v1229_v24  ;;  %v1389_v43 = vadd.f32 %v1357_v3, %v1230_v30  ;;  %v1675_v5 = vmul.f32 %v9457_v2, %v12399_v7  ;;  %v12406_v39 = vld [vmem:[#allocation370_spill] sm:$0xff]  ;;  %v12407_v40 = vld [vmem:[#allocation307_spill] sm:$0xff]  ;;  %v12408_v30 = vld [vmem:[#allocation308_spill] sm:$0xff] }
 0x2b0   :  { %v1833_v35 = vmul.f32 %v9780_v60, %v12400_v54  ;;  %6755 = vmatprep.subr.bf16.mxu0 %v3299_v50  ;;  %v1834_v57 = vmul.f32 %v9804_v15, %v12400_v54  ;;  %v1992_v31 = vmul.f32 %v9810_v26, %v12401_v51  ;;  %v1993_v44 = vmul.f32 %v9812_v48, %v12401_v51 }
 0x2b1   :  { %v2035_v27 = vpack.c.bf16 %v2007_v18, %v2006_v34  ;;  %v1547_v36 = vadd.f32 %v1515_v37, %v1388_v29  ;;  %v1548_v14 = vadd.f32 %v1516_v11, %v1389_v43  ;;  %v2642_v12 = vadd.f32 %v12403_v19, %v12402_v49  ;;  %v12409_v34 = vld [vmem:[#allocation112_spill] sm:$0xff]  ;;  %v12411_v29 = vld [vmem:[#allocation113_spill] sm:$0xff]  ;;  %v12412_v43 = vld [vmem:[#allocation195_spill] sm:$0xff] }
 0x2b2   :  { %v2643_v0 = vadd.f32 %v12405_v10, %v12404_v42  ;;  %v2920_v17 = vmul.f32 %v9486_v28, %v12376_v45  ;;  %v2921_v55 = vmul.f32 %v9491_v47, %v12376_v45  ;;  %v3075_v3 = vmul.f32 %v9914_v16, %v12406_v39  ;;  %v12410_v45 = vld [vmem:[#allocation194_spill] sm:$0xff]  ;;  %v12414_v42 = vld [vmem:[#allocation341_spill] sm:$0xff] }
 0x2b3   :  { %6784 = vmatpush3.bf16.msra.mxu1 %v2035_v27  ;;  %v3076_v38 = vmul.f32 %v9916_v8, %v12406_v39  ;;  %v1706_v59 = vadd.f32 %v1674_v61, %v1547_v36  ;;  %v1707_v22 = vadd.f32 %v1675_v5, %v1548_v14  ;;  %v2797_v24 = vadd.f32 %v12407_v40, %v2642_v12  ;;  %v12413_v36 = vld [vmem:[#allocation214_spill] sm:$0xff] }
 0x2b4   :  { %v2798_v37 = vadd.f32 %v12408_v30, %v2643_v0  ;;  %v3230_v11 = vmul.f32 %v9918_v41, %v12380_v20  ;;  %v3231_v50 = vmul.f32 %v9920_v23, %v12380_v20  ;;  %v2350_v18 = vadd.f32 %v12410_v45, %v12409_v34  ;;  %v12416_v34 = vld [vmem:[#allocation409_spill] sm:$0xff] }
 0x2b5   :  { %v2351_v27 = vadd.f32 %v12412_v43, %v12411_v29  ;;  %v1865_v49 = vadd.f32 %v1833_v35, %v1706_v59  ;;  %v1866_v19 = vadd.f32 %v1834_v57, %v1707_v22  ;;  %v2952_v61 = vadd.f32 %v2920_v17, %v2797_v24  ;;  %v12415_v17 = vld [vmem:[#allocation301_spill] sm:$0xff] }
 0x2b6   :  { %v2953_v5 = vadd.f32 %v2921_v55, %v2798_v37  ;;  %v2473_v14 = vmul.f32 %v12334_v9, %v12413_v36  ;;  %v2474_v12 = vmul.f32 %v12335_v1, %v12413_v36  ;;  %v2628_v10 = vmul.f32 %v8800_v6, %v12414_v42 }
 0x2b7   :  { %v2629_v20 = vmul.f32 %v8802_v62, %v12414_v42  ;;  %v2024_v0 = vadd.f32 %v1992_v31, %v1865_v49  ;;  %v2025_v39 = vadd.f32 %v1993_v44, %v1866_v19  ;;  %v3107_v40 = vadd.f32 %v3075_v3, %v2952_v61  ;;  %v12417_v44 = vld [vmem:[#allocation373_spill] sm:$0xff]  ;;  %v12419_v61 = vld [vmem:[#allocation198_spill] sm:$0xff] }
 0x2b8   :  { %v3108_v30 = vadd.f32 %v3076_v38, %v2953_v5  ;;  %v2505_v35 = vadd.f32 %v2473_v14, %v2350_v18  ;;  %v2506_v57 = vadd.f32 %v2474_v12, %v2351_v27  ;;  %v2783_v55 = vmul.f32 %v12053_v4, %v12415_v17  ;;  %v12418_v27 = vld [vmem:[#allocation438_spill] sm:$0xff]  ;;  %v12420_v5 = vld [vmem:[#allocation291_spill] sm:$0xff] }
 0x2b9   :  { %v2784_v59 = vmul.f32 %v12398_v63, %v12415_v17  ;;  %v2044_v22 = vpack.c.bf16 %v2025_v39, %v2024_v0  ;;  %v3262_v24 = vadd.f32 %v3230_v11, %v3107_v40  ;;  %v2938_v45 = vmul.f32 %v9425_v13, %v12416_v34  ;;  %v12421_v12 = vld [vmem:[#allocation199_spill] sm:$0xff]  ;;  %v12423_v0 = vld [vmem:[#allocation388_spill] sm:$0xff]  ;;  %v12430_v63 = vld [vmem:[#allocation54_spill] sm:$0xff] }
 0x2ba   :  { %v3263_v37 = vadd.f32 %v3231_v50, %v3108_v30  ;;  %v2660_v29 = vadd.f32 %v2628_v10, %v2505_v35  ;;  %v2661_v43 = vadd.f32 %v2629_v20, %v2506_v57  ;;  %v2939_v31 = vmul.f32 %v9457_v2, %v12416_v34  ;;  %v12422_v10 = vld [vmem:[#allocation292_spill] sm:$0xff]  ;;  %v12424_v30 = vld [vmem:[#allocation357_spill] sm:$0xff]  ;;  %v12431_v4 = vld [vmem:[#allocation150_spill] sm:$0xff] }
 0x2bb   :  { %v3093_v3 = vmul.f32 %v9780_v60, %v12417_v44  ;;  %6785 = vmatprep.subr.bf16.mxu1 %v2044_v22  ;;  %v3094_v18 = vmul.f32 %v9804_v15, %v12417_v44  ;;  %v3248_v11 = vmul.f32 %v9810_v26, %v12418_v27  ;;  %v3249_v50 = vmul.f32 %v9812_v48, %v12418_v27  ;;  %v12425_v22 = vld [vmem:[#allocation249_spill] sm:$0xff] }
 0x2bc   :  { %v3291_v38 = vpack.c.bf16 %v3263_v37, %v3262_v24  ;;  %v2815_v49 = vadd.f32 %v2783_v55, %v2660_v29  ;;  %v2816_v19 = vadd.f32 %v2784_v59, %v2661_v43  ;;  %v1372_v14 = vadd.f32 %v12420_v5, %v12419_v61  ;;  %v12426_v37 = vld [vmem:[#allocation250_spill] sm:$0xff]  ;;  %v12427_v43 = vld [vmem:[#allocation425_spill] sm:$0xff] }
 0x2bd   :  { %v1373_v20 = vadd.f32 %v12422_v10, %v12421_v12  ;;  %v1658_v39 = vmul.f32 %v9425_v13, %v12423_v0  ;;  %v1659_v40 = vmul.f32 %v9457_v2, %v12423_v0  ;;  %v1817_v35 = vmul.f32 %v9780_v60, %v12424_v30  ;;  %v12428_v5 = vld [vmem:[#allocation53_spill] sm:$0xff] }
 0x2be   :  { %6756 = vmatpush3.bf16.msra.mxu0 %v3291_v38  ;;  %v1818_v57 = vmul.f32 %v9804_v15, %v12424_v30  ;;  %v2970_v55 = vadd.f32 %v2938_v45, %v2815_v49  ;;  %v2971_v59 = vadd.f32 %v2939_v31, %v2816_v19  ;;  %v1531_v24 = vadd.f32 %v12425_v22, %v1372_v14  ;;  %v12429_v12 = vld [vmem:[#allocation149_spill] sm:$0xff] }
 0x2bf   :  { %v1532_v29 = vadd.f32 %v12426_v37, %v1373_v20  ;;  %v1976_v38 = vmul.f32 %v9810_v26, %v12427_v43  ;;  %v1977_v61 = vmul.f32 %v9812_v48, %v12427_v43  ;;  %v1072_v10 = vadd.f32 %v12429_v12, %v12428_v5  ;;  %v12435_v12 = vld [vmem:[#allocation348_spill] sm:$0xff] }
 0x2c0   :  { %v1073_v62 = vadd.f32 %v12431_v4, %v12430_v63  ;;  %v3125_v6 = vadd.f32 %v3093_v3, %v2970_v55  ;;  %v3126_v1 = vadd.f32 %v3094_v18, %v2971_v59  ;;  %v1690_v45 = vadd.f32 %v1658_v39, %v1531_v24 }
 0x2c1   :  { %v1691_v31 = vadd.f32 %v1659_v40, %v1532_v29  ;;  %v1199_v49 = vmul.f32 %v12370_v21, %v12395_v46  ;;  %v1200_v19 = vmul.f32 %v12371_v58, %v12395_v46  ;;  %v1358_v14 = vmul.f32 %v8867_v53, %v12396_v52  ;;  %v12432_v29 = vld [vmem:[#allocation226_spill] sm:$0xff] }
 0x2c2   :  { %v1359_v20 = vmul.f32 %v8869_v33, %v12396_v52  ;;  %v3280_v22 = vadd.f32 %v3248_v11, %v3125_v6  ;;  %v3281_v37 = vadd.f32 %v3249_v50, %v3126_v1  ;;  %v1849_v5 = vadd.f32 %v1817_v35, %v1690_v45  ;;  %v12436_v45 = vld [vmem:[#allocation407_spill] sm:$0xff] }
 0x2c3   :  { %v1850_v4 = vadd.f32 %v1818_v57, %v1691_v31  ;;  %v1231_v63 = vadd.f32 %v1199_v49, %v1072_v10  ;;  %v1232_v3 = vadd.f32 %v1200_v19, %v1073_v62  ;;  %v1517_v18 = vmul.f32 %v12057_v56, %v12397_v32  ;;  %v12437_v49 = vld [vmem:[#allocation371_spill] sm:$0xff] }
 0x2c4   :  { %v1518_v39 = vmul.f32 %v8581_v25, %v12397_v32  ;;  %v3300_v40 = vpack.c.bf16 %v3281_v37, %v3280_v22  ;;  %v2008_v46 = vadd.f32 %v1976_v38, %v1849_v5  ;;  %v1676_v59 = vmul.f32 %v9486_v28, %v12399_v7  ;;  %v12433_v38 = vld [vmem:[#allocation347_spill] sm:$0xff]  ;;  %v12438_v22 = vld [vmem:[#allocation309_spill] sm:$0xff]  ;;  %v12439_v5 = vld [vmem:[#allocation310_spill] sm:$0xff] }
 0x2c5   :  { %v2009_v55 = vadd.f32 %v1977_v61, %v1850_v4  ;;  %v1390_v24 = vadd.f32 %v1358_v14, %v1231_v63  ;;  %v1391_v52 = vadd.f32 %v1359_v20, %v1232_v3  ;;  %v1677_v6 = vmul.f32 %v9491_v47, %v12399_v7  ;;  %v12434_v7 = vld [vmem:[#allocation227_spill] sm:$0xff]  ;;  %v12440_v63 = vld [vmem:[#allocation44_spill] sm:$0xff] }
 0x2c6   :  { %v1835_v62 = vmul.f32 %v9914_v16, %v12400_v54  ;;  %6757 = vmatprep.subr.bf16.mxu0 %v3300_v40  ;;  %v1836_v11 = vmul.f32 %v9916_v8, %v12400_v54  ;;  %v1994_v32 = vmul.f32 %v9918_v41, %v12401_v51  ;;  %v1995_v50 = vmul.f32 %v9920_v23, %v12401_v51  ;;  %v12442_v40 = vld [vmem:[#allocation196_spill] sm:$0xff] }
 0x2c7   :  { %v2036_v1 = vpack.c.bf16 %v2009_v55, %v2008_v46  ;;  %v1549_v35 = vadd.f32 %v1517_v18, %v1390_v24  ;;  %v1550_v57 = vadd.f32 %v1518_v39, %v1391_v52  ;;  %v2644_v61 = vadd.f32 %v12433_v38, %v12432_v29  ;;  %v12441_v39 = vld [vmem:[#allocation114_spill] sm:$0xff]  ;;  %v12443_v55 = vld [vmem:[#allocation115_spill] sm:$0xff]  ;;  %v12444_v24 = vld [vmem:[#allocation197_spill] sm:$0xff] }
 0x2c8   :  { %v2645_v10 = vadd.f32 %v12435_v12, %v12434_v7  ;;  %v2922_v31 = vmul.f32 %v9425_v13, %v12436_v45  ;;  %v2923_v54 = vmul.f32 %v9457_v2, %v12436_v45  ;;  %v3077_v19 = vmul.f32 %v9780_v60, %v12437_v49 }
 0x2c9   :  { %6786 = vmatpush3.bf16.msra.mxu1 %v2036_v1  ;;  %v3078_v51 = vmul.f32 %v9804_v15, %v12437_v49  ;;  %v1708_v14 = vadd.f32 %v1676_v59, %v1549_v35  ;;  %v1709_v20 = vadd.f32 %v1677_v6, %v1550_v57  ;;  %v2799_v37 = vadd.f32 %v12438_v22, %v2644_v61 }
 0x2ca   :  { %v2800_v4 = vadd.f32 %v12439_v5, %v2645_v10  ;;  %v3232_v3 = vmul.f32 %v9810_v26, %v12440_v63  ;;  %v3233_v18 = vmul.f32 %v9812_v48, %v12440_v63  ;;  %v2352_v46 = vadd.f32 %v12442_v40, %v12441_v39  ;;  %v12445_v39 = vld [vmem:[#allocation200_spill] sm:$0xff]  ;;  %v12446_v40 = vld [vmem:[#allocation293_spill] sm:$0xff] }
 0x2cb   :  { %v2353_v52 = vadd.f32 %v12444_v24, %v12443_v55  ;;  %v1867_v1 = vadd.f32 %v1835_v62, %v1708_v14  ;;  %v1868_v29 = vadd.f32 %v1836_v11, %v1709_v20  ;;  %v2954_v59 = vadd.f32 %v2922_v31, %v2799_v37  ;;  %v12448_v55 = vld [vmem:[#allocation294_spill] sm:$0xff] }
 0x2cc   :  { %v2955_v6 = vadd.f32 %v2923_v54, %v2800_v4  ;;  %v2475_v35 = vmul.f32 %v12370_v21, %v12413_v36  ;;  %v2476_v57 = vmul.f32 %v12371_v58, %v12413_v36  ;;  %v2630_v38 = vmul.f32 %v8867_v53, %v12414_v42 }
 0x2cd   :  { %v2631_v61 = vmul.f32 %v8869_v33, %v12414_v42  ;;  %v2026_v7 = vadd.f32 %v1994_v32, %v1867_v1  ;;  %v2027_v12 = vadd.f32 %v1995_v50, %v1868_v29  ;;  %v3109_v10 = vadd.f32 %v3077_v19, %v2954_v59 }
 0x2ce   :  { %v3110_v22 = vadd.f32 %v3078_v51, %v2955_v6  ;;  %v2507_v62 = vadd.f32 %v2475_v35, %v2352_v46  ;;  %v2508_v11 = vadd.f32 %v2476_v57, %v2353_v52  ;;  %v2785_v31 = vmul.f32 %v12057_v56, %v12415_v17  ;;  %v12449_v6 = vld [vmem:[#allocation251_spill] sm:$0xff]  ;;  %v12450_v57 = vld [vmem:[#allocation252_spill] sm:$0xff] }
 0x2cf   :  { %v2786_v54 = vmul.f32 %v8581_v25, %v12415_v17  ;;  %v2045_v14 = vpack.c.bf16 %v2027_v12, %v2026_v7  ;;  %v3264_v36 = vadd.f32 %v3232_v3, %v3109_v10  ;;  %v2940_v37 = vmul.f32 %v9486_v28, %v12416_v34  ;;  %v12451_v12 = vld [vmem:[#allocation38_spill] sm:$0xff] }
 0x2d0   :  { %v3265_v20 = vadd.f32 %v3233_v18, %v3110_v22  ;;  %v2662_v5 = vadd.f32 %v2630_v38, %v2507_v62  ;;  %v2663_v42 = vadd.f32 %v2631_v61, %v2508_v11  ;;  %v2941_v32 = vmul.f32 %v9491_v47, %v12416_v34  ;;  %v12447_v34 = vld [vmem:[#allocation201_spill] sm:$0xff]  ;;  %v12453_v22 = vld [vmem:[#allocation8_spill] sm:$0xff] }
 0x2d1   :  { %v3095_v50 = vmul.f32 %v9914_v16, %v12417_v44  ;;  %6787 = vmatprep.subr.bf16.mxu1 %v2045_v14  ;;  %v3096_v51 = vmul.f32 %v9916_v8, %v12417_v44  ;;  %v3250_v17 = vmul.f32 %v9918_v41, %v12418_v27  ;;  %v3251_v4 = vmul.f32 %v9920_v23, %v12418_v27  ;;  %v12454_v14 = vld [vmem:[#allocation138_spill] sm:$0xff] }
 0x2d2   :  { %v3292_v19 = vpack.c.bf16 %v3265_v20, %v3264_v36  ;;  %v2817_v3 = vadd.f32 %v2785_v31, %v2662_v5  ;;  %v2818_v18 = vadd.f32 %v2786_v54, %v2663_v42  ;;  %v1374_v46 = vadd.f32 %v12446_v40, %v12445_v39  ;;  %v12455_v36 = vld [vmem:[#allocation12_spill] sm:$0xff]  ;;  %v12457_v42 = vld [vmem:[#allocation93_spill] sm:$0xff] }
 0x2d3   :  { %v1375_v24 = vadd.f32 %v12448_v55, %v12447_v34  ;;  %v1660_v52 = vmul.f32 %v9486_v28, %v12423_v0  ;;  %v1661_v44 = vmul.f32 %v9491_v47, %v12423_v0  ;;  %v1819_v1 = vmul.f32 %v9914_v16, %v12424_v30  ;;  %v12452_v0 = vld [vmem:[#allocation7_spill] sm:$0xff]  ;;  %v12460_v34 = vld [vmem:[#allocation6_spill] sm:$0xff] }
 0x2d4   :  { %6758 = vmatpush3.bf16.msra.mxu0 %v3292_v19  ;;  %v1820_v27 = vmul.f32 %v9916_v8, %v12424_v30  ;;  %v2972_v29 = vadd.f32 %v2940_v37, %v2817_v3  ;;  %v2973_v59 = vadd.f32 %v2941_v32, %v2818_v18  ;;  %v1533_v35 = vadd.f32 %v12449_v6, %v1374_v46  ;;  %v12456_v37 = vld [vmem:[#allocation13_spill] sm:$0xff]  ;;  %v12459_v46 = vld [vmem:[#allocation286_spill] sm:$0xff] }
 0x2d5   :  { %v1534_v38 = vadd.f32 %v12450_v57, %v1375_v24  ;;  %v1978_v61 = vmul.f32 %v9918_v41, %v12427_v43  ;;  %v1979_v7 = vmul.f32 %v9920_v23, %v12427_v43  ;;  %v883_v10 = vmul.f32 %v12452_v0, %v12451_v12  ;;  %v12458_v43 = vld [vmem:[#allocation17_spill] sm:$0xff]  ;;  %v12461_v24 = vld [vmem:[#allocation78_spill] sm:$0xff] }
 0x2d6   :  { %v884_v62 = vmul.f32 %v12453_v22, %v12451_v12  ;;  %v3127_v11 = vadd.f32 %v3095_v50, %v2972_v29  ;;  %v3128_v30 = vadd.f32 %v3096_v51, %v2973_v59  ;;  %v1692_v31 = vadd.f32 %v1660_v52, %v1533_v35  ;;  %v12462_v6 = vld [vmem:[#allocation246_spill] sm:$0xff]  ;;  %v12463_v35 = vld [vmem:[#allocation23_spill] sm:$0xff] }
 0x2d7   :  { %v1693_v54 = vadd.f32 %v1661_v44, %v1534_v38  ;;  %v1042_v20 = vmul.f32 %v12455_v36, %v12454_v14  ;;  %v1043_v5 = vmul.f32 %v12456_v37, %v12454_v14  ;;  %v1201_v32 = vmul.f32 %v12334_v9, %v12457_v42 }
 0x2d8   :  { %v1202_v19 = vmul.f32 %v12458_v43, %v12457_v42  ;;  %v3282_v3 = vadd.f32 %v3250_v17, %v3127_v11  ;;  %v3283_v18 = vadd.f32 %v3251_v4, %v3128_v30  ;;  %v1851_v39 = vadd.f32 %v1819_v1, %v1692_v31  ;;  %v12464_v17 = vld [vmem:[#allocation20_spill] sm:$0xff]  ;;  %v12465_v1 = vld [vmem:[#allocation394_spill] sm:$0xff]  ;;  %v12466_v11 = vld [vmem:[#allocation361_spill] sm:$0xff] }
 0x2d9   :  { %v1852_v40 = vadd.f32 %v1820_v27, %v1693_v54  ;;  %v1074_v50 = vadd.f32 %v1042_v20, %v883_v10  ;;  %v1075_v51 = vadd.f32 %v1043_v5, %v884_v62  ;;  %v1360_v55 = vmul.f32 %v12460_v34, %v12459_v46  ;;  %v12467_v54 = vld [vmem:[#allocation429_spill] sm:$0xff] }
 0x2da   :  { %v1361_v52 = vmul.f32 %v12461_v24, %v12459_v46  ;;  %v3301_v44 = vpack.c.bf16 %v3283_v18, %v3282_v3  ;;  %v2010_v29 = vadd.f32 %v1978_v61, %v1851_v39  ;;  %v1519_v57 = vmul.f32 %v12463_v35, %v12462_v6  ;;  %v12470_v18 = vld [vmem:[#allocation229_spill] sm:$0xff]  ;;  %v12471_v39 = vld [vmem:[#allocation350_spill] sm:$0xff] }
 0x2db   :  { %v2011_v59 = vadd.f32 %v1979_v7, %v1852_v40  ;;  %v1233_v38 = vadd.f32 %v1201_v32, %v1074_v50  ;;  %v1234_v25 = vadd.f32 %v1202_v19, %v1075_v51  ;;  %v1520_v4 = vmul.f32 %v12464_v17, %v12462_v6  ;;  %v12468_v32 = vld [vmem:[#allocation228_spill] sm:$0xff]  ;;  %v12469_v19 = vld [vmem:[#allocation349_spill] sm:$0xff] }
 0x2dc   :  { %v1678_v27 = vmul.f32 %v9425_v13, %v12465_v1  ;;  %6759 = vmatprep.subr.bf16.mxu0 %v3301_v44  ;;  %v1679_v62 = vmul.f32 %v9457_v2, %v12465_v1  ;;  %v1837_v61 = vmul.f32 %v9780_v60, %v12466_v11  ;;  %v1838_v7 = vmul.f32 %v9804_v15, %v12466_v11 }
 0x2dd   :  { %v2037_v10 = vpack.c.bf16 %v2011_v59, %v2010_v29  ;;  %v1392_v30 = vadd.f32 %v1360_v55, %v1233_v38  ;;  %v1393_v31 = vadd.f32 %v1361_v52, %v1234_v25  ;;  %v1996_v20 = vmul.f32 %v9810_v26, %v12467_v54  ;;  %v12472_v29 = vld [vmem:[#allocation311_spill] sm:$0xff]  ;;  %v12473_v38 = vld [vmem:[#allocation312_spill] sm:$0xff] }
 0x2de   :  { %v1997_v5 = vmul.f32 %v9812_v48, %v12467_v54  ;;  %v2646_v3 = vadd.f32 %v12469_v19, %v12468_v32  ;;  %v2647_v40 = vadd.f32 %v12471_v39, %v12470_v18  ;;  %v2924_v50 = vmul.f32 %v9486_v28, %v12436_v45  ;;  %v12475_v39 = vld [vmem:[#allocation185_spill] sm:$0xff] }
 0x2df   :  { %6788 = vmatpush3.bf16.msra.mxu1 %v2037_v10  ;;  %v2925_v51 = vmul.f32 %v9491_v47, %v12436_v45  ;;  %v1551_v25 = vadd.f32 %v1519_v57, %v1392_v30  ;;  %v1552_v55 = vadd.f32 %v1520_v4, %v1393_v31  ;;  %v3079_v52 = vmul.f32 %v9914_v16, %v12437_v49  ;;  %v12474_v57 = vld [vmem:[#allocation89_spill] sm:$0xff] }
 0x2e0   :  { %v3080_v44 = vmul.f32 %v9916_v8, %v12437_v49  ;;  %v2801_v59 = vadd.f32 %v12472_v29, %v2646_v3  ;;  %v2802_v10 = vadd.f32 %v12473_v38, %v2647_v40  ;;  %v3234_v32 = vmul.f32 %v9918_v41, %v12440_v63  ;;  %v12476_v41 = vld [vmem:[#allocation215_spill] sm:$0xff] }
 0x2e1   :  { %v3235_v19 = vmul.f32 %v9920_v23, %v12440_v63  ;;  %v1710_v18 = vadd.f32 %v1678_v27, %v1551_v25  ;;  %v1711_v45 = vadd.f32 %v1679_v62, %v1552_v55  ;;  %v2167_v4 = vmul.f32 %v12452_v0, %v12474_v57  ;;  %v12478_v0 = vld [vmem:[#allocation306_spill] sm:$0xff] }
 0x2e2   :  { %v2168_v30 = vmul.f32 %v12453_v22, %v12474_v57  ;;  %v2956_v31 = vadd.f32 %v2924_v50, %v2801_v59  ;;  %v2957_v49 = vadd.f32 %v2925_v51, %v2802_v10  ;;  %v2322_v3 = vmul.f32 %v12455_v36, %v12475_v39  ;;  %v12477_v59 = vld [vmem:[#allocation342_spill] sm:$0xff] }
 0x2e3   :  { %v2323_v40 = vmul.f32 %v12456_v37, %v12475_v39  ;;  %v1869_v29 = vadd.f32 %v1837_v61, %v1710_v18  ;;  %v1870_v38 = vadd.f32 %v1838_v7, %v1711_v45  ;;  %v2477_v63 = vmul.f32 %v12334_v9, %v12476_v41 }
 0x2e4   :  { %v2478_v27 = vmul.f32 %v12458_v43, %v12476_v41  ;;  %v3111_v62 = vadd.f32 %v3079_v52, %v2956_v31  ;;  %v3112_v25 = vadd.f32 %v3080_v44, %v2957_v49  ;;  %v2354_v55 = vadd.f32 %v2322_v3, %v2167_v4  ;;  %v12479_v44 = vld [vmem:[#allocation414_spill] sm:$0xff]  ;;  %v12481_v49 = vld [vmem:[#allocation440_spill] sm:$0xff] }
 0x2e5   :  { %v2355_v22 = vadd.f32 %v2323_v40, %v2168_v30  ;;  %v2028_v50 = vadd.f32 %v1996_v20, %v1869_v29  ;;  %v2029_v51 = vadd.f32 %v1997_v5, %v1870_v38  ;;  %v2632_v10 = vmul.f32 %v12460_v34, %v12477_v59 }
 0x2e6   :  { %v2633_v37 = vmul.f32 %v12461_v24, %v12477_v59  ;;  %v3266_v61 = vadd.f32 %v3234_v32, %v3111_v62  ;;  %v3267_v7 = vadd.f32 %v3235_v19, %v3112_v25  ;;  %v2509_v18 = vadd.f32 %v2477_v63, %v2354_v55  ;;  %v12480_v32 = vld [vmem:[#allocation375_spill] sm:$0xff]  ;;  %v12483_v63 = vld [vmem:[#allocation94_spill] sm:$0xff]  ;;  %v12484_v62 = vld [vmem:[#allocation40_spill] sm:$0xff] }
 0x2e7   :  { %v2510_v45 = vadd.f32 %v2478_v27, %v2355_v22  ;;  %v2046_v36 = vpack.c.bf16 %v2029_v51, %v2028_v50  ;;  %v2787_v43 = vmul.f32 %v12463_v35, %v12478_v0  ;;  %v2788_v52 = vmul.f32 %v12464_v17, %v12478_v0  ;;  %v12486_v55 = vld [vmem:[#allocation9_spill] sm:$0xff] }
 0x2e8   :  { %v2942_v20 = vmul.f32 %v9425_v13, %v12479_v44  ;;  %v3293_v5 = vpack.c.bf16 %v3267_v7, %v3266_v61  ;;  %v2664_v4 = vadd.f32 %v2632_v10, %v2509_v18  ;;  %v2943_v31 = vmul.f32 %v9457_v2, %v12479_v44  ;;  %v12487_v10 = vld [vmem:[#allocation389_spill] sm:$0xff] }
 0x2e9   :  { %v2665_v30 = vadd.f32 %v2633_v37, %v2510_v45  ;;  %6789 = vmatprep.subr.bf16.mxu1 %v2046_v36  ;;  %v3097_v22 = vmul.f32 %v9780_v60, %v12480_v32  ;;  %v3098_v19 = vmul.f32 %v9804_v15, %v12480_v32  ;;  %v3252_v3 = vmul.f32 %v9810_v26, %v12481_v49  ;;  %v12482_v37 = vld [vmem:[#allocation39_spill] sm:$0xff] }
 0x2ea   :  { %v3253_v40 = vmul.f32 %v9812_v48, %v12481_v49  ;;  %6760 = vmatpush3.bf16.msra.mxu0 %v3293_v5  ;;  %v2819_v29 = vadd.f32 %v2787_v43, %v2664_v4  ;;  %v1217_v27 = vadd.f32 %v12483_v63, %v12482_v37  ;;  %v12485_v36 = vld [vmem:[#allocation95_spill] sm:$0xff]  ;;  %v1503_v50 = vmul.f32 %v12463_v35, %v12486_v55  ;;  %v12489_v5 = vld [vmem:[#allocation296_spill] sm:$0xff] }
 0x2eb   :  { %v2820_v38 = vadd.f32 %v2788_v52, %v2665_v30  ;;  %v1218_v25 = vadd.f32 %v12485_v36, %v12484_v62  ;;  %v1504_v51 = vmul.f32 %v12464_v17, %v12486_v55  ;;  %v1662_v61 = vmul.f32 %v9425_v13, %v12487_v10  ;;  %v12488_v45 = vld [vmem:[#allocation295_spill] sm:$0xff]  ;;  %v12490_v30 = vld [vmem:[#allocation358_spill] sm:$0xff] }
 0x2ec   :  { %v1663_v7 = vmul.f32 %v9457_v2, %v12487_v10  ;;  %v2974_v43 = vadd.f32 %v2942_v20, %v2819_v29  ;;  %v1376_v52 = vadd.f32 %v12488_v45, %v1217_v27  ;;  %v1821_v37 = vmul.f32 %v9780_v60, %v12490_v30  ;;  %v12491_v62 = vld [vmem:[#allocation427_spill] sm:$0xff]  ;;  %v12492_v29 = vld [vmem:[#allocation10_spill] sm:$0xff] }
 0x2ed   :  { %v2975_v18 = vadd.f32 %v2943_v31, %v2820_v38  ;;  %v1377_v4 = vadd.f32 %v12489_v5, %v1218_v25  ;;  %v1822_v63 = vmul.f32 %v9804_v15, %v12490_v30  ;;  %v1980_v36 = vmul.f32 %v9810_v26, %v12491_v62  ;;  %v12493_v27 = vld [vmem:[#allocation11_spill] sm:$0xff]  ;;  %v12494_v45 = vld [vmem:[#allocation14_spill] sm:$0xff] }
 0x2ee   :  { %v1981_v9 = vmul.f32 %v9812_v48, %v12491_v62  ;;  %v3129_v24 = vadd.f32 %v3097_v22, %v2974_v43  ;;  %v1535_v20 = vadd.f32 %v1503_v50, %v1376_v52  ;;  %v885_v38 = vmul.f32 %v12492_v29, %v12451_v12  ;;  %v12495_v30 = vld [vmem:[#allocation15_spill] sm:$0xff] }
 0x2ef   :  { %v3130_v34 = vadd.f32 %v3098_v19, %v2975_v18  ;;  %v1536_v31 = vadd.f32 %v1504_v51, %v1377_v4  ;;  %v886_v25 = vmul.f32 %v12493_v27, %v12451_v12  ;;  %v1044_v5 = vmul.f32 %v12494_v45, %v12454_v14 }
 0x2f0   :  { %v1045_v10 = vmul.f32 %v12495_v30, %v12454_v14  ;;  %v3284_v55 = vadd.f32 %v3252_v3, %v3129_v24  ;;  %v1694_v32 = vadd.f32 %v1662_v61, %v1535_v20  ;;  %v1203_v50 = vmul.f32 %v12370_v21, %v12457_v42  ;;  %v12498_v20 = vld [vmem:[#allocation86_spill] sm:$0xff] }
 0x2f1   :  { %v3285_v49 = vadd.f32 %v3253_v40, %v3130_v34  ;;  %v1695_v62 = vadd.f32 %v1663_v7, %v1536_v31  ;;  %v1076_v22 = vadd.f32 %v1044_v5, %v885_v38  ;;  %v1204_v51 = vmul.f32 %v12371_v58, %v12457_v42  ;;  %v12499_v31 = vld [vmem:[#allocation216_spill] sm:$0xff] }
 0x2f2   :  { %v1077_v19 = vadd.f32 %v1045_v10, %v886_v25  ;;  %v1853_v12 = vadd.f32 %v1821_v37, %v1694_v32  ;;  %v1362_v52 = vmul.f32 %v8867_v53, %v12459_v46  ;;  %v1363_v34 = vmul.f32 %v8869_v33, %v12459_v46  ;;  %v12496_v10 = vld [vmem:[#allocation202_spill] sm:$0xff]  ;;  %v12500_v25 = vld [vmem:[#allocation87_spill] sm:$0xff] }
 0x2f3   :  { %v3302_v43 = vpack.c.bf16 %v3285_v49, %v3284_v55  ;;  %v1854_v18 = vadd.f32 %v1822_v63, %v1695_v62  ;;  %v1235_v4 = vadd.f32 %v1203_v50, %v1076_v22  ;;  %v1521_v24 = vmul.f32 %v12057_v56, %v12462_v6  ;;  %v12502_v22 = vld [vmem:[#allocation71_spill] sm:$0xff]  ;;  %v12503_v50 = vld [vmem:[#allocation410_spill] sm:$0xff] }
 0x2f4   :  { %v1236_v14 = vadd.f32 %v1204_v51, %v1077_v19  ;;  %v2012_v3 = vadd.f32 %v1980_v36, %v1853_v12  ;;  %v1522_v42 = vmul.f32 %v12496_v10, %v12462_v6  ;;  %v1680_v32 = vmul.f32 %v9486_v28, %v12465_v1 }
 0x2f5   :  { %6761 = vmatprep.subr.bf16.mxu0 %v3302_v43  ;;  %v2013_v40 = vadd.f32 %v1981_v9, %v1854_v18  ;;  %v1394_v49 = vadd.f32 %v1362_v52, %v1235_v4  ;;  %v1681_v61 = vmul.f32 %v9491_v47, %v12465_v1  ;;  %v1839_v46 = vmul.f32 %v9914_v16, %v12466_v11  ;;  %v12497_v9 = vld [vmem:[#allocation103_spill] sm:$0xff]  ;;  %v12501_v1 = vld [vmem:[#allocation217_spill] sm:$0xff]  ;;  %v12505_v4 = vld [vmem:[#allocation352_spill] sm:$0xff] }
 0x2f6   :  { %v1395_v55 = vadd.f32 %v1363_v34, %v1236_v14  ;;  %v1840_v37 = vmul.f32 %v9916_v8, %v12466_v11  ;;  %v1998_v63 = vmul.f32 %v12497_v9, %v12467_v54  ;;  %v1999_v6 = vmul.f32 %v9920_v23, %v12467_v54  ;;  %v12504_v18 = vld [vmem:[#allocation351_spill] sm:$0xff]  ;;  %v12506_v34 = vld [vmem:[#allocation374_spill] sm:$0xff] }
 0x2f7   :  { %v2038_v7 = vpack.c.bf16 %v2013_v40, %v2012_v3  ;;  %v1553_v62 = vadd.f32 %v1521_v24, %v1394_v49  ;;  %v2493_v38 = vadd.f32 %v12499_v31, %v12498_v20  ;;  %v2494_v5 = vadd.f32 %v12501_v1, %v12500_v25  ;;  %v12507_v40 = vld [vmem:[#allocation439_spill] sm:$0xff] }
 0x2f8   :  { %v1554_v36 = vadd.f32 %v1522_v42, %v1395_v55  ;;  %v2771_v19 = vmul.f32 %v12463_v35, %v12502_v22  ;;  %v2772_v11 = vmul.f32 %v12464_v17, %v12502_v22  ;;  %v2926_v51 = vmul.f32 %v9425_v13, %v12503_v50 }
 0x2f9   :  { %6790 = vmatpush3.bf16.msra.mxu1 %v2038_v7  ;;  %v2927_v54 = vmul.f32 %v9457_v2, %v12503_v50  ;;  %v1712_v43 = vadd.f32 %v1680_v32, %v1553_v62  ;;  %v2648_v52 = vadd.f32 %v12504_v18, %v2493_v38  ;;  %v2649_v14 = vadd.f32 %v12505_v4, %v2494_v5 }
 0x2fa   :  { %v1713_v12 = vadd.f32 %v1681_v61, %v1554_v36  ;;  %v3081_v24 = vmul.f32 %v9780_v60, %v12506_v34  ;;  %v3082_v3 = vmul.f32 %v9804_v15, %v12506_v34  ;;  %v3236_v42 = vmul.f32 %v9810_v26, %v12507_v40 }
 0x2fb   :  { %v3237_v49 = vmul.f32 %v9812_v48, %v12507_v40  ;;  %v1871_v55 = vadd.f32 %v1839_v46, %v1712_v43  ;;  %v2803_v32 = vadd.f32 %v2771_v19, %v2648_v52  ;;  %v2804_v61 = vadd.f32 %v2772_v11, %v2649_v14 }
 0x2fc   :  { %v1872_v7 = vadd.f32 %v1840_v37, %v1713_v12  ;;  %v2169_v62 = vmul.f32 %v12492_v29, %v12474_v57  ;;  %v2170_v36 = vmul.f32 %v12493_v27, %v12474_v57  ;;  %v2324_v20 = vmul.f32 %v12494_v45, %v12475_v39  ;;  %v12608_v27 = vld [vmem:[#allocation230_spill] sm:$0xff] }
 0x2fd   :  { %v2325_v31 = vmul.f32 %v12495_v30, %v12475_v39  ;;  %v2030_v38 = vadd.f32 %v1998_v63, %v1871_v55  ;;  %v2958_v1 = vadd.f32 %v2926_v51, %v2803_v32  ;;  %v2959_v5 = vadd.f32 %v2927_v54, %v2804_v61  ;;  %v12508_v55 = vld [vmem:[#allocation375_spill] sm:$0xff] }
 0x2fe   :  { %v2031_v25 = vadd.f32 %v1999_v6, %v1872_v7  ;;  %v2356_v46 = vadd.f32 %v2324_v20, %v2169_v62  ;;  %v2479_v19 = vmul.f32 %v12370_v21, %v12476_v41  ;;  %v2480_v11 = vmul.f32 %v12371_v58, %v12476_v41  ;;  %v12511_v20 = vld [vmem:[#allocation96_spill] sm:$0xff] }
 0x2ff   :  { %v2357_v37 = vadd.f32 %v2325_v31, %v2170_v36  ;;  %v3113_v57 = vadd.f32 %v3081_v24, %v2958_v1  ;;  %v3114_v12 = vadd.f32 %v3082_v3, %v2959_v5  ;;  %v2634_v18 = vmul.f32 %v8867_v53, %v12477_v59  ;;  %v12510_v36 = vld [vmem:[#allocation41_spill] sm:$0xff] }
 0x300   :  { %v2047_v43 = vpack.c.bf16 %v2031_v25, %v2030_v38  ;;  %v2511_v52 = vadd.f32 %v2479_v19, %v2356_v46  ;;  %v2635_v63 = vmul.f32 %v8869_v33, %v12477_v59  ;;  %v2789_v6 = vmul.f32 %v12057_v56, %v12478_v0  ;;  %v12512_v38 = vld [vmem:[#allocation42_spill] sm:$0xff]  ;;  %v12514_v1 = vld [vmem:[#allocation9_spill] sm:$0xff] }
 0x301   :  { %v2512_v39 = vadd.f32 %v2480_v11, %v2357_v37  ;;  %v3268_v51 = vadd.f32 %v3236_v42, %v3113_v57  ;;  %v3269_v54 = vadd.f32 %v3237_v49, %v3114_v12  ;;  %v2790_v41 = vmul.f32 %v12496_v10, %v12478_v0  ;;  %v12509_v42 = vld [vmem:[#allocation440_spill] sm:$0xff]  ;;  %v12515_v37 = vld [vmem:[#allocation389_spill] sm:$0xff] }
 0x302   :  { %6791 = vmatprep.subr.bf16.mxu1 %v2047_v43  ;;  %v2944_v4 = vmul.f32 %v9486_v28, %v12479_v44  ;;  %v2666_v14 = vadd.f32 %v2634_v18, %v2511_v52  ;;  %v2945_v3 = vmul.f32 %v9491_v47, %v12479_v44  ;;  %v3099_v59 = vmul.f32 %v9914_v16, %v12508_v55  ;;  %v12513_v44 = vld [vmem:[#allocation97_spill] sm:$0xff]  ;;  %v12517_v52 = vld [vmem:[#allocation298_spill] sm:$0xff] }
 0x303   :  { %v2667_v24 = vadd.f32 %v2635_v63, %v2512_v39  ;;  %v3294_v7 = vpack.c.bf16 %v3269_v54, %v3268_v51  ;;  %v3100_v32 = vmul.f32 %v9916_v8, %v12508_v55  ;;  %v3254_v49 = vmul.f32 %v12497_v9, %v12509_v42  ;;  %v12516_v12 = vld [vmem:[#allocation297_spill] sm:$0xff]  ;;  %v12518_v63 = vld [vmem:[#allocation358_spill] sm:$0xff]  ;;  %v12519_v54 = vld [vmem:[#allocation427_spill] sm:$0xff] }
 0x304   :  { %v3255_v0 = vmul.f32 %v9920_v23, %v12509_v42  ;;  %v2821_v61 = vadd.f32 %v2789_v6, %v2666_v14  ;;  %v1219_v31 = vadd.f32 %v12511_v20, %v12510_v36  ;;  %v1220_v25 = vadd.f32 %v12513_v44, %v12512_v38  ;;  %v12521_v42 = vld [vmem:[#allocation21_spill] sm:$0xff]  ;;  %v12525_v38 = vld [vmem:[#allocation6_spill] sm:$0xff] }
 0x305   :  { %v2822_v62 = vadd.f32 %v2790_v41, %v2667_v24  ;;  %6762 = vmatpush3.bf16.msra.mxu0 %v3294_v7  ;;  %v1505_v5 = vmul.f32 %v12057_v56, %v12514_v1  ;;  %v1506_v46 = vmul.f32 %v12496_v10, %v12514_v1  ;;  %v1664_v19 = vmul.f32 %v9486_v28, %v12515_v37  ;;  %v12520_v7 = vld [vmem:[#allocation73_spill] sm:$0xff] }
 0x306   :  { %v1665_v11 = vmul.f32 %v9491_v47, %v12515_v37  ;;  %v2976_v43 = vadd.f32 %v2944_v4, %v2821_v61  ;;  %v1378_v18 = vadd.f32 %v12516_v12, %v1219_v31  ;;  %v1379_v39 = vadd.f32 %v12517_v52, %v1220_v25  ;;  %v12523_v36 = vld [vmem:[#allocation117_spill] sm:$0xff]  ;;  %v12526_v25 = vld [vmem:[#allocation78_spill] sm:$0xff] }
 0x307   :  { %v2977_v57 = vadd.f32 %v2945_v3, %v2822_v62  ;;  %v1823_v6 = vmul.f32 %v9914_v16, %v12518_v63  ;;  %v1824_v51 = vmul.f32 %v9916_v8, %v12518_v63  ;;  %v1982_v41 = vmul.f32 %v12497_v9, %v12519_v54  ;;  %v12522_v62 = vld [vmem:[#allocation74_spill] sm:$0xff]  ;;  %v12524_v31 = vld [vmem:[#allocation313_spill] sm:$0xff] }
 0x308   :  { %v1983_v14 = vmul.f32 %v9920_v23, %v12519_v54  ;;  %v3131_v24 = vadd.f32 %v3099_v59, %v2976_v43  ;;  %v1537_v4 = vadd.f32 %v1505_v5, %v1378_v18  ;;  %v1538_v3 = vadd.f32 %v1506_v46, %v1379_v39  ;;  %v12527_v59 = vld [vmem:[#allocation210_spill] sm:$0xff]  ;;  %v12528_v5 = vld [vmem:[#allocation211_spill] sm:$0xff]  ;;  %v12529_v43 = vld [vmem:[#allocation116_spill] sm:$0xff] }
 0x309   :  { %v3132_v55 = vadd.f32 %v3100_v32, %v2977_v57  ;;  %v5065_v61 = vadd.f32 %v12521_v42, %v12520_v7  ;;  %v5066_v20 = vadd.f32 %v12523_v36, %v12522_v62  ;;  %v5343_v44 = vmul.f32 %v12525_v38, %v12524_v31  ;;  %v12530_v42 = vld [vmem:[#allocation395_spill] sm:$0xff] }
 0x30a   :  { %v5344_v1 = vmul.f32 %v12526_v25, %v12524_v31  ;;  %v3286_v37 = vadd.f32 %v3254_v49, %v3131_v24  ;;  %v1696_v52 = vadd.f32 %v1664_v19, %v1537_v4  ;;  %v1697_v63 = vadd.f32 %v1665_v11, %v1538_v3  ;;  %v12531_v11 = vld [vmem:[#allocation364_spill] sm:$0xff] }
 0x30b   :  { %v3287_v12 = vadd.f32 %v3255_v0, %v3132_v55  ;;  %v5220_v32 = vadd.f32 %v12527_v59, %v5065_v61  ;;  %v5221_v46 = vadd.f32 %v12528_v5, %v5066_v20  ;;  %v5498_v57 = vmul.f32 %v12463_v35, %v12529_v43  ;;  %v12532_v61 = vld [vmem:[#allocation432_spill] sm:$0xff] }
 0x30c   :  { %v5499_v18 = vmul.f32 %v12464_v17, %v12529_v43  ;;  %v1855_v54 = vadd.f32 %v1823_v6, %v1696_v52  ;;  %v1856_v7 = vadd.f32 %v1824_v51, %v1697_v63  ;;  %v5653_v62 = vmul.f32 %v9425_v13, %v12530_v42  ;;  %v12535_v52 = vld [vmem:[#allocation90_spill] sm:$0xff]  ;;  %v12536_v63 = vld [vmem:[#allocation219_spill] sm:$0xff] }
 0x30d   :  { %v3303_v39 = vpack.c.bf16 %v3287_v12, %v3286_v37  ;;  %v5375_v49 = vadd.f32 %v5343_v44, %v5220_v32  ;;  %v5376_v0 = vadd.f32 %v5344_v1, %v5221_v46  ;;  %v5654_v19 = vmul.f32 %v9457_v2, %v12530_v42  ;;  %v12533_v44 = vld [vmem:[#allocation88_spill] sm:$0xff]  ;;  %v12534_v1 = vld [vmem:[#allocation218_spill] sm:$0xff]  ;;  %v12537_v46 = vld [vmem:[#allocation353_spill] sm:$0xff] }
 0x30e   :  { %v5808_v24 = vmul.f32 %v9780_v60, %v12531_v11  ;;  %v2014_v55 = vadd.f32 %v1982_v41, %v1855_v54  ;;  %v2015_v4 = vadd.f32 %v1983_v14, %v1856_v7  ;;  %v5809_v3 = vmul.f32 %v9804_v15, %v12531_v11  ;;  %v12538_v54 = vld [vmem:[#allocation354_spill] sm:$0xff] }
 0x30f   :  { %6763 = vmatprep.subr.bf16.mxu0 %v3303_v39  ;;  %v5963_v6 = vmul.f32 %v9810_v26, %v12532_v61  ;;  %v5530_v51 = vadd.f32 %v5498_v57, %v5375_v49  ;;  %v5531_v36 = vadd.f32 %v5499_v18, %v5376_v0  ;;  %v5964_v20 = vmul.f32 %v9812_v48, %v12532_v61  ;;  %v6988_v39 = vld [vmem:[%s11470_s5] ss:$8 sps:$4 sm:$0xff]   ;;  %v6996_v0 = vld [vmem:[%s11470_s5 + $0x14] ss:$8 sps:$4 sm:$0xff]  }
 0x310   :  { %v2495_v37 = vadd.f32 %v12534_v1, %v12533_v44  ;;  %v2039_v12 = vpack.c.bf16 %v2015_v4, %v2014_v55  ;;  %v2496_v59 = vadd.f32 %v12536_v63, %v12535_v52  ;;  %v2773_v41 = vmul.f32 %v12057_v56, %v12502_v22  ;;  %v12539_v44 = vld [vmem:[#allocation25_spill] sm:$0xff]  ;;  %v12542_v52 = vld [vmem:[#allocation122_spill] sm:$0xff] }
 0x311   :  { %v2774_v14 = vmul.f32 %v12496_v10, %v12502_v22  ;;  %v5685_v32 = vadd.f32 %v5653_v62, %v5530_v51  ;;  %v5686_v5 = vadd.f32 %v5654_v19, %v5531_v36  ;;  %v2928_v18 = vmul.f32 %v9486_v28, %v12503_v50  ;;  %v12540_v1 = vld [vmem:[#allocation121_spill] sm:$0xff] }
 0x312   :  { %v2650_v57 = vadd.f32 %v12537_v46, %v2495_v37  ;;  %6792 = vmatpush3.bf16.msra.mxu1 %v2039_v12  ;;  %v2651_v7 = vadd.f32 %v12538_v54, %v2496_v59  ;;  %v2929_v49 = vmul.f32 %v9491_v47, %v12503_v50  ;;  %v3083_v22 = vmul.f32 %v9914_v16, %v12506_v34  ;;  %v12541_v12 = vld [vmem:[#allocation26_spill] sm:$0xff]  ;;  %v12543_v54 = vld [vmem:[#allocation253_spill] sm:$0xff] }
 0x313   :  { %v3084_v62 = vmul.f32 %v9916_v8, %v12506_v34  ;;  %v5840_v19 = vadd.f32 %v5808_v24, %v5685_v32  ;;  %v5841_v55 = vadd.f32 %v5809_v3, %v5686_v5  ;;  %v3238_v51 = vmul.f32 %v12497_v9, %v12507_v40 }
 0x314   :  { %v2805_v4 = vadd.f32 %v2773_v41, %v2650_v57  ;;  %v2806_v36 = vadd.f32 %v2774_v14, %v2651_v7  ;;  %v3239_v50 = vmul.f32 %v9920_v23, %v12507_v40  ;;  %v3736_v37 = vadd.f32 %v12540_v1, %v12539_v44  ;;  %v12544_v41 = vld [vmem:[#allocation168_spill] sm:$0xff]  ;;  %v12545_v14 = vld [vmem:[#allocation169_spill] sm:$0xff] }
 0x315   :  { %v3737_v34 = vadd.f32 %v12542_v52, %v12541_v12  ;;  %v5995_v63 = vadd.f32 %v5963_v6, %v5840_v19  ;;  %v5996_v59 = vadd.f32 %v5964_v20, %v5841_v55  ;;  %v4014_v24 = vmul.f32 %v12525_v38, %v12543_v54  ;;  %3426 = vmatmul.mubr.bf16.vlgmr.msra.gmra.mrb[20].mxu1 %v6988_v39  ;;  %v12546_v44 = vld [vmem:[#allocation5_spill] sm:$0xff] }
 0x316   :  { %v2960_v46 = vadd.f32 %v2928_v18, %v2805_v4  ;;  %v2961_v3 = vadd.f32 %v2929_v49, %v2806_v36  ;;  %v3891_v32 = vadd.f32 %v12544_v41, %v3736_v37  ;;  %v4015_v40 = vmul.f32 %v12526_v25, %v12543_v54  ;;  %3433 = vmatprep.mubr.bf16.mxu1 %v6996_v0  ;;  %v12547_v49 = vld [vmem:[#allocation378_spill] sm:$0xff]  ;;  %v12548_v0 = vld [vmem:[#allocation335_spill] sm:$0xff] }
 0x317   :  { %v3892_v5 = vadd.f32 %v12545_v14, %v3737_v34  ;;  %v6019_v57 = vpack.c.bf16 %v5996_v59, %v5995_v63  ;;  %v4169_v6 = vmul.f32 %v12463_v35, %v12546_v44  ;;  %v4170_v20 = vmul.f32 %v12464_v17, %v12546_v44  ;;  %v12550_v59 = vld [vmem:[#allocation329_spill] sm:$0xff] }
 0x318   :  { %v3115_v7 = vadd.f32 %v3083_v22, %v2960_v46  ;;  %v3116_v18 = vadd.f32 %v3084_v62, %v2961_v3  ;;  %v4046_v19 = vadd.f32 %v4014_v24, %v3891_v32  ;;  %v4324_v55 = vmul.f32 %v9425_v13, %v12547_v49  ;;  %v12549_v62 = vld [vmem:[#allocation418_spill] sm:$0xff] }
 0x319   :  { %v4047_v39 = vadd.f32 %v4015_v40, %v3892_v5  ;;  %6833 = vmatprep.subr.bf16.mxu1 %v6019_v57  ;;  %v4325_v36 = vmul.f32 %v9457_v2, %v12547_v49  ;;  %v4479_v22 = vmul.f32 %v9780_v60, %v12548_v0  ;;  %v4480_v1 = vmul.f32 %v9804_v15, %v12548_v0  ;;  %v12552_v24 = vld [vmem:[#allocation330_spill] sm:$0xff] }
 0x31a   :  { %v3270_v4 = vadd.f32 %v3238_v51, %v3115_v7  ;;  %v3271_v37 = vadd.f32 %v3239_v50, %v3116_v18  ;;  %v4201_v12 = vadd.f32 %v4169_v6, %v4046_v19  ;;  %v4634_v34 = vmul.f32 %v9810_v26, %v12549_v62  ;;  %v12551_v51 = vld [vmem:[#allocation269_spill] sm:$0xff]  ;;  %v12553_v3 = vld [vmem:[#allocation270_spill] sm:$0xff] }
 0x31b   :  { %v4202_v52 = vadd.f32 %v4170_v20, %v4047_v39  ;;  %v4635_v63 = vmul.f32 %v9812_v48, %v12549_v62  ;;  %v5514_v46 = vadd.f32 %v12551_v51, %v12550_v59  ;;  %v5515_v41 = vadd.f32 %v12553_v3, %v12552_v24  ;;  %v12554_v32 = vld [vmem:[#allocation362_spill] sm:$0xff]  ;;  %v6991_v6 = vld [vmem:[%s11470_s5 + $0x20] ss:$8 sps:$4 sm:$0xff]  }
 0x31c   :  { %v5792_v14 = vmul.f32 %v9780_v60, %v12554_v32  ;;  %v6999_v50 = vld [vmem:[%s11470_s5 + $0x10] ss:$8 sps:$4 sm:$0xff]   ;;  %v3295_v5 = vpack.c.bf16 %v3271_v37, %v3270_v4  ;;  %v4356_v40 = vadd.f32 %v4324_v55, %v4201_v12  ;;  %v5793_v7 = vmul.f32 %v9804_v15, %v12554_v32  ;;  %v12556_v19 = vld [vmem:[#allocation401_spill] sm:$0xff]  ;;  %v12559_v37 = vld [vmem:[#allocation152_spill] sm:$0xff] }
 0x31d   :  { %v4357_v57 = vadd.f32 %v4325_v36, %v4202_v52  ;;  %v12555_v20 = vld [vmem:[#allocation398_spill] sm:$0xff]  ;;  %v5670_v39 = vadd.f32 %v12556_v19, %v5515_v41  ;;  %3434 = vmatmul.mubr.bf16.gmra.mrb[24].mxu1 %v6999_v50  ;;  %v12558_v36 = vld [vmem:[#allocation75_spill] sm:$0xff]  ;;  %v12560_v52 = vld [vmem:[#allocation76_spill] sm:$0xff]  ;;  %v5345_v19 = vmul.f32 %v8867_v53, %v12524_v31  ;;  %v5346_v50 = vmul.f32 %v8869_v33, %v12524_v31 }
 0x31e   :  { %v5669_v18 = vadd.f32 %v12555_v20, %v5514_v46  ;;  %v12557_v59 = vld [vmem:[#allocation430_spill] sm:$0xff]  ;;  %6764 = vmatpush3.bf16.msra.mxu0 %v3295_v5  ;;  %v4511_v55 = vadd.f32 %v4479_v22, %v4356_v40  ;;  %v5067_v12 = vadd.f32 %v12559_v37, %v12558_v36  ;;  %v12561_v3 = vld [vmem:[#allocation153_spill] sm:$0xff]  ;;  %v12562_v5 = vld [vmem:[#allocation212_spill] sm:$0xff]  ;;  %v5655_v31 = vmul.f32 %v9486_v28, %v12530_v42 }
 0x31f   :  { %v5947_v51 = vmul.f32 %v9810_v26, %v12557_v59  ;;  %v5948_v24 = vmul.f32 %v9812_v48, %v12557_v59  ;;  %v4512_v4 = vadd.f32 %v4480_v1, %v4357_v57  ;;  %v5068_v30 = vadd.f32 %v12561_v3, %v12560_v52  ;;  %v6994_v46 = vld [vmem:[%s11470_s5 + $0x34] ss:$8 sps:$4 sm:$0xff]   ;;  %v12563_v57 = vld [vmem:[#allocation213_spill] sm:$0xff] }
 0x320   :  { %v5824_v41 = vadd.f32 %v5792_v14, %v5669_v18  ;;  %v5825_v20 = vadd.f32 %v5793_v7, %v5670_v39  ;;  %v4666_v22 = vadd.f32 %v4634_v34, %v4511_v55  ;;  %v5222_v40 = vadd.f32 %v12562_v5, %v5067_v12  ;;  %v12565_v12 = vld [vmem:[#allocation232_spill] sm:$0xff] }
 0x321   :  { %v4667_v1 = vadd.f32 %v4635_v63, %v4512_v4  ;;  %v5223_v36 = vadd.f32 %v12563_v57, %v5068_v30  ;;  %3357 = vmatmul.mubr.bf16.vlgmr.msra.gmra.mrb[12].mxu0 %v6991_v6  ;;  %v5500_v3 = vmul.f32 %v12057_v56, %v12529_v43  ;;  %v5501_v14 = vmul.f32 %v12496_v10, %v12529_v43  ;;  %v12564_v4 = vld [vmem:[#allocation172_spill] sm:$0xff] }
 0x322   :  { %v5979_v37 = vadd.f32 %v5947_v51, %v5824_v41  ;;  %v5980_v52 = vadd.f32 %v5948_v24, %v5825_v20  ;;  %v5377_v18 = vadd.f32 %v5345_v19, %v5222_v40  ;;  %3364 = vmatprep.mubr.bf16.mxu0 %v6994_v46  ;;  %v5656_v30 = vmul.f32 %v9491_v47, %v12530_v42  ;;  %v12566_v42 = vld [vmem:[#allocation173_spill] sm:$0xff]  ;;  %v12568_v19 = vld [vmem:[#allocation55_spill] sm:$0xff] }
 0x323   :  { %v4690_v7 = vpack.c.bf16 %v4667_v1, %v4666_v22  ;;  %v5378_v39 = vadd.f32 %v5346_v50, %v5223_v36  ;;  %v5810_v63 = vmul.f32 %v9914_v16, %v12531_v11  ;;  %v5811_v6 = vmul.f32 %v9916_v8, %v12531_v11  ;;  %v12567_v41 = vld [vmem:[#allocation233_spill] sm:$0xff]  ;;  %v6998_v22 = vld [vmem:[%s11470_s5 + $0x30] ss:$8 sps:$4 sm:$0xff]  }
 0x324   :  { %v6011_v34 = vpack.c.bf16 %v5980_v52, %v5979_v37  ;;  %v5532_v51 = vadd.f32 %v5500_v3, %v5377_v18  ;;  %v5965_v24 = vmul.f32 %v12497_v9, %v12532_v61  ;;  %v5966_v55 = vmul.f32 %v9920_v23, %v12532_v61  ;;  %v12569_v61 = vld [vmem:[#allocation416_spill] sm:$0xff]  ;;  %v12570_v36 = vld [vmem:[#allocation383_spill] sm:$0xff] }
 0x325   :  { %6805 = vmatprep.subr.bf16.mxu0 %v4690_v7  ;;  %v5533_v43 = vadd.f32 %v5501_v14, %v5378_v39  ;;  %v4185_v46 = vadd.f32 %v12565_v12, %v12564_v4  ;;  %v4186_v20 = vadd.f32 %v12567_v41, %v12566_v42  ;;  %v4463_v50 = vmul.f32 %v9780_v60, %v12568_v19  ;;  %v12571_v52 = vld [vmem:[#allocation384_spill] sm:$0xff]  ;;  %v12572_v14 = vld [vmem:[#allocation27_spill] sm:$0xff]  ;;  %v12576_v41 = vld [vmem:[#allocation170_spill] sm:$0xff] }
 0x326   :  { %6834 = vmatpush3.bf16.msra.mxu1 %v6011_v34  ;;  %v4464_v11 = vmul.f32 %v9804_v15, %v12568_v19  ;;  %v5687_v1 = vadd.f32 %v5655_v31, %v5532_v51  ;;  %v4618_v40 = vmul.f32 %v9810_v26, %v12569_v61  ;;  %v4619_v57 = vmul.f32 %v9812_v48, %v12569_v61  ;;  %v12573_v7 = vld [vmem:[#allocation123_spill] sm:$0xff]  ;;  %v12574_v39 = vld [vmem:[#allocation28_spill] sm:$0xff] }
 0x327   :  { %v5688_v5 = vadd.f32 %v5656_v30, %v5533_v43  ;;  %v4340_v37 = vadd.f32 %v12570_v36, %v4185_v46  ;;  %v4341_v3 = vadd.f32 %v12571_v52, %v4186_v20  ;;  %v3738_v18 = vadd.f32 %v12573_v7, %v12572_v14  ;;  %v12575_v34 = vld [vmem:[#allocation124_spill] sm:$0xff]  ;;  %v12577_v36 = vld [vmem:[#allocation171_spill] sm:$0xff] }
 0x328   :  { %v3739_v4 = vadd.f32 %v12575_v34, %v12574_v39  ;;  %v5842_v12 = vadd.f32 %v5810_v63, %v5687_v1  ;;  %v4016_v31 = vmul.f32 %v8867_v53, %v12543_v54  ;;  %v4017_v30 = vmul.f32 %v8869_v33, %v12543_v54 }
 0x329   :  { %v5843_v42 = vadd.f32 %v5811_v6, %v5688_v5  ;;  %v4495_v51 = vadd.f32 %v4463_v50, %v4340_v37  ;;  %v4496_v43 = vadd.f32 %v4464_v11, %v4341_v3  ;;  %v3893_v46 = vadd.f32 %v12576_v41, %v3738_v18  ;;  %3365 = vmatmul.mubr.bf16.gmra.mrb[16].mxu0 %v6998_v22  ;;  %v12578_v3 = vld [vmem:[#allocation331_spill] sm:$0xff]  ;;  %v12579_v18 = vld [vmem:[#allocation274_spill] sm:$0xff]  ;;  %v12583_v41 = vld [vmem:[#allocation404_spill] sm:$0xff] }
 0x32a   :  { %v3894_v20 = vadd.f32 %v12577_v36, %v3739_v4  ;;  %v5997_v52 = vadd.f32 %v5965_v24, %v5842_v12  ;;  %v4171_v7 = vmul.f32 %v12057_v56, %v12546_v44  ;;  %v4172_v63 = vmul.f32 %v12496_v10, %v12546_v44  ;;  %v12581_v4 = vld [vmem:[#allocation275_spill] sm:$0xff] }
 0x32b   :  { %v5998_v14 = vadd.f32 %v5966_v55, %v5843_v42  ;;  %v4650_v6 = vadd.f32 %v4618_v40, %v4495_v51  ;;  %v4651_v1 = vadd.f32 %v4619_v57, %v4496_v43  ;;  %v4048_v5 = vadd.f32 %v4016_v31, %v3893_v46  ;;  %v12582_v51 = vld [vmem:[#allocation403_spill] sm:$0xff] }
 0x32c   :  { %v4049_v39 = vadd.f32 %v4017_v30, %v3894_v20  ;;  %v4326_v50 = vmul.f32 %v9486_v28, %v12547_v49  ;;  %v4327_v11 = vmul.f32 %v9491_v47, %v12547_v49  ;;  %v4481_v24 = vmul.f32 %v9914_v16, %v12548_v0  ;;  %v12580_v49 = vld [vmem:[#allocation332_spill] sm:$0xff] }
 0x32d   :  { %v6020_v54 = vpack.c.bf16 %v5998_v14, %v5997_v52  ;;  %v4682_v55 = vpack.c.bf16 %v4651_v1, %v4650_v6  ;;  %v4203_v22 = vadd.f32 %v4171_v7, %v4048_v5  ;;  %v4482_v44 = vmul.f32 %v9916_v8, %v12548_v0  ;;  %v12584_v14 = vld [vmem:[#allocation77_spill] sm:$0xff]  ;;  %v12585_v7 = vld [vmem:[#allocation154_spill] sm:$0xff]  ;;  %v12586_v6 = vld [vmem:[#allocation79_spill] sm:$0xff] }
 0x32e   :  { %v4204_v37 = vadd.f32 %v4172_v63, %v4049_v39  ;;  %v4636_v40 = vmul.f32 %v12497_v9, %v12549_v62  ;;  %v4637_v57 = vmul.f32 %v9920_v23, %v12549_v62  ;;  %v5516_v34 = vadd.f32 %v12579_v18, %v12578_v3  ;;  %v12587_v1 = vld [vmem:[#allocation155_spill] sm:$0xff]  ;;  %v12591_v18 = vld [vmem:[#allocation314_spill] sm:$0xff] }
 0x32f   :  { %6835 = vmatprep.subr.bf16.mxu1 %v6020_v54  ;;  %v5517_v12 = vadd.f32 %v12581_v4, %v12580_v49  ;;  %6806 = vmatpush3.bf16.msra.mxu0 %v4682_v55  ;;  %v4358_v42 = vadd.f32 %v4326_v50, %v4203_v22  ;;  %v5794_v30 = vmul.f32 %v9914_v16, %v12554_v32  ;;  %v12588_v54 = vld [vmem:[#allocation203_spill] sm:$0xff]  ;;  %v12589_v50 = vld [vmem:[#allocation16_spill] sm:$0xff]  ;;  %v12590_v55 = vld [vmem:[#allocation17_spill] sm:$0xff] }
 0x330   :  { %v4359_v31 = vadd.f32 %v4327_v11, %v4204_v37  ;;  %v5795_v0 = vmul.f32 %v9916_v8, %v12554_v32  ;;  %v5671_v43 = vadd.f32 %v12582_v51, %v5516_v34  ;;  %v5949_v62 = vmul.f32 %v12497_v9, %v12557_v59 }
 0x331   :  { %v5672_v46 = vadd.f32 %v12583_v41, %v5517_v12  ;;  %v5950_v36 = vmul.f32 %v9920_v23, %v12557_v59  ;;  %v4513_v20 = vadd.f32 %v4481_v24, %v4358_v42  ;;  %v5069_v63 = vadd.f32 %v12585_v7, %v12584_v14  ;;  %v12592_v42 = vld [vmem:[#allocation272_spill] sm:$0xff] }
 0x332   :  { %v4514_v52 = vadd.f32 %v4482_v44, %v4359_v31  ;;  %v5070_v5 = vadd.f32 %v12587_v1, %v12586_v6  ;;  %v5826_v39 = vadd.f32 %v5794_v30, %v5671_v43  ;;  %v5192_v11 = vmul.f32 %v12589_v50, %v12588_v54  ;;  %v12596_v6 = vld [vmem:[#allocation174_spill] sm:$0xff] }
 0x333   :  { %v5827_v32 = vadd.f32 %v5795_v0, %v5672_v46  ;;  %v5193_v22 = vmul.f32 %v12590_v55, %v12588_v54  ;;  %v4668_v37 = vadd.f32 %v4636_v40, %v4513_v20  ;;  %v5347_v59 = vmul.f32 %v12525_v38, %v12591_v18  ;;  %v12593_v0 = vld [vmem:[#allocation399_spill] sm:$0xff]  ;;  %v12595_v20 = vld [vmem:[#allocation434_spill] sm:$0xff] }
 0x334   :  { %v4669_v3 = vadd.f32 %v4637_v57, %v4514_v52  ;;  %v5348_v24 = vmul.f32 %v12526_v25, %v12591_v18  ;;  %v5981_v44 = vadd.f32 %v5949_v62, %v5826_v39  ;;  %v5224_v49 = vadd.f32 %v5192_v11, %v5069_v63  ;;  %v12594_v46 = vld [vmem:[#allocation367_spill] sm:$0xff]  ;;  %v12597_v1 = vld [vmem:[#allocation22_spill] sm:$0xff] }
 0x335   :  { %v5982_v34 = vadd.f32 %v5950_v36, %v5827_v32  ;;  %v5225_v4 = vadd.f32 %v5193_v22, %v5070_v5  ;;  %v5502_v31 = vmul.f32 %v12463_v35, %v12592_v42  ;;  %v5503_v30 = vmul.f32 %v12464_v17, %v12592_v42  ;;  %v12598_v39 = vld [vmem:[#allocation175_spill] sm:$0xff] }
 0x336   :  { %v4691_v12 = vpack.c.bf16 %v4669_v3, %v4668_v37  ;;  %v5657_v40 = vmul.f32 %v9425_v13, %v12593_v0  ;;  %v5379_v51 = vadd.f32 %v5347_v59, %v5224_v49  ;;  %v5658_v41 = vmul.f32 %v9457_v2, %v12593_v0  ;;  %v12599_v32 = vld [vmem:[#allocation235_spill] sm:$0xff] }
 0x337   :  { %v6012_v57 = vpack.c.bf16 %v5982_v34, %v5981_v44  ;;  %v5380_v43 = vadd.f32 %v5348_v24, %v5225_v4  ;;  %v5812_v62 = vmul.f32 %v9780_v60, %v12594_v46  ;;  %v5813_v36 = vmul.f32 %v9804_v15, %v12594_v46  ;;  %v12600_v34 = vld [vmem:[#allocation385_spill] sm:$0xff]  ;;  %v12601_v4 = vld [vmem:[#allocation386_spill] sm:$0xff] }
 0x338   :  { %6807 = vmatprep.subr.bf16.mxu0 %v4691_v12  ;;  %v5967_v52 = vmul.f32 %v9810_v26, %v12595_v20  ;;  %v5968_v14 = vmul.f32 %v9812_v48, %v12595_v20  ;;  %v5534_v7 = vadd.f32 %v5502_v31, %v5379_v51  ;;  %v4187_v5 = vadd.f32 %v12597_v1, %v12596_v6  ;;  %v12602_v31 = vld [vmem:[#allocation29_spill] sm:$0xff]  ;;  %v12604_v51 = vld [vmem:[#allocation30_spill] sm:$0xff]  ;;  %v12606_v1 = vld [vmem:[#allocation72_spill] sm:$0xff] }
 0x339   :  { %6836 = vmatpush3.bf16.msra.mxu1 %v6012_v57  ;;  %v5535_v63 = vadd.f32 %v5503_v30, %v5380_v43  ;;  %v4188_v11 = vadd.f32 %v12599_v32, %v12598_v39  ;;  %v4465_v22 = vmul.f32 %v9914_v16, %v12568_v19  ;;  %v4466_v37 = vmul.f32 %v9916_v8, %v12568_v19  ;;  %v12603_v30 = vld [vmem:[#allocation125_spill] sm:$0xff]  ;;  %v12605_v43 = vld [vmem:[#allocation126_spill] sm:$0xff] }
 0x33a   :  { %v4620_v3 = vmul.f32 %v12497_v9, %v12569_v61  ;;  %v4621_v59 = vmul.f32 %v9920_v23, %v12569_v61  ;;  %v5689_v24 = vadd.f32 %v5657_v40, %v5534_v7  ;;  %v4342_v49 = vadd.f32 %v12600_v34, %v4187_v5  ;;  %v12607_v5 = vld [vmem:[#allocation254_spill] sm:$0xff] }
 0x33b   :  { %v5690_v44 = vadd.f32 %v5658_v41, %v5535_v63  ;;  %v4343_v12 = vadd.f32 %v12601_v4, %v4188_v11  ;;  %v3740_v57 = vadd.f32 %v12603_v30, %v12602_v31  ;;  %v3741_v6 = vadd.f32 %v12605_v43, %v12604_v51 }
 0x33c   :  { %v3863_v19 = vmul.f32 %v12589_v50, %v12606_v1  ;;  %v3864_v39 = vmul.f32 %v12590_v55, %v12606_v1  ;;  %v5844_v32 = vadd.f32 %v5812_v62, %v5689_v24  ;;  %v4497_v40 = vadd.f32 %v4465_v22, %v4342_v49  ;;  %v12609_v24 = vld [vmem:[#allocation379_spill] sm:$0xff] }
 0x33d   :  { %v5845_v61 = vadd.f32 %v5813_v36, %v5690_v44  ;;  %v4498_v41 = vadd.f32 %v4466_v37, %v4343_v12  ;;  %v4018_v11 = vmul.f32 %v12525_v38, %v12607_v5  ;;  %v4019_v34 = vmul.f32 %v12526_v25, %v12607_v5 }
 0x33e   :  { %v3895_v7 = vadd.f32 %v3863_v19, %v3740_v57  ;;  %v3896_v63 = vadd.f32 %v3864_v39, %v3741_v6  ;;  %v5999_v4 = vadd.f32 %v5967_v52, %v5844_v32  ;;  %v4652_v30 = vadd.f32 %v4620_v3, %v4497_v40  ;;  %v12610_v3 = vld [vmem:[#allocation337_spill] sm:$0xff]  ;;  %v12611_v57 = vld [vmem:[#allocation420_spill] sm:$0xff] }
 0x33f   :  { %v6000_v31 = vadd.f32 %v5968_v14, %v5845_v61  ;;  %v4653_v51 = vadd.f32 %v4621_v59, %v4498_v41  ;;  %v4173_v62 = vmul.f32 %v12463_v35, %v12608_v27  ;;  %v4174_v36 = vmul.f32 %v12464_v17, %v12608_v27  ;;  %v12612_v39 = vld [vmem:[#allocation56_spill] sm:$0xff]  ;;  %v12613_v32 = vld [vmem:[#allocation317_spill] sm:$0xff] }
 0x340   :  { %v4050_v43 = vadd.f32 %v4018_v11, %v3895_v7  ;;  %v4051_v45 = vadd.f32 %v4019_v34, %v3896_v63  ;;  %v4328_v44 = vmul.f32 %v9425_v13, %v12609_v24  ;;  %v4329_v49 = vmul.f32 %v9457_v2, %v12609_v24  ;;  %v12615_v7 = vld [vmem:[#allocation318_spill] sm:$0xff]  ;;  %v12616_v11 = vld [vmem:[#allocation396_spill] sm:$0xff] }
 0x341   :  { %v6021_v22 = vpack.c.bf16 %v6000_v31, %v5999_v4  ;;  %v4683_v37 = vpack.c.bf16 %v4653_v51, %v4652_v30  ;;  %v4483_v59 = vmul.f32 %v9780_v60, %v12610_v3  ;;  %v4484_v12 = vmul.f32 %v9804_v15, %v12610_v3  ;;  %v12617_v4 = vld [vmem:[#allocation276_spill] sm:$0xff]  ;;  %v12618_v51 = vld [vmem:[#allocation363_spill] sm:$0xff] }
 0x342   :  { %v4205_v52 = vadd.f32 %v4173_v62, %v4050_v43  ;;  %v4206_v14 = vadd.f32 %v4174_v36, %v4051_v45  ;;  %v4638_v6 = vmul.f32 %v9810_v26, %v12611_v57  ;;  %v4639_v19 = vmul.f32 %v9812_v48, %v12611_v57  ;;  %v12614_v45 = vld [vmem:[#allocation57_spill] sm:$0xff] }
 0x343   :  { %6837 = vmatprep.subr.bf16.mxu1 %v6021_v22  ;;  %6808 = vmatpush3.bf16.msra.mxu0 %v4683_v37  ;;  %v5363_v61 = vadd.f32 %v12613_v32, %v12612_v39  ;;  %v5364_v63 = vadd.f32 %v12615_v7, %v12614_v45  ;;  %v5641_v34 = vmul.f32 %v9425_v13, %v12616_v11  ;;  %v12619_v37 = vld [vmem:[#allocation277_spill] sm:$0xff]  ;;  %v12621_v32 = vld [vmem:[#allocation80_spill] sm:$0xff] }
 0x344   :  { %v4360_v40 = vadd.f32 %v4328_v44, %v4205_v52  ;;  %v4361_v41 = vadd.f32 %v4329_v49, %v4206_v14  ;;  %v5642_v30 = vmul.f32 %v9457_v2, %v12616_v11  ;;  %v5796_v43 = vmul.f32 %v9780_v60, %v12618_v51  ;;  %v12620_v49 = vld [vmem:[#allocation431_spill] sm:$0xff]  ;;  %v12623_v7 = vld [vmem:[#allocation81_spill] sm:$0xff] }
 0x345   :  { %v5518_v31 = vadd.f32 %v12617_v4, %v5363_v61  ;;  %v5797_v62 = vmul.f32 %v9804_v15, %v12618_v51  ;;  %v5519_v44 = vadd.f32 %v12619_v37, %v5364_v63  ;;  %v5951_v52 = vmul.f32 %v9810_v26, %v12620_v49  ;;  %v12622_v61 = vld [vmem:[#allocation156_spill] sm:$0xff]  ;;  %v12624_v4 = vld [vmem:[#allocation157_spill] sm:$0xff] }
 0x346   :  { %v4515_v36 = vadd.f32 %v4483_v59, %v4360_v40  ;;  %v4516_v22 = vadd.f32 %v4484_v12, %v4361_v41  ;;  %v5952_v39 = vmul.f32 %v9812_v48, %v12620_v49  ;;  %v5071_v45 = vadd.f32 %v12622_v61, %v12621_v32  ;;  %v12626_v32 = vld [vmem:[#allocation257_spill] sm:$0xff] }
 0x347   :  { %v5673_v14 = vadd.f32 %v5641_v34, %v5518_v31  ;;  %v5072_v29 = vadd.f32 %v12624_v4, %v12623_v7  ;;  %v5674_v25 = vadd.f32 %v5642_v30, %v5519_v44  ;;  %v5194_v59 = vmul.f32 %v12370_v21, %v12588_v54 }
 0x348   :  { %v4670_v17 = vadd.f32 %v4638_v6, %v4515_v36  ;;  %v4671_v35 = vadd.f32 %v4639_v19, %v4516_v22  ;;  %v5195_v40 = vmul.f32 %v12371_v58, %v12588_v54  ;;  %v5349_v41 = vmul.f32 %v8867_v53, %v12591_v18  ;;  %v7002_v19 = vld [vmem:[%s11470_s5 + $0x64] ss:$8 sps:$4 sm:$0xff]  }
 0x349   :  { %v5828_v12 = vadd.f32 %v5796_v43, %v5673_v14  ;;  %v5350_v63 = vmul.f32 %v8869_v33, %v12591_v18  ;;  %v5829_v31 = vadd.f32 %v5797_v62, %v5674_v25  ;;  %v5226_v37 = vadd.f32 %v5194_v59, %v5071_v45  ;;  %6079 = vmatprep.mubr.bf16.mxu1 %v7002_v19  ;;  %v12628_v45 = vld [vmem:[#allocation258_spill] sm:$0xff]  ;;  %v12629_v59 = vld [vmem:[#allocation376_spill] sm:$0xff] }
 0x34a   :  { %v4692_v34 = vpack.c.bf16 %v4671_v35, %v4670_v17  ;;  %v5504_v6 = vmul.f32 %v12057_v56, %v12592_v42  ;;  %v5227_v43 = vadd.f32 %v5195_v40, %v5072_v29  ;;  %v5505_v54 = vmul.f32 %v12496_v10, %v12592_v42  ;;  %v7005_v35 = vld [vmem:[%s11470_s5 + $0x44] ss:$8 sps:$4 sm:$0xff]  }
 0x34b   :  { %v5983_v30 = vadd.f32 %v5951_v52, %v5828_v12  ;;  %v5659_v36 = vmul.f32 %v9486_v28, %v12593_v0  ;;  %v5984_v17 = vadd.f32 %v5952_v39, %v5829_v31  ;;  %v5381_v25 = vadd.f32 %v5349_v41, %v5226_v37  ;;  %v12625_v39 = vld [vmem:[#allocation176_spill] sm:$0xff]  ;;  %4750 = vmatprep.mubr.bf16.mxu0 %v7005_v35  ;;  %v12630_v40 = vld [vmem:[#allocation333_spill] sm:$0xff]  ;;  %v12634_v35 = vld [vmem:[#allocation31_spill] sm:$0xff] }
 0x34c   :  { %6809 = vmatprep.subr.bf16.mxu0 %v4692_v34  ;;  %v5660_v18 = vmul.f32 %v9491_v47, %v12593_v0  ;;  %v5814_v62 = vmul.f32 %v9914_v16, %v12594_v46  ;;  %v5382_v29 = vadd.f32 %v5350_v63, %v5227_v43  ;;  %v5815_v42 = vmul.f32 %v9916_v8, %v12594_v46  ;;  %v12627_v0 = vld [vmem:[#allocation177_spill] sm:$0xff]  ;;  %v12631_v63 = vld [vmem:[#allocation236_spill] sm:$0xff] }
 0x34d   :  { %v5969_v22 = vmul.f32 %v12497_v9, %v12595_v20  ;;  %v5970_v44 = vmul.f32 %v9920_v23, %v12595_v20  ;;  %v6013_v52 = vpack.c.bf16 %v5984_v17, %v5983_v30  ;;  %v5536_v14 = vadd.f32 %v5504_v6, %v5381_v25  ;;  %v12632_v31 = vld [vmem:[#allocation237_spill] sm:$0xff]  ;;  %v12635_v17 = vld [vmem:[#allocation127_spill] sm:$0xff] }
 0x34e   :  { %v4034_v61 = vadd.f32 %v12626_v32, %v12625_v39  ;;  %v4035_v7 = vadd.f32 %v12628_v45, %v12627_v0  ;;  %v5537_v4 = vadd.f32 %v5505_v54, %v5382_v29  ;;  %v4312_v46 = vmul.f32 %v9425_v13, %v12629_v59  ;;  %v12633_v30 = vld [vmem:[#allocation417_spill] sm:$0xff]  ;;  %v12637_v39 = vld [vmem:[#allocation128_spill] sm:$0xff] }
 0x34f   :  { %v4313_v12 = vmul.f32 %v9457_v2, %v12629_v59  ;;  %v4467_v20 = vmul.f32 %v9780_v60, %v12630_v40  ;;  %6838 = vmatpush3.bf16.msra.mxu1 %v6013_v52  ;;  %v5691_v41 = vadd.f32 %v5659_v36, %v5536_v14  ;;  %v4468_v6 = vmul.f32 %v9804_v15, %v12630_v40  ;;  %v12636_v14 = vld [vmem:[#allocation32_spill] sm:$0xff] }
 0x350   :  { %v4189_v34 = vadd.f32 %v12631_v63, %v4034_v61  ;;  %v4190_v37 = vadd.f32 %v12632_v31, %v4035_v7  ;;  %v5692_v19 = vadd.f32 %v5660_v18, %v5537_v4  ;;  %v4622_v43 = vmul.f32 %v9810_v26, %v12633_v30 }
 0x351   :  { %v4623_v54 = vmul.f32 %v9812_v48, %v12633_v30  ;;  %v3742_v25 = vadd.f32 %v12635_v17, %v12634_v35  ;;  %v5846_v29 = vadd.f32 %v5814_v62, %v5691_v41  ;;  %v3743_v32 = vadd.f32 %v12637_v39, %v12636_v14 }
 0x352   :  { %v4344_v52 = vadd.f32 %v4312_v46, %v4189_v34  ;;  %v4345_v36 = vadd.f32 %v4313_v12, %v4190_v37  ;;  %v5847_v61 = vadd.f32 %v5815_v42, %v5692_v19  ;;  %v3865_v0 = vmul.f32 %v12370_v21, %v12606_v1 }
 0x353   :  { %v3866_v18 = vmul.f32 %v12371_v58, %v12606_v1  ;;  %v4020_v45 = vmul.f32 %v8867_v53, %v12607_v5  ;;  %v6001_v7 = vadd.f32 %v5969_v22, %v5846_v29  ;;  %v4021_v62 = vmul.f32 %v8869_v33, %v12607_v5  ;;  %v12639_v29 = vld [vmem:[#allocation319_spill] sm:$0xff] }
 0x354   :  { %v4499_v4 = vadd.f32 %v4467_v20, %v4344_v52  ;;  %v4500_v63 = vadd.f32 %v4468_v6, %v4345_v36  ;;  %v6002_v46 = vadd.f32 %v5970_v44, %v5847_v61  ;;  %v3897_v12 = vadd.f32 %v3865_v0, %v3742_v25  ;;  %v12638_v25 = vld [vmem:[#allocation58_spill] sm:$0xff]  ;;  %v12641_v36 = vld [vmem:[#allocation320_spill] sm:$0xff] }
 0x355   :  { %v3898_v41 = vadd.f32 %v3866_v18, %v3743_v32  ;;  %v4175_v42 = vmul.f32 %v12057_v56, %v12608_v27  ;;  %v4176_v1 = vmul.f32 %v12496_v10, %v12608_v27  ;;  %v4330_v37 = vmul.f32 %v9486_v28, %v12609_v24  ;;  %v12642_v18 = vld [vmem:[#allocation279_spill] sm:$0xff] }
 0x356   :  { %v4654_v34 = vadd.f32 %v4622_v43, %v4499_v4  ;;  %v4655_v31 = vadd.f32 %v4623_v54, %v4500_v63  ;;  %v6022_v22 = vpack.c.bf16 %v6002_v46, %v6001_v7  ;;  %v4052_v20 = vadd.f32 %v4020_v45, %v3897_v12  ;;  %v12643_v7 = vld [vmem:[#allocation280_spill] sm:$0xff]  ;;  %v12644_v46 = vld [vmem:[#allocation82_spill] sm:$0xff] }
 0x357   :  { %v4053_v6 = vadd.f32 %v4021_v62, %v3898_v41  ;;  %v4331_v5 = vmul.f32 %v9491_v47, %v12609_v24  ;;  %v4485_v19 = vmul.f32 %v9914_v16, %v12610_v3  ;;  %v4486_v43 = vmul.f32 %v9916_v8, %v12610_v3  ;;  %v12640_v24 = vld [vmem:[#allocation59_spill] sm:$0xff] }
 0x358   :  { %v4684_v44 = vpack.c.bf16 %v4655_v31, %v4654_v34  ;;  %v4640_v54 = vmul.f32 %v12497_v9, %v12611_v57  ;;  %6839 = vmatprep.subr.bf16.mxu1 %v6022_v22  ;;  %v4207_v27 = vadd.f32 %v4175_v42, %v4052_v20  ;;  %v4641_v17 = vmul.f32 %v9920_v23, %v12611_v57  ;;  %v12646_v31 = vld [vmem:[#allocation83_spill] sm:$0xff]  ;;  %v12648_v20 = vld [vmem:[#allocation204_spill] sm:$0xff] }
 0x359   :  { %v4208_v35 = vadd.f32 %v4176_v1, %v4053_v6  ;;  %v5365_v52 = vadd.f32 %v12639_v29, %v12638_v25  ;;  %v5366_v14 = vadd.f32 %v12641_v36, %v12640_v24  ;;  %v5643_v39 = vmul.f32 %v9486_v28, %v12616_v11  ;;  %v12647_v1 = vld [vmem:[#allocation159_spill] sm:$0xff]  ;;  %v12651_v24 = vld [vmem:[#allocation273_spill] sm:$0xff] }
 0x35a   :  { %6810 = vmatpush3.bf16.msra.mxu0 %v4684_v44  ;;  %v5644_v3 = vmul.f32 %v9491_v47, %v12616_v11  ;;  %v5798_v32 = vmul.f32 %v9914_v16, %v12618_v51  ;;  %v4362_v61 = vadd.f32 %v4330_v37, %v4207_v27  ;;  %v5799_v45 = vmul.f32 %v9916_v8, %v12618_v51  ;;  %v12645_v11 = vld [vmem:[#allocation158_spill] sm:$0xff]  ;;  %v12652_v36 = vld [vmem:[#allocation23_spill] sm:$0xff] }
 0x35b   :  { %v4363_v0 = vadd.f32 %v4331_v5, %v4208_v35  ;;  %v5520_v57 = vadd.f32 %v12642_v18, %v5365_v52  ;;  %v5521_v4 = vadd.f32 %v12643_v7, %v5366_v14  ;;  %v5953_v63 = vmul.f32 %v12497_v9, %v12620_v49  ;;  %v12649_v5 = vld [vmem:[#allocation315_spill] sm:$0xff]  ;;  %v12654_v18 = vld [vmem:[#allocation400_spill] sm:$0xff] }
 0x35c   :  { %v5954_v62 = vmul.f32 %v9920_v23, %v12620_v49  ;;  %v5073_v12 = vadd.f32 %v12645_v11, %v12644_v46  ;;  %v4517_v41 = vadd.f32 %v4485_v19, %v4362_v61  ;;  %v5074_v37 = vadd.f32 %v12647_v1, %v12646_v31  ;;  %v12650_v19 = vld [vmem:[#allocation78_spill] sm:$0xff]  ;;  %v12653_v61 = vld [vmem:[#allocation20_spill] sm:$0xff]  ;;  %v12658_v31 = vld [vmem:[#allocation259_spill] sm:$0xff] }
 0x35d   :  { %v4518_v42 = vadd.f32 %v4486_v43, %v4363_v0  ;;  %v5675_v34 = vadd.f32 %v5643_v39, %v5520_v57  ;;  %v5676_v22 = vadd.f32 %v5644_v3, %v5521_v4  ;;  %v5196_v51 = vmul.f32 %v12589_v50, %v12648_v20 }
 0x35e   :  { %v5197_v6 = vmul.f32 %v12590_v55, %v12648_v20  ;;  %v5351_v44 = vmul.f32 %v12525_v38, %v12649_v5  ;;  %v4672_v49 = vadd.f32 %v4640_v54, %v4517_v41  ;;  %v5352_v43 = vmul.f32 %v12650_v19, %v12649_v5 }
 0x35f   :  { %v4673_v27 = vadd.f32 %v4641_v17, %v4518_v42  ;;  %v5830_v35 = vadd.f32 %v5798_v32, %v5675_v34  ;;  %v5831_v25 = vadd.f32 %v5799_v45, %v5676_v22  ;;  %v5228_v29 = vadd.f32 %v5196_v51, %v5073_v12  ;;  %v12655_v45 = vld [vmem:[#allocation368_spill] sm:$0xff]  ;;  %v12657_v34 = vld [vmem:[#allocation178_spill] sm:$0xff] }
 0x360   :  { %v5229_v52 = vadd.f32 %v5197_v6, %v5074_v37  ;;  %v5506_v14 = vmul.f32 %v12652_v36, %v12651_v24  ;;  %v5507_v0 = vmul.f32 %v12653_v61, %v12651_v24  ;;  %v5661_v57 = vmul.f32 %v9425_v13, %v12654_v18  ;;  %v12659_v37 = vld [vmem:[#allocation179_spill] sm:$0xff]  ;;  %v12660_v22 = vld [vmem:[#allocation260_spill] sm:$0xff] }
 0x361   :  { %v4693_v39 = vpack.c.bf16 %v4673_v27, %v4672_v49  ;;  %v5985_v3 = vadd.f32 %v5953_v63, %v5830_v35  ;;  %v5986_v54 = vadd.f32 %v5954_v62, %v5831_v25  ;;  %v5383_v17 = vadd.f32 %v5351_v44, %v5228_v29  ;;  %v12656_v63 = vld [vmem:[#allocation436_spill] sm:$0xff] }
 0x362   :  { %v5384_v32 = vadd.f32 %v5352_v43, %v5229_v52  ;;  %v5662_v7 = vmul.f32 %v9457_v2, %v12654_v18  ;;  %v5816_v4 = vmul.f32 %v9780_v60, %v12655_v45  ;;  %v5817_v46 = vmul.f32 %v9804_v15, %v12655_v45  ;;  %v12661_v43 = vld [vmem:[#allocation238_spill] sm:$0xff]  ;;  %v12662_v52 = vld [vmem:[#allocation239_spill] sm:$0xff] }
 0x363   :  { %6811 = vmatprep.subr.bf16.mxu0 %v4693_v39  ;;  %v5971_v11 = vmul.f32 %v9810_v26, %v12656_v63  ;;  %v5972_v12 = vmul.f32 %v9812_v48, %v12656_v63  ;;  %v6014_v41 = vpack.c.bf16 %v5986_v54, %v5985_v3  ;;  %v5538_v62 = vadd.f32 %v5506_v14, %v5383_v17 }
 0x364   :  { %v5539_v42 = vadd.f32 %v5507_v0, %v5384_v32  ;;  %v4036_v1 = vadd.f32 %v12658_v31, %v12657_v34  ;;  %v4037_v51 = vadd.f32 %v12660_v22, %v12659_v37  ;;  %v4314_v6 = vmul.f32 %v9486_v28, %v12629_v59  ;;  %v12664_v0 = vld [vmem:[#allocation129_spill] sm:$0xff]  ;;  %v12667_v34 = vld [vmem:[#allocation162_spill] sm:$0xff] }
 0x365   :  { %v4315_v44 = vmul.f32 %v9491_v47, %v12629_v59  ;;  %v4469_v49 = vmul.f32 %v9914_v16, %v12630_v40  ;;  %6840 = vmatpush3.bf16.msra.mxu1 %v6014_v41  ;;  %v5693_v27 = vadd.f32 %v5661_v57, %v5538_v62  ;;  %v4470_v29 = vmul.f32 %v9916_v8, %v12630_v40  ;;  %v12663_v59 = vld [vmem:[#allocation33_spill] sm:$0xff]  ;;  %v12666_v41 = vld [vmem:[#allocation130_spill] sm:$0xff] }
 0x366   :  { %v5694_v35 = vadd.f32 %v5662_v7, %v5539_v42  ;;  %v4191_v25 = vadd.f32 %v12661_v43, %v4036_v1  ;;  %v4192_v14 = vadd.f32 %v12662_v52, %v4037_v51  ;;  %v4624_v39 = vmul.f32 %v12497_v9, %v12633_v30  ;;  %v12665_v7 = vld [vmem:[#allocation34_spill] sm:$0xff]  ;;  %v12668_v1 = vld [vmem:[#allocation255_spill] sm:$0xff] }
 0x367   :  { %v4625_v3 = vmul.f32 %v9920_v23, %v12633_v30  ;;  %v3744_v54 = vadd.f32 %v12664_v0, %v12663_v59  ;;  %v5848_v17 = vadd.f32 %v5816_v4, %v5693_v27  ;;  %v3745_v62 = vadd.f32 %v12666_v41, %v12665_v7 }
 0x368   :  { %v5849_v32 = vadd.f32 %v5817_v46, %v5694_v35  ;;  %v4346_v57 = vadd.f32 %v4314_v6, %v4191_v25  ;;  %v4347_v42 = vadd.f32 %v4315_v44, %v4192_v14  ;;  %v3867_v40 = vmul.f32 %v12589_v50, %v12667_v34  ;;  %v12669_v35 = vld [vmem:[#allocation231_spill] sm:$0xff]  ;;  %v12670_v14 = vld [vmem:[#allocation380_spill] sm:$0xff] }
 0x369   :  { %v3868_v31 = vmul.f32 %v12590_v55, %v12667_v34  ;;  %v4022_v37 = vmul.f32 %v12525_v38, %v12668_v1  ;;  %v6003_v30 = vadd.f32 %v5971_v11, %v5848_v17  ;;  %v4023_v4 = vmul.f32 %v12650_v19, %v12668_v1 }
 0x36a   :  { %v6004_v22 = vadd.f32 %v5972_v12, %v5849_v32  ;;  %v4501_v51 = vadd.f32 %v4469_v49, %v4346_v57  ;;  %v4502_v46 = vadd.f32 %v4470_v29, %v4347_v42  ;;  %v3899_v6 = vadd.f32 %v3867_v40, %v3744_v54  ;;  %v12671_v29 = vld [vmem:[#allocation338_spill] sm:$0xff]  ;;  %v12674_v42 = vld [vmem:[#allocation321_spill] sm:$0xff] }
 0x36b   :  { %v3900_v27 = vadd.f32 %v3868_v31, %v3745_v62  ;;  %v4177_v44 = vmul.f32 %v12652_v36, %v12669_v35  ;;  %v4178_v52 = vmul.f32 %v12653_v61, %v12669_v35  ;;  %v4332_v59 = vmul.f32 %v9425_v13, %v12670_v14  ;;  %v12673_v62 = vld [vmem:[#allocation60_spill] sm:$0xff]  ;;  %v12675_v31 = vld [vmem:[#allocation61_spill] sm:$0xff] }
 0x36c   :  { %v6023_v43 = vpack.c.bf16 %v6004_v22, %v6003_v30  ;;  %v4656_v25 = vadd.f32 %v4624_v39, %v4501_v51  ;;  %v4657_v11 = vadd.f32 %v4625_v3, %v4502_v46  ;;  %v4054_v12 = vadd.f32 %v4022_v37, %v3899_v6  ;;  %v12672_v39 = vld [vmem:[#allocation422_spill] sm:$0xff]  ;;  %v12677_v22 = vld [vmem:[#allocation397_spill] sm:$0xff] }
 0x36d   :  { %v4055_v49 = vadd.f32 %v4023_v4, %v3900_v27  ;;  %v4333_v0 = vmul.f32 %v9457_v2, %v12670_v14  ;;  %v4487_v54 = vmul.f32 %v9780_v60, %v12671_v29  ;;  %v4488_v17 = vmul.f32 %v9804_v15, %v12671_v29  ;;  %v12676_v37 = vld [vmem:[#allocation322_spill] sm:$0xff]  ;;  %v12678_v46 = vld [vmem:[#allocation365_spill] sm:$0xff] }
 0x36e   :  { %6841 = vmatprep.subr.bf16.mxu1 %v6023_v43  ;;  %v4642_v32 = vmul.f32 %v9810_v26, %v12672_v39  ;;  %v4643_v57 = vmul.f32 %v9812_v48, %v12672_v39  ;;  %v4685_v7 = vpack.c.bf16 %v4657_v11, %v4656_v25  ;;  %v4209_v3 = vadd.f32 %v4177_v44, %v4054_v12  ;;  %v12679_v44 = vld [vmem:[#allocation281_spill] sm:$0xff]  ;;  %v12680_v11 = vld [vmem:[#allocation282_spill] sm:$0xff] }
 0x36f   :  { %v4210_v41 = vadd.f32 %v4178_v52, %v4055_v49  ;;  %v5367_v40 = vadd.f32 %v12674_v42, %v12673_v62  ;;  %v5368_v30 = vadd.f32 %v12676_v37, %v12675_v31  ;;  %v5645_v51 = vmul.f32 %v9425_v13, %v12677_v22  ;;  %v12681_v49 = vld [vmem:[#allocation433_spill] sm:$0xff]  ;;  %v12682_v31 = vld [vmem:[#allocation84_spill] sm:$0xff] }
 0x370   :  { %v5646_v4 = vmul.f32 %v9457_v2, %v12677_v22  ;;  %v5800_v6 = vmul.f32 %v9780_v60, %v12678_v46  ;;  %6812 = vmatpush3.bf16.msra.mxu0 %v4685_v7  ;;  %v4364_v27 = vadd.f32 %v4332_v59, %v4209_v3  ;;  %v5801_v52 = vmul.f32 %v9804_v15, %v12678_v46  ;;  %v12683_v37 = vld [vmem:[#allocation160_spill] sm:$0xff]  ;;  %v12685_v3 = vld [vmem:[#allocation161_spill] sm:$0xff] }
 0x371   :  { %v4365_v43 = vadd.f32 %v4333_v0, %v4210_v41  ;;  %v5522_v25 = vadd.f32 %v12679_v44, %v5367_v40  ;;  %v5523_v12 = vadd.f32 %v12680_v11, %v5368_v30  ;;  %v5955_v62 = vmul.f32 %v9810_v26, %v12681_v49  ;;  %v12684_v0 = vld [vmem:[#allocation85_spill] sm:$0xff] }
 0x372   :  { %v5956_v42 = vmul.f32 %v9812_v48, %v12681_v49  ;;  %v5075_v61 = vadd.f32 %v12683_v37, %v12682_v31  ;;  %v4519_v36 = vadd.f32 %v4487_v54, %v4364_v27  ;;  %v5076_v41 = vadd.f32 %v12685_v3, %v12684_v0  ;;  %v12689_v37 = vld [vmem:[#allocation262_spill] sm:$0xff] }
 0x373   :  { %v4520_v7 = vadd.f32 %v4488_v17, %v4365_v43  ;;  %v5677_v59 = vadd.f32 %v5645_v51, %v5522_v25  ;;  %v5678_v40 = vadd.f32 %v5646_v4, %v5523_v12  ;;  %v5198_v44 = vmul.f32 %v12370_v21, %v12648_v20  ;;  %v12691_v3 = vld [vmem:[#allocation334_spill] sm:$0xff] }
 0x374   :  { %v5199_v30 = vmul.f32 %v12371_v58, %v12648_v20  ;;  %v5353_v11 = vmul.f32 %v8867_v53, %v12649_v5  ;;  %v4674_v19 = vadd.f32 %v4642_v32, %v4519_v36  ;;  %v5354_v54 = vmul.f32 %v8869_v33, %v12649_v5 }
 0x375   :  { %v4675_v38 = vadd.f32 %v4643_v57, %v4520_v7  ;;  %v5832_v55 = vadd.f32 %v5800_v6, %v5677_v59  ;;  %v5833_v17 = vadd.f32 %v5801_v52, %v5678_v40  ;;  %v5230_v51 = vadd.f32 %v5198_v44, %v5075_v61  ;;  %v12690_v59 = vld [vmem:[#allocation377_spill] sm:$0xff]  ;;  %v12692_v44 = vld [vmem:[#allocation240_spill] sm:$0xff] }
 0x376   :  { %v5231_v27 = vadd.f32 %v5199_v30, %v5076_v41  ;;  %v5508_v4 = vmul.f32 %v12057_v56, %v12651_v24  ;;  %v5509_v20 = vmul.f32 %v12496_v10, %v12651_v24  ;;  %v5663_v12 = vmul.f32 %v9486_v28, %v12654_v18 }
 0x377   :  { %v4694_v43 = vpack.c.bf16 %v4675_v38, %v4674_v19  ;;  %v5987_v25 = vadd.f32 %v5955_v62, %v5832_v55  ;;  %v5988_v36 = vadd.f32 %v5956_v42, %v5833_v17  ;;  %v5385_v32 = vadd.f32 %v5353_v11, %v5230_v51  ;;  %v12686_v62 = vld [vmem:[#allocation180_spill] sm:$0xff]  ;;  %v12687_v42 = vld [vmem:[#allocation261_spill] sm:$0xff]  ;;  %v12694_v51 = vld [vmem:[#allocation419_spill] sm:$0xff] }
 0x378   :  { %v5386_v57 = vadd.f32 %v5354_v54, %v5231_v27  ;;  %v5664_v5 = vmul.f32 %v9491_v47, %v12654_v18  ;;  %v5818_v61 = vmul.f32 %v9914_v16, %v12655_v45  ;;  %v5819_v38 = vmul.f32 %v9916_v8, %v12655_v45  ;;  %v12688_v18 = vld [vmem:[#allocation181_spill] sm:$0xff] }
 0x379   :  { %6813 = vmatprep.subr.bf16.mxu0 %v4694_v43  ;;  %v5973_v55 = vmul.f32 %v12497_v9, %v12656_v63  ;;  %v5974_v19 = vmul.f32 %v9920_v23, %v12656_v63  ;;  %v6015_v24 = vpack.c.bf16 %v5988_v36, %v5987_v25  ;;  %v5540_v6 = vadd.f32 %v5508_v4, %v5385_v32  ;;  %v12693_v54 = vld [vmem:[#allocation241_spill] sm:$0xff]  ;;  %v12695_v43 = vld [vmem:[#allocation35_spill] sm:$0xff] }
 0x37a   :  { %v5541_v52 = vadd.f32 %v5509_v20, %v5386_v57  ;;  %v4038_v31 = vadd.f32 %v12687_v42, %v12686_v62  ;;  %v4039_v7 = vadd.f32 %v12689_v37, %v12688_v18  ;;  %v4316_v0 = vmul.f32 %v9425_v13, %v12690_v59  ;;  %v12696_v25 = vld [vmem:[#allocation131_spill] sm:$0xff]  ;;  %v12697_v57 = vld [vmem:[#allocation36_spill] sm:$0xff] }
 0x37b   :  { %v4317_v45 = vmul.f32 %v9457_v2, %v12690_v59  ;;  %v4471_v41 = vmul.f32 %v9780_v60, %v12691_v3  ;;  %6842 = vmatpush3.bf16.msra.mxu1 %v6015_v24  ;;  %v5695_v63 = vadd.f32 %v5663_v12, %v5540_v6  ;;  %v4472_v11 = vmul.f32 %v9804_v15, %v12691_v3 }
 0x37c   :  { %v5696_v40 = vadd.f32 %v5664_v5, %v5541_v52  ;;  %v4193_v30 = vadd.f32 %v12692_v44, %v4038_v31  ;;  %v4194_v17 = vadd.f32 %v12693_v54, %v4039_v7  ;;  %v4626_v27 = vmul.f32 %v9810_v26, %v12694_v51  ;;  %v12698_v5 = vld [vmem:[#allocation132_spill] sm:$0xff] }
 0x37d   :  { %v4627_v4 = vmul.f32 %v9812_v48, %v12694_v51  ;;  %v3746_v20 = vadd.f32 %v12696_v25, %v12695_v43  ;;  %v5850_v36 = vadd.f32 %v5818_v61, %v5695_v63  ;;  %v3747_v24 = vadd.f32 %v12698_v5, %v12697_v57  ;;  %v12699_v43 = vld [vmem:[#allocation63_spill] sm:$0xff] }
 0x37e   :  { %v5851_v32 = vadd.f32 %v5819_v38, %v5696_v40  ;;  %v4348_v12 = vadd.f32 %v4316_v0, %v4193_v30  ;;  %v4349_v6 = vadd.f32 %v4317_v45, %v4194_v17  ;;  %v3869_v52 = vmul.f32 %v12370_v21, %v12667_v34  ;;  %v12700_v25 = vld [vmem:[#allocation323_spill] sm:$0xff] }
 0x37f   :  { %v3870_v62 = vmul.f32 %v12371_v58, %v12667_v34  ;;  %v4024_v42 = vmul.f32 %v8867_v53, %v12668_v1  ;;  %v6005_v31 = vadd.f32 %v5973_v55, %v5850_v36  ;;  %v4025_v61 = vmul.f32 %v8869_v33, %v12668_v1  ;;  %v12702_v36 = vld [vmem:[#allocation324_spill] sm:$0xff] }
 0x380   :  { %v6006_v18 = vadd.f32 %v5974_v19, %v5851_v32  ;;  %v4503_v37 = vadd.f32 %v4471_v41, %v4348_v12  ;;  %v4504_v38 = vadd.f32 %v4472_v11, %v4349_v6  ;;  %v3901_v7 = vadd.f32 %v3869_v52, %v3746_v20 }
 0x381   :  { %v3902_v0 = vadd.f32 %v3870_v62, %v3747_v24  ;;  %v4179_v45 = vmul.f32 %v12057_v56, %v12669_v35  ;;  %v4180_v34 = vmul.f32 %v12496_v10, %v12669_v35  ;;  %v4334_v44 = vmul.f32 %v9486_v28, %v12670_v14  ;;  %v12703_v24 = vld [vmem:[#allocation283_spill] sm:$0xff]  ;;  %v12704_v62 = vld [vmem:[#allocation284_spill] sm:$0xff] }
 0x382   :  { %v6024_v63 = vpack.c.bf16 %v6006_v18, %v6005_v31  ;;  %v4658_v40 = vadd.f32 %v4626_v27, %v4503_v37  ;;  %v4659_v55 = vadd.f32 %v4627_v4, %v4504_v38  ;;  %v4056_v19 = vadd.f32 %v4024_v42, %v3901_v7  ;;  %v12706_v37 = vld [vmem:[#allocation7_spill] sm:$0xff] }
 0x383   :  { %v4057_v41 = vadd.f32 %v4025_v61, %v3902_v0  ;;  %v4335_v1 = vmul.f32 %v9491_v47, %v12670_v14  ;;  %v4489_v30 = vmul.f32 %v9914_v16, %v12671_v29  ;;  %v4490_v11 = vmul.f32 %v9916_v8, %v12671_v29  ;;  %v12701_v14 = vld [vmem:[#allocation64_spill] sm:$0xff] }
 0x384   :  { %6843 = vmatprep.subr.bf16.mxu1 %v6024_v63  ;;  %v4644_v54 = vmul.f32 %v12497_v9, %v12672_v39  ;;  %v4645_v35 = vmul.f32 %v9920_v23, %v12672_v39  ;;  %v4686_v17 = vpack.c.bf16 %v4659_v55, %v4658_v40  ;;  %v4211_v27 = vadd.f32 %v4179_v45, %v4056_v19  ;;  %v12707_v45 = vld [vmem:[#allocation8_spill] sm:$0xff]  ;;  %v12710_v55 = vld [vmem:[#allocation13_spill] sm:$0xff] }
 0x385   :  { %v4212_v4 = vadd.f32 %v4180_v34, %v4057_v41  ;;  %v5369_v20 = vadd.f32 %v12700_v25, %v12699_v43  ;;  %v5370_v32 = vadd.f32 %v12702_v36, %v12701_v14  ;;  %v5647_v12 = vmul.f32 %v9486_v28, %v12677_v22  ;;  %v12708_v34 = vld [vmem:[#allocation118_spill] sm:$0xff]  ;;  %v12711_v41 = vld [vmem:[#allocation205_spill] sm:$0xff] }
 0x386   :  { %v5648_v29 = vmul.f32 %v9491_v47, %v12677_v22  ;;  %v5802_v57 = vmul.f32 %v9914_v16, %v12678_v46  ;;  %6814 = vmatpush3.bf16.msra.mxu0 %v4686_v17  ;;  %v4366_v39 = vadd.f32 %v4334_v44, %v4211_v27  ;;  %v5803_v52 = vmul.f32 %v9916_v8, %v12678_v46  ;;  %v12705_v22 = vld [vmem:[#allocation62_spill] sm:$0xff]  ;;  %v12709_v46 = vld [vmem:[#allocation12_spill] sm:$0xff] }
 0x387   :  { %v4367_v5 = vadd.f32 %v4335_v1, %v4212_v4  ;;  %v5524_v6 = vadd.f32 %v12703_v24, %v5369_v20  ;;  %v5525_v42 = vadd.f32 %v12704_v62, %v5370_v32  ;;  %v5957_v31 = vmul.f32 %v12497_v9, %v12681_v49  ;;  %v12713_v20 = vld [vmem:[#allocation316_spill] sm:$0xff]  ;;  %v12714_v14 = vld [vmem:[#allocation6_spill] sm:$0xff]  ;;  %v12717_v24 = vld [vmem:[#allocation23_spill] sm:$0xff] }
 0x388   :  { %v5958_v18 = vmul.f32 %v9920_v23, %v12681_v49  ;;  %v4890_v61 = vmul.f32 %v12706_v37, %v12705_v22  ;;  %v4521_v38 = vadd.f32 %v4489_v30, %v4366_v39  ;;  %v4891_v63 = vmul.f32 %v12707_v45, %v12705_v22  ;;  %v12712_v30 = vld [vmem:[#allocation17_spill] sm:$0xff]  ;;  %v12718_v62 = vld [vmem:[#allocation20_spill] sm:$0xff] }
 0x389   :  { %v4522_v7 = vadd.f32 %v4490_v11, %v4367_v5  ;;  %v5679_v0 = vadd.f32 %v5647_v12, %v5524_v6  ;;  %v5680_v40 = vadd.f32 %v5648_v29, %v5525_v42  ;;  %v5045_v44 = vmul.f32 %v12709_v46, %v12708_v34  ;;  %v12715_v29 = vld [vmem:[#allocation78_spill] sm:$0xff] }
 0x38a   :  { %v5046_v19 = vmul.f32 %v12710_v55, %v12708_v34  ;;  %v5200_v1 = vmul.f32 %v12589_v50, %v12711_v41  ;;  %v4676_v49 = vadd.f32 %v4644_v54, %v4521_v38  ;;  %v5201_v11 = vmul.f32 %v12712_v30, %v12711_v41  ;;  %v12716_v5 = vld [vmem:[#allocation278_spill] sm:$0xff] }
 0x38b   :  { %v4677_v17 = vadd.f32 %v4645_v35, %v4522_v7  ;;  %v5834_v27 = vadd.f32 %v5802_v57, %v5679_v0  ;;  %v5835_v4 = vadd.f32 %v5803_v52, %v5680_v40  ;;  %v5077_v43 = vadd.f32 %v5045_v44, %v4890_v61  ;;  %v12719_v52 = vld [vmem:[#allocation405_spill] sm:$0xff] }
 0x38c   :  { %v5078_v25 = vadd.f32 %v5046_v19, %v4891_v63  ;;  %v5355_v36 = vmul.f32 %v12714_v14, %v12713_v20  ;;  %v5356_v39 = vmul.f32 %v12715_v29, %v12713_v20  ;;  %v5510_v6 = vmul.f32 %v12717_v24, %v12716_v5  ;;  %v12721_v44 = vld [vmem:[#allocation437_spill] sm:$0xff] }
 0x38d   :  { %v4695_v32 = vpack.c.bf16 %v4677_v17, %v4676_v49  ;;  %v5989_v12 = vadd.f32 %v5957_v31, %v5834_v27  ;;  %v5990_v54 = vadd.f32 %v5958_v18, %v5835_v4  ;;  %v5232_v35 = vadd.f32 %v5200_v1, %v5077_v43  ;;  %v12720_v31 = vld [vmem:[#allocation369_spill] sm:$0xff]  ;;  %v12722_v49 = vld [vmem:[#allocation182_spill] sm:$0xff]  ;;  %v12723_v17 = vld [vmem:[#allocation263_spill] sm:$0xff] }
 0x38e   :  { %v5233_v57 = vadd.f32 %v5201_v11, %v5078_v25  ;;  %v5511_v42 = vmul.f32 %v12718_v62, %v12716_v5  ;;  %v5665_v61 = vmul.f32 %v9425_v13, %v12719_v52  ;;  %v5666_v38 = vmul.f32 %v9457_v2, %v12719_v52  ;;  %v12724_v11 = vld [vmem:[#allocation183_spill] sm:$0xff]  ;;  %v12725_v4 = vld [vmem:[#allocation264_spill] sm:$0xff] }
 0x38f   :  { %6815 = vmatprep.subr.bf16.mxu0 %v4695_v32  ;;  %v5820_v7 = vmul.f32 %v9780_v60, %v12720_v31  ;;  %v5821_v0 = vmul.f32 %v9804_v15, %v12720_v31  ;;  %v6016_v63 = vpack.c.bf16 %v5990_v54, %v5989_v12  ;;  %v5387_v18 = vadd.f32 %v5355_v36, %v5232_v35  ;;  %v12726_v54 = vld [vmem:[#allocation242_spill] sm:$0xff] }
 0x390   :  { %v5388_v40 = vadd.f32 %v5356_v39, %v5233_v57  ;;  %v5975_v19 = vmul.f32 %v9810_v26, %v12721_v44  ;;  %v5976_v1 = vmul.f32 %v9812_v48, %v12721_v44  ;;  %v4040_v27 = vadd.f32 %v12723_v17, %v12722_v49  ;;  %v12727_v57 = vld [vmem:[#allocation243_spill] sm:$0xff] }
 0x391   :  { %v4041_v43 = vadd.f32 %v12725_v4, %v12724_v11  ;;  %v4318_v25 = vmul.f32 %v9486_v28, %v12690_v59  ;;  %6844 = vmatpush3.bf16.msra.mxu1 %v6016_v63  ;;  %v5542_v32 = vadd.f32 %v5510_v6, %v5387_v18  ;;  %v4319_v36 = vmul.f32 %v9491_v47, %v12690_v59  ;;  %v12729_v4 = vld [vmem:[#allocation119_spill] sm:$0xff] }
 0x392   :  { %v5543_v12 = vadd.f32 %v5511_v42, %v5388_v40  ;;  %v4473_v39 = vmul.f32 %v9914_v16, %v12691_v3  ;;  %v4195_v35 = vadd.f32 %v12726_v54, %v4040_v27  ;;  %v4474_v49 = vmul.f32 %v9916_v8, %v12691_v3  ;;  %v12728_v42 = vld [vmem:[#allocation24_spill] sm:$0xff] }
 0x393   :  { %v4196_v44 = vadd.f32 %v12727_v57, %v4041_v43  ;;  %v4628_v17 = vmul.f32 %v12497_v9, %v12694_v51  ;;  %v5697_v11 = vadd.f32 %v5665_v61, %v5542_v32  ;;  %v4629_v6 = vmul.f32 %v9920_v23, %v12694_v51 }
 0x394   :  { %v5698_v63 = vadd.f32 %v5666_v38, %v5543_v12  ;;  %v3561_v59 = vmul.f32 %v12706_v37, %v12728_v42  ;;  %v4350_v18 = vadd.f32 %v4318_v25, %v4195_v35  ;;  %v3562_v27 = vmul.f32 %v12707_v45, %v12728_v42  ;;  %v12730_v38 = vld [vmem:[#allocation163_spill] sm:$0xff] }
 0x395   :  { %v4351_v40 = vadd.f32 %v4319_v36, %v4196_v44  ;;  %v3716_v43 = vmul.f32 %v12709_v46, %v12729_v4  ;;  %v5852_v3 = vadd.f32 %v5820_v7, %v5697_v11  ;;  %v3717_v61 = vmul.f32 %v12710_v55, %v12729_v4  ;;  %v12731_v36 = vld [vmem:[#allocation256_spill] sm:$0xff] }
 0x396   :  { %v5853_v54 = vadd.f32 %v5821_v0, %v5698_v63  ;;  %v3871_v32 = vmul.f32 %v12589_v50, %v12730_v38  ;;  %v4505_v51 = vadd.f32 %v4473_v39, %v4350_v18  ;;  %v3872_v37 = vmul.f32 %v12712_v30, %v12730_v38  ;;  %v12732_v39 = vld [vmem:[#allocation234_spill] sm:$0xff] }
 0x397   :  { %v4506_v12 = vadd.f32 %v4474_v49, %v4351_v40  ;;  %v3748_v57 = vadd.f32 %v3716_v43, %v3561_v59  ;;  %v6007_v44 = vadd.f32 %v5975_v19, %v5852_v3  ;;  %v3749_v45 = vadd.f32 %v3717_v61, %v3562_v27  ;;  %v12733_v63 = vld [vmem:[#allocation382_spill] sm:$0xff]  ;;  %v12735_v40 = vld [vmem:[#allocation423_spill] sm:$0xff] }
 0x398   :  { %v6008_v25 = vadd.f32 %v5976_v1, %v5853_v54  ;;  %v4026_v46 = vmul.f32 %v12714_v14, %v12731_v36  ;;  %v4660_v7 = vadd.f32 %v4628_v17, %v4505_v51  ;;  %v4027_v55 = vmul.f32 %v12715_v29, %v12731_v36  ;;  %v12736_v54 = vld [vmem:[#allocation67_spill] sm:$0xff]  ;;  %v12737_v61 = vld [vmem:[#allocation206_spill] sm:$0xff]  ;;  %v12738_v51 = vld [vmem:[#allocation68_spill] sm:$0xff] }
 0x399   :  { %v4661_v0 = vadd.f32 %v4629_v6, %v4506_v12  ;;  %v3903_v35 = vadd.f32 %v3871_v32, %v3748_v57  ;;  %v3904_v50 = vadd.f32 %v3872_v37, %v3749_v45  ;;  %v4181_v49 = vmul.f32 %v12717_v24, %v12732_v39  ;;  %v12734_v6 = vld [vmem:[#allocation339_spill] sm:$0xff] }
 0x39a   :  { %v6025_v11 = vpack.c.bf16 %v6008_v25, %v6007_v44  ;;  %v4182_v30 = vmul.f32 %v12718_v62, %v12732_v39  ;;  %v4336_v59 = vmul.f32 %v9425_v13, %v12733_v63  ;;  %v4337_v14 = vmul.f32 %v9457_v2, %v12733_v63  ;;  %v12739_v12 = vld [vmem:[#allocation207_spill] sm:$0xff] }
 0x39b   :  { %v4687_v19 = vpack.c.bf16 %v4661_v0, %v4660_v7  ;;  %v4058_v1 = vadd.f32 %v4026_v46, %v3903_v35  ;;  %v4059_v17 = vadd.f32 %v4027_v55, %v3904_v50  ;;  %v4491_v29 = vmul.f32 %v9780_v60, %v12734_v6  ;;  %v12740_v44 = vld [vmem:[#allocation271_spill] sm:$0xff]  ;;  %v12741_v46 = vld [vmem:[#allocation402_spill] sm:$0xff]  ;;  %v12742_v35 = vld [vmem:[#allocation325_spill] sm:$0xff] }
 0x39c   :  { %6845 = vmatprep.subr.bf16.mxu1 %v6025_v11  ;;  %v4492_v18 = vmul.f32 %v9804_v15, %v12734_v6  ;;  %v4646_v27 = vmul.f32 %v9810_v26, %v12735_v40  ;;  %v4647_v3 = vmul.f32 %v9812_v48, %v12735_v40  ;;  %v5216_v32 = vadd.f32 %v12737_v61, %v12736_v54  ;;  %v12743_v11 = vld [vmem:[#allocation326_spill] sm:$0xff]  ;;  %v12745_v54 = vld [vmem:[#allocation435_spill] sm:$0xff] }
 0x39d   :  { %6816 = vmatpush3.bf16.msra.mxu0 %v4687_v19  ;;  %v4213_v43 = vadd.f32 %v4181_v49, %v4058_v1  ;;  %v5217_v57 = vadd.f32 %v12739_v12, %v12738_v51  ;;  %v4214_v37 = vadd.f32 %v4182_v30, %v4059_v17  ;;  %v5494_v25 = vmul.f32 %v12717_v24, %v12740_v44  ;;  %v12744_v1 = vld [vmem:[#allocation366_spill] sm:$0xff] }
 0x39e   :  { %v5495_v45 = vmul.f32 %v12718_v62, %v12740_v44  ;;  %v5649_v7 = vmul.f32 %v9425_v13, %v12741_v46  ;;  %v5371_v55 = vadd.f32 %v12742_v35, %v5216_v32  ;;  %v5650_v49 = vmul.f32 %v9457_v2, %v12741_v46 }
 0x39f   :  { %v4368_v0 = vadd.f32 %v4336_v59, %v4213_v43  ;;  %v5372_v50 = vadd.f32 %v12743_v11, %v5217_v57  ;;  %v4369_v19 = vadd.f32 %v4337_v14, %v4214_v37  ;;  %v5804_v30 = vmul.f32 %v9780_v60, %v12744_v1  ;;  %v12746_v57 = vld [vmem:[#allocation10_spill] sm:$0xff]  ;;  %v12747_v14 = vld [vmem:[#allocation11_spill] sm:$0xff] }
 0x3a0   :  { %v5805_v17 = vmul.f32 %v9804_v15, %v12744_v1  ;;  %v5959_v61 = vmul.f32 %v9810_v26, %v12745_v54  ;;  %v5526_v12 = vadd.f32 %v5494_v25, %v5371_v55  ;;  %v5960_v43 = vmul.f32 %v9812_v48, %v12745_v54  ;;  %v12748_v11 = vld [vmem:[#allocation14_spill] sm:$0xff] }
 0x3a1   :  { %v4523_v51 = vadd.f32 %v4491_v29, %v4368_v0  ;;  %v5527_v59 = vadd.f32 %v5495_v45, %v5372_v50  ;;  %v4524_v32 = vadd.f32 %v4492_v18, %v4369_v19  ;;  %v4892_v35 = vmul.f32 %v12746_v57, %v12705_v22  ;;  %v12749_v29 = vld [vmem:[#allocation15_spill] sm:$0xff] }
 0x3a2   :  { %v4893_v37 = vmul.f32 %v12747_v14, %v12705_v22  ;;  %v5047_v46 = vmul.f32 %v12748_v11, %v12708_v34  ;;  %v5681_v44 = vadd.f32 %v5649_v7, %v5526_v12  ;;  %v5048_v25 = vmul.f32 %v12749_v29, %v12708_v34  ;;  %v12750_v12 = vld [vmem:[#allocation437_spill] sm:$0xff] }
 0x3a3   :  { %v4678_v1 = vadd.f32 %v4646_v27, %v4523_v51  ;;  %v5682_v40 = vadd.f32 %v5650_v49, %v5527_v59  ;;  %v4679_v45 = vadd.f32 %v4647_v3, %v4524_v32  ;;  %v5202_v18 = vmul.f32 %v12370_v21, %v12711_v41  ;;  %v12752_v32 = vld [vmem:[#allocation164_spill] sm:$0xff] }
 0x3a4   :  { %v5079_v0 = vadd.f32 %v5047_v46, %v4892_v35  ;;  %v5203_v55 = vmul.f32 %v12371_v58, %v12711_v41  ;;  %v5836_v50 = vadd.f32 %v5804_v30, %v5681_v44  ;;  %v5080_v22 = vadd.f32 %v5048_v25, %v4893_v37  ;;  %v12753_v37 = vld [vmem:[#allocation135_spill] sm:$0xff] }
 0x3a5   :  { %v5837_v19 = vadd.f32 %v5805_v17, %v5682_v40  ;;  %v5357_v54 = vmul.f32 %v8867_v53, %v12713_v20  ;;  %v4696_v27 = vpack.c.bf16 %v4679_v45, %v4678_v1  ;;  %v5358_v49 = vmul.f32 %v8869_v33, %v12713_v20 }
 0x3a6   :  { %v5234_v7 = vadd.f32 %v5202_v18, %v5079_v0  ;;  %v5512_v34 = vmul.f32 %v12057_v56, %v12716_v5  ;;  %v5991_v3 = vadd.f32 %v5959_v61, %v5836_v50  ;;  %v5235_v51 = vadd.f32 %v5203_v55, %v5080_v22  ;;  %v12755_v0 = vld [vmem:[#allocation105_spill] sm:$0xff] }
 0x3a7   :  { %v5992_v46 = vadd.f32 %v5960_v43, %v5837_v19  ;;  %v5513_v41 = vmul.f32 %v12496_v10, %v12716_v5  ;;  %6817 = vmatprep.subr.bf16.mxu0 %v4696_v27  ;;  %v5667_v44 = vmul.f32 %v9486_v28, %v12719_v52  ;;  %v5668_v1 = vmul.f32 %v9491_v47, %v12719_v52  ;;  %v12751_v43 = vld [vmem:[#allocation134_spill] sm:$0xff]  ;;  %v12754_v52 = vld [vmem:[#allocation165_spill] sm:$0xff] }
 0x3a8   :  { %v5389_v40 = vadd.f32 %v5357_v54, %v5234_v7  ;;  %v5822_v20 = vmul.f32 %v9914_v16, %v12720_v31  ;;  %v5390_v17 = vadd.f32 %v5358_v49, %v5235_v51  ;;  %v5823_v61 = vmul.f32 %v9916_v8, %v12720_v31  ;;  %v12756_v55 = vld [vmem:[#allocation381_spill] sm:$0xff]  ;;  %v12758_v7 = vld [vmem:[#allocation266_spill] sm:$0xff] }
 0x3a9   :  { %v6017_v30 = vpack.c.bf16 %v5992_v46, %v5991_v3  ;;  %v5977_v59 = vmul.f32 %v12497_v9, %v12750_v12  ;;  %v5978_v54 = vmul.f32 %v9920_v23, %v12750_v12  ;;  %v3887_v35 = vadd.f32 %v12752_v32, %v12751_v43  ;;  %v12757_v22 = vld [vmem:[#allocation265_spill] sm:$0xff]  ;;  %v12759_v46 = vld [vmem:[#allocation336_spill] sm:$0xff] }
 0x3aa   :  { %v5544_v5 = vadd.f32 %v5512_v34, %v5389_v40  ;;  %v3888_v25 = vadd.f32 %v12754_v52, %v12753_v37  ;;  %v5545_v45 = vadd.f32 %v5513_v41, %v5390_v17  ;;  %v4165_v18 = vmul.f32 %v12717_v24, %v12755_v0  ;;  %v12760_v41 = vld [vmem:[#allocation421_spill] sm:$0xff] }
 0x3ab   :  { %6846 = vmatpush3.bf16.msra.mxu1 %v6017_v30  ;;  %v4166_v31 = vmul.f32 %v12718_v62, %v12755_v0  ;;  %v4320_v50 = vmul.f32 %v9425_v13, %v12756_v55  ;;  %v4042_v27 = vadd.f32 %v12757_v22, %v3887_v35  ;;  %v4321_v34 = vmul.f32 %v9457_v2, %v12756_v55 }
 0x3ac   :  { %v5699_v19 = vadd.f32 %v5667_v44, %v5544_v5  ;;  %v4043_v49 = vadd.f32 %v12758_v7, %v3888_v25  ;;  %v5700_v3 = vadd.f32 %v5668_v1, %v5545_v45  ;;  %v4475_v51 = vmul.f32 %v9780_v60, %v12759_v46  ;;  %v12761_v45 = vld [vmem:[#allocation423_spill] sm:$0xff] }
 0x3ad   :  { %v4476_v24 = vmul.f32 %v9804_v15, %v12759_v46  ;;  %v4630_v62 = vmul.f32 %v9810_v26, %v12760_v41  ;;  %v4197_v13 = vadd.f32 %v4165_v18, %v4042_v27  ;;  %v4631_v30 = vmul.f32 %v9812_v48, %v12760_v41  ;;  %v12764_v27 = vld [vmem:[#allocation70_spill] sm:$0xff] }
 0x3ae   :  { %v5854_v40 = vadd.f32 %v5822_v20, %v5699_v19  ;;  %v4198_v44 = vadd.f32 %v4166_v31, %v4043_v49  ;;  %v5855_v17 = vadd.f32 %v5823_v61, %v5700_v3  ;;  %v3563_v2 = vmul.f32 %v12746_v57, %v12728_v42  ;;  %v12763_v19 = vld [vmem:[#allocation208_spill] sm:$0xff] }
 0x3af   :  { %v3564_v1 = vmul.f32 %v12747_v14, %v12728_v42  ;;  %v3718_v60 = vmul.f32 %v12748_v11, %v12729_v4  ;;  %v4352_v12 = vadd.f32 %v4320_v50, %v4197_v13  ;;  %v3719_v26 = vmul.f32 %v12749_v29, %v12729_v4  ;;  %v12762_v50 = vld [vmem:[#allocation69_spill] sm:$0xff] }
 0x3b0   :  { %v6009_v15 = vadd.f32 %v5977_v59, %v5854_v40  ;;  %v4353_v5 = vadd.f32 %v4321_v34, %v4198_v44  ;;  %v6010_v20 = vadd.f32 %v5978_v54, %v5855_v17  ;;  %v3873_v48 = vmul.f32 %v12370_v21, %v12730_v38  ;;  %v12766_v34 = vld [vmem:[#allocation271_spill] sm:$0xff]  ;;  %v12769_v44 = vld [vmem:[#allocation328_spill] sm:$0xff] }
 0x3b1   :  { %v3750_v43 = vadd.f32 %v3718_v60, %v3563_v2  ;;  %v3874_v57 = vmul.f32 %v12371_v58, %v12730_v38  ;;  %v4507_v61 = vadd.f32 %v4475_v51, %v4352_v12  ;;  %v3751_v42 = vadd.f32 %v3719_v26, %v3564_v1  ;;  %v12767_v51 = vld [vmem:[#allocation402_spill] sm:$0xff]  ;;  %v12768_v40 = vld [vmem:[#allocation327_spill] sm:$0xff] }
 0x3b2   :  { %v4508_v32 = vadd.f32 %v4476_v24, %v4353_v5  ;;  %v4028_v14 = vmul.f32 %v8867_v53, %v12731_v36  ;;  %v6026_v11 = vpack.c.bf16 %v6010_v20, %v6009_v15  ;;  %v4029_v35 = vmul.f32 %v8869_v33, %v12731_v36  ;;  %v12770_v1 = vld [vmem:[#allocation366_spill] sm:$0xff]  ;;  %v12771_v12 = vld [vmem:[#allocation435_spill] sm:$0xff] }
 0x3b3   :  { %v3905_v59 = vadd.f32 %v3873_v48, %v3750_v43  ;;  %v4183_v4 = vmul.f32 %v12057_v56, %v12732_v39  ;;  %v4662_v29 = vadd.f32 %v4630_v62, %v4507_v61  ;;  %v3906_v21 = vadd.f32 %v3874_v57, %v3751_v42  ;;  %v12772_v61 = vld [vmem:[#allocation136_spill] sm:$0xff] }
 0x3b4   :  { %v4663_v54 = vadd.f32 %v4631_v30, %v4508_v32  ;;  %v4184_v58 = vmul.f32 %v12496_v10, %v12732_v39  ;;  %6847 = vmatprep.subr.bf16.mxu1 %v6026_v11  ;;  %v4338_v37 = vmul.f32 %v9486_v28, %v12733_v63  ;;  %v4339_v53 = vmul.f32 %v9491_v47, %v12733_v63  ;;  %v12765_v63 = vld [vmem:[#allocation209_spill] sm:$0xff]  ;;  %v12773_v32 = vld [vmem:[#allocation166_spill] sm:$0xff]  ;;  %v12775_v11 = vld [vmem:[#allocation167_spill] sm:$0xff] }
 0x3b5   :  { %v4060_v38 = vadd.f32 %v4028_v14, %v3905_v59  ;;  %v4493_v33 = vmul.f32 %v9914_v16, %v12734_v6  ;;  %v4061_v52 = vadd.f32 %v4029_v35, %v3906_v21  ;;  %v4494_v25 = vmul.f32 %v9916_v8, %v12734_v6  ;;  %v12774_v14 = vld [vmem:[#allocation137_spill] sm:$0xff] }
 0x3b6   :  { %v4688_v36 = vpack.c.bf16 %v4663_v54, %v4662_v29  ;;  %v4648_v18 = vmul.f32 %v12497_v9, %v12761_v45  ;;  %v4649_v31 = vmul.f32 %v9920_v23, %v12761_v45  ;;  %v5218_v22 = vadd.f32 %v12763_v19, %v12762_v50 }
 0x3b7   :  { %v4215_v39 = vadd.f32 %v4183_v4, %v4060_v38  ;;  %v5219_v7 = vadd.f32 %v12765_v63, %v12764_v27  ;;  %v4216_v49 = vadd.f32 %v4184_v58, %v4061_v52  ;;  %v5496_v3 = vmul.f32 %v12057_v56, %v12766_v34  ;;  %v12776_v38 = vld [vmem:[#allocation267_spill] sm:$0xff]  ;;  %v7000_v63 = vld [vmem:[%s11470_s5 + $0x60] ss:$8 sps:$4 sm:$0xff]  }
 0x3b8   :  { %6818 = vmatpush3.bf16.msra.mxu0 %v4688_v36  ;;  %v5497_v6 = vmul.f32 %v12496_v10, %v12766_v34  ;;  %v5651_v24 = vmul.f32 %v9486_v28, %v12767_v51  ;;  %v5373_v13 = vadd.f32 %v12768_v40, %v5218_v22  ;;  %v5652_v17 = vmul.f32 %v9491_v47, %v12767_v51  ;;  %v7011_v34 = vld [vmem:[%s11470_s5 + $0x50] ss:$8 sps:$4 sm:$0xff]  }
 0x3b9   :  { %v4370_v62 = vadd.f32 %v4338_v37, %v4215_v39  ;;  %v5374_v30 = vadd.f32 %v12769_v44, %v5219_v7  ;;  %v4371_v2 = vadd.f32 %v4339_v53, %v4216_v49  ;;  %v5806_v60 = vmul.f32 %v9914_v16, %v12770_v1  ;;  %v12777_v53 = vld [vmem:[#allocation268_spill] sm:$0xff] }
 0x3ba   :  { %v5807_v15 = vmul.f32 %v9916_v8, %v12770_v1  ;;  %v5961_v5 = vmul.f32 %v12497_v9, %v12771_v12  ;;  %v5528_v20 = vadd.f32 %v5496_v3, %v5373_v13  ;;  %v5962_v48 = vmul.f32 %v9920_v23, %v12771_v12 }
 0x3bb   :  { %v4525_v26 = vadd.f32 %v4493_v33, %v4370_v62  ;;  %v5529_v43 = vadd.f32 %v5497_v6, %v5374_v30  ;;  %v4526_v57 = vadd.f32 %v4494_v25, %v4371_v2  ;;  %v3889_v42 = vadd.f32 %v12773_v32, %v12772_v61 }
 0x3bc   :  { %v3890_v59 = vadd.f32 %v12775_v11, %v12774_v14  ;;  %v4167_v35 = vmul.f32 %v12057_v56, %v12755_v0  ;;  %v5683_v29 = vadd.f32 %v5651_v24, %v5528_v20  ;;  %v4168_v21 = vmul.f32 %v12496_v10, %v12755_v0 }
 0x3bd   :  { %v4680_v4 = vadd.f32 %v4648_v18, %v4525_v26  ;;  %v5684_v54 = vadd.f32 %v5652_v17, %v5529_v43  ;;  %v4681_v58 = vadd.f32 %v4649_v31, %v4526_v57  ;;  %v4044_v37 = vadd.f32 %v12776_v38, %v3889_v42  ;;  %v7017_v38 = vld [vmem:[%s11473_s7] sm:$0xff]  }
 0x3be   :  { %v4045_v33 = vadd.f32 %v12777_v53, %v3890_v59  ;;  %v4322_v36 = vmul.f32 %v9486_v28, %v12756_v55  ;;  %v5838_v52 = vadd.f32 %v5806_v60, %v5683_v29  ;;  %v4323_v45 = vmul.f32 %v9491_v47, %v12756_v55  ;;  %v7013_v29 = vld [vmem:[%s11472_s8] sm:$0xff]  }
 0x3bf   :  { %v5839_v25 = vadd.f32 %v5807_v15, %v5684_v54  ;;  %v4477_v56 = vmul.f32 %v9914_v16, %v12759_v46  ;;  %v4697_v18 = vpack.c.bf16 %v4681_v58, %v4680_v4  ;;  %v4199_v39 = vadd.f32 %v4167_v35, %v4044_v37  ;;  %v7012_v4 = vld [vmem:[%s11471_s2] sm:$0xff]   ;;  %v7014_v54 = vld [vmem:[%s11472_s8 + $0x8] sm:$0xff]   ;;  %v7016_v58 = vld [vmem:[%s11472_s8 + $0x18] sm:$0xff]  }
 0x3c0   :  { %v4200_v50 = vadd.f32 %v4168_v21, %v4045_v33  ;;  %v4478_v10 = vmul.f32 %v9916_v8, %v12759_v46  ;;  %v5993_v0 = vadd.f32 %v5961_v5, %v5838_v52  ;;  %v4632_v28 = vmul.f32 %v12497_v9, %v12760_v41  ;;  %v7006_v8 = vld [vmem:[%s11470_s5 + $0x74] ss:$8 sps:$4 sm:$0xff]  }
 0x3c1   :  { %v5994_v31 = vadd.f32 %v5962_v48, %v5839_v25  ;;  %6819 = vmatprep.subr.bf16.mxu0 %v4697_v18  ;;  %v4354_v19 = vadd.f32 %v4322_v36, %v4199_v39  ;;  %v4633_v47 = vmul.f32 %v9920_v23, %v12760_v41  ;;  %v7003_v23 = vld [vmem:[%s11470_s5 + $0x40] ss:$8 sps:$4 sm:$0xff]   ;;  %v7008_v9 = vld [vmem:[%s11470_s5 + $0x54] ss:$8 sps:$4 sm:$0xff]   ;;  %v7010_v41 = vld [vmem:[%s11470_s5 + $0x70] ss:$8 sps:$4 sm:$0xff]  }
 0x3c2   :  { %v4355_v22 = vadd.f32 %v4323_v45, %v4200_v50  ;;  %v7015_v21 = vld [vmem:[%s11472_s8 + $0x10] sm:$0xff]  }
 0x3c3   :  { %v6018_v55 = vpack.c.bf16 %v5994_v31, %v5993_v0  ;;  %v4509_v27 = vadd.f32 %v4477_v56, %v4354_v19 }
 0x3c4   :  { %v4510_v16 = vadd.f32 %v4478_v10, %v4355_v22 }
 0x3c5   :  { %6848 = vmatpush3.bf16.msra.mxu1 %v6018_v55  ;;  %v4664_v46 = vadd.f32 %v4632_v28, %v4509_v27 }
 0x3c6   :  { %v4665_v7 = vadd.f32 %v4633_v47, %v4510_v16  ;;  %v6103_v16 = vpop.permute.xlu0 %6102 }
 0x3c8   :  { %v4689_v49 = vpack.c.bf16 %v4665_v7, %v4664_v46  ;;  %6080 = vmatmul.mubr.bf16.vlgmr.msra.gmra.mrb[28].mxu1 %v7000_v63 }
 0x3c9   :  { %6087 = vmatprep.mubr.bf16.mxu1 %v7006_v8 }
 0x3ca   :  { %6820 = vmatpush3.bf16.msra.mxu0 %v4689_v49  ;;  %v6108_v49 = vpop.permute.xlu1 %6107 }
 0x3cb   :  { %6928 = vmatprep.subr.bf16.mxu0 %v7012_v4 }
 0x3cd   :  { %4751 = vmatmul.mubr.bf16.vlgmr.msra.gmra.mrb[20].mxu0 %v7003_v23 }
 0x3ce   :  { %4758 = vmatprep.mubr.bf16.mxu0 %v7008_v9  ;;  %6929 = vmatpush3.bf16.msra.mxu0 %v7012_v4 }
 0x3d0   :  { %6088 = vmatmul.mubr.bf16.gmra.mrb[32].mxu1 %v7010_v41 }
 0x3d5   :  { %4759 = vmatmul.mubr.bf16.gmra.mrb[24].mxu0 %v7011_v34 }
 0x3d6   :  { %6930 = vmatprep.mubr.msk.bf16.mxu0 %vm6158_vm2, %v7013_v29 }
 0x3dd   :  { %6931 = vmatmul.mubr.msk.bf16.vlgmr.msra.gmra.mrb[28].mxu0 %vm6158_vm2, %v7014_v54 }
 0x3de   :  { %6934 = vmatprep.mubr.msk.bf16.mxu0 %vm6158_vm2, %v7015_v21 }
 0x3e5   :  { %6935 = vmatmul.mubr.msk.bf16.gmra.mrb[32].mxu0 %vm6158_vm2, %v7016_v58 }
 0x3e6   :  { %6942 = vmatprep.mubr.msk.bf16.mxu0 %vm6256_vm3, %v7017_v38 }
 0x3e8   :  { %v6793_v3 = vpop.f32.mrb[20].mxu1 }
 0x3e9   :  { %v6794_v6 = vpop.f32.mrb[21].mxu1 }
 0x3ea   :  { %v6795_v51 = vadd.f32 %v6794_v6, %v6793_v3  ;;  %v6796_v24 = vpop.f32.mrb[22].mxu1 }
 0x3eb   :  { %v6797_v62 = vpop.f32.mrb[23].mxu1 }
 0x3ec   :  { %v6798_v40 = vadd.f32 %v6797_v62, %v6796_v24 }
 0x3f0   :  { %v6799_v13 = vpop.f32.mrb[24].mxu1 }
 0x3f1   :  { %v6800_v44 = vpop.f32.mrb[25].mxu1 }
 0x3f2   :  { %v6801_v30 = vadd.f32 %v6800_v44, %v6799_v13  ;;  %v6802_v17 = vpop.f32.mrb[26].mxu1 }
 0x3f3   :  { %v6803_v2 = vpop.f32.mrb[27].mxu1 }
 0x3f4   :  { %v6765_v1 = vpop.f32.mrb[12].mxu0  ;;  %v6804_v60 = vadd.f32 %v6803_v2, %v6802_v17 }
 0x3f5   :  { %v6766_v15 = vpop.f32.mrb[13].mxu0 }
 0x3f6   :  { %v6767_v12 = vadd.f32 %v6766_v15, %v6765_v1  ;;  %v6768_v5 = vpop.f32.mrb[14].mxu0  ;;  %v6118_v1 = vpop.permute.xlu1 %6117 }
 0x3f7   :  { %v6769_v26 = vpop.f32.mrb[15].mxu0 }
 0x3f8   :  { %v3428_v20 = vadd.f32 %v6795_v51, %v6767_v12  ;;  %v6770_v43 = vadd.f32 %v6769_v26, %v6768_v5  ;;  %v7018_v26 = vld [vmem:[%s11473_s7 + $0x8] sm:$0xff]  }
 0x3fa   :  { %v3431_v48 = vadd.f32 %v6798_v40, %v6770_v43  ;;  %v7020_v43 = vld [vmem:[%s11473_s7 + $0x18] sm:$0xff]  }
 0x3fc   :  { %v6771_v57 = vpop.f32.mrb[16].mxu0 }
 0x3fd   :  { %v6772_v61 = vpop.f32.mrb[17].mxu0 }
 0x3fe   :  { %v6773_v32 = vadd.f32 %v6772_v61, %v6771_v57  ;;  %v6774_v42 = vpop.f32.mrb[18].mxu0  ;;  %v6342_v61 = vpop.permute.xlu1 %6341 }
 0x3ff   :  { %v6775_v14 = vpop.f32.mrb[19].mxu0 }
 0x400   :  { %v3436_v11 = vadd.f32 %v6801_v30, %v6773_v32  ;;  %v6776_v59 = vadd.f32 %v6775_v14, %v6774_v42  ;;  %v6113_v30 = vpop.permute.xlu0 %6112 }
 0x402   :  { %v3439_v35 = vadd.f32 %v6804_v60, %v6776_v59  ;;  %v6352_v42 = vpop.permute.xlu1 %6351 }
 0x404   :  { %v6337_v57 = vpop.permute.xlu0 %6336 }
 0x406   :  { %v6362_v58 = vpop.permute.xlu1 %6361 }
 0x408   :  { %v6347_v32 = vpop.permute.xlu0 %6346 }
 0x49b   :  { %v6849_v37 = vpop.f32.mrb[28].mxu1 }
 0x49c   :  { %v6850_v53 = vpop.f32.mrb[29].mxu1 }
 0x49d   :  { %v6851_v33 = vadd.f32 %v6850_v53, %v6849_v37  ;;  %v6852_v36 = vpop.f32.mrb[30].mxu1 }
 0x49e   :  { %v6853_v52 = vpop.f32.mrb[31].mxu1 }
 0x49f   :  { %v6854_v25 = vadd.f32 %v6853_v52, %v6852_v36 }
 0x4a0   :  { %v6821_v45 = vpop.f32.mrb[20].mxu0 }
 0x4a1   :  { %v6822_v56 = vpop.f32.mrb[21].mxu0 }
 0x4a2   :  { %v6823_v18 = vadd.f32 %v6822_v56, %v6821_v45  ;;  %v6824_v39 = vpop.f32.mrb[22].mxu0 }
 0x4a3   :  { %v6825_v50 = vpop.f32.mrb[23].mxu0  ;;  %v6855_v10 = vpop.f32.mrb[32].mxu1 }
 0x4a4   :  { %v4767_v0 = vadd.f32 %v6823_v18, %v3428_v20  ;;  %v6826_v31 = vadd.f32 %v6825_v50, %v6824_v39  ;;  %v6856_v19 = vpop.f32.mrb[33].mxu1  ;;  %v7019_v20 = vld [vmem:[%s11473_s7 + $0x10] sm:$0xff]   ;;  %v6372_v50 = vpop.permute.xlu1 %6371 }
 0x4a5   :  { %v6857_v22 = vadd.f32 %v6856_v19, %v6855_v10  ;;  %v6858_v28 = vpop.f32.mrb[34].mxu1 }
 0x4a6   :  { %v6096_v47 = vadd.f32 %v6851_v33, %v4767_v0  ;;  %v4768_v55 = vadd.f32 %v6826_v31, %v3431_v48  ;;  %v6859_v27 = vpop.f32.mrb[35].mxu1  ;;  %v7021_v48 = vld [vmem:[%s11474_s10] sm:$0xff]  }
 0x4a7   :  { %v6860_v63 = vadd.f32 %v6859_v27, %v6858_v28  ;;  %6958 = vmatprep.mubr.msk.bf16.mxu1 %vm6454_vm4, %v7021_v48 }
 0x4a8   :  { %v6097_v8 = vadd.f32 %v6854_v25, %v4768_v55  ;;  %v6827_v46 = vpop.f32.mrb[24].mxu0  ;;  %v6120_v7 = vadd.f32 %v6103_v16, %v6096_v47 }
 0x4a9   :  { %v6828_v23 = vpop.f32.mrb[25].mxu0 }
 0x4aa   :  { %v6829_v9 = vadd.f32 %v6828_v23, %v6827_v46  ;;  %v6830_v41 = vpop.f32.mrb[26].mxu0  ;;  %v6121_v34 = vadd.f32 %v6108_v49, %v6097_v8  ;;  %v6124_v24 = vmax.f32 %v6120_v7, 0.0  ;;  %v7022_v8 = vld [vmem:[%s11474_s10 + $0x8] sm:$0xff]   ;;  %v7023_v46 = vld [vmem:[%s11474_s10 + $0x10] sm:$0xff]   ;;  %v7024_v7 = vld [vmem:[%s11474_s10 + $0x18] sm:$0xff]   ;;  %v6402_v23 = vpop.permute.xlu1 %6401 }
 0x4ab   :  { %v6831_v3 = vpop.f32.mrb[27].mxu0 }
 0x4ac   :  { %v4769_v6 = vadd.f32 %v6829_v9, %v3436_v11  ;;  %v6832_v51 = vadd.f32 %v6831_v3, %v6830_v41  ;;  %v6125_v62 = vmax.f32 %v6121_v34, 0.0 }
 0x4ae   :  { %v6098_v40 = vadd.f32 %v6857_v22, %v4769_v6  ;;  %v4770_v13 = vadd.f32 %v6832_v51, %v3439_v35  ;;  %v6128_v44 = vpack.c.bf16 %v6125_v62, %v6124_v24  ;;  %v6357_v35 = vpop.permute.xlu0 %6356  ;;  %v6412_v41 = vpop.permute.xlu1 %6411 }
 0x4b0   :  { %v6099_v17 = vadd.f32 %v6860_v63, %v4770_v13  ;;  %6938 = vmatprep.subr.bf16.mxu0 %v6128_v44  ;;  %v6122_v2 = vadd.f32 %v6113_v30, %v6098_v40 }
 0x4b1   :  { %6939 = vmatpush3.bf16.msra.mxu0 %v6128_v44 }
 0x4b2   :  { %v6123_v60 = vadd.f32 %v6118_v1, %v6099_v17  ;;  %v6126_v15 = vmax.f32 %v6122_v2, 0.0  ;;  %v6367_v25 = vpop.permute.xlu0 %6366  ;;  %v6422_v30 = vpop.permute.xlu1 %6421 }
 0x4b4   :  { %v6127_v12 = vmax.f32 %v6123_v60, 0.0 }
 0x4b6   :  { %v6129_v5 = vpack.c.bf16 %v6127_v12, %v6126_v15  ;;  %v6397_v49 = vpop.permute.xlu0 %6396 }
 0x4b8   :  { %6940 = vmatprep.subr.bf16.mxu0 %v6129_v5 }
 0x4b9   :  { %6941 = vmatpush3.bf16.msra.mxu0 %v6129_v5 }
 0x4ba   :  { %v6407_v9 = vpop.permute.xlu0 %6406 }
 0x4bc   :  { %6943 = vmatmul.mubr.msk.bf16.vlgmr.msra.gmra.mrb[28].mxu0 %vm6256_vm3, %v7018_v26 }
 0x4bd   :  { %6946 = vmatprep.mubr.msk.bf16.mxu0 %vm6256_vm3, %v7019_v20  ;;  %v6432_v20 = vpop.permute.xlu1 %6431 }
 0x4be   :  { %v6417_v51 = vpop.permute.xlu0 %6416 }
 0x4c2   :  { %v6427_v15 = vpop.permute.xlu0 %6426 }
 0x4c4   :  { %6947 = vmatmul.mubr.msk.bf16.gmra.mrb[32].mxu0 %vm6256_vm3, %v7020_v43 }
 0x58f   :  { %v6944_v14 = vpop.f32.mrb[28].mxu0 }
 0x590   :  { %v6376_v11 = vadd.f32 %v6944_v14, %v6347_v32  ;;  %v6303_v59 = vpop.f32.mrb[29].mxu0 }
 0x591   :  { %v6374_v4 = vadd.f32 %v6337_v57, %v6303_v59  ;;  %v6945_v29 = vpop.f32.mrb[30].mxu0 }
 0x592   :  { %v6377_v54 = vadd.f32 %v6945_v29, %v6352_v42  ;;  %v6306_v21 = vpop.f32.mrb[31].mxu0  ;;  %v6384_v37 = vmax.f32 %v6376_v11, 0.0 }
 0x593   :  { %v6375_v38 = vadd.f32 %v6342_v61, %v6306_v21  ;;  %v6382_v33 = vmax.f32 %v6374_v4, 0.0 }
 0x594   :  { %v6385_v53 = vmax.f32 %v6377_v54, 0.0 }
 0x595   :  { %v6383_v36 = vmax.f32 %v6375_v38, 0.0 }
 0x596   :  { %v6391_v52 = vpack.c.bf16 %v6385_v53, %v6384_v37 }
 0x597   :  { %v6390_v45 = vpack.c.bf16 %v6383_v36, %v6382_v33  ;;  %v6948_v56 = vpop.f32.mrb[32].mxu0 }
 0x598   :  { %v6380_v18 = vadd.f32 %v6948_v56, %v6367_v25  ;;  %v6319_v39 = vpop.f32.mrb[33].mxu0 }
 0x599   :  { %v6378_v10 = vadd.f32 %v6357_v35, %v6319_v39  ;;  %v6949_v0 = vpop.f32.mrb[34].mxu0  ;;  %6950 = vmatprep.subr.bf16.mxu1 %v6390_v45 }
 0x59a   :  { %v6381_v31 = vadd.f32 %v6949_v0, %v6372_v50  ;;  %v6322_v19 = vpop.f32.mrb[35].mxu0  ;;  %6951 = vmatpush3.bf16.msra.mxu1 %v6390_v45  ;;  %v6388_v28 = vmax.f32 %v6380_v18, 0.0 }
 0x59b   :  { %v6379_v22 = vadd.f32 %v6362_v58, %v6322_v19  ;;  %6952 = vmatprep.subr.bf16.mxu1 %v6391_v52  ;;  %v6386_v55 = vmax.f32 %v6378_v10, 0.0 }
 0x59c   :  { %v6389_v47 = vmax.f32 %v6381_v31, 0.0 }
 0x59d   :  { %v6387_v27 = vmax.f32 %v6379_v22, 0.0 }
 0x59e   :  { %v6393_v16 = vpack.c.bf16 %v6389_v47, %v6388_v28  ;;  %6953 = vmatpush3.bf16.msra.mxu1 %v6391_v52 }
 0x59f   :  { %v6392_v63 = vpack.c.bf16 %v6387_v27, %v6386_v55 }
 0x5a1   :  { %6954 = vmatprep.subr.bf16.mxu1 %v6392_v63 }
 0x5a2   :  { %6955 = vmatpush3.bf16.msra.mxu1 %v6392_v63 }
 0x5a3   :  { %6956 = vmatprep.subr.bf16.mxu1 %v6393_v16 }
 0x5a6   :  { %6957 = vmatpush3.bf16.msra.mxu1 %v6393_v16 }
 0x5a9   :  { %6959 = vmatmul.mubr.msk.bf16.vlgmr.msra.gmra.mrb[36].mxu1 %vm6454_vm4, %v7022_v8 }
 0x5aa   :  { %6962 = vmatprep.mubr.msk.bf16.mxu1 %vm6454_vm4, %v7023_v46 }
 0x5b1   :  { %6963 = vmatmul.mubr.msk.bf16.gmra.mrb[40].mxu1 %vm6454_vm4, %v7024_v7 }
 0x67c   :  { %v6960_v34 = vpop.f32.mrb[36].mxu1 }
 0x67d   :  { %v6510_v3 = vadd.f32 %v6960_v34, %v6407_v9  ;;  %v6501_v6 = vpop.f32.mrb[37].mxu1 }
 0x67e   :  { %v6502_v24 = vadd.f32 %v6501_v6, %v6397_v49  ;;  %v6961_v62 = vpop.f32.mrb[38].mxu1 }
 0x67f   :  { %v6534_v40 = vmax.f32 %v6510_v3, 0.0  ;;  %v6513_v13 = vadd.f32 %v6961_v62, %v6412_v41  ;;  %v6504_v44 = vpop.f32.mrb[39].mxu1 }
 0x680   :  { %v6532_v17 = vmax.f32 %v6502_v24, 0.0  ;;  %v6505_v2 = vadd.f32 %v6504_v44, %v6402_v23 }
 0x681   :  { %6542 = vst [vmem:[%s11475_s12 + $0x10] sm:$0xff] %v6534_v40  ;;  %v6535_v1 = vmax.f32 %v6513_v13, 0.0 }
 0x682   :  { %6540 = vst [vmem:[%s11475_s12] sm:$0xff] %v6532_v17  ;;  %v6533_v60 = vmax.f32 %v6505_v2, 0.0 }
 0x683   :  { %6543 = vst [vmem:[%s11475_s12 + $0x18] sm:$0xff] %v6535_v1 }
 0x684   :  { %6541 = vst [vmem:[%s11475_s12 + $0x8] sm:$0xff] %v6533_v60  ;;  %v6964_v12 = vpop.f32.mrb[40].mxu1 }
 0x685   :  { %v6526_v5 = vadd.f32 %v6964_v12, %v6427_v15  ;;  %v6517_v26 = vpop.f32.mrb[41].mxu1 }
 0x686   :  { %v6518_v43 = vadd.f32 %v6517_v26, %v6417_v51  ;;  %v6965_v48 = vpop.f32.mrb[42].mxu1 }
 0x687   :  { %v6538_v57 = vmax.f32 %v6526_v5, 0.0  ;;  %v6529_v61 = vadd.f32 %v6965_v48, %v6432_v20  ;;  %v6520_v32 = vpop.f32.mrb[43].mxu1 }
 0x688   :  { %v6536_v42 = vmax.f32 %v6518_v43, 0.0  ;;  %v6521_v14 = vadd.f32 %v6520_v32, %v6422_v30 }
 0x689   :  { %6546 = vst [vmem:[%s11475_s12 + $0x30] sm:$0xff] %v6538_v57  ;;  %v6539_v11 = vmax.f32 %v6529_v61, 0.0 }
 0x68a   :  { %6544 = vst [vmem:[%s11475_s12 + $0x20] sm:$0xff] %v6536_v42  ;;  %v6537_v59 = vmax.f32 %v6521_v14, 0.0 }
 0x68b   :  { %6547 = vst [vmem:[%s11475_s12 + $0x38] sm:$0xff] %v6539_v11 }
 0x68c   :  { %6545 = vst [vmem:[%s11475_s12 + $0x28] sm:$0xff] %v6537_v59 }

</bundles_post_ra>
